<compile_context>
chip_gen: v5e
topology: v5e:2x2
jax: 0.10.0
libtpu: 0.0.40
codegen_flags: <defaults>
</compile_context>

<pallas_src>
import jax
import jax.numpy as jnp
from jax.experimental import pallas as pl
from jax.experimental.pallas import tpu as pltpu


def round_up(x, m):
    return (x + m - 1) // m * m


# --------------------------------------------------------------------------
# Pallas kernels
# --------------------------------------------------------------------------

def make_fused_matmul_kernel(apply_relu: bool, has_residual: bool):
    """out = [relu]( (A @ W) * scale + bias [+ residual] ).

    Grid = (M-tiles, K-tiles); K (axis 1) is the reduction axis.  A/W/residual
    are bf16, accumulation + epilogue are f32, output is bf16 (so the f32
    accumulator scratch is required for precision).
    """
    def kernel(a_ref, w_ref, scale_ref, bias_ref, *rest):
        if has_residual:
            res_ref, o_ref, acc_ref = rest
        else:
            o_ref, acc_ref = rest
        k = pl.program_id(1)

        @pl.when(k == 0)
        def _():
            acc_ref[...] = jnp.zeros_like(acc_ref)

        acc_ref[...] += jnp.dot(a_ref[...], w_ref[...],
                                preferred_element_type=jnp.float32)

        @pl.when(k == pl.num_programs(1) - 1)
        def _():
            y = acc_ref[...] * scale_ref[...] + bias_ref[...]
            if has_residual:
                y = y + res_ref[...].astype(jnp.float32)
            if apply_relu:
                y = jnp.maximum(y, 0.0)
            o_ref[...] = y.astype(o_ref.dtype)

    return kernel


def make_maxpool_kernel(ksize: int):
    # Stride-1 ksize x ksize window max over the (-inf)-padded input, computed by
    # reading shifted windows of the resident block (no stacked copies in HBM).
    # The cheap stride-2 decimation is done outside by a single XLA strided slice.
    def kernel(x_ref, o_ref):
        hq = o_ref.shape[1]
        wq = o_ref.shape[2]
        m = x_ref[0, 0:hq, 0:wq, :]
        for i in range(ksize):
            for j in range(ksize):
                if i == 0 and j == 0:
                    continue
                m = jnp.maximum(m, x_ref[0, i:i + hq, j:j + wq, :])
        o_ref[0] = m
    return kernel


def make_head_kernel(inv_temperature: float):
    # Fused adaptive_avg_pool2d(output_size=1) + Linear + divide-by-temperature.
    def kernel(x_ref, w_ref, b_ref, o_ref):
        feat = jnp.mean(x_ref[...].astype(jnp.float32), axis=1)      # (N, C)
        logits = jnp.dot(feat.astype(jnp.bfloat16), w_ref[...],
                         preferred_element_type=jnp.float32) + b_ref[...]
        o_ref[...] = logits * inv_temperature
    return kernel


# --------------------------------------------------------------------------
# pallas_call wrappers
# --------------------------------------------------------------------------

def fused_matmul(a, w_p, s_p, b_p, n_out, residual=None, relu=True):
    """a: (M, K) bf16, w_p: (Kp, Np) bf16 (pre-padded), scale/bias: (1, Np) f32.

    residual: (M, n_out) bf16 or None.  Returns (M, n_out) bf16.
    """
    M, K = a.shape
    Kp, Np = w_p.shape

    # M tiling: 256-wide tiles for big-M GEMMs (good v6e/v7x MXU occupancy and a
    # parallel axis for v7x's 2 TensorCores); otherwise one 16-aligned tile.
    if M > 256:
        Mp, tm = round_up(M, 256), 256
    else:
        Mp, tm = round_up(M, 16), round_up(M, 16)

    # K tiling: pad only to a multiple of 128; single K step up to 1024,
    # otherwise the largest 128-multiple divisor of Kp that is <= 512.
    if Kp <= 1024:
        tk = Kp
    else:
        nb = Kp // 128
        d = max(dd for dd in (4, 3, 2, 1) if nb % dd == 0)
        tk = d * 128

    # Fast path: skip padding copies when already aligned.
    a_p = a if (Mp == M and Kp == K) else jnp.pad(a, ((0, Mp - M), (0, Kp - K)))

    in_specs = [
        pl.BlockSpec((tm, tk), lambda m, k: (m, k)),
        pl.BlockSpec((tk, Np), lambda m, k: (k, 0)),
        pl.BlockSpec((1, Np), lambda m, k: (0, 0)),
        pl.BlockSpec((1, Np), lambda m, k: (0, 0)),
    ]
    inputs = [a_p, w_p, s_p, b_p]
    has_res = residual is not None
    if has_res:
        r = residual.astype(jnp.bfloat16)
        r_p = r if (Mp == M and Np == n_out) else jnp.pad(
            r, ((0, Mp - M), (0, Np - n_out)))
        in_specs.append(pl.BlockSpec((tm, Np), lambda m, k: (m, 0)))
        inputs.append(r_p)

    # VMEM budget derived from the actual tiles (double-buffered bf16 ins/outs +
    # f32 accumulator), kept <= 48 MiB so it also fits v7x's 64 MiB per-core VMEM.
    est = (2 * (tm * tk * 2 + tk * Np * 2 + 2 * Np * 4)
           + 2 * tm * Np * 2 + tm * Np * 4
           + (2 * tm * Np * 2 if has_res else 0))
    vmem_limit = int(min(48 * 1024 * 1024, max(32 * 1024 * 1024, 4 * est)))

    out = pl.pallas_call(
        make_fused_matmul_kernel(relu, has_res),
        out_shape=jax.ShapeDtypeStruct((Mp, Np), jnp.bfloat16),
        grid=(Mp // tm, Kp // tk),
        in_specs=in_specs,
        out_specs=pl.BlockSpec((tm, Np), lambda m, k: (m, 0)),
        scratch_shapes=[pltpu.VMEM((tm, Np), jnp.float32)],
        compiler_params=pltpu.CompilerParams(
            dimension_semantics=("parallel", "arbitrary"),
            vmem_limit_bytes=vmem_limit),
    )(*inputs)
    return out[:M, :n_out]


def im2col(x, kh, kw, stride, padding):
    # x: NHWC bf16.  Patch feature order is (kh, kw, Cin), matching the weight
    # reshape.  Single bf16 materialization (no extra padded copy afterwards).
    # TODO(synk): fuse this gather into the GEMM kernel to avoid the HBM blowup.
    N, H, W, C = x.shape
    Ho = (H + 2 * padding - kh) // stride + 1
    Wo = (W + 2 * padding - kw) // stride + 1
    xp = jnp.pad(x, ((0, 0), (padding, padding), (padding, padding), (0, 0)))
    views = []
    for i in range(kh):
        for j in range(kw):
            views.append(xp[:, i:i + stride * Ho:stride,
                             j:j + stride * Wo:stride, :])
    patches = jnp.stack(views, axis=3)                    # (N, Ho, Wo, kh*kw, C)
    return patches.reshape(N * Ho * Wo, kh * kw * C), (N, Ho, Wo)


def conv_bn(x, cp, relu=True, residual=None):
    kh, kw = cp['kh'], cp['kw']
    patches, (N, Ho, Wo) = im2col(x, kh, kw, cp['stride'], cp['pad'])
    res = None if residual is None else residual.reshape(N * Ho * Wo, cp['cout'])
    out = fused_matmul(patches, cp['w_p'], cp['s_p'], cp['b_p'], cp['cout'],
                       residual=res, relu=relu)
    return out.reshape(N, Ho, Wo, cp['cout'])


def maxpool2d(x, ksize=3, stride=2, padding=1):
    N, H, W, C = x.shape
    Ho = (H + 2 * padding - ksize) // stride + 1
    Wo = (W + 2 * padding - ksize) // stride + 1
    neg = float(jnp.finfo(x.dtype).min)
    xp = jnp.pad(x, ((0, 0), (padding, padding), (padding, padding), (0, 0)),
                 constant_values=neg)
    Hp, Wp = H + 2 * padding, W + 2 * padding
    Hq, Wq = Hp - ksize + 1, Wp - ksize + 1
    full = pl.pallas_call(
        make_maxpool_kernel(ksize),
        out_shape=jax.ShapeDtypeStruct((N, Hq, Wq, C), x.dtype),
        grid=(N,),
        in_specs=[pl.BlockSpec((1, Hp, Wp, C), lambda n: (n, 0, 0, 0))],
        out_specs=pl.BlockSpec((1, Hq, Wq, C), lambda n: (n, 0, 0, 0)),
        compiler_params=pltpu.CompilerParams(
            dimension_semantics=("parallel",)),
    )(xp)
    # Stride-2 decimation of the stride-1 window max (cheap XLA strided slice).
    return full[:, ::stride, ::stride, :][:, :Ho, :Wo, :]


def head(x, fc_w_p, fc_b_p, num_classes, temperature):
    # x: (N, H, W, C) bf16 -> global-average-pool over (H, W), Linear, /T.
    N, H, W, C = x.shape
    Cp, Np = fc_w_p.shape
    xr = x.reshape(N, H * W, C)
    if Cp != C:
        xr = jnp.pad(xr, ((0, 0), (0, 0), (0, Cp - C)))
    out = pl.pallas_call(
        make_head_kernel(1.0 / float(temperature)),
        out_shape=jax.ShapeDtypeStruct((N, Np), jnp.float32),
    )(xr, fc_w_p, fc_b_p)
    return out[:, :num_classes]


# --------------------------------------------------------------------------
# Parameters (deterministic synthetic init, prepared/padded once at init time)
# --------------------------------------------------------------------------

class KeyGen:
    def __init__(self, key):
        self.key = key

    def next(self):
        self.key, sub = jax.random.split(self.key)
        return sub


def conv_weight(kg, kh, kw, cin, cout):
    fan_in = kh * kw * cin
    # PyTorch layout (Cout, Cin, kh, kw) -> (kh, kw, Cin, Cout)
    w = jax.random.normal(kg.next(), (cout, cin, kh, kw),
                          jnp.float32) * jnp.sqrt(2.0 / fan_in)
    return jnp.transpose(w, (2, 3, 1, 0))


def bn_affine(kg, c, eps=1e-5):
    # Eval-mode BatchNorm folded into (scale, bias).
    gamma = 1.0 + 0.1 * jax.random.normal(kg.next(), (c,), jnp.float32)
    beta = 0.1 * jax.random.normal(kg.next(), (c,), jnp.float32)
    mean = 0.1 * jax.random.normal(kg.next(), (c,), jnp.float32)
    var = 1.0 + 0.1 * jnp.abs(jax.random.normal(kg.next(), (c,), jnp.float32))
    scale = gamma / jnp.sqrt(var + eps)
    bias = beta - mean * scale
    return scale.reshape(1, c), bias.reshape(1, c)


def make_conv(kg, kh, kw, cin, cout, stride, padding):
    # Prepared once (eagerly): bf16 2-D weight padded to (Kp, Np), f32 BN
    # scale/bias padded to (1, Np).  Hoists all per-call weight prep.
    w = conv_weight(kg, kh, kw, cin, cout)
    scale, bias = bn_affine(kg, cout)
    K = kh * kw * cin
    Kp, Np = round_up(K, 128), round_up(cout, 128)
    w2 = w.reshape(K, cout).astype(jnp.bfloat16)
    w_p = jnp.zeros((Kp, Np), jnp.bfloat16).at[:K, :cout].set(w2)
    s_p = jnp.zeros((1, Np), jnp.float32).at[:, :cout].set(scale)
    b_p = jnp.zeros((1, Np), jnp.float32).at[:, :cout].set(bias)
    return dict(w_p=w_p, s_p=s_p, b_p=b_p, kh=kh, kw=kw,
                stride=stride, pad=padding, cout=cout)


def init_params(key, num_blocks=(1, 1, 1, 1), num_classes=100, in_channels=3):
    kg = KeyGen(key)
    p = {}
    p['conv1'] = make_conv(kg, 7, 7, in_channels, 64, stride=2, padding=3)
    inplanes = 64
    for li, (planes, nb, stride) in enumerate(
            zip((64, 128, 256, 512), num_blocks, (1, 2, 2, 2)), start=1):
        blocks = []
        for bi in range(nb):
            s = stride if bi == 0 else 1
            bp = {}
            bp['conv1'] = make_conv(kg, 3, 3, inplanes, planes, stride=s, padding=1)
            bp['conv2'] = make_conv(kg, 3, 3, planes, planes, stride=1, padding=1)
            if s != 1 or inplanes != planes:          # BasicBlock downsample
                bp['down'] = make_conv(kg, 1, 1, inplanes, planes, stride=s, padding=0)
            blocks.append(bp)
            inplanes = planes
        p['layer%d' % li] = blocks
    # nn.Linear weight is (num_classes, 512); store transposed, bf16, padded.
    fc_w = (0.05 * jax.random.normal(kg.next(), (num_classes, 512), jnp.float32)).T
    fc_b = 0.05 * jax.random.normal(kg.next(), (num_classes,), jnp.float32)
    Cp, Np = round_up(512, 128), round_up(num_classes, 128)
    p['fc_w_p'] = jnp.zeros((Cp, Np), jnp.bfloat16).at[:512, :num_classes].set(
        fc_w.astype(jnp.bfloat16))
    p['fc_b_p'] = jnp.zeros((1, Np), jnp.float32).at[:, :num_classes].set(
        fc_b.reshape(1, -1))
    p['num_classes'] = num_classes
    return p


# --------------------------------------------------------------------------
# Forward pass
# --------------------------------------------------------------------------

def basic_block(x, bp):
    identity = x
    out = conv_bn(x, bp['conv1'], relu=True)
    if 'down' in bp:
        identity = conv_bn(x, bp['down'], relu=False)
    # conv2 + bn2 + residual add + relu, fused into a single Pallas GEMM kernel.
    out = conv_bn(out, bp['conv2'], relu=True, residual=identity)
    return out


def resnet_forward(params, x_nchw, temperature=1.0):
    x = jnp.transpose(x_nchw, (0, 2, 3, 1)).astype(jnp.bfloat16)   # NCHW -> NHWC
    x = conv_bn(x, params['conv1'], relu=True)
    x = maxpool2d(x, ksize=3, stride=2, padding=1)
    for lname in ('layer1', 'layer2', 'layer3', 'layer4'):
        for bp in params[lname]:
            x = basic_block(x, bp)
    # TODO(synk): nn.Dropout(p=0.5) is identity at inference; training-mode
    #             stochastic dropout not implemented.
    logits = head(x, params['fc_w_p'], params['fc_b_p'],
                  params['num_classes'], temperature)
    return logits


if __name__ == "__main__":
    key = jax.random.PRNGKey(0)
    pkey, xkey = jax.random.split(key)
    params = init_params(pkey, num_blocks=(1, 1, 1, 1),
                         num_classes=100, in_channels=3)
    # Small input consistent with the module (NCHW, like PyTorch).
    x = jax.random.normal(xkey, (2, 3, 32, 32), jnp.float32)

    fwd = jax.jit(lambda inp: resnet_forward(params, inp, temperature=1.0))
    logits = fwd(x)
    jax.block_until_ready(logits)
    assert logits.shape == (2, 100), logits.shape
    assert bool(jnp.all(jnp.isfinite(logits)))
    print("KERNEL_OK")
</pallas_src>

<mosaic_0001>
module attributes {stable_mosaic.version = 11 : i64} {
  func.func @kernel(%arg0: i32, %arg1: i32, %arg2: memref<256x256xbf16, #tpu.memory_space<vmem>>, %arg3: memref<256x128xbf16, #tpu.memory_space<vmem>>, %arg4: memref<1x128xf32, #tpu.memory_space<vmem>>, %arg5: memref<1x128xf32, #tpu.memory_space<vmem>>, %arg6: memref<256x128xbf16, #tpu.memory_space<vmem>>, %arg7: memref<256x128xf32, #tpu.memory_space<vmem>>) attributes {dimension_semantics = [#tpu.dimension_semantics<parallel>, #tpu.dimension_semantics<arbitrary>], iteration_bounds = array<i64: 2, 1>, scalar_prefetch = 0 : i64, scratch_operands = 1 : i64, tpu.core_type = #tpu.core_type<tc>, window_params = [{transform_indices = @transform_0, window_bounds = array<i64: 256, 256>}, {transform_indices = @transform_1, window_bounds = array<i64: 256, 128>}, {pipeline_mode = #tpu.pipeline_mode<synchronous>, transform_indices = @transform_2, window_bounds = array<i64: 1, 128>}, {pipeline_mode = #tpu.pipeline_mode<synchronous>, transform_indices = @transform_3, window_bounds = array<i64: 1, 128>}, {transform_indices = @transform_4, window_bounds = array<i64: 256, 128>}]} {
    %c0_i32 = arith.constant 0 : i32
    %0 = arith.cmpi eq, %arg1, %c0_i32 : i32
    %1 = arith.extui %0 : i1 to i32
    %c0_i32_0 = arith.constant 0 : i32
    %2 = arith.cmpi ne, %1, %c0_i32_0 : i32
    scf.if %2 {
      %cst_10 = arith.constant 0.000000e+00 : f32
      %12 = vector.broadcast %cst_10 : f32 to vector<256x128xf32>
      %c0_11 = arith.constant 0 : index
      %c0_12 = arith.constant 0 : index
      %13 = vector.load %arg7[%c0_11, %c0_12] : memref<256x128xf32, #tpu.memory_space<vmem>>, vector<256x128xf32>
      tpu.vector_store %arg7[%c0_11, %c0_12], %12 {strides = array<i32>} : memref<256x128xf32, #tpu.memory_space<vmem>>, vector<256x128xf32>,
    } else {
    }
    %c0 = arith.constant 0 : index
    %c0_1 = arith.constant 0 : index
    %3 = vector.load %arg7[%c0, %c0_1] : memref<256x128xf32, #tpu.memory_space<vmem>>, vector<256x128xf32>
    %c0_2 = arith.constant 0 : index
    %c0_3 = arith.constant 0 : index
    %4 = vector.load %arg2[%c0_2, %c0_3] : memref<256x256xbf16, #tpu.memory_space<vmem>>, vector<256x256xbf16>
    %c0_4 = arith.constant 0 : index
    %c0_5 = arith.constant 0 : index
    %5 = vector.load %arg3[%c0_4, %c0_5] : memref<256x128xbf16, #tpu.memory_space<vmem>>, vector<256x128xbf16>
    %cst = arith.constant dense<0.000000e+00> : vector<256x128xf32>
    %6 = tpu.matmul %4, %5, %cst {dimension_numbers = #tpu.dot_dimension_numbers<[1], [0], [0], [1], [0, 0, 1, 1], [], []>} : vector<256x256xbf16>, vector<256x128xbf16>, vector<256x128xf32> -> vector<256x128xf32>
    %7 = arith.addf %3, %6 : vector<256x128xf32>
    %c0_6 = arith.constant 0 : index
    %c0_7 = arith.constant 0 : index
    %8 = vector.load %arg7[%c0_6, %c0_7] : memref<256x128xf32, #tpu.memory_space<vmem>>, vector<256x128xf32>
    tpu.vector_store %arg7[%c0_6, %c0_7], %7 {strides = array<i32>} : memref<256x128xf32, #tpu.memory_space<vmem>>, vector<256x128xf32>,
    %c0_i32_8 = arith.constant 0 : i32
    %9 = arith.cmpi eq, %arg1, %c0_i32_8 : i32
    %10 = arith.extui %9 : i1 to i32
    %c0_i32_9 = arith.constant 0 : i32
    %11 = arith.cmpi ne, %10, %c0_i32_9 : i32
    scf.if %11 {
      %c0_10 = arith.constant 0 : index
      %c0_11 = arith.constant 0 : index
      %12 = vector.load %arg7[%c0_10, %c0_11] : memref<256x128xf32, #tpu.memory_space<vmem>>, vector<256x128xf32>
      %c0_12 = arith.constant 0 : index
      %c0_13 = arith.constant 0 : index
      %13 = vector.load %arg4[%c0_12, %c0_13] : memref<1x128xf32, #tpu.memory_space<vmem>>, vector<1x128xf32>
      %14 = vector.broadcast %13 : vector<1x128xf32> to vector<256x128xf32>
      %15 = arith.mulf %12, %14 : vector<256x128xf32>
      %c0_14 = arith.constant 0 : index
      %c0_15 = arith.constant 0 : index
      %16 = vector.load %arg5[%c0_14, %c0_15] : memref<1x128xf32, #tpu.memory_space<vmem>>, vector<1x128xf32>
      %17 = vector.broadcast %16 : vector<1x128xf32> to vector<256x128xf32>
      %18 = arith.addf %15, %17 : vector<256x128xf32>
      %cst_16 = arith.constant 0.000000e+00 : f32
      %19 = vector.broadcast %cst_16 : f32 to vector<256x128xf32>
      %20 = arith.maximumf %18, %19 : vector<256x128xf32>
      %21 = arith.truncf %20 : vector<256x128xf32> to vector<256x128xbf16>
      %c0_17 = arith.constant 0 : index
      %c0_18 = arith.constant 0 : index
      %22 = vector.load %arg6[%c0_17, %c0_18] : memref<256x128xbf16, #tpu.memory_space<vmem>>, vector<256x128xbf16>
      tpu.vector_store %arg6[%c0_17, %c0_18], %21 {strides = array<i32>} : memref<256x128xbf16, #tpu.memory_space<vmem>>, vector<256x128xbf16>,
    } else {
    }
    return
  }
  func.func @transform_0(%arg0: i32, %arg1: i32) -> (i32, i32) {
    %c0_i32 = arith.constant 0 : i32
    return %arg0, %arg1 : i32, i32
  }
  func.func @transform_1(%arg0: i32, %arg1: i32) -> (i32, i32) {
    %c0_i32 = arith.constant 0 : i32
    %c0_i32_0 = arith.constant 0 : i32
    return %arg1, %c0_i32 : i32, i32
  }
  func.func @transform_2(%arg0: i32, %arg1: i32) -> (i32, i32) {
    %c0_i32 = arith.constant 0 : i32
    %c0_i32_0 = arith.constant 0 : i32
    %c0_i32_1 = arith.constant 0 : i32
    return %c0_i32, %c0_i32_0 : i32, i32
  }
  func.func @transform_3(%arg0: i32, %arg1: i32) -> (i32, i32) {
    %c0_i32 = arith.constant 0 : i32
    %c0_i32_0 = arith.constant 0 : i32
    %c0_i32_1 = arith.constant 0 : i32
    return %c0_i32, %c0_i32_0 : i32, i32
  }
  func.func @transform_4(%arg0: i32, %arg1: i32) -> (i32, i32) {
    %c0_i32 = arith.constant 0 : i32
    %c0_i32_0 = arith.constant 0 : i32
    return %arg0, %c0_i32 : i32, i32
  }
}

module attributes {stable_mosaic.version = 11 : i64} {
  func.func @kernel(%arg0: i32, %arg1: memref<1x18x18x64xbf16, #tpu.memory_space<vmem>>, %arg2: memref<1x16x16x64xbf16, #tpu.memory_space<vmem>>) attributes {dimension_semantics = [#tpu.dimension_semantics<parallel>], iteration_bounds = array<i64: 2>, scalar_prefetch = 0 : i64, scratch_operands = 0 : i64, tpu.core_type = #tpu.core_type<tc>, window_params = [{transform_indices = @transform_0, window_bounds = array<i64: 1, 18, 18, 64>}, {transform_indices = @transform_1, window_bounds = array<i64: 1, 16, 16, 64>}]} {
    %c0 = arith.constant 0 : index
    %c0_0 = arith.constant 0 : index
    %c0_1 = arith.constant 0 : index
    %c0_2 = arith.constant 0 : index
    %0 = vector.load %arg1[%c0, %c0_0, %c0_1, %c0_2] : memref<1x18x18x64xbf16, #tpu.memory_space<vmem>>, vector<1x16x16x64xbf16>
    %1 = vector.shape_cast %0 : vector<1x16x16x64xbf16> to vector<16x16x64xbf16>
    %c0_3 = arith.constant 0 : index
    %c0_4 = arith.constant 0 : index
    %c1 = arith.constant 1 : index
    %c0_5 = arith.constant 0 : index
    %2 = vector.load %arg1[%c0_3, %c0_4, %c1, %c0_5] : memref<1x18x18x64xbf16, #tpu.memory_space<vmem>>, vector<1x16x16x64xbf16>
    %3 = vector.shape_cast %2 : vector<1x16x16x64xbf16> to vector<16x16x64xbf16>
    %4 = arith.maximumf %1, %3 : vector<16x16x64xbf16>
    %c0_6 = arith.constant 0 : index
    %c0_7 = arith.constant 0 : index
    %c2 = arith.constant 2 : index
    %c0_8 = arith.constant 0 : index
    %5 = vector.load %arg1[%c0_6, %c0_7, %c2, %c0_8] : memref<1x18x18x64xbf16, #tpu.memory_space<vmem>>, vector<1x16x16x64xbf16>
    %6 = vector.shape_cast %5 : vector<1x16x16x64xbf16> to vector<16x16x64xbf16>
    %7 = arith.maximumf %4, %6 : vector<16x16x64xbf16>
    %c0_9 = arith.constant 0 : index
    %c1_10 = arith.constant 1 : index
    %c0_11 = arith.constant 0 : index
    %c0_12 = arith.constant 0 : index
    %8 = vector.load %arg1[%c0_9, %c1_10, %c0_11, %c0_12] : memref<1x18x18x64xbf16, #tpu.memory_space<vmem>>, vector<1x16x16x64xbf16>
    %9 = vector.shape_cast %8 : vector<1x16x16x64xbf16> to vector<16x16x64xbf16>
    %10 = arith.maximumf %7, %9 : vector<16x16x64xbf16>
    %c0_13 = arith.constant 0 : index
    %c1_14 = arith.constant 1 : index
    %c1_15 = arith.constant 1 : index
    %c0_16 = arith.constant 0 : index
    %11 = vector.load %arg1[%c0_13, %c1_14, %c1_15, %c0_16] : memref<1x18x18x64xbf16, #tpu.memory_space<vmem>>, vector<1x16x16x64xbf16>
    %12 = vector.shape_cast %11 : vector<1x16x16x64xbf16> to vector<16x16x64xbf16>
    %13 = arith.maximumf %10, %12 : vector<16x16x64xbf16>
    %c0_17 = arith.constant 0 : index
    %c1_18 = arith.constant 1 : index
    %c2_19 = arith.constant 2 : index
    %c0_20 = arith.constant 0 : index
    %14 = vector.load %arg1[%c0_17, %c1_18, %c2_19, %c0_20] : memref<1x18x18x64xbf16, #tpu.memory_space<vmem>>, vector<1x16x16x64xbf16>
    %15 = vector.shape_cast %14 : vector<1x16x16x64xbf16> to vector<16x16x64xbf16>
    %16 = arith.maximumf %13, %15 : vector<16x16x64xbf16>
    %c0_21 = arith.constant 0 : index
    %c2_22 = arith.constant 2 : index
    %c0_23 = arith.constant 0 : index
    %c0_24 = arith.constant 0 : index
    %17 = vector.load %arg1[%c0_21, %c2_22, %c0_23, %c0_24] : memref<1x18x18x64xbf16, #tpu.memory_space<vmem>>, vector<1x16x16x64xbf16>
    %18 = vector.shape_cast %17 : vector<1x16x16x64xbf16> to vector<16x16x64xbf16>
    %19 = arith.maximumf %16, %18 : vector<16x16x64xbf16>
    %c0_25 = arith.constant 0 : index
    %c2_26 = arith.constant 2 : index
    %c1_27 = arith.constant 1 : index
    %c0_28 = arith.constant 0 : index
    %20 = vector.load %arg1[%c0_25, %c2_26, %c1_27, %c0_28] : memref<1x18x18x64xbf16, #tpu.memory_space<vmem>>, vector<1x16x16x64xbf16>
    %21 = vector.shape_cast %20 : vector<1x16x16x64xbf16> to vector<16x16x64xbf16>
    %22 = arith.maximumf %19, %21 : vector<16x16x64xbf16>
    %c0_29 = arith.constant 0 : index
    %c2_30 = arith.constant 2 : index
    %c2_31 = arith.constant 2 : index
    %c0_32 = arith.constant 0 : index
    %23 = vector.load %arg1[%c0_29, %c2_30, %c2_31, %c0_32] : memref<1x18x18x64xbf16, #tpu.memory_space<vmem>>, vector<1x16x16x64xbf16>
    %24 = vector.shape_cast %23 : vector<1x16x16x64xbf16> to vector<16x16x64xbf16>
    %25 = arith.maximumf %22, %24 : vector<16x16x64xbf16>
    %c0_33 = arith.constant 0 : index
    %c0_34 = arith.constant 0 : index
    %c0_35 = arith.constant 0 : index
    %c0_36 = arith.constant 0 : index
    %26 = vector.load %arg2[%c0_33, %c0_34, %c0_35, %c0_36] : memref<1x16x16x64xbf16, #tpu.memory_space<vmem>>, vector<1x16x16x64xbf16>
    %27 = vector.shape_cast %26 : vector<1x16x16x64xbf16> to vector<16x16x64xbf16>
    %28 = vector.shape_cast %25 : vector<16x16x64xbf16> to vector<1x16x16x64xbf16>
    tpu.vector_store %arg2[%c0_33, %c0_34, %c0_35, %c0_36], %28 {strides = array<i32>} : memref<1x16x16x64xbf16, #tpu.memory_space<vmem>>, vector<1x16x16x64xbf16>,
    return
  }
  func.func @transform_0(%arg0: i32) -> (i32, i32, i32, i32) {
    %c0_i32 = arith.constant 0 : i32
    %c0_i32_0 = arith.constant 0 : i32
    %c0_i32_1 = arith.constant 0 : i32
    %c0_i32_2 = arith.constant 0 : i32
    return %arg0, %c0_i32, %c0_i32_0, %c0_i32_1 : i32, i32, i32, i32
  }
  func.func @transform_1(%arg0: i32) -> (i32, i32, i32, i32) {
    %c0_i32 = arith.constant 0 : i32
    %c0_i32_0 = arith.constant 0 : i32
    %c0_i32_1 = arith.constant 0 : i32
    %c0_i32_2 = arith.constant 0 : i32
    return %arg0, %c0_i32, %c0_i32_0, %c0_i32_1 : i32, i32, i32, i32
  }
}

module attributes {stable_mosaic.version = 11 : i64} {
  func.func @kernel(%arg0: i32, %arg1: i32, %arg2: memref<128x640xbf16, #tpu.memory_space<vmem>>, %arg3: memref<640x128xbf16, #tpu.memory_space<vmem>>, %arg4: memref<1x128xf32, #tpu.memory_space<vmem>>, %arg5: memref<1x128xf32, #tpu.memory_space<vmem>>, %arg6: memref<128x128xbf16, #tpu.memory_space<vmem>>, %arg7: memref<128x128xf32, #tpu.memory_space<vmem>>) attributes {dimension_semantics = [#tpu.dimension_semantics<parallel>, #tpu.dimension_semantics<arbitrary>], iteration_bounds = array<i64: 1, 1>, scalar_prefetch = 0 : i64, scratch_operands = 1 : i64, tpu.core_type = #tpu.core_type<tc>, window_params = [{transform_indices = @transform_0, window_bounds = array<i64: 128, 640>}, {transform_indices = @transform_1, window_bounds = array<i64: 640, 128>}, {pipeline_mode = #tpu.pipeline_mode<synchronous>, transform_indices = @transform_2, window_bounds = array<i64: 1, 128>}, {pipeline_mode = #tpu.pipeline_mode<synchronous>, transform_indices = @transform_3, window_bounds = array<i64: 1, 128>}, {transform_indices = @transform_4, window_bounds = array<i64: 128, 128>}]} {
    %c0_i32 = arith.constant 0 : i32
    %0 = arith.cmpi eq, %arg1, %c0_i32 : i32
    %1 = arith.extui %0 : i1 to i32
    %c0_i32_0 = arith.constant 0 : i32
    %2 = arith.cmpi ne, %1, %c0_i32_0 : i32
    scf.if %2 {
      %cst_10 = arith.constant 0.000000e+00 : f32
      %12 = vector.broadcast %cst_10 : f32 to vector<128x128xf32>
      %c0_11 = arith.constant 0 : index
      %c0_12 = arith.constant 0 : index
      %13 = vector.load %arg7[%c0_11, %c0_12] : memref<128x128xf32, #tpu.memory_space<vmem>>, vector<128x128xf32>
      tpu.vector_store %arg7[%c0_11, %c0_12], %12 {strides = array<i32>} : memref<128x128xf32, #tpu.memory_space<vmem>>, vector<128x128xf32>,
    } else {
    }
    %c0 = arith.constant 0 : index
    %c0_1 = arith.constant 0 : index
    %3 = vector.load %arg7[%c0, %c0_1] : memref<128x128xf32, #tpu.memory_space<vmem>>, vector<128x128xf32>
    %c0_2 = arith.constant 0 : index
    %c0_3 = arith.constant 0 : index
    %4 = vector.load %arg2[%c0_2, %c0_3] : memref<128x640xbf16, #tpu.memory_space<vmem>>, vector<128x640xbf16>
    %c0_4 = arith.constant 0 : index
    %c0_5 = arith.constant 0 : index
    %5 = vector.load %arg3[%c0_4, %c0_5] : memref<640x128xbf16, #tpu.memory_space<vmem>>, vector<640x128xbf16>
    %cst = arith.constant dense<0.000000e+00> : vector<128x128xf32>
    %6 = tpu.matmul %4, %5, %cst {dimension_numbers = #tpu.dot_dimension_numbers<[1], [0], [0], [1], [0, 0, 1, 1], [], []>} : vector<128x640xbf16>, vector<640x128xbf16>, vector<128x128xf32> -> vector<128x128xf32>
    %7 = arith.addf %3, %6 : vector<128x128xf32>
    %c0_6 = arith.constant 0 : index
    %c0_7 = arith.constant 0 : index
    %8 = vector.load %arg7[%c0_6, %c0_7] : memref<128x128xf32, #tpu.memory_space<vmem>>, vector<128x128xf32>
    tpu.vector_store %arg7[%c0_6, %c0_7], %7 {strides = array<i32>} : memref<128x128xf32, #tpu.memory_space<vmem>>, vector<128x128xf32>,
    %c0_i32_8 = arith.constant 0 : i32
    %9 = arith.cmpi eq, %arg1, %c0_i32_8 : i32
    %10 = arith.extui %9 : i1 to i32
    %c0_i32_9 = arith.constant 0 : i32
    %11 = arith.cmpi ne, %10, %c0_i32_9 : i32
    scf.if %11 {
      %c0_10 = arith.constant 0 : index
      %c0_11 = arith.constant 0 : index
      %12 = vector.load %arg7[%c0_10, %c0_11] : memref<128x128xf32, #tpu.memory_space<vmem>>, vector<128x128xf32>
      %c0_12 = arith.constant 0 : index
      %c0_13 = arith.constant 0 : index
      %13 = vector.load %arg4[%c0_12, %c0_13] : memref<1x128xf32, #tpu.memory_space<vmem>>, vector<1x128xf32>
      %14 = vector.broadcast %13 : vector<1x128xf32> to vector<128x128xf32>
      %15 = arith.mulf %12, %14 : vector<128x128xf32>
      %c0_14 = arith.constant 0 : index
      %c0_15 = arith.constant 0 : index
      %16 = vector.load %arg5[%c0_14, %c0_15] : memref<1x128xf32, #tpu.memory_space<vmem>>, vector<1x128xf32>
      %17 = vector.broadcast %16 : vector<1x128xf32> to vector<128x128xf32>
      %18 = arith.addf %15, %17 : vector<128x128xf32>
      %cst_16 = arith.constant 0.000000e+00 : f32
      %19 = vector.broadcast %cst_16 : f32 to vector<128x128xf32>
      %20 = arith.maximumf %18, %19 : vector<128x128xf32>
      %21 = arith.truncf %20 : vector<128x128xf32> to vector<128x128xbf16>
      %c0_17 = arith.constant 0 : index
      %c0_18 = arith.constant 0 : index
      %22 = vector.load %arg6[%c0_17, %c0_18] : memref<128x128xbf16, #tpu.memory_space<vmem>>, vector<128x128xbf16>
      tpu.vector_store %arg6[%c0_17, %c0_18], %21 {strides = array<i32>} : memref<128x128xbf16, #tpu.memory_space<vmem>>, vector<128x128xbf16>,
    } else {
    }
    return
  }
  func.func @transform_0(%arg0: i32, %arg1: i32) -> (i32, i32) {
    %c0_i32 = arith.constant 0 : i32
    return %arg0, %arg1 : i32, i32
  }
  func.func @transform_1(%arg0: i32, %arg1: i32) -> (i32, i32) {
    %c0_i32 = arith.constant 0 : i32
    %c0_i32_0 = arith.constant 0 : i32
    return %arg1, %c0_i32 : i32, i32
  }
  func.func @transform_2(%arg0: i32, %arg1: i32) -> (i32, i32) {
    %c0_i32 = arith.constant 0 : i32
    %c0_i32_0 = arith.constant 0 : i32
    %c0_i32_1 = arith.constant 0 : i32
    return %c0_i32, %c0_i32_0 : i32, i32
  }
  func.func @transform_3(%arg0: i32, %arg1: i32) -> (i32, i32) {
    %c0_i32 = arith.constant 0 : i32
    %c0_i32_0 = arith.constant 0 : i32
    %c0_i32_1 = arith.constant 0 : i32
    return %c0_i32, %c0_i32_0 : i32, i32
  }
  func.func @transform_4(%arg0: i32, %arg1: i32) -> (i32, i32) {
    %c0_i32 = arith.constant 0 : i32
    %c0_i32_0 = arith.constant 0 : i32
    return %arg0, %c0_i32 : i32, i32
  }
}

module attributes {stable_mosaic.version = 11 : i64} {
  func.func @kernel(%arg0: i32, %arg1: i32, %arg2: memref<128x640xbf16, #tpu.memory_space<vmem>>, %arg3: memref<640x128xbf16, #tpu.memory_space<vmem>>, %arg4: memref<1x128xf32, #tpu.memory_space<vmem>>, %arg5: memref<1x128xf32, #tpu.memory_space<vmem>>, %arg6: memref<128x128xbf16, #tpu.memory_space<vmem>>, %arg7: memref<128x128xbf16, #tpu.memory_space<vmem>>, %arg8: memref<128x128xf32, #tpu.memory_space<vmem>>) attributes {dimension_semantics = [#tpu.dimension_semantics<parallel>, #tpu.dimension_semantics<arbitrary>], iteration_bounds = array<i64: 1, 1>, scalar_prefetch = 0 : i64, scratch_operands = 1 : i64, tpu.core_type = #tpu.core_type<tc>, window_params = [{transform_indices = @transform_0, window_bounds = array<i64: 128, 640>}, {transform_indices = @transform_1, window_bounds = array<i64: 640, 128>}, {pipeline_mode = #tpu.pipeline_mode<synchronous>, transform_indices = @transform_2, window_bounds = array<i64: 1, 128>}, {pipeline_mode = #tpu.pipeline_mode<synchronous>, transform_indices = @transform_3, window_bounds = array<i64: 1, 128>}, {transform_indices = @transform_4, window_bounds = array<i64: 128, 128>}, {transform_indices = @transform_5, window_bounds = array<i64: 128, 128>}]} {
    %c0_i32 = arith.constant 0 : i32
    %0 = arith.cmpi eq, %arg1, %c0_i32 : i32
    %1 = arith.extui %0 : i1 to i32
    %c0_i32_0 = arith.constant 0 : i32
    %2 = arith.cmpi ne, %1, %c0_i32_0 : i32
    scf.if %2 {
      %cst_10 = arith.constant 0.000000e+00 : f32
      %12 = vector.broadcast %cst_10 : f32 to vector<128x128xf32>
      %c0_11 = arith.constant 0 : index
      %c0_12 = arith.constant 0 : index
      %13 = vector.load %arg8[%c0_11, %c0_12] : memref<128x128xf32, #tpu.memory_space<vmem>>, vector<128x128xf32>
      tpu.vector_store %arg8[%c0_11, %c0_12], %12 {strides = array<i32>} : memref<128x128xf32, #tpu.memory_space<vmem>>, vector<128x128xf32>,
    } else {
    }
    %c0 = arith.constant 0 : index
    %c0_1 = arith.constant 0 : index
    %3 = vector.load %arg8[%c0, %c0_1] : memref<128x128xf32, #tpu.memory_space<vmem>>, vector<128x128xf32>
    %c0_2 = arith.constant 0 : index
    %c0_3 = arith.constant 0 : index
    %4 = vector.load %arg2[%c0_2, %c0_3] : memref<128x640xbf16, #tpu.memory_space<vmem>>, vector<128x640xbf16>
    %c0_4 = arith.constant 0 : index
    %c0_5 = arith.constant 0 : index
    %5 = vector.load %arg3[%c0_4, %c0_5] : memref<640x128xbf16, #tpu.memory_space<vmem>>, vector<640x128xbf16>
    %cst = arith.constant dense<0.000000e+00> : vector<128x128xf32>
    %6 = tpu.matmul %4, %5, %cst {dimension_numbers = #tpu.dot_dimension_numbers<[1], [0], [0], [1], [0, 0, 1, 1], [], []>} : vector<128x640xbf16>, vector<640x128xbf16>, vector<128x128xf32> -> vector<128x128xf32>
    %7 = arith.addf %3, %6 : vector<128x128xf32>
    %c0_6 = arith.constant 0 : index
    %c0_7 = arith.constant 0 : index
    %8 = vector.load %arg8[%c0_6, %c0_7] : memref<128x128xf32, #tpu.memory_space<vmem>>, vector<128x128xf32>
    tpu.vector_store %arg8[%c0_6, %c0_7], %7 {strides = array<i32>} : memref<128x128xf32, #tpu.memory_space<vmem>>, vector<128x128xf32>,
    %c0_i32_8 = arith.constant 0 : i32
    %9 = arith.cmpi eq, %arg1, %c0_i32_8 : i32
    %10 = arith.extui %9 : i1 to i32
    %c0_i32_9 = arith.constant 0 : i32
    %11 = arith.cmpi ne, %10, %c0_i32_9 : i32
    scf.if %11 {
      %c0_10 = arith.constant 0 : index
      %c0_11 = arith.constant 0 : index
      %12 = vector.load %arg8[%c0_10, %c0_11] : memref<128x128xf32, #tpu.memory_space<vmem>>, vector<128x128xf32>
      %c0_12 = arith.constant 0 : index
      %c0_13 = arith.constant 0 : index
      %13 = vector.load %arg4[%c0_12, %c0_13] : memref<1x128xf32, #tpu.memory_space<vmem>>, vector<1x128xf32>
      %14 = vector.broadcast %13 : vector<1x128xf32> to vector<128x128xf32>
      %15 = arith.mulf %12, %14 : vector<128x128xf32>
      %c0_14 = arith.constant 0 : index
      %c0_15 = arith.constant 0 : index
      %16 = vector.load %arg5[%c0_14, %c0_15] : memref<1x128xf32, #tpu.memory_space<vmem>>, vector<1x128xf32>
      %17 = vector.broadcast %16 : vector<1x128xf32> to vector<128x128xf32>
      %18 = arith.addf %15, %17 : vector<128x128xf32>
      %c0_16 = arith.constant 0 : index
      %c0_17 = arith.constant 0 : index
      %19 = vector.load %arg6[%c0_16, %c0_17] : memref<128x128xbf16, #tpu.memory_space<vmem>>, vector<128x128xbf16>
      %20 = arith.extf %19 : vector<128x128xbf16> to vector<128x128xf32>
      %21 = arith.addf %18, %20 : vector<128x128xf32>
      %cst_18 = arith.constant 0.000000e+00 : f32
      %22 = vector.broadcast %cst_18 : f32 to vector<128x128xf32>
      %23 = arith.maximumf %21, %22 : vector<128x128xf32>
      %24 = arith.truncf %23 : vector<128x128xf32> to vector<128x128xbf16>
      %c0_19 = arith.constant 0 : index
      %c0_20 = arith.constant 0 : index
      %25 = vector.load %arg7[%c0_19, %c0_20] : memref<128x128xbf16, #tpu.memory_space<vmem>>, vector<128x128xbf16>
      tpu.vector_store %arg7[%c0_19, %c0_20], %24 {strides = array<i32>} : memref<128x128xbf16, #tpu.memory_space<vmem>>, vector<128x128xbf16>,
    } else {
    }
    return
  }
  func.func @transform_0(%arg0: i32, %arg1: i32) -> (i32, i32) {
    %c0_i32 = arith.constant 0 : i32
    return %arg0, %arg1 : i32, i32
  }
  func.func @transform_1(%arg0: i32, %arg1: i32) -> (i32, i32) {
    %c0_i32 = arith.constant 0 : i32
    %c0_i32_0 = arith.constant 0 : i32
    return %arg1, %c0_i32 : i32, i32
  }
  func.func @transform_2(%arg0: i32, %arg1: i32) -> (i32, i32) {
    %c0_i32 = arith.constant 0 : i32
    %c0_i32_0 = arith.constant 0 : i32
    %c0_i32_1 = arith.constant 0 : i32
    return %c0_i32, %c0_i32_0 : i32, i32
  }
  func.func @transform_3(%arg0: i32, %arg1: i32) -> (i32, i32) {
    %c0_i32 = arith.constant 0 : i32
    %c0_i32_0 = arith.constant 0 : i32
    %c0_i32_1 = arith.constant 0 : i32
    return %c0_i32, %c0_i32_0 : i32, i32
  }
  func.func @transform_4(%arg0: i32, %arg1: i32) -> (i32, i32) {
    %c0_i32 = arith.constant 0 : i32
    %c0_i32_0 = arith.constant 0 : i32
    return %arg0, %c0_i32 : i32, i32
  }
  func.func @transform_5(%arg0: i32, %arg1: i32) -> (i32, i32) {
    %c0_i32 = arith.constant 0 : i32
    %c0_i32_0 = arith.constant 0 : i32
    return %arg0, %c0_i32 : i32, i32
  }
}

module attributes {stable_mosaic.version = 11 : i64} {
  func.func @kernel(%arg0: i32, %arg1: i32, %arg2: memref<32x640xbf16, #tpu.memory_space<vmem>>, %arg3: memref<640x128xbf16, #tpu.memory_space<vmem>>, %arg4: memref<1x128xf32, #tpu.memory_space<vmem>>, %arg5: memref<1x128xf32, #tpu.memory_space<vmem>>, %arg6: memref<32x128xbf16, #tpu.memory_space<vmem>>, %arg7: memref<32x128xf32, #tpu.memory_space<vmem>>) attributes {dimension_semantics = [#tpu.dimension_semantics<parallel>, #tpu.dimension_semantics<arbitrary>], iteration_bounds = array<i64: 1, 1>, scalar_prefetch = 0 : i64, scratch_operands = 1 : i64, tpu.core_type = #tpu.core_type<tc>, window_params = [{transform_indices = @transform_0, window_bounds = array<i64: 32, 640>}, {transform_indices = @transform_1, window_bounds = array<i64: 640, 128>}, {pipeline_mode = #tpu.pipeline_mode<synchronous>, transform_indices = @transform_2, window_bounds = array<i64: 1, 128>}, {pipeline_mode = #tpu.pipeline_mode<synchronous>, transform_indices = @transform_3, window_bounds = array<i64: 1, 128>}, {transform_indices = @transform_4, window_bounds = array<i64: 32, 128>}]} {
    %c0_i32 = arith.constant 0 : i32
    %0 = arith.cmpi eq, %arg1, %c0_i32 : i32
    %1 = arith.extui %0 : i1 to i32
    %c0_i32_0 = arith.constant 0 : i32
    %2 = arith.cmpi ne, %1, %c0_i32_0 : i32
    scf.if %2 {
      %cst_10 = arith.constant 0.000000e+00 : f32
      %12 = vector.broadcast %cst_10 : f32 to vector<32x128xf32>
      %c0_11 = arith.constant 0 : index
      %c0_12 = arith.constant 0 : index
      %13 = vector.load %arg7[%c0_11, %c0_12] : memref<32x128xf32, #tpu.memory_space<vmem>>, vector<32x128xf32>
      tpu.vector_store %arg7[%c0_11, %c0_12], %12 {strides = array<i32>} : memref<32x128xf32, #tpu.memory_space<vmem>>, vector<32x128xf32>,
    } else {
    }
    %c0 = arith.constant 0 : index
    %c0_1 = arith.constant 0 : index
    %3 = vector.load %arg7[%c0, %c0_1] : memref<32x128xf32, #tpu.memory_space<vmem>>, vector<32x128xf32>
    %c0_2 = arith.constant 0 : index
    %c0_3 = arith.constant 0 : index
    %4 = vector.load %arg2[%c0_2, %c0_3] : memref<32x640xbf16, #tpu.memory_space<vmem>>, vector<32x640xbf16>
    %c0_4 = arith.constant 0 : index
    %c0_5 = arith.constant 0 : index
    %5 = vector.load %arg3[%c0_4, %c0_5] : memref<640x128xbf16, #tpu.memory_space<vmem>>, vector<640x128xbf16>
    %cst = arith.constant dense<0.000000e+00> : vector<32x128xf32>
    %6 = tpu.matmul %4, %5, %cst {dimension_numbers = #tpu.dot_dimension_numbers<[1], [0], [0], [1], [0, 0, 1, 1], [], []>} : vector<32x640xbf16>, vector<640x128xbf16>, vector<32x128xf32> -> vector<32x128xf32>
    %7 = arith.addf %3, %6 : vector<32x128xf32>
    %c0_6 = arith.constant 0 : index
    %c0_7 = arith.constant 0 : index
    %8 = vector.load %arg7[%c0_6, %c0_7] : memref<32x128xf32, #tpu.memory_space<vmem>>, vector<32x128xf32>
    tpu.vector_store %arg7[%c0_6, %c0_7], %7 {strides = array<i32>} : memref<32x128xf32, #tpu.memory_space<vmem>>, vector<32x128xf32>,
    %c0_i32_8 = arith.constant 0 : i32
    %9 = arith.cmpi eq, %arg1, %c0_i32_8 : i32
    %10 = arith.extui %9 : i1 to i32
    %c0_i32_9 = arith.constant 0 : i32
    %11 = arith.cmpi ne, %10, %c0_i32_9 : i32
    scf.if %11 {
      %c0_10 = arith.constant 0 : index
      %c0_11 = arith.constant 0 : index
      %12 = vector.load %arg7[%c0_10, %c0_11] : memref<32x128xf32, #tpu.memory_space<vmem>>, vector<32x128xf32>
      %c0_12 = arith.constant 0 : index
      %c0_13 = arith.constant 0 : index
      %13 = vector.load %arg4[%c0_12, %c0_13] : memref<1x128xf32, #tpu.memory_space<vmem>>, vector<1x128xf32>
      %14 = vector.broadcast %13 : vector<1x128xf32> to vector<32x128xf32>
      %15 = arith.mulf %12, %14 : vector<32x128xf32>
      %c0_14 = arith.constant 0 : index
      %c0_15 = arith.constant 0 : index
      %16 = vector.load %arg5[%c0_14, %c0_15] : memref<1x128xf32, #tpu.memory_space<vmem>>, vector<1x128xf32>
      %17 = vector.broadcast %16 : vector<1x128xf32> to vector<32x128xf32>
      %18 = arith.addf %15, %17 : vector<32x128xf32>
      %cst_16 = arith.constant 0.000000e+00 : f32
      %19 = vector.broadcast %cst_16 : f32 to vector<32x128xf32>
      %20 = arith.maximumf %18, %19 : vector<32x128xf32>
      %21 = arith.truncf %20 : vector<32x128xf32> to vector<32x128xbf16>
      %c0_17 = arith.constant 0 : index
      %c0_18 = arith.constant 0 : index
      %22 = vector.load %arg6[%c0_17, %c0_18] : memref<32x128xbf16, #tpu.memory_space<vmem>>, vector<32x128xbf16>
      tpu.vector_store %arg6[%c0_17, %c0_18], %21 {strides = array<i32>} : memref<32x128xbf16, #tpu.memory_space<vmem>>, vector<32x128xbf16>,
    } else {
    }
    return
  }
  func.func @transform_0(%arg0: i32, %arg1: i32) -> (i32, i32) {
    %c0_i32 = arith.constant 0 : i32
    return %arg0, %arg1 : i32, i32
  }
  func.func @transform_1(%arg0: i32, %arg1: i32) -> (i32, i32) {
    %c0_i32 = arith.constant 0 : i32
    %c0_i32_0 = arith.constant 0 : i32
    return %arg1, %c0_i32 : i32, i32
  }
  func.func @transform_2(%arg0: i32, %arg1: i32) -> (i32, i32) {
    %c0_i32 = arith.constant 0 : i32
    %c0_i32_0 = arith.constant 0 : i32
    %c0_i32_1 = arith.constant 0 : i32
    return %c0_i32, %c0_i32_0 : i32, i32
  }
  func.func @transform_3(%arg0: i32, %arg1: i32) -> (i32, i32) {
    %c0_i32 = arith.constant 0 : i32
    %c0_i32_0 = arith.constant 0 : i32
    %c0_i32_1 = arith.constant 0 : i32
    return %c0_i32, %c0_i32_0 : i32, i32
  }
  func.func @transform_4(%arg0: i32, %arg1: i32) -> (i32, i32) {
    %c0_i32 = arith.constant 0 : i32
    %c0_i32_0 = arith.constant 0 : i32
    return %arg0, %c0_i32 : i32, i32
  }
}

module attributes {stable_mosaic.version = 11 : i64} {
  func.func @kernel(%arg0: i32, %arg1: i32, %arg2: memref<32x128xbf16, #tpu.memory_space<vmem>>, %arg3: memref<128x128xbf16, #tpu.memory_space<vmem>>, %arg4: memref<1x128xf32, #tpu.memory_space<vmem>>, %arg5: memref<1x128xf32, #tpu.memory_space<vmem>>, %arg6: memref<32x128xbf16, #tpu.memory_space<vmem>>, %arg7: memref<32x128xf32, #tpu.memory_space<vmem>>) attributes {dimension_semantics = [#tpu.dimension_semantics<parallel>, #tpu.dimension_semantics<arbitrary>], iteration_bounds = array<i64: 1, 1>, scalar_prefetch = 0 : i64, scratch_operands = 1 : i64, tpu.core_type = #tpu.core_type<tc>, window_params = [{transform_indices = @transform_0, window_bounds = array<i64: 32, 128>}, {transform_indices = @transform_1, window_bounds = array<i64: 128, 128>}, {pipeline_mode = #tpu.pipeline_mode<synchronous>, transform_indices = @transform_2, window_bounds = array<i64: 1, 128>}, {pipeline_mode = #tpu.pipeline_mode<synchronous>, transform_indices = @transform_3, window_bounds = array<i64: 1, 128>}, {transform_indices = @transform_4, window_bounds = array<i64: 32, 128>}]} {
    %c0_i32 = arith.constant 0 : i32
    %0 = arith.cmpi eq, %arg1, %c0_i32 : i32
    %1 = arith.extui %0 : i1 to i32
    %c0_i32_0 = arith.constant 0 : i32
    %2 = arith.cmpi ne, %1, %c0_i32_0 : i32
    scf.if %2 {
      %cst_10 = arith.constant 0.000000e+00 : f32
      %12 = vector.broadcast %cst_10 : f32 to vector<32x128xf32>
      %c0_11 = arith.constant 0 : index
      %c0_12 = arith.constant 0 : index
      %13 = vector.load %arg7[%c0_11, %c0_12] : memref<32x128xf32, #tpu.memory_space<vmem>>, vector<32x128xf32>
      tpu.vector_store %arg7[%c0_11, %c0_12], %12 {strides = array<i32>} : memref<32x128xf32, #tpu.memory_space<vmem>>, vector<32x128xf32>,
    } else {
    }
    %c0 = arith.constant 0 : index
    %c0_1 = arith.constant 0 : index
    %3 = vector.load %arg7[%c0, %c0_1] : memref<32x128xf32, #tpu.memory_space<vmem>>, vector<32x128xf32>
    %c0_2 = arith.constant 0 : index
    %c0_3 = arith.constant 0 : index
    %4 = vector.load %arg2[%c0_2, %c0_3] : memref<32x128xbf16, #tpu.memory_space<vmem>>, vector<32x128xbf16>
    %c0_4 = arith.constant 0 : index
    %c0_5 = arith.constant 0 : index
    %5 = vector.load %arg3[%c0_4, %c0_5] : memref<128x128xbf16, #tpu.memory_space<vmem>>, vector<128x128xbf16>
    %cst = arith.constant dense<0.000000e+00> : vector<32x128xf32>
    %6 = tpu.matmul %4, %5, %cst {dimension_numbers = #tpu.dot_dimension_numbers<[1], [0], [0], [1], [0, 0, 1, 1], [], []>} : vector<32x128xbf16>, vector<128x128xbf16>, vector<32x128xf32> -> vector<32x128xf32>
    %7 = arith.addf %3, %6 : vector<32x128xf32>
    %c0_6 = arith.constant 0 : index
    %c0_7 = arith.constant 0 : index
    %8 = vector.load %arg7[%c0_6, %c0_7] : memref<32x128xf32, #tpu.memory_space<vmem>>, vector<32x128xf32>
    tpu.vector_store %arg7[%c0_6, %c0_7], %7 {strides = array<i32>} : memref<32x128xf32, #tpu.memory_space<vmem>>, vector<32x128xf32>,
    %c0_i32_8 = arith.constant 0 : i32
    %9 = arith.cmpi eq, %arg1, %c0_i32_8 : i32
    %10 = arith.extui %9 : i1 to i32
    %c0_i32_9 = arith.constant 0 : i32
    %11 = arith.cmpi ne, %10, %c0_i32_9 : i32
    scf.if %11 {
      %c0_10 = arith.constant 0 : index
      %c0_11 = arith.constant 0 : index
      %12 = vector.load %arg7[%c0_10, %c0_11] : memref<32x128xf32, #tpu.memory_space<vmem>>, vector<32x128xf32>
      %c0_12 = arith.constant 0 : index
      %c0_13 = arith.constant 0 : index
      %13 = vector.load %arg4[%c0_12, %c0_13] : memref<1x128xf32, #tpu.memory_space<vmem>>, vector<1x128xf32>
      %14 = vector.broadcast %13 : vector<1x128xf32> to vector<32x128xf32>
      %15 = arith.mulf %12, %14 : vector<32x128xf32>
      %c0_14 = arith.constant 0 : index
      %c0_15 = arith.constant 0 : index
      %16 = vector.load %arg5[%c0_14, %c0_15] : memref<1x128xf32, #tpu.memory_space<vmem>>, vector<1x128xf32>
      %17 = vector.broadcast %16 : vector<1x128xf32> to vector<32x128xf32>
      %18 = arith.addf %15, %17 : vector<32x128xf32>
      %19 = arith.truncf %18 : vector<32x128xf32> to vector<32x128xbf16>
      %c0_16 = arith.constant 0 : index
      %c0_17 = arith.constant 0 : index
      %20 = vector.load %arg6[%c0_16, %c0_17] : memref<32x128xbf16, #tpu.memory_space<vmem>>, vector<32x128xbf16>
      tpu.vector_store %arg6[%c0_16, %c0_17], %19 {strides = array<i32>} : memref<32x128xbf16, #tpu.memory_space<vmem>>, vector<32x128xbf16>,
    } else {
    }
    return
  }
  func.func @transform_0(%arg0: i32, %arg1: i32) -> (i32, i32) {
    %c0_i32 = arith.constant 0 : i32
    return %arg0, %arg1 : i32, i32
  }
  func.func @transform_1(%arg0: i32, %arg1: i32) -> (i32, i32) {
    %c0_i32 = arith.constant 0 : i32
    %c0_i32_0 = arith.constant 0 : i32
    return %arg1, %c0_i32 : i32, i32
  }
  func.func @transform_2(%arg0: i32, %arg1: i32) -> (i32, i32) {
    %c0_i32 = arith.constant 0 : i32
    %c0_i32_0 = arith.constant 0 : i32
    %c0_i32_1 = arith.constant 0 : i32
    return %c0_i32, %c0_i32_0 : i32, i32
  }
  func.func @transform_3(%arg0: i32, %arg1: i32) -> (i32, i32) {
    %c0_i32 = arith.constant 0 : i32
    %c0_i32_0 = arith.constant 0 : i32
    %c0_i32_1 = arith.constant 0 : i32
    return %c0_i32, %c0_i32_0 : i32, i32
  }
  func.func @transform_4(%arg0: i32, %arg1: i32) -> (i32, i32) {
    %c0_i32 = arith.constant 0 : i32
    %c0_i32_0 = arith.constant 0 : i32
    return %arg0, %c0_i32 : i32, i32
  }
}

module attributes {stable_mosaic.version = 11 : i64} {
  func.func @kernel(%arg0: i32, %arg1: i32, %arg2: memref<32x384xbf16, #tpu.memory_space<vmem>>, %arg3: memref<384x128xbf16, #tpu.memory_space<vmem>>, %arg4: memref<1x128xf32, #tpu.memory_space<vmem>>, %arg5: memref<1x128xf32, #tpu.memory_space<vmem>>, %arg6: memref<32x128xbf16, #tpu.memory_space<vmem>>, %arg7: memref<32x128xbf16, #tpu.memory_space<vmem>>, %arg8: memref<32x128xf32, #tpu.memory_space<vmem>>) attributes {dimension_semantics = [#tpu.dimension_semantics<parallel>, #tpu.dimension_semantics<arbitrary>], iteration_bounds = array<i64: 1, 3>, scalar_prefetch = 0 : i64, scratch_operands = 1 : i64, tpu.core_type = #tpu.core_type<tc>, window_params = [{transform_indices = @transform_0, window_bounds = array<i64: 32, 384>}, {transform_indices = @transform_1, window_bounds = array<i64: 384, 128>}, {pipeline_mode = #tpu.pipeline_mode<synchronous>, transform_indices = @transform_2, window_bounds = array<i64: 1, 128>}, {pipeline_mode = #tpu.pipeline_mode<synchronous>, transform_indices = @transform_3, window_bounds = array<i64: 1, 128>}, {transform_indices = @transform_4, window_bounds = array<i64: 32, 128>}, {transform_indices = @transform_5, window_bounds = array<i64: 32, 128>}]} {
    %c0_i32 = arith.constant 0 : i32
    %0 = arith.cmpi eq, %arg1, %c0_i32 : i32
    %1 = arith.extui %0 : i1 to i32
    %c0_i32_0 = arith.constant 0 : i32
    %2 = arith.cmpi ne, %1, %c0_i32_0 : i32
    scf.if %2 {
      %cst_9 = arith.constant 0.000000e+00 : f32
      %12 = vector.broadcast %cst_9 : f32 to vector<32x128xf32>
      %c0_10 = arith.constant 0 : index
      %c0_11 = arith.constant 0 : index
      %13 = vector.load %arg8[%c0_10, %c0_11] : memref<32x128xf32, #tpu.memory_space<vmem>>, vector<32x128xf32>
      tpu.vector_store %arg8[%c0_10, %c0_11], %12 {strides = array<i32>} : memref<32x128xf32, #tpu.memory_space<vmem>>, vector<32x128xf32>,
    } else {
    }
    %c0 = arith.constant 0 : index
    %c0_1 = arith.constant 0 : index
    %3 = vector.load %arg8[%c0, %c0_1] : memref<32x128xf32, #tpu.memory_space<vmem>>, vector<32x128xf32>
    %c0_2 = arith.constant 0 : index
    %c0_3 = arith.constant 0 : index
    %4 = vector.load %arg2[%c0_2, %c0_3] : memref<32x384xbf16, #tpu.memory_space<vmem>>, vector<32x384xbf16>
    %c0_4 = arith.constant 0 : index
    %c0_5 = arith.constant 0 : index
    %5 = vector.load %arg3[%c0_4, %c0_5] : memref<384x128xbf16, #tpu.memory_space<vmem>>, vector<384x128xbf16>
    %cst = arith.constant dense<0.000000e+00> : vector<32x128xf32>
    %6 = tpu.matmul %4, %5, %cst {dimension_numbers = #tpu.dot_dimension_numbers<[1], [0], [0], [1], [0, 0, 1, 1], [], []>} : vector<32x384xbf16>, vector<384x128xbf16>, vector<32x128xf32> -> vector<32x128xf32>
    %7 = arith.addf %3, %6 : vector<32x128xf32>
    %c0_6 = arith.constant 0 : index
    %c0_7 = arith.constant 0 : index
    %8 = vector.load %arg8[%c0_6, %c0_7] : memref<32x128xf32, #tpu.memory_space<vmem>>, vector<32x128xf32>
    tpu.vector_store %arg8[%c0_6, %c0_7], %7 {strides = array<i32>} : memref<32x128xf32, #tpu.memory_space<vmem>>, vector<32x128xf32>,
    %c2_i32 = arith.constant 2 : i32
    %9 = arith.cmpi eq, %arg1, %c2_i32 : i32
    %10 = arith.extui %9 : i1 to i32
    %c0_i32_8 = arith.constant 0 : i32
    %11 = arith.cmpi ne, %10, %c0_i32_8 : i32
    scf.if %11 {
      %c0_9 = arith.constant 0 : index
      %c0_10 = arith.constant 0 : index
      %12 = vector.load %arg8[%c0_9, %c0_10] : memref<32x128xf32, #tpu.memory_space<vmem>>, vector<32x128xf32>
      %c0_11 = arith.constant 0 : index
      %c0_12 = arith.constant 0 : index
      %13 = vector.load %arg4[%c0_11, %c0_12] : memref<1x128xf32, #tpu.memory_space<vmem>>, vector<1x128xf32>
      %14 = vector.broadcast %13 : vector<1x128xf32> to vector<32x128xf32>
      %15 = arith.mulf %12, %14 : vector<32x128xf32>
      %c0_13 = arith.constant 0 : index
      %c0_14 = arith.constant 0 : index
      %16 = vector.load %arg5[%c0_13, %c0_14] : memref<1x128xf32, #tpu.memory_space<vmem>>, vector<1x128xf32>
      %17 = vector.broadcast %16 : vector<1x128xf32> to vector<32x128xf32>
      %18 = arith.addf %15, %17 : vector<32x128xf32>
      %c0_15 = arith.constant 0 : index
      %c0_16 = arith.constant 0 : index
      %19 = vector.load %arg6[%c0_15, %c0_16] : memref<32x128xbf16, #tpu.memory_space<vmem>>, vector<32x128xbf16>
      %20 = arith.extf %19 : vector<32x128xbf16> to vector<32x128xf32>
      %21 = arith.addf %18, %20 : vector<32x128xf32>
      %cst_17 = arith.constant 0.000000e+00 : f32
      %22 = vector.broadcast %cst_17 : f32 to vector<32x128xf32>
      %23 = arith.maximumf %21, %22 : vector<32x128xf32>
      %24 = arith.truncf %23 : vector<32x128xf32> to vector<32x128xbf16>
      %c0_18 = arith.constant 0 : index
      %c0_19 = arith.constant 0 : index
      %25 = vector.load %arg7[%c0_18, %c0_19] : memref<32x128xbf16, #tpu.memory_space<vmem>>, vector<32x128xbf16>
      tpu.vector_store %arg7[%c0_18, %c0_19], %24 {strides = array<i32>} : memref<32x128xbf16, #tpu.memory_space<vmem>>, vector<32x128xbf16>,
    } else {
    }
    return
  }
  func.func @transform_0(%arg0: i32, %arg1: i32) -> (i32, i32) {
    %c0_i32 = arith.constant 0 : i32
    return %arg0, %arg1 : i32, i32
  }
  func.func @transform_1(%arg0: i32, %arg1: i32) -> (i32, i32) {
    %c0_i32 = arith.constant 0 : i32
    %c0_i32_0 = arith.constant 0 : i32
    return %arg1, %c0_i32 : i32, i32
  }
  func.func @transform_2(%arg0: i32, %arg1: i32) -> (i32, i32) {
    %c0_i32 = arith.constant 0 : i32
    %c0_i32_0 = arith.constant 0 : i32
    %c0_i32_1 = arith.constant 0 : i32
    return %c0_i32, %c0_i32_0 : i32, i32
  }
  func.func @transform_3(%arg0: i32, %arg1: i32) -> (i32, i32) {
    %c0_i32 = arith.constant 0 : i32
    %c0_i32_0 = arith.constant 0 : i32
    %c0_i32_1 = arith.constant 0 : i32
    return %c0_i32, %c0_i32_0 : i32, i32
  }
  func.func @transform_4(%arg0: i32, %arg1: i32) -> (i32, i32) {
    %c0_i32 = arith.constant 0 : i32
    %c0_i32_0 = arith.constant 0 : i32
    return %arg0, %c0_i32 : i32, i32
  }
  func.func @transform_5(%arg0: i32, %arg1: i32) -> (i32, i32) {
    %c0_i32 = arith.constant 0 : i32
    %c0_i32_0 = arith.constant 0 : i32
    return %arg0, %c0_i32 : i32, i32
  }
}

module attributes {stable_mosaic.version = 11 : i64} {
  func.func @kernel(%arg0: i32, %arg1: i32, %arg2: memref<16x384xbf16, #tpu.memory_space<vmem>>, %arg3: memref<384x256xbf16, #tpu.memory_space<vmem>>, %arg4: memref<1x256xf32, #tpu.memory_space<vmem>>, %arg5: memref<1x256xf32, #tpu.memory_space<vmem>>, %arg6: memref<16x256xbf16, #tpu.memory_space<vmem>>, %arg7: memref<16x256xf32, #tpu.memory_space<vmem>>) attributes {dimension_semantics = [#tpu.dimension_semantics<parallel>, #tpu.dimension_semantics<arbitrary>], iteration_bounds = array<i64: 1, 3>, scalar_prefetch = 0 : i64, scratch_operands = 1 : i64, tpu.core_type = #tpu.core_type<tc>, window_params = [{transform_indices = @transform_0, window_bounds = array<i64: 16, 384>}, {transform_indices = @transform_1, window_bounds = array<i64: 384, 256>}, {pipeline_mode = #tpu.pipeline_mode<synchronous>, transform_indices = @transform_2, window_bounds = array<i64: 1, 256>}, {pipeline_mode = #tpu.pipeline_mode<synchronous>, transform_indices = @transform_3, window_bounds = array<i64: 1, 256>}, {transform_indices = @transform_4, window_bounds = array<i64: 16, 256>}]} {
    %c0_i32 = arith.constant 0 : i32
    %0 = arith.cmpi eq, %arg1, %c0_i32 : i32
    %1 = arith.extui %0 : i1 to i32
    %c0_i32_0 = arith.constant 0 : i32
    %2 = arith.cmpi ne, %1, %c0_i32_0 : i32
    scf.if %2 {
      %cst_9 = arith.constant 0.000000e+00 : f32
      %12 = vector.broadcast %cst_9 : f32 to vector<16x256xf32>
      %c0_10 = arith.constant 0 : index
      %c0_11 = arith.constant 0 : index
      %13 = vector.load %arg7[%c0_10, %c0_11] : memref<16x256xf32, #tpu.memory_space<vmem>>, vector<16x256xf32>
      tpu.vector_store %arg7[%c0_10, %c0_11], %12 {strides = array<i32>} : memref<16x256xf32, #tpu.memory_space<vmem>>, vector<16x256xf32>,
    } else {
    }
    %c0 = arith.constant 0 : index
    %c0_1 = arith.constant 0 : index
    %3 = vector.load %arg7[%c0, %c0_1] : memref<16x256xf32, #tpu.memory_space<vmem>>, vector<16x256xf32>
    %c0_2 = arith.constant 0 : index
    %c0_3 = arith.constant 0 : index
    %4 = vector.load %arg2[%c0_2, %c0_3] : memref<16x384xbf16, #tpu.memory_space<vmem>>, vector<16x384xbf16>
    %c0_4 = arith.constant 0 : index
    %c0_5 = arith.constant 0 : index
    %5 = vector.load %arg3[%c0_4, %c0_5] : memref<384x256xbf16, #tpu.memory_space<vmem>>, vector<384x256xbf16>
    %cst = arith.constant dense<0.000000e+00> : vector<16x256xf32>
    %6 = tpu.matmul %4, %5, %cst {dimension_numbers = #tpu.dot_dimension_numbers<[1], [0], [0], [1], [0, 0, 1, 1], [], []>} : vector<16x384xbf16>, vector<384x256xbf16>, vector<16x256xf32> -> vector<16x256xf32>
    %7 = arith.addf %3, %6 : vector<16x256xf32>
    %c0_6 = arith.constant 0 : index
    %c0_7 = arith.constant 0 : index
    %8 = vector.load %arg7[%c0_6, %c0_7] : memref<16x256xf32, #tpu.memory_space<vmem>>, vector<16x256xf32>
    tpu.vector_store %arg7[%c0_6, %c0_7], %7 {strides = array<i32>} : memref<16x256xf32, #tpu.memory_space<vmem>>, vector<16x256xf32>,
    %c2_i32 = arith.constant 2 : i32
    %9 = arith.cmpi eq, %arg1, %c2_i32 : i32
    %10 = arith.extui %9 : i1 to i32
    %c0_i32_8 = arith.constant 0 : i32
    %11 = arith.cmpi ne, %10, %c0_i32_8 : i32
    scf.if %11 {
      %c0_9 = arith.constant 0 : index
      %c0_10 = arith.constant 0 : index
      %12 = vector.load %arg7[%c0_9, %c0_10] : memref<16x256xf32, #tpu.memory_space<vmem>>, vector<16x256xf32>
      %c0_11 = arith.constant 0 : index
      %c0_12 = arith.constant 0 : index
      %13 = vector.load %arg4[%c0_11, %c0_12] : memref<1x256xf32, #tpu.memory_space<vmem>>, vector<1x256xf32>
      %14 = vector.broadcast %13 : vector<1x256xf32> to vector<16x256xf32>
      %15 = arith.mulf %12, %14 : vector<16x256xf32>
      %c0_13 = arith.constant 0 : index
      %c0_14 = arith.constant 0 : index
      %16 = vector.load %arg5[%c0_13, %c0_14] : memref<1x256xf32, #tpu.memory_space<vmem>>, vector<1x256xf32>
      %17 = vector.broadcast %16 : vector<1x256xf32> to vector<16x256xf32>
      %18 = arith.addf %15, %17 : vector<16x256xf32>
      %cst_15 = arith.constant 0.000000e+00 : f32
      %19 = vector.broadcast %cst_15 : f32 to vector<16x256xf32>
      %20 = arith.maximumf %18, %19 : vector<16x256xf32>
      %21 = arith.truncf %20 : vector<16x256xf32> to vector<16x256xbf16>
      %c0_16 = arith.constant 0 : index
      %c0_17 = arith.constant 0 : index
      %22 = vector.load %arg6[%c0_16, %c0_17] : memref<16x256xbf16, #tpu.memory_space<vmem>>, vector<16x256xbf16>
      tpu.vector_store %arg6[%c0_16, %c0_17], %21 {strides = array<i32>} : memref<16x256xbf16, #tpu.memory_space<vmem>>, vector<16x256xbf16>,
    } else {
    }
    return
  }
  func.func @transform_0(%arg0: i32, %arg1: i32) -> (i32, i32) {
    %c0_i32 = arith.constant 0 : i32
    return %arg0, %arg1 : i32, i32
  }
  func.func @transform_1(%arg0: i32, %arg1: i32) -> (i32, i32) {
    %c0_i32 = arith.constant 0 : i32
    %c0_i32_0 = arith.constant 0 : i32
    return %arg1, %c0_i32 : i32, i32
  }
  func.func @transform_2(%arg0: i32, %arg1: i32) -> (i32, i32) {
    %c0_i32 = arith.constant 0 : i32
    %c0_i32_0 = arith.constant 0 : i32
    %c0_i32_1 = arith.constant 0 : i32
    return %c0_i32, %c0_i32_0 : i32, i32
  }
  func.func @transform_3(%arg0: i32, %arg1: i32) -> (i32, i32) {
    %c0_i32 = arith.constant 0 : i32
    %c0_i32_0 = arith.constant 0 : i32
    %c0_i32_1 = arith.constant 0 : i32
    return %c0_i32, %c0_i32_0 : i32, i32
  }
  func.func @transform_4(%arg0: i32, %arg1: i32) -> (i32, i32) {
    %c0_i32 = arith.constant 0 : i32
    %c0_i32_0 = arith.constant 0 : i32
    return %arg0, %c0_i32 : i32, i32
  }
}

module attributes {stable_mosaic.version = 11 : i64} {
  func.func @kernel(%arg0: i32, %arg1: i32, %arg2: memref<16x128xbf16, #tpu.memory_space<vmem>>, %arg3: memref<128x256xbf16, #tpu.memory_space<vmem>>, %arg4: memref<1x256xf32, #tpu.memory_space<vmem>>, %arg5: memref<1x256xf32, #tpu.memory_space<vmem>>, %arg6: memref<16x256xbf16, #tpu.memory_space<vmem>>, %arg7: memref<16x256xf32, #tpu.memory_space<vmem>>) attributes {dimension_semantics = [#tpu.dimension_semantics<parallel>, #tpu.dimension_semantics<arbitrary>], iteration_bounds = array<i64: 1, 1>, scalar_prefetch = 0 : i64, scratch_operands = 1 : i64, tpu.core_type = #tpu.core_type<tc>, window_params = [{transform_indices = @transform_0, window_bounds = array<i64: 16, 128>}, {transform_indices = @transform_1, window_bounds = array<i64: 128, 256>}, {pipeline_mode = #tpu.pipeline_mode<synchronous>, transform_indices = @transform_2, window_bounds = array<i64: 1, 256>}, {pipeline_mode = #tpu.pipeline_mode<synchronous>, transform_indices = @transform_3, window_bounds = array<i64: 1, 256>}, {transform_indices = @transform_4, window_bounds = array<i64: 16, 256>}]} {
    %c0_i32 = arith.constant 0 : i32
    %0 = arith.cmpi eq, %arg1, %c0_i32 : i32
    %1 = arith.extui %0 : i1 to i32
    %c0_i32_0 = arith.constant 0 : i32
    %2 = arith.cmpi ne, %1, %c0_i32_0 : i32
    scf.if %2 {
      %cst_10 = arith.constant 0.000000e+00 : f32
      %12 = vector.broadcast %cst_10 : f32 to vector<16x256xf32>
      %c0_11 = arith.constant 0 : index
      %c0_12 = arith.constant 0 : index
      %13 = vector.load %arg7[%c0_11, %c0_12] : memref<16x256xf32, #tpu.memory_space<vmem>>, vector<16x256xf32>
      tpu.vector_store %arg7[%c0_11, %c0_12], %12 {strides = array<i32>} : memref<16x256xf32, #tpu.memory_space<vmem>>, vector<16x256xf32>,
    } else {
    }
    %c0 = arith.constant 0 : index
    %c0_1 = arith.constant 0 : index
    %3 = vector.load %arg7[%c0, %c0_1] : memref<16x256xf32, #tpu.memory_space<vmem>>, vector<16x256xf32>
    %c0_2 = arith.constant 0 : index
    %c0_3 = arith.constant 0 : index
    %4 = vector.load %arg2[%c0_2, %c0_3] : memref<16x128xbf16, #tpu.memory_space<vmem>>, vector<16x128xbf16>
    %c0_4 = arith.constant 0 : index
    %c0_5 = arith.constant 0 : index
    %5 = vector.load %arg3[%c0_4, %c0_5] : memref<128x256xbf16, #tpu.memory_space<vmem>>, vector<128x256xbf16>
    %cst = arith.constant dense<0.000000e+00> : vector<16x256xf32>
    %6 = tpu.matmul %4, %5, %cst {dimension_numbers = #tpu.dot_dimension_numbers<[1], [0], [0], [1], [0, 0, 1, 1], [], []>} : vector<16x128xbf16>, vector<128x256xbf16>, vector<16x256xf32> -> vector<16x256xf32>
    %7 = arith.addf %3, %6 : vector<16x256xf32>
    %c0_6 = arith.constant 0 : index
    %c0_7 = arith.constant 0 : index
    %8 = vector.load %arg7[%c0_6, %c0_7] : memref<16x256xf32, #tpu.memory_space<vmem>>, vector<16x256xf32>
    tpu.vector_store %arg7[%c0_6, %c0_7], %7 {strides = array<i32>} : memref<16x256xf32, #tpu.memory_space<vmem>>, vector<16x256xf32>,
    %c0_i32_8 = arith.constant 0 : i32
    %9 = arith.cmpi eq, %arg1, %c0_i32_8 : i32
    %10 = arith.extui %9 : i1 to i32
    %c0_i32_9 = arith.constant 0 : i32
    %11 = arith.cmpi ne, %10, %c0_i32_9 : i32
    scf.if %11 {
      %c0_10 = arith.constant 0 : index
      %c0_11 = arith.constant 0 : index
      %12 = vector.load %arg7[%c0_10, %c0_11] : memref<16x256xf32, #tpu.memory_space<vmem>>, vector<16x256xf32>
      %c0_12 = arith.constant 0 : index
      %c0_13 = arith.constant 0 : index
      %13 = vector.load %arg4[%c0_12, %c0_13] : memref<1x256xf32, #tpu.memory_space<vmem>>, vector<1x256xf32>
      %14 = vector.broadcast %13 : vector<1x256xf32> to vector<16x256xf32>
      %15 = arith.mulf %12, %14 : vector<16x256xf32>
      %c0_14 = arith.constant 0 : index
      %c0_15 = arith.constant 0 : index
      %16 = vector.load %arg5[%c0_14, %c0_15] : memref<1x256xf32, #tpu.memory_space<vmem>>, vector<1x256xf32>
      %17 = vector.broadcast %16 : vector<1x256xf32> to vector<16x256xf32>
      %18 = arith.addf %15, %17 : vector<16x256xf32>
      %19 = arith.truncf %18 : vector<16x256xf32> to vector<16x256xbf16>
      %c0_16 = arith.constant 0 : index
      %c0_17 = arith.constant 0 : index
      %20 = vector.load %arg6[%c0_16, %c0_17] : memref<16x256xbf16, #tpu.memory_space<vmem>>, vector<16x256xbf16>
      tpu.vector_store %arg6[%c0_16, %c0_17], %19 {strides = array<i32>} : memref<16x256xbf16, #tpu.memory_space<vmem>>, vector<16x256xbf16>,
    } else {
    }
    return
  }
  func.func @transform_0(%arg0: i32, %arg1: i32) -> (i32, i32) {
    %c0_i32 = arith.constant 0 : i32
    return %arg0, %arg1 : i32, i32
  }
  func.func @transform_1(%arg0: i32, %arg1: i32) -> (i32, i32) {
    %c0_i32 = arith.constant 0 : i32
    %c0_i32_0 = arith.constant 0 : i32
    return %arg1, %c0_i32 : i32, i32
  }
  func.func @transform_2(%arg0: i32, %arg1: i32) -> (i32, i32) {
    %c0_i32 = arith.constant 0 : i32
    %c0_i32_0 = arith.constant 0 : i32
    %c0_i32_1 = arith.constant 0 : i32
    return %c0_i32, %c0_i32_0 : i32, i32
  }
  func.func @transform_3(%arg0: i32, %arg1: i32) -> (i32, i32) {
    %c0_i32 = arith.constant 0 : i32
    %c0_i32_0 = arith.constant 0 : i32
    %c0_i32_1 = arith.constant 0 : i32
    return %c0_i32, %c0_i32_0 : i32, i32
  }
  func.func @transform_4(%arg0: i32, %arg1: i32) -> (i32, i32) {
    %c0_i32 = arith.constant 0 : i32
    %c0_i32_0 = arith.constant 0 : i32
    return %arg0, %c0_i32 : i32, i32
  }
}

module attributes {stable_mosaic.version = 11 : i64} {
  func.func @kernel(%arg0: i32, %arg1: i32, %arg2: memref<16x384xbf16, #tpu.memory_space<vmem>>, %arg3: memref<384x256xbf16, #tpu.memory_space<vmem>>, %arg4: memref<1x256xf32, #tpu.memory_space<vmem>>, %arg5: memref<1x256xf32, #tpu.memory_space<vmem>>, %arg6: memref<16x256xbf16, #tpu.memory_space<vmem>>, %arg7: memref<16x256xbf16, #tpu.memory_space<vmem>>, %arg8: memref<16x256xf32, #tpu.memory_space<vmem>>) attributes {dimension_semantics = [#tpu.dimension_semantics<parallel>, #tpu.dimension_semantics<arbitrary>], iteration_bounds = array<i64: 1, 6>, scalar_prefetch = 0 : i64, scratch_operands = 1 : i64, tpu.core_type = #tpu.core_type<tc>, window_params = [{transform_indices = @transform_0, window_bounds = array<i64: 16, 384>}, {transform_indices = @transform_1, window_bounds = array<i64: 384, 256>}, {pipeline_mode = #tpu.pipeline_mode<synchronous>, transform_indices = @transform_2, window_bounds = array<i64: 1, 256>}, {pipeline_mode = #tpu.pipeline_mode<synchronous>, transform_indices = @transform_3, window_bounds = array<i64: 1, 256>}, {transform_indices = @transform_4, window_bounds = array<i64: 16, 256>}, {transform_indices = @transform_5, window_bounds = array<i64: 16, 256>}]} {
    %c0_i32 = arith.constant 0 : i32
    %0 = arith.cmpi eq, %arg1, %c0_i32 : i32
    %1 = arith.extui %0 : i1 to i32
    %c0_i32_0 = arith.constant 0 : i32
    %2 = arith.cmpi ne, %1, %c0_i32_0 : i32
    scf.if %2 {
      %cst_9 = arith.constant 0.000000e+00 : f32
      %12 = vector.broadcast %cst_9 : f32 to vector<16x256xf32>
      %c0_10 = arith.constant 0 : index
      %c0_11 = arith.constant 0 : index
      %13 = vector.load %arg8[%c0_10, %c0_11] : memref<16x256xf32, #tpu.memory_space<vmem>>, vector<16x256xf32>
      tpu.vector_store %arg8[%c0_10, %c0_11], %12 {strides = array<i32>} : memref<16x256xf32, #tpu.memory_space<vmem>>, vector<16x256xf32>,
    } else {
    }
    %c0 = arith.constant 0 : index
    %c0_1 = arith.constant 0 : index
    %3 = vector.load %arg8[%c0, %c0_1] : memref<16x256xf32, #tpu.memory_space<vmem>>, vector<16x256xf32>
    %c0_2 = arith.constant 0 : index
    %c0_3 = arith.constant 0 : index
    %4 = vector.load %arg2[%c0_2, %c0_3] : memref<16x384xbf16, #tpu.memory_space<vmem>>, vector<16x384xbf16>
    %c0_4 = arith.constant 0 : index
    %c0_5 = arith.constant 0 : index
    %5 = vector.load %arg3[%c0_4, %c0_5] : memref<384x256xbf16, #tpu.memory_space<vmem>>, vector<384x256xbf16>
    %cst = arith.constant dense<0.000000e+00> : vector<16x256xf32>
    %6 = tpu.matmul %4, %5, %cst {dimension_numbers = #tpu.dot_dimension_numbers<[1], [0], [0], [1], [0, 0, 1, 1], [], []>} : vector<16x384xbf16>, vector<384x256xbf16>, vector<16x256xf32> -> vector<16x256xf32>
    %7 = arith.addf %3, %6 : vector<16x256xf32>
    %c0_6 = arith.constant 0 : index
    %c0_7 = arith.constant 0 : index
    %8 = vector.load %arg8[%c0_6, %c0_7] : memref<16x256xf32, #tpu.memory_space<vmem>>, vector<16x256xf32>
    tpu.vector_store %arg8[%c0_6, %c0_7], %7 {strides = array<i32>} : memref<16x256xf32, #tpu.memory_space<vmem>>, vector<16x256xf32>,
    %c5_i32 = arith.constant 5 : i32
    %9 = arith.cmpi eq, %arg1, %c5_i32 : i32
    %10 = arith.extui %9 : i1 to i32
    %c0_i32_8 = arith.constant 0 : i32
    %11 = arith.cmpi ne, %10, %c0_i32_8 : i32
    scf.if %11 {
      %c0_9 = arith.constant 0 : index
      %c0_10 = arith.constant 0 : index
      %12 = vector.load %arg8[%c0_9, %c0_10] : memref<16x256xf32, #tpu.memory_space<vmem>>, vector<16x256xf32>
      %c0_11 = arith.constant 0 : index
      %c0_12 = arith.constant 0 : index
      %13 = vector.load %arg4[%c0_11, %c0_12] : memref<1x256xf32, #tpu.memory_space<vmem>>, vector<1x256xf32>
      %14 = vector.broadcast %13 : vector<1x256xf32> to vector<16x256xf32>
      %15 = arith.mulf %12, %14 : vector<16x256xf32>
      %c0_13 = arith.constant 0 : index
      %c0_14 = arith.constant 0 : index
      %16 = vector.load %arg5[%c0_13, %c0_14] : memref<1x256xf32, #tpu.memory_space<vmem>>, vector<1x256xf32>
      %17 = vector.broadcast %16 : vector<1x256xf32> to vector<16x256xf32>
      %18 = arith.addf %15, %17 : vector<16x256xf32>
      %c0_15 = arith.constant 0 : index
      %c0_16 = arith.constant 0 : index
      %19 = vector.load %arg6[%c0_15, %c0_16] : memref<16x256xbf16, #tpu.memory_space<vmem>>, vector<16x256xbf16>
      %20 = arith.extf %19 : vector<16x256xbf16> to vector<16x256xf32>
      %21 = arith.addf %18, %20 : vector<16x256xf32>
      %cst_17 = arith.constant 0.000000e+00 : f32
      %22 = vector.broadcast %cst_17 : f32 to vector<16x256xf32>
      %23 = arith.maximumf %21, %22 : vector<16x256xf32>
      %24 = arith.truncf %23 : vector<16x256xf32> to vector<16x256xbf16>
      %c0_18 = arith.constant 0 : index
      %c0_19 = arith.constant 0 : index
      %25 = vector.load %arg7[%c0_18, %c0_19] : memref<16x256xbf16, #tpu.memory_space<vmem>>, vector<16x256xbf16>
      tpu.vector_store %arg7[%c0_18, %c0_19], %24 {strides = array<i32>} : memref<16x256xbf16, #tpu.memory_space<vmem>>, vector<16x256xbf16>,
    } else {
    }
    return
  }
  func.func @transform_0(%arg0: i32, %arg1: i32) -> (i32, i32) {
    %c0_i32 = arith.constant 0 : i32
    return %arg0, %arg1 : i32, i32
  }
  func.func @transform_1(%arg0: i32, %arg1: i32) -> (i32, i32) {
    %c0_i32 = arith.constant 0 : i32
    %c0_i32_0 = arith.constant 0 : i32
    return %arg1, %c0_i32 : i32, i32
  }
  func.func @transform_2(%arg0: i32, %arg1: i32) -> (i32, i32) {
    %c0_i32 = arith.constant 0 : i32
    %c0_i32_0 = arith.constant 0 : i32
    %c0_i32_1 = arith.constant 0 : i32
    return %c0_i32, %c0_i32_0 : i32, i32
  }
  func.func @transform_3(%arg0: i32, %arg1: i32) -> (i32, i32) {
    %c0_i32 = arith.constant 0 : i32
    %c0_i32_0 = arith.constant 0 : i32
    %c0_i32_1 = arith.constant 0 : i32
    return %c0_i32, %c0_i32_0 : i32, i32
  }
  func.func @transform_4(%arg0: i32, %arg1: i32) -> (i32, i32) {
    %c0_i32 = arith.constant 0 : i32
    %c0_i32_0 = arith.constant 0 : i32
    return %arg0, %c0_i32 : i32, i32
  }
  func.func @transform_5(%arg0: i32, %arg1: i32) -> (i32, i32) {
    %c0_i32 = arith.constant 0 : i32
    %c0_i32_0 = arith.constant 0 : i32
    return %arg0, %c0_i32 : i32, i32
  }
}

module attributes {stable_mosaic.version = 11 : i64} {
  func.func @kernel(%arg0: i32, %arg1: i32, %arg2: memref<16x384xbf16, #tpu.memory_space<vmem>>, %arg3: memref<384x512xbf16, #tpu.memory_space<vmem>>, %arg4: memref<1x512xf32, #tpu.memory_space<vmem>>, %arg5: memref<1x512xf32, #tpu.memory_space<vmem>>, %arg6: memref<16x512xbf16, #tpu.memory_space<vmem>>, %arg7: memref<16x512xf32, #tpu.memory_space<vmem>>) attributes {dimension_semantics = [#tpu.dimension_semantics<parallel>, #tpu.dimension_semantics<arbitrary>], iteration_bounds = array<i64: 1, 6>, scalar_prefetch = 0 : i64, scratch_operands = 1 : i64, tpu.core_type = #tpu.core_type<tc>, window_params = [{transform_indices = @transform_0, window_bounds = array<i64: 16, 384>}, {transform_indices = @transform_1, window_bounds = array<i64: 384, 512>}, {pipeline_mode = #tpu.pipeline_mode<synchronous>, transform_indices = @transform_2, window_bounds = array<i64: 1, 512>}, {pipeline_mode = #tpu.pipeline_mode<synchronous>, transform_indices = @transform_3, window_bounds = array<i64: 1, 512>}, {transform_indices = @transform_4, window_bounds = array<i64: 16, 512>}]} {
    %c0_i32 = arith.constant 0 : i32
    %0 = arith.cmpi eq, %arg1, %c0_i32 : i32
    %1 = arith.extui %0 : i1 to i32
    %c0_i32_0 = arith.constant 0 : i32
    %2 = arith.cmpi ne, %1, %c0_i32_0 : i32
    scf.if %2 {
      %cst_9 = arith.constant 0.000000e+00 : f32
      %12 = vector.broadcast %cst_9 : f32 to vector<16x512xf32>
      %c0_10 = arith.constant 0 : index
      %c0_11 = arith.constant 0 : index
      %13 = vector.load %arg7[%c0_10, %c0_11] : memref<16x512xf32, #tpu.memory_space<vmem>>, vector<16x512xf32>
      tpu.vector_store %arg7[%c0_10, %c0_11], %12 {strides = array<i32>} : memref<16x512xf32, #tpu.memory_space<vmem>>, vector<16x512xf32>,
    } else {
    }
    %c0 = arith.constant 0 : index
    %c0_1 = arith.constant 0 : index
    %3 = vector.load %arg7[%c0, %c0_1] : memref<16x512xf32, #tpu.memory_space<vmem>>, vector<16x512xf32>
    %c0_2 = arith.constant 0 : index
    %c0_3 = arith.constant 0 : index
    %4 = vector.load %arg2[%c0_2, %c0_3] : memref<16x384xbf16, #tpu.memory_space<vmem>>, vector<16x384xbf16>
    %c0_4 = arith.constant 0 : index
    %c0_5 = arith.constant 0 : index
    %5 = vector.load %arg3[%c0_4, %c0_5] : memref<384x512xbf16, #tpu.memory_space<vmem>>, vector<384x512xbf16>
    %cst = arith.constant dense<0.000000e+00> : vector<16x512xf32>
    %6 = tpu.matmul %4, %5, %cst {dimension_numbers = #tpu.dot_dimension_numbers<[1], [0], [0], [1], [0, 0, 1, 1], [], []>} : vector<16x384xbf16>, vector<384x512xbf16>, vector<16x512xf32> -> vector<16x512xf32>
    %7 = arith.addf %3, %6 : vector<16x512xf32>
    %c0_6 = arith.constant 0 : index
    %c0_7 = arith.constant 0 : index
    %8 = vector.load %arg7[%c0_6, %c0_7] : memref<16x512xf32, #tpu.memory_space<vmem>>, vector<16x512xf32>
    tpu.vector_store %arg7[%c0_6, %c0_7], %7 {strides = array<i32>} : memref<16x512xf32, #tpu.memory_space<vmem>>, vector<16x512xf32>,
    %c5_i32 = arith.constant 5 : i32
    %9 = arith.cmpi eq, %arg1, %c5_i32 : i32
    %10 = arith.extui %9 : i1 to i32
    %c0_i32_8 = arith.constant 0 : i32
    %11 = arith.cmpi ne, %10, %c0_i32_8 : i32
    scf.if %11 {
      %c0_9 = arith.constant 0 : index
      %c0_10 = arith.constant 0 : index
      %12 = vector.load %arg7[%c0_9, %c0_10] : memref<16x512xf32, #tpu.memory_space<vmem>>, vector<16x512xf32>
      %c0_11 = arith.constant 0 : index
      %c0_12 = arith.constant 0 : index
      %13 = vector.load %arg4[%c0_11, %c0_12] : memref<1x512xf32, #tpu.memory_space<vmem>>, vector<1x512xf32>
      %14 = vector.broadcast %13 : vector<1x512xf32> to vector<16x512xf32>
      %15 = arith.mulf %12, %14 : vector<16x512xf32>
      %c0_13 = arith.constant 0 : index
      %c0_14 = arith.constant 0 : index
      %16 = vector.load %arg5[%c0_13, %c0_14] : memref<1x512xf32, #tpu.memory_space<vmem>>, vector<1x512xf32>
      %17 = vector.broadcast %16 : vector<1x512xf32> to vector<16x512xf32>
      %18 = arith.addf %15, %17 : vector<16x512xf32>
      %cst_15 = arith.constant 0.000000e+00 : f32
      %19 = vector.broadcast %cst_15 : f32 to vector<16x512xf32>
      %20 = arith.maximumf %18, %19 : vector<16x512xf32>
      %21 = arith.truncf %20 : vector<16x512xf32> to vector<16x512xbf16>
      %c0_16 = arith.constant 0 : index
      %c0_17 = arith.constant 0 : index
      %22 = vector.load %arg6[%c0_16, %c0_17] : memref<16x512xbf16, #tpu.memory_space<vmem>>, vector<16x512xbf16>
      tpu.vector_store %arg6[%c0_16, %c0_17], %21 {strides = array<i32>} : memref<16x512xbf16, #tpu.memory_space<vmem>>, vector<16x512xbf16>,
    } else {
    }
    return
  }
  func.func @transform_0(%arg0: i32, %arg1: i32) -> (i32, i32) {
    %c0_i32 = arith.constant 0 : i32
    return %arg0, %arg1 : i32, i32
  }
  func.func @transform_1(%arg0: i32, %arg1: i32) -> (i32, i32) {
    %c0_i32 = arith.constant 0 : i32
    %c0_i32_0 = arith.constant 0 : i32
    return %arg1, %c0_i32 : i32, i32
  }
  func.func @transform_2(%arg0: i32, %arg1: i32) -> (i32, i32) {
    %c0_i32 = arith.constant 0 : i32
    %c0_i32_0 = arith.constant 0 : i32
    %c0_i32_1 = arith.constant 0 : i32
    return %c0_i32, %c0_i32_0 : i32, i32
  }
  func.func @transform_3(%arg0: i32, %arg1: i32) -> (i32, i32) {
    %c0_i32 = arith.constant 0 : i32
    %c0_i32_0 = arith.constant 0 : i32
    %c0_i32_1 = arith.constant 0 : i32
    return %c0_i32, %c0_i32_0 : i32, i32
  }
  func.func @transform_4(%arg0: i32, %arg1: i32) -> (i32, i32) {
    %c0_i32 = arith.constant 0 : i32
    %c0_i32_0 = arith.constant 0 : i32
    return %arg0, %c0_i32 : i32, i32
  }
}

module attributes {stable_mosaic.version = 11 : i64} {
  func.func @kernel(%arg0: i32, %arg1: i32, %arg2: memref<16x256xbf16, #tpu.memory_space<vmem>>, %arg3: memref<256x512xbf16, #tpu.memory_space<vmem>>, %arg4: memref<1x512xf32, #tpu.memory_space<vmem>>, %arg5: memref<1x512xf32, #tpu.memory_space<vmem>>, %arg6: memref<16x512xbf16, #tpu.memory_space<vmem>>, %arg7: memref<16x512xf32, #tpu.memory_space<vmem>>) attributes {dimension_semantics = [#tpu.dimension_semantics<parallel>, #tpu.dimension_semantics<arbitrary>], iteration_bounds = array<i64: 1, 1>, scalar_prefetch = 0 : i64, scratch_operands = 1 : i64, tpu.core_type = #tpu.core_type<tc>, window_params = [{transform_indices = @transform_0, window_bounds = array<i64: 16, 256>}, {transform_indices = @transform_1, window_bounds = array<i64: 256, 512>}, {pipeline_mode = #tpu.pipeline_mode<synchronous>, transform_indices = @transform_2, window_bounds = array<i64: 1, 512>}, {pipeline_mode = #tpu.pipeline_mode<synchronous>, transform_indices = @transform_3, window_bounds = array<i64: 1, 512>}, {transform_indices = @transform_4, window_bounds = array<i64: 16, 512>}]} {
    %c0_i32 = arith.constant 0 : i32
    %0 = arith.cmpi eq, %arg1, %c0_i32 : i32
    %1 = arith.extui %0 : i1 to i32
    %c0_i32_0 = arith.constant 0 : i32
    %2 = arith.cmpi ne, %1, %c0_i32_0 : i32
    scf.if %2 {
      %cst_10 = arith.constant 0.000000e+00 : f32
      %12 = vector.broadcast %cst_10 : f32 to vector<16x512xf32>
      %c0_11 = arith.constant 0 : index
      %c0_12 = arith.constant 0 : index
      %13 = vector.load %arg7[%c0_11, %c0_12] : memref<16x512xf32, #tpu.memory_space<vmem>>, vector<16x512xf32>
      tpu.vector_store %arg7[%c0_11, %c0_12], %12 {strides = array<i32>} : memref<16x512xf32, #tpu.memory_space<vmem>>, vector<16x512xf32>,
    } else {
    }
    %c0 = arith.constant 0 : index
    %c0_1 = arith.constant 0 : index
    %3 = vector.load %arg7[%c0, %c0_1] : memref<16x512xf32, #tpu.memory_space<vmem>>, vector<16x512xf32>
    %c0_2 = arith.constant 0 : index
    %c0_3 = arith.constant 0 : index
    %4 = vector.load %arg2[%c0_2, %c0_3] : memref<16x256xbf16, #tpu.memory_space<vmem>>, vector<16x256xbf16>
    %c0_4 = arith.constant 0 : index
    %c0_5 = arith.constant 0 : index
    %5 = vector.load %arg3[%c0_4, %c0_5] : memref<256x512xbf16, #tpu.memory_space<vmem>>, vector<256x512xbf16>
    %cst = arith.constant dense<0.000000e+00> : vector<16x512xf32>
    %6 = tpu.matmul %4, %5, %cst {dimension_numbers = #tpu.dot_dimension_numbers<[1], [0], [0], [1], [0, 0, 1, 1], [], []>} : vector<16x256xbf16>, vector<256x512xbf16>, vector<16x512xf32> -> vector<16x512xf32>
    %7 = arith.addf %3, %6 : vector<16x512xf32>
    %c0_6 = arith.constant 0 : index
    %c0_7 = arith.constant 0 : index
    %8 = vector.load %arg7[%c0_6, %c0_7] : memref<16x512xf32, #tpu.memory_space<vmem>>, vector<16x512xf32>
    tpu.vector_store %arg7[%c0_6, %c0_7], %7 {strides = array<i32>} : memref<16x512xf32, #tpu.memory_space<vmem>>, vector<16x512xf32>,
    %c0_i32_8 = arith.constant 0 : i32
    %9 = arith.cmpi eq, %arg1, %c0_i32_8 : i32
    %10 = arith.extui %9 : i1 to i32
    %c0_i32_9 = arith.constant 0 : i32
    %11 = arith.cmpi ne, %10, %c0_i32_9 : i32
    scf.if %11 {
      %c0_10 = arith.constant 0 : index
      %c0_11 = arith.constant 0 : index
      %12 = vector.load %arg7[%c0_10, %c0_11] : memref<16x512xf32, #tpu.memory_space<vmem>>, vector<16x512xf32>
      %c0_12 = arith.constant 0 : index
      %c0_13 = arith.constant 0 : index
      %13 = vector.load %arg4[%c0_12, %c0_13] : memref<1x512xf32, #tpu.memory_space<vmem>>, vector<1x512xf32>
      %14 = vector.broadcast %13 : vector<1x512xf32> to vector<16x512xf32>
      %15 = arith.mulf %12, %14 : vector<16x512xf32>
      %c0_14 = arith.constant 0 : index
      %c0_15 = arith.constant 0 : index
      %16 = vector.load %arg5[%c0_14, %c0_15] : memref<1x512xf32, #tpu.memory_space<vmem>>, vector<1x512xf32>
      %17 = vector.broadcast %16 : vector<1x512xf32> to vector<16x512xf32>
      %18 = arith.addf %15, %17 : vector<16x512xf32>
      %19 = arith.truncf %18 : vector<16x512xf32> to vector<16x512xbf16>
      %c0_16 = arith.constant 0 : index
      %c0_17 = arith.constant 0 : index
      %20 = vector.load %arg6[%c0_16, %c0_17] : memref<16x512xbf16, #tpu.memory_space<vmem>>, vector<16x512xbf16>
      tpu.vector_store %arg6[%c0_16, %c0_17], %19 {strides = array<i32>} : memref<16x512xbf16, #tpu.memory_space<vmem>>, vector<16x512xbf16>,
    } else {
    }
    return
  }
  func.func @transform_0(%arg0: i32, %arg1: i32) -> (i32, i32) {
    %c0_i32 = arith.constant 0 : i32
    return %arg0, %arg1 : i32, i32
  }
  func.func @transform_1(%arg0: i32, %arg1: i32) -> (i32, i32) {
    %c0_i32 = arith.constant 0 : i32
    %c0_i32_0 = arith.constant 0 : i32
    return %arg1, %c0_i32 : i32, i32
  }
  func.func @transform_2(%arg0: i32, %arg1: i32) -> (i32, i32) {
    %c0_i32 = arith.constant 0 : i32
    %c0_i32_0 = arith.constant 0 : i32
    %c0_i32_1 = arith.constant 0 : i32
    return %c0_i32, %c0_i32_0 : i32, i32
  }
  func.func @transform_3(%arg0: i32, %arg1: i32) -> (i32, i32) {
    %c0_i32 = arith.constant 0 : i32
    %c0_i32_0 = arith.constant 0 : i32
    %c0_i32_1 = arith.constant 0 : i32
    return %c0_i32, %c0_i32_0 : i32, i32
  }
  func.func @transform_4(%arg0: i32, %arg1: i32) -> (i32, i32) {
    %c0_i32 = arith.constant 0 : i32
    %c0_i32_0 = arith.constant 0 : i32
    return %arg0, %c0_i32 : i32, i32
  }
}

module attributes {stable_mosaic.version = 11 : i64} {
  func.func @kernel(%arg0: i32, %arg1: i32, %arg2: memref<16x512xbf16, #tpu.memory_space<vmem>>, %arg3: memref<512x512xbf16, #tpu.memory_space<vmem>>, %arg4: memref<1x512xf32, #tpu.memory_space<vmem>>, %arg5: memref<1x512xf32, #tpu.memory_space<vmem>>, %arg6: memref<16x512xbf16, #tpu.memory_space<vmem>>, %arg7: memref<16x512xbf16, #tpu.memory_space<vmem>>, %arg8: memref<16x512xf32, #tpu.memory_space<vmem>>) attributes {dimension_semantics = [#tpu.dimension_semantics<parallel>, #tpu.dimension_semantics<arbitrary>], iteration_bounds = array<i64: 1, 9>, scalar_prefetch = 0 : i64, scratch_operands = 1 : i64, tpu.core_type = #tpu.core_type<tc>, window_params = [{transform_indices = @transform_0, window_bounds = array<i64: 16, 512>}, {transform_indices = @transform_1, window_bounds = array<i64: 512, 512>}, {pipeline_mode = #tpu.pipeline_mode<synchronous>, transform_indices = @transform_2, window_bounds = array<i64: 1, 512>}, {pipeline_mode = #tpu.pipeline_mode<synchronous>, transform_indices = @transform_3, window_bounds = array<i64: 1, 512>}, {transform_indices = @transform_4, window_bounds = array<i64: 16, 512>}, {transform_indices = @transform_5, window_bounds = array<i64: 16, 512>}]} {
    %c0_i32 = arith.constant 0 : i32
    %0 = arith.cmpi eq, %arg1, %c0_i32 : i32
    %1 = arith.extui %0 : i1 to i32
    %c0_i32_0 = arith.constant 0 : i32
    %2 = arith.cmpi ne, %1, %c0_i32_0 : i32
    scf.if %2 {
      %cst_9 = arith.constant 0.000000e+00 : f32
      %12 = vector.broadcast %cst_9 : f32 to vector<16x512xf32>
      %c0_10 = arith.constant 0 : index
      %c0_11 = arith.constant 0 : index
      %13 = vector.load %arg8[%c0_10, %c0_11] : memref<16x512xf32, #tpu.memory_space<vmem>>, vector<16x512xf32>
      tpu.vector_store %arg8[%c0_10, %c0_11], %12 {strides = array<i32>} : memref<16x512xf32, #tpu.memory_space<vmem>>, vector<16x512xf32>,
    } else {
    }
    %c0 = arith.constant 0 : index
    %c0_1 = arith.constant 0 : index
    %3 = vector.load %arg8[%c0, %c0_1] : memref<16x512xf32, #tpu.memory_space<vmem>>, vector<16x512xf32>
    %c0_2 = arith.constant 0 : index
    %c0_3 = arith.constant 0 : index
    %4 = vector.load %arg2[%c0_2, %c0_3] : memref<16x512xbf16, #tpu.memory_space<vmem>>, vector<16x512xbf16>
    %c0_4 = arith.constant 0 : index
    %c0_5 = arith.constant 0 : index
    %5 = vector.load %arg3[%c0_4, %c0_5] : memref<512x512xbf16, #tpu.memory_space<vmem>>, vector<512x512xbf16>
    %cst = arith.constant dense<0.000000e+00> : vector<16x512xf32>
    %6 = tpu.matmul %4, %5, %cst {dimension_numbers = #tpu.dot_dimension_numbers<[1], [0], [0], [1], [0, 0, 1, 1], [], []>} : vector<16x512xbf16>, vector<512x512xbf16>, vector<16x512xf32> -> vector<16x512xf32>
    %7 = arith.addf %3, %6 : vector<16x512xf32>
    %c0_6 = arith.constant 0 : index
    %c0_7 = arith.constant 0 : index
    %8 = vector.load %arg8[%c0_6, %c0_7] : memref<16x512xf32, #tpu.memory_space<vmem>>, vector<16x512xf32>
    tpu.vector_store %arg8[%c0_6, %c0_7], %7 {strides = array<i32>} : memref<16x512xf32, #tpu.memory_space<vmem>>, vector<16x512xf32>,
    %c8_i32 = arith.constant 8 : i32
    %9 = arith.cmpi eq, %arg1, %c8_i32 : i32
    %10 = arith.extui %9 : i1 to i32
    %c0_i32_8 = arith.constant 0 : i32
    %11 = arith.cmpi ne, %10, %c0_i32_8 : i32
    scf.if %11 {
      %c0_9 = arith.constant 0 : index
      %c0_10 = arith.constant 0 : index
      %12 = vector.load %arg8[%c0_9, %c0_10] : memref<16x512xf32, #tpu.memory_space<vmem>>, vector<16x512xf32>
      %c0_11 = arith.constant 0 : index
      %c0_12 = arith.constant 0 : index
      %13 = vector.load %arg4[%c0_11, %c0_12] : memref<1x512xf32, #tpu.memory_space<vmem>>, vector<1x512xf32>
      %14 = vector.broadcast %13 : vector<1x512xf32> to vector<16x512xf32>
      %15 = arith.mulf %12, %14 : vector<16x512xf32>
      %c0_13 = arith.constant 0 : index
      %c0_14 = arith.constant 0 : index
      %16 = vector.load %arg5[%c0_13, %c0_14] : memref<1x512xf32, #tpu.memory_space<vmem>>, vector<1x512xf32>
      %17 = vector.broadcast %16 : vector<1x512xf32> to vector<16x512xf32>
      %18 = arith.addf %15, %17 : vector<16x512xf32>
      %c0_15 = arith.constant 0 : index
      %c0_16 = arith.constant 0 : index
      %19 = vector.load %arg6[%c0_15, %c0_16] : memref<16x512xbf16, #tpu.memory_space<vmem>>, vector<16x512xbf16>
      %20 = arith.extf %19 : vector<16x512xbf16> to vector<16x512xf32>
      %21 = arith.addf %18, %20 : vector<16x512xf32>
      %cst_17 = arith.constant 0.000000e+00 : f32
      %22 = vector.broadcast %cst_17 : f32 to vector<16x512xf32>
      %23 = arith.maximumf %21, %22 : vector<16x512xf32>
      %24 = arith.truncf %23 : vector<16x512xf32> to vector<16x512xbf16>
      %c0_18 = arith.constant 0 : index
      %c0_19 = arith.constant 0 : index
      %25 = vector.load %arg7[%c0_18, %c0_19] : memref<16x512xbf16, #tpu.memory_space<vmem>>, vector<16x512xbf16>
      tpu.vector_store %arg7[%c0_18, %c0_19], %24 {strides = array<i32>} : memref<16x512xbf16, #tpu.memory_space<vmem>>, vector<16x512xbf16>,
    } else {
    }
    return
  }
  func.func @transform_0(%arg0: i32, %arg1: i32) -> (i32, i32) {
    %c0_i32 = arith.constant 0 : i32
    return %arg0, %arg1 : i32, i32
  }
  func.func @transform_1(%arg0: i32, %arg1: i32) -> (i32, i32) {
    %c0_i32 = arith.constant 0 : i32
    %c0_i32_0 = arith.constant 0 : i32
    return %arg1, %c0_i32 : i32, i32
  }
  func.func @transform_2(%arg0: i32, %arg1: i32) -> (i32, i32) {
    %c0_i32 = arith.constant 0 : i32
    %c0_i32_0 = arith.constant 0 : i32
    %c0_i32_1 = arith.constant 0 : i32
    return %c0_i32, %c0_i32_0 : i32, i32
  }
  func.func @transform_3(%arg0: i32, %arg1: i32) -> (i32, i32) {
    %c0_i32 = arith.constant 0 : i32
    %c0_i32_0 = arith.constant 0 : i32
    %c0_i32_1 = arith.constant 0 : i32
    return %c0_i32, %c0_i32_0 : i32, i32
  }
  func.func @transform_4(%arg0: i32, %arg1: i32) -> (i32, i32) {
    %c0_i32 = arith.constant 0 : i32
    %c0_i32_0 = arith.constant 0 : i32
    return %arg0, %c0_i32 : i32, i32
  }
  func.func @transform_5(%arg0: i32, %arg1: i32) -> (i32, i32) {
    %c0_i32 = arith.constant 0 : i32
    %c0_i32_0 = arith.constant 0 : i32
    return %arg0, %c0_i32 : i32, i32
  }
}

module attributes {stable_mosaic.version = 11 : i64} {
  func.func @kernel(%arg0: memref<2x1x512xbf16, #tpu.memory_space<vmem>>, %arg1: memref<512x128xbf16, #tpu.memory_space<vmem>>, %arg2: memref<1x128xf32, #tpu.memory_space<vmem>>, %arg3: memref<2x128xf32, #tpu.memory_space<vmem>>) attributes {dimension_semantics = [], scalar_prefetch = 0 : i64, scratch_operands = 0 : i64, tpu.core_type = #tpu.core_type<tc>} {
    %c0 = arith.constant 0 : index
    %c0_0 = arith.constant 0 : index
    %c0_1 = arith.constant 0 : index
    %0 = vector.load %arg0[%c0, %c0_0, %c0_1] : memref<2x1x512xbf16, #tpu.memory_space<vmem>>, vector<2x1x512xbf16>
    %1 = arith.extf %0 : vector<2x1x512xbf16> to vector<2x1x512xf32>
    %cst = arith.constant dense<0.000000e+00> : vector<2x512xf32>
    %2 = vector.multi_reduction <add>, %1, %cst [1] : vector<2x1x512xf32> to vector<2x512xf32>
    %cst_2 = arith.constant 1.000000e+00 : f32
    %3 = vector.broadcast %cst_2 : f32 to vector<2x512xf32>
    %4 = arith.divf %2, %3 : vector<2x512xf32>
    %5 = arith.truncf %4 : vector<2x512xf32> to vector<2x512xbf16>
    %c0_3 = arith.constant 0 : index
    %c0_4 = arith.constant 0 : index
    %6 = vector.load %arg1[%c0_3, %c0_4] : memref<512x128xbf16, #tpu.memory_space<vmem>>, vector<512x128xbf16>
    %cst_5 = arith.constant dense<0.000000e+00> : vector<2x128xf32>
    %7 = tpu.matmul %5, %6, %cst_5 {dimension_numbers = #tpu.dot_dimension_numbers<[1], [0], [0], [1], [0, 0, 1, 1], [], []>} : vector<2x512xbf16>, vector<512x128xbf16>, vector<2x128xf32> -> vector<2x128xf32>
    %c0_6 = arith.constant 0 : index
    %c0_7 = arith.constant 0 : index
    %8 = vector.load %arg2[%c0_6, %c0_7] : memref<1x128xf32, #tpu.memory_space<vmem>>, vector<1x128xf32>
    %9 = vector.broadcast %8 : vector<1x128xf32> to vector<2x128xf32>
    %10 = arith.addf %7, %9 : vector<2x128xf32>
    %cst_8 = arith.constant 1.000000e+00 : f32
    %11 = vector.broadcast %cst_8 : f32 to vector<2x128xf32>
    %12 = arith.mulf %10, %11 : vector<2x128xf32>
    %c0_9 = arith.constant 0 : index
    %c0_10 = arith.constant 0 : index
    %13 = vector.load %arg3[%c0_9, %c0_10] : memref<2x128xf32, #tpu.memory_space<vmem>>, vector<2x128xf32>
    tpu.vector_store %arg3[%c0_9, %c0_10], %12 {strides = array<i32>} : memref<2x128xf32, #tpu.memory_space<vmem>>, vector<2x128xf32>,
    return
  }
}

</mosaic_0001>

<bundles_post_ra>
// kernel: _lambda_.14
= control target key start
LH: loop header
LB: loop body
LE: loop exit
PB: predicated region body
PF: predicated region fallthrough
CT: control target
= control target key end

     0   :  { %s1613_s15 = smov 0   ;;  %s1615_s16 = smov 0   ;;  %s1859_s0 = inlined_call_operand.vmem [shape: bf16[512,256], index: 0, kind: input, shape index: {}]   ;;  %s1860_s1 = inlined_call_operand.vmem [shape: bf16[256,128], index: 1, kind: input, shape index: {}]   ;;  %s1861_s2 = inlined_call_operand.vmem [shape: f32[1,128], index: 2, kind: input, shape index: {}]   ;;  %s1862_s3 = inlined_call_operand.vmem [shape: f32[1,128], index: 3, kind: input, shape index: {}]   ;;  %s1863_s4 = inlined_call_operand.vmem [shape: bf16[512,128], index: 4, kind: output, shape index: {}]  }
   0x1   :  { %s1617_s17 = smov 0  }
   0x2 LB: > { %s26_s18 = sadd.s32 1, %s1582_s16  ;;  %p1178_p0 = scmp.ge.s32.totalorder %s1586_s17, 1  ;;  %s1586_s17 = sphi %s1617_s17, %s14_s17   ;;  %s1582_s16 = sphi %s1615_s16, %s1865_s16   ;;  %s1578_s15 = sphi %s1613_s15, %s1864_s15  }
   0x3   : > { %p28_p1 = scmp.ge.s32.totalorder %s26_s18, 2  ;;  %p194_p2 = scmp.lt.s32.totalorder %s1586_s17, 3 }
   0x5   : > { %s1867_s18 = smov (%p28_p1, %s26_s18), 0  ;;  %p195_p3 = pnand %p1178_p0, %p194_p2 }
   0x6   : > { %s1179_s5 = sshll.u32 (!%p195_p3), %s1578_s15, 5 }
   0x7   : > { %198 = sbr.rel (%p195_p3) target bundleno = 308 (0x134), region = 36  ;;  %p232_p4 = scmp.lt.s32.totalorder (!%p195_p3), %s1179_s5, 63 }
   0xc   : > { %v1418_v0 = vld [vmem:[%s1860_s1 + $0x38] sm:$0xff]  ;;  %v1417_v2 = vld [vmem:[%s1860_s1 + $0x30] sm:$0xff]  ;;  %v1416_v4 = vld [vmem:[%s1860_s1 + $0x28] sm:$0xff]  ;;  %s1869_s5 = smov (!%p232_p4, %s1179_s5), 63 }
   0xd   : > { %v1426_v1 = vld [vmem:[%s1860_s1 + $0x78] sm:$0xff]  ;;  %642 = vmatpush.bf16.msra.mxu0 %v1418_v0  ;;  %1522 = vmatpush.bf16.msra.mxu2 %v1418_v0  ;;  %v1425_v3 = vld [vmem:[%s1860_s1 + $0x70] sm:$0xff]  ;;  %v1424_v5 = vld [vmem:[%s1860_s1 + $0x68] sm:$0xff]  ;;  %s1378_s21 = sshll.u32 %s1869_s5, 3  ;;  %s1183_s12 = sshll.u32 %s1869_s5, 2 }
   0xe   : > { %731 = vmatpush.bf16.msra.mxu1 %v1426_v1  ;;  %1530 = vmatpush.bf16.msra.mxu3 %v1426_v1  ;;  %v1415_v6 = vld [vmem:[%s1860_s1 + $0x20] sm:$0xff]  ;;  %v1414_v8 = vld [vmem:[%s1860_s1 + $0x18] sm:$0xff]  ;;  %v1413_v10 = vld [vmem:[%s1860_s1 + $0x10] sm:$0xff]  ;;  %s1679_s26 = scalar_lea.vmem %s1859_s0, %s1378_s21  ;;  %s1773_s15 = scalar_lea.vmem %s1863_s4, %s1183_s12 }
   0xf   : > { %v1423_v7 = vld [vmem:[%s1860_s1 + $0x60] sm:$0xff]  ;;  %v1422_v9 = vld [vmem:[%s1860_s1 + $0x58] sm:$0xff]  ;;  %v1421_v11 = vld [vmem:[%s1860_s1 + $0x50] sm:$0xff] }
  0x10   : > { %v1412_v12 = vld [vmem:[%s1860_s1 + $0x8] sm:$0xff]  ;;  %v1411_v14 = vld [vmem:[%s1860_s1] sm:$0xff]  ;;  %v1194_v28 = vld [vmem:[%s1679_s26 + $0x10] sm:$0xf] }
  0x11   : > { %643 = vmatpush.bf16.msra.mxu0 %v1417_v2  ;;  %1523 = vmatpush.bf16.msra.mxu2 %v1417_v2  ;;  %v1420_v13 = vld [vmem:[%s1860_s1 + $0x48] sm:$0xff]  ;;  %v1419_v15 = vld [vmem:[%s1860_s1 + $0x40] sm:$0xff]  ;;  %v1382_v29 = vld [vmem:[%s1679_s26 + $0x14] sm:$0xf0] }
  0x12   : > { %732 = vmatpush.bf16.msra.mxu1 %v1425_v3  ;;  %1531 = vmatpush.bf16.msra.mxu3 %v1425_v3  ;;  %v1186_v16 = vld [vmem:[%s1679_s26] sm:$0xf]  ;;  %v1380_v17 = vld [vmem:[%s1679_s26 + $0x4] sm:$0xf0]  ;;  %v1379_v20 = vld [vmem:[%s1679_s26 + $0x4] sm:$0xf]  ;;  %v1195_v36 = vor.u32 %v1382_v29, %v1194_v28 }
  0x13   : > { %v1250_v18 = vld [vmem:[%s1679_s26 + $0x80] sm:$0xf]  ;;  %v1396_v19 = vld [vmem:[%s1679_s26 + $0x84] sm:$0xf0]  ;;  %v1188_v21 = vld [vmem:[%s1679_s26 + $0x8] sm:$0xf0]  ;;  %v1187_v24 = vor.u32 %v1380_v17, %v1186_v16 }
  0x14   : > { %v1395_v22 = vld [vmem:[%s1679_s26 + $0x84] sm:$0xf]  ;;  %v1252_v23 = vld [vmem:[%s1679_s26 + $0x88] sm:$0xf0]  ;;  %v1251_v25 = vor.u32 %v1396_v19, %v1250_v18  ;;  %v1191_v26 = vor.u32 %v1379_v20, %v1188_v21  ;;  %v1258_v30 = vld [vmem:[%s1679_s26 + $0x90] sm:$0xf] }
  0x15   : > { %644 = vmatpush.bf16.msra.mxu0 %v1416_v4  ;;  %1524 = vmatpush.bf16.msra.mxu2 %v1416_v4  ;;  %v1255_v27 = vor.u32 %v1395_v22, %v1252_v23  ;;  %v1398_v31 = vld [vmem:[%s1679_s26 + $0x94] sm:$0xf0]  ;;  %v1381_v32 = vld [vmem:[%s1679_s26 + $0x14] sm:$0xf]  ;;  %v1196_v33 = vld [vmem:[%s1679_s26 + $0x18] sm:$0xf0] }
  0x16   : > { %733 = vmatpush.bf16.msra.mxu1 %v1424_v5  ;;  %1532 = vmatpush.bf16.msra.mxu3 %v1424_v5  ;;  %v1397_v34 = vld [vmem:[%s1679_s26 + $0x94] sm:$0xf]  ;;  %v1260_v35 = vld [vmem:[%s1679_s26 + $0x98] sm:$0xf0]  ;;  %v1259_v37 = vor.u32 %v1398_v31, %v1258_v30  ;;  %v1199_v38 = vor.u32 %v1381_v32, %v1196_v33  ;;  %v1202_v40 = vld [vmem:[%s1679_s26 + $0x20] sm:$0xf] }
  0x17   : > { %v1263_v39 = vor.u32 %v1397_v34, %v1260_v35  ;;  %v1384_v41 = vld [vmem:[%s1679_s26 + $0x24] sm:$0xf0]  ;;  %v1266_v42 = vld [vmem:[%s1679_s26 + $0xa0] sm:$0xf]  ;;  %v1383_v44 = vld [vmem:[%s1679_s26 + $0x24] sm:$0xf] }
  0x18   : > { %v1400_v43 = vld [vmem:[%s1679_s26 + $0xa4] sm:$0xf0]  ;;  %v1204_v45 = vld [vmem:[%s1679_s26 + $0x28] sm:$0xf0]  ;;  %v1399_v46 = vld [vmem:[%s1679_s26 + $0xa4] sm:$0xf]  ;;  %v1203_v48 = vor.u32 %v1384_v41, %v1202_v40 }
  0x19   : > { %645 = vmatpush.bf16.msra.mxu0 %v1415_v6  ;;  %1525 = vmatpush.bf16.msra.mxu2 %v1415_v6  ;;  %v1268_v47 = vld [vmem:[%s1679_s26 + $0xa8] sm:$0xf0]  ;;  %v1267_v49 = vor.u32 %v1400_v43, %v1266_v42  ;;  %v1207_v50 = vor.u32 %v1383_v44, %v1204_v45  ;;  %v1210_v52 = vld [vmem:[%s1679_s26 + $0x30] sm:$0xf]  ;;  %v1386_v53 = vld [vmem:[%s1679_s26 + $0x34] sm:$0xf0] }
  0x1a   : > { %734 = vmatpush.bf16.msra.mxu1 %v1423_v7  ;;  %1533 = vmatpush.bf16.msra.mxu3 %v1423_v7  ;;  %v1271_v51 = vor.u32 %v1399_v46, %v1268_v47  ;;  %v1274_v54 = vld [vmem:[%s1679_s26 + $0xb0] sm:$0xf]  ;;  %v1402_v55 = vld [vmem:[%s1679_s26 + $0xb4] sm:$0xf0]  ;;  %v1385_v56 = vld [vmem:[%s1679_s26 + $0x34] sm:$0xf]  ;;  %v1211_v60 = vor.u32 %v1386_v53, %v1210_v52 }
  0x1b   : > { %v1212_v57 = vld [vmem:[%s1679_s26 + $0x38] sm:$0xf0]  ;;  %v1401_v58 = vld [vmem:[%s1679_s26 + $0xb4] sm:$0xf]  ;;  %v1275_v61 = vor.u32 %v1402_v55, %v1274_v54  ;;  %v1218_v0 = vld [vmem:[%s1679_s26 + $0x40] sm:$0xf] }
  0x1c   : > { %v1276_v59 = vld [vmem:[%s1679_s26 + $0xb8] sm:$0xf0]  ;;  %v1215_v62 = vor.u32 %v1385_v56, %v1212_v57  ;;  %v1388_v1 = vld [vmem:[%s1679_s26 + $0x44] sm:$0xf0]  ;;  %v1282_v2 = vld [vmem:[%s1679_s26 + $0xc0] sm:$0xf] }
  0x1d   : > { %646 = vmatpush.bf16.msra.mxu0 %v1414_v8  ;;  %1526 = vmatpush.bf16.msra.mxu2 %v1414_v8  ;;  %v1279_v63 = vor.u32 %v1401_v58, %v1276_v59  ;;  %v1404_v3 = vld [vmem:[%s1679_s26 + $0xc4] sm:$0xf0]  ;;  %v1387_v4 = vld [vmem:[%s1679_s26 + $0x44] sm:$0xf]  ;;  %v1220_v5 = vld [vmem:[%s1679_s26 + $0x48] sm:$0xf0]  ;;  %v1219_v8 = vor.u32 %v1388_v1, %v1218_v0 }
  0x1e   : > { %735 = vmatpush.bf16.msra.mxu1 %v1422_v9  ;;  %1534 = vmatpush.bf16.msra.mxu3 %v1422_v9  ;;  %v1403_v6 = vld [vmem:[%s1679_s26 + $0xc4] sm:$0xf]  ;;  %v1284_v7 = vld [vmem:[%s1679_s26 + $0xc8] sm:$0xf0]  ;;  %v1283_v9 = vor.u32 %v1404_v3, %v1282_v2  ;;  %v1389_v16 = vld [vmem:[%s1679_s26 + $0x54] sm:$0xf] }
  0x1f   : > { %v1228_v17 = vld [vmem:[%s1679_s26 + $0x58] sm:$0xf0]  ;;  %v1405_v18 = vld [vmem:[%s1679_s26 + $0xd4] sm:$0xf]  ;;  %v1391_v28 = vld [vmem:[%s1679_s26 + $0x64] sm:$0xf] }
  0x20   : > { %v1292_v19 = vld [vmem:[%s1679_s26 + $0xd8] sm:$0xf0]  ;;  %v1231_v22 = vor.u32 %v1389_v16, %v1228_v17  ;;  %v1236_v29 = vld [vmem:[%s1679_s26 + $0x68] sm:$0xf0]  ;;  %v1407_v30 = vld [vmem:[%s1679_s26 + $0xe4] sm:$0xf] }
  0x21   : > { %647 = vmatpush.bf16.msra.mxu0 %v1413_v10  ;;  %1527 = vmatpush.bf16.msra.mxu2 %v1413_v10  ;;  %v1223_v10 = vor.u32 %v1387_v4, %v1220_v5  ;;  %v1295_v23 = vor.u32 %v1405_v18, %v1292_v19  ;;  %v1300_v31 = vld [vmem:[%s1679_s26 + $0xe8] sm:$0xf0]  ;;  %v1239_v34 = vor.u32 %v1391_v28, %v1236_v29  ;;  %v1393_v40 = vld [vmem:[%s1679_s26 + $0x74] sm:$0xf]  ;;  %v1244_v41 = vld [vmem:[%s1679_s26 + $0x78] sm:$0xf0] }
  0x22   : > { %736 = vmatpush.bf16.msra.mxu1 %v1421_v11  ;;  %1535 = vmatpush.bf16.msra.mxu3 %v1421_v11  ;;  %v1287_v11 = vor.u32 %v1403_v6, %v1284_v7  ;;  %v1303_v35 = vor.u32 %v1407_v30, %v1300_v31  ;;  %v1409_v42 = vld [vmem:[%s1679_s26 + $0xf4] sm:$0xf]  ;;  %v1308_v43 = vld [vmem:[%s1679_s26 + $0xf8] sm:$0xf0]  ;;  %v1247_v46 = vor.u32 %v1393_v40, %v1244_v41  ;;  %v1763_v55 = vld [vmem:[%s1862_s3] ss:$0 sm:$0xff] }
  0x23   : > { %v1311_v47 = vor.u32 %v1409_v42, %v1308_v43 }
  0x25   : > { %648 = vmatpush.bf16.msra.mxu0 %v1412_v12  ;;  %1528 = vmatpush.bf16.msra.mxu2 %v1412_v12  ;;  %v1226_v12 = vld [vmem:[%s1679_s26 + $0x50] sm:$0xf] }
  0x26   : > { %737 = vmatpush.bf16.msra.mxu1 %v1420_v13  ;;  %1536 = vmatpush.bf16.msra.mxu3 %v1420_v13  ;;  %v1390_v13 = vld [vmem:[%s1679_s26 + $0x54] sm:$0xf0] }
  0x27   : > { %v1227_v20 = vor.u32 %v1390_v13, %v1226_v12 }
  0x29   : > { %649 = vmatpush.bf16.msra.mxu0 %v1411_v14  ;;  %1529 = vmatpush.bf16.msra.mxu2 %v1411_v14  ;;  %v1290_v14 = vld [vmem:[%s1679_s26 + $0xd0] sm:$0xf] }
  0x2a   : > { %738 = vmatpush.bf16.msra.mxu1 %v1419_v15  ;;  %1537 = vmatpush.bf16.msra.mxu3 %v1419_v15  ;;  %v1406_v15 = vld [vmem:[%s1679_s26 + $0xd4] sm:$0xf0] }
  0x2b   : > { %v1291_v21 = vor.u32 %v1406_v15, %v1290_v14 }
  0x2c   : > { %650 = vmatmul.bf16.vlgmr.msra.gmra.mxu0 %v1187_v24  ;;  %690 = vmatmul.bf16.vlgmr.msra.gmra.mxu2 %v1251_v25  ;;  %v1234_v24 = vld [vmem:[%s1679_s26 + $0x60] sm:$0xf]  ;;  %v1392_v25 = vld [vmem:[%s1679_s26 + $0x64] sm:$0xf0] }
  0x2d   : > { %739 = vmatmul.bf16.vlgmr.msra.gmra.mxu1 %v1191_v26  ;;  %779 = vmatmul.bf16.vlgmr.msra.gmra.mxu3 %v1255_v27  ;;  %v1298_v26 = vld [vmem:[%s1679_s26 + $0xe0] sm:$0xf]  ;;  %v1408_v27 = vld [vmem:[%s1679_s26 + $0xe4] sm:$0xf0]  ;;  %v1235_v32 = vor.u32 %v1392_v25, %v1234_v24 }
  0x2e   : > { %v1299_v33 = vor.u32 %v1408_v27, %v1298_v26 }
  0x3c   : > { %655 = vmatmul.bf16.gmra.mxu0 %v1195_v36  ;;  %695 = vmatmul.bf16.gmra.mxu2 %v1259_v37  ;;  %v1242_v36 = vld [vmem:[%s1679_s26 + $0x70] sm:$0xf]  ;;  %v1394_v37 = vld [vmem:[%s1679_s26 + $0x74] sm:$0xf0] }
  0x3d   : > { %744 = vmatmul.bf16.gmra.mxu1 %v1199_v38  ;;  %784 = vmatmul.bf16.gmra.mxu3 %v1263_v39  ;;  %v1306_v38 = vld [vmem:[%s1679_s26 + $0xf0] sm:$0xf]  ;;  %v1410_v39 = vld [vmem:[%s1679_s26 + $0xf4] sm:$0xf0]  ;;  %v1243_v44 = vor.u32 %v1394_v37, %v1242_v36 }
  0x3e   : > { %v1307_v45 = vor.u32 %v1410_v39, %v1306_v38 }
  0x4c   : > { %660 = vmatmul.bf16.gmra.mxu0 %v1203_v48  ;;  %700 = vmatmul.bf16.gmra.mxu2 %v1267_v49 }
  0x4d   : > { %749 = vmatmul.bf16.gmra.mxu1 %v1207_v50  ;;  %789 = vmatmul.bf16.gmra.mxu3 %v1271_v51  ;;  %v1757_v51 = vld [vmem:[%s1861_s2] ss:$0 sm:$0xff] }
  0x5c   : > { %665 = vmatmul.bf16.gmra.mxu0 %v1211_v60  ;;  %705 = vmatmul.bf16.gmra.mxu2 %v1275_v61 }
  0x5d   : > { %754 = vmatmul.bf16.gmra.mxu1 %v1215_v62  ;;  %794 = vmatmul.bf16.gmra.mxu3 %v1279_v63 }
  0x6c   : > { %670 = vmatmul.bf16.gmra.mxu0 %v1219_v8  ;;  %710 = vmatmul.bf16.gmra.mxu2 %v1283_v9 }
  0x6d   : > { %759 = vmatmul.bf16.gmra.mxu1 %v1223_v10  ;;  %799 = vmatmul.bf16.gmra.mxu3 %v1287_v11 }
  0x7c   : > { %675 = vmatmul.bf16.gmra.mxu0 %v1227_v20  ;;  %715 = vmatmul.bf16.gmra.mxu2 %v1291_v21 }
  0x7d   : > { %764 = vmatmul.bf16.gmra.mxu1 %v1231_v22  ;;  %804 = vmatmul.bf16.gmra.mxu3 %v1295_v23 }
  0x8c   : > { %680 = vmatmul.bf16.gmra.mxu0 %v1235_v32  ;;  %720 = vmatmul.bf16.gmra.mxu2 %v1299_v33 }
  0x8d   : > { %769 = vmatmul.bf16.gmra.mxu1 %v1239_v34  ;;  %809 = vmatmul.bf16.gmra.mxu3 %v1303_v35 }
  0x9c   : > { %685 = vmatmul.bf16.gmra.mxu0 %v1243_v44  ;;  %725 = vmatmul.bf16.gmra.mxu2 %v1307_v45 }
  0x9d   : > { %774 = vmatmul.bf16.gmra.mxu1 %v1247_v46  ;;  %814 = vmatmul.bf16.gmra.mxu3 %v1311_v47 }
  0xa9   : > { %v651_v48 = vpop.f32.mrf.mxu0 }
  0xaa   : > { %v740_v49 = vpop.f32.mrf.mxu1 }
  0xab   : > { %v741_v50 = vadd.f32 %v740_v49, %v651_v48 }
  0xad   : > { %v923_v54 = vmul.f32 %v1757_v51, %v741_v50 }
  0xaf   : > { %v691_v52 = vpop.f32.mrf.mxu2  ;;  %v959_v60 = vadd.f32 %v1763_v55, %v923_v54 }
  0xb0   : > { %v780_v53 = vpop.f32.mrf.mxu3 }
  0xb1   : > { %v653_v56 = vpop.f32.mrf.mxu0  ;;  %v781_v58 = vadd.f32 %v780_v53, %v691_v52  ;;  %v991_v2 = vmax.f32 %v959_v60, 0.0 }
  0xb2   : > { %v742_v57 = vpop.f32.mrf.mxu1 }
  0xb3   : > { %v743_v59 = vadd.f32 %v742_v57, %v653_v56  ;;  %v939_v62 = vmul.f32 %v1757_v51, %v781_v58 }
  0xb5   : > { %v924_v61 = vmul.f32 %v1757_v51, %v743_v59  ;;  %v975_v7 = vadd.f32 %v1763_v55, %v939_v62 }
  0xb7   : > { %v960_v63 = vadd.f32 %v1763_v55, %v924_v61  ;;  %v693_v0 = vpop.f32.mrf.mxu2  ;;  %v1007_v12 = vmax.f32 %v975_v7, 0.0 }
  0xb8   : > { %v782_v1 = vpop.f32.mrf.mxu3 }
  0xb9   : > { %v992_v3 = vmax.f32 %v960_v63, 0.0  ;;  %v783_v4 = vadd.f32 %v782_v1, %v693_v0  ;;  %v656_v5 = vpop.f32.mrf.mxu0 }
  0xba   : > { %v745_v6 = vpop.f32.mrf.mxu1 }
  0xbb   : > { %v1430_v8 = vpack.c.bf16 %v992_v3, %v991_v2  ;;  %v940_v9 = vmul.f32 %v1757_v51, %v783_v4  ;;  %v746_v11 = vadd.f32 %v745_v6, %v656_v5 }
  0xbd   : > { %1431 = vst [vmem:[%s1773_s15] sm:$0xff] %v1430_v8   ;;  %v976_v10 = vadd.f32 %v1763_v55, %v940_v9  ;;  %v925_v17 = vmul.f32 %v1757_v51, %v746_v11 }
  0xbf   : > { %v1008_v13 = vmax.f32 %v976_v10, 0.0  ;;  %v696_v14 = vpop.f32.mrf.mxu2  ;;  %v961_v22 = vadd.f32 %v1763_v55, %v925_v17 }
  0xc0   : > { %v785_v15 = vpop.f32.mrf.mxu3 }
  0xc1   : > { %v1470_v16 = vpack.c.bf16 %v1008_v13, %v1007_v12  ;;  %v658_v18 = vpop.f32.mrf.mxu0  ;;  %v786_v20 = vadd.f32 %v785_v15, %v696_v14  ;;  %v993_v28 = vmax.f32 %v961_v22, 0.0 }
  0xc2   : > { %v747_v19 = vpop.f32.mrf.mxu1 }
  0xc3   : > { %1514 = vst [vmem:[%s1773_s15 + $0x40] sm:$0xff] %v1470_v16   ;;  %v748_v21 = vadd.f32 %v747_v19, %v658_v18  ;;  %v941_v24 = vmul.f32 %v1757_v51, %v786_v20 }
  0xc5   : > { %v926_v23 = vmul.f32 %v1757_v51, %v748_v21  ;;  %v977_v33 = vadd.f32 %v1763_v55, %v941_v24 }
  0xc7   : > { %v962_v25 = vadd.f32 %v1763_v55, %v926_v23  ;;  %v698_v26 = vpop.f32.mrf.mxu2  ;;  %v1009_v38 = vmax.f32 %v977_v33, 0.0 }
  0xc8   : > { %v787_v27 = vpop.f32.mrf.mxu3 }
  0xc9   : > { %v994_v29 = vmax.f32 %v962_v25, 0.0  ;;  %v788_v30 = vadd.f32 %v787_v27, %v698_v26  ;;  %v661_v31 = vpop.f32.mrf.mxu0 }
  0xca   : > { %v750_v32 = vpop.f32.mrf.mxu1 }
  0xcb   : > { %v1435_v34 = vpack.c.bf16 %v994_v29, %v993_v28  ;;  %v942_v35 = vmul.f32 %v1757_v51, %v788_v30  ;;  %v751_v37 = vadd.f32 %v750_v32, %v661_v31 }
  0xcd   : > { %1507 = vst [vmem:[%s1773_s15 + $0x8] sm:$0xff] %v1435_v34   ;;  %v978_v36 = vadd.f32 %v1763_v55, %v942_v35  ;;  %v927_v43 = vmul.f32 %v1757_v51, %v751_v37 }
  0xcf   : > { %v1010_v39 = vmax.f32 %v978_v36, 0.0  ;;  %v701_v40 = vpop.f32.mrf.mxu2  ;;  %v963_v48 = vadd.f32 %v1763_v55, %v927_v43 }
  0xd0   : > { %v790_v41 = vpop.f32.mrf.mxu3 }
  0xd1   : > { %v1475_v42 = vpack.c.bf16 %v1010_v39, %v1009_v38  ;;  %v663_v44 = vpop.f32.mrf.mxu0  ;;  %v791_v46 = vadd.f32 %v790_v41, %v701_v40  ;;  %v995_v56 = vmax.f32 %v963_v48, 0.0 }
  0xd2   : > { %v752_v45 = vpop.f32.mrf.mxu1 }
  0xd3   : > { %1515 = vst [vmem:[%s1773_s15 + $0x48] sm:$0xff] %v1475_v42   ;;  %v753_v47 = vadd.f32 %v752_v45, %v663_v44  ;;  %v943_v50 = vmul.f32 %v1757_v51, %v791_v46 }
  0xd5   : > { %v928_v49 = vmul.f32 %v1757_v51, %v753_v47  ;;  %v979_v61 = vadd.f32 %v1763_v55, %v943_v50 }
  0xd7   : > { %v964_v52 = vadd.f32 %v1763_v55, %v928_v49  ;;  %v703_v53 = vpop.f32.mrf.mxu2  ;;  %v1011_v2 = vmax.f32 %v979_v61, 0.0 }
  0xd8   : > { %v792_v54 = vpop.f32.mrf.mxu3 }
  0xd9   : > { %v996_v57 = vmax.f32 %v964_v52, 0.0  ;;  %v793_v58 = vadd.f32 %v792_v54, %v703_v53  ;;  %v666_v59 = vpop.f32.mrf.mxu0 }
  0xda   : > { %v755_v60 = vpop.f32.mrf.mxu1 }
  0xdb   : > { %v1440_v62 = vpack.c.bf16 %v996_v57, %v995_v56  ;;  %v944_v63 = vmul.f32 %v1757_v51, %v793_v58  ;;  %v756_v1 = vadd.f32 %v755_v60, %v666_v59 }
  0xdd   : > { %1508 = vst [vmem:[%s1773_s15 + $0x10] sm:$0xff] %v1440_v62   ;;  %v980_v0 = vadd.f32 %v1763_v55, %v944_v63  ;;  %v929_v7 = vmul.f32 %v1757_v51, %v756_v1 }
  0xdf   : > { %v1012_v3 = vmax.f32 %v980_v0, 0.0  ;;  %v706_v4 = vpop.f32.mrf.mxu2  ;;  %v965_v12 = vadd.f32 %v1763_v55, %v929_v7 }
  0xe0   : > { %v795_v5 = vpop.f32.mrf.mxu3 }
  0xe1   : > { %v1480_v6 = vpack.c.bf16 %v1012_v3, %v1011_v2  ;;  %v668_v8 = vpop.f32.mrf.mxu0  ;;  %v796_v10 = vadd.f32 %v795_v5, %v706_v4  ;;  %v997_v18 = vmax.f32 %v965_v12, 0.0 }
  0xe2   : > { %v757_v9 = vpop.f32.mrf.mxu1 }
  0xe3   : > { %1516 = vst [vmem:[%s1773_s15 + $0x50] sm:$0xff] %v1480_v6   ;;  %v758_v11 = vadd.f32 %v757_v9, %v668_v8  ;;  %v945_v14 = vmul.f32 %v1757_v51, %v796_v10 }
  0xe5   : > { %v930_v13 = vmul.f32 %v1757_v51, %v758_v11  ;;  %v981_v23 = vadd.f32 %v1763_v55, %v945_v14 }
  0xe7   : > { %v966_v15 = vadd.f32 %v1763_v55, %v930_v13  ;;  %v708_v16 = vpop.f32.mrf.mxu2  ;;  %v1013_v28 = vmax.f32 %v981_v23, 0.0 }
  0xe8   : > { %v797_v17 = vpop.f32.mrf.mxu3 }
  0xe9   : > { %v998_v19 = vmax.f32 %v966_v15, 0.0  ;;  %v798_v20 = vadd.f32 %v797_v17, %v708_v16  ;;  %v671_v21 = vpop.f32.mrf.mxu0 }
  0xea   : > { %v760_v22 = vpop.f32.mrf.mxu1 }
  0xeb   : > { %v1445_v24 = vpack.c.bf16 %v998_v19, %v997_v18  ;;  %v946_v25 = vmul.f32 %v1757_v51, %v798_v20  ;;  %v761_v27 = vadd.f32 %v760_v22, %v671_v21 }
  0xed   : > { %1509 = vst [vmem:[%s1773_s15 + $0x18] sm:$0xff] %v1445_v24   ;;  %v982_v26 = vadd.f32 %v1763_v55, %v946_v25  ;;  %v931_v33 = vmul.f32 %v1757_v51, %v761_v27 }
  0xef   : > { %v1014_v29 = vmax.f32 %v982_v26, 0.0  ;;  %v711_v30 = vpop.f32.mrf.mxu2  ;;  %v967_v38 = vadd.f32 %v1763_v55, %v931_v33 }
  0xf0   : > { %v800_v31 = vpop.f32.mrf.mxu3 }
  0xf1   : > { %v1485_v32 = vpack.c.bf16 %v1014_v29, %v1013_v28  ;;  %v673_v34 = vpop.f32.mrf.mxu0  ;;  %v801_v36 = vadd.f32 %v800_v31, %v711_v30  ;;  %v999_v44 = vmax.f32 %v967_v38, 0.0 }
  0xf2   : > { %v762_v35 = vpop.f32.mrf.mxu1 }
  0xf3   : > { %1517 = vst [vmem:[%s1773_s15 + $0x58] sm:$0xff] %v1485_v32   ;;  %v763_v37 = vadd.f32 %v762_v35, %v673_v34  ;;  %v947_v40 = vmul.f32 %v1757_v51, %v801_v36 }
  0xf5   : > { %v932_v39 = vmul.f32 %v1757_v51, %v763_v37  ;;  %v983_v49 = vadd.f32 %v1763_v55, %v947_v40 }
  0xf7   : > { %v968_v41 = vadd.f32 %v1763_v55, %v932_v39  ;;  %v713_v42 = vpop.f32.mrf.mxu2  ;;  %v1015_v56 = vmax.f32 %v983_v49, 0.0 }
  0xf8   : > { %v802_v43 = vpop.f32.mrf.mxu3 }
  0xf9   : > { %v1000_v45 = vmax.f32 %v968_v41, 0.0  ;;  %v803_v46 = vadd.f32 %v802_v43, %v713_v42  ;;  %v676_v47 = vpop.f32.mrf.mxu0 }
  0xfa   : > { %v765_v48 = vpop.f32.mrf.mxu1 }
  0xfb   : > { %v1450_v50 = vpack.c.bf16 %v1000_v45, %v999_v44  ;;  %v948_v52 = vmul.f32 %v1757_v51, %v803_v46  ;;  %v766_v54 = vadd.f32 %v765_v48, %v676_v47 }
  0xfd   : > { %1510 = vst [vmem:[%s1773_s15 + $0x20] sm:$0xff] %v1450_v50   ;;  %v984_v53 = vadd.f32 %v1763_v55, %v948_v52  ;;  %v933_v61 = vmul.f32 %v1757_v51, %v766_v54 }
  0xff   : > { %v1016_v57 = vmax.f32 %v984_v53, 0.0  ;;  %v716_v58 = vpop.f32.mrf.mxu2  ;;  %v969_v2 = vadd.f32 %v1763_v55, %v933_v61 }
 0x100   : > { %v805_v59 = vpop.f32.mrf.mxu3 }
 0x101   : > { %v1490_v60 = vpack.c.bf16 %v1016_v57, %v1015_v56  ;;  %v678_v62 = vpop.f32.mrf.mxu0  ;;  %v806_v0 = vadd.f32 %v805_v59, %v716_v58  ;;  %v1001_v8 = vmax.f32 %v969_v2, 0.0 }
 0x102   : > { %v767_v63 = vpop.f32.mrf.mxu1 }
 0x103   : > { %1518 = vst [vmem:[%s1773_s15 + $0x60] sm:$0xff] %v1490_v60   ;;  %v768_v1 = vadd.f32 %v767_v63, %v678_v62  ;;  %v949_v4 = vmul.f32 %v1757_v51, %v806_v0 }
 0x105   : > { %v934_v3 = vmul.f32 %v1757_v51, %v768_v1  ;;  %v985_v13 = vadd.f32 %v1763_v55, %v949_v4 }
 0x107   : > { %v970_v5 = vadd.f32 %v1763_v55, %v934_v3  ;;  %v718_v6 = vpop.f32.mrf.mxu2  ;;  %v1017_v18 = vmax.f32 %v985_v13, 0.0 }
 0x108   : > { %v807_v7 = vpop.f32.mrf.mxu3 }
 0x109   : > { %v1002_v9 = vmax.f32 %v970_v5, 0.0  ;;  %v808_v10 = vadd.f32 %v807_v7, %v718_v6  ;;  %v681_v11 = vpop.f32.mrf.mxu0 }
 0x10a   : > { %v770_v12 = vpop.f32.mrf.mxu1 }
 0x10b   : > { %v1455_v14 = vpack.c.bf16 %v1002_v9, %v1001_v8  ;;  %v950_v15 = vmul.f32 %v1757_v51, %v808_v10  ;;  %v771_v17 = vadd.f32 %v770_v12, %v681_v11 }
 0x10d   : > { %1511 = vst [vmem:[%s1773_s15 + $0x28] sm:$0xff] %v1455_v14   ;;  %v986_v16 = vadd.f32 %v1763_v55, %v950_v15  ;;  %v935_v23 = vmul.f32 %v1757_v51, %v771_v17 }
 0x10f   : > { %v1018_v19 = vmax.f32 %v986_v16, 0.0  ;;  %v721_v20 = vpop.f32.mrf.mxu2  ;;  %v971_v28 = vadd.f32 %v1763_v55, %v935_v23 }
 0x110   : > { %v810_v21 = vpop.f32.mrf.mxu3 }
 0x111   : > { %v1495_v22 = vpack.c.bf16 %v1018_v19, %v1017_v18  ;;  %v683_v24 = vpop.f32.mrf.mxu0  ;;  %v811_v26 = vadd.f32 %v810_v21, %v721_v20  ;;  %v1003_v34 = vmax.f32 %v971_v28, 0.0 }
 0x112   : > { %v772_v25 = vpop.f32.mrf.mxu1 }
 0x113   : > { %1519 = vst [vmem:[%s1773_s15 + $0x68] sm:$0xff] %v1495_v22   ;;  %v773_v27 = vadd.f32 %v772_v25, %v683_v24  ;;  %v951_v30 = vmul.f32 %v1757_v51, %v811_v26 }
 0x115   : > { %v936_v29 = vmul.f32 %v1757_v51, %v773_v27  ;;  %v987_v39 = vadd.f32 %v1763_v55, %v951_v30 }
 0x117   : > { %v972_v31 = vadd.f32 %v1763_v55, %v936_v29  ;;  %v723_v32 = vpop.f32.mrf.mxu2  ;;  %v1019_v44 = vmax.f32 %v987_v39, 0.0 }
 0x118   : > { %v812_v33 = vpop.f32.mrf.mxu3 }
 0x119   : > { %v1004_v35 = vmax.f32 %v972_v31, 0.0  ;;  %v813_v36 = vadd.f32 %v812_v33, %v723_v32  ;;  %v686_v37 = vpop.f32.mrf.mxu0 }
 0x11a   : > { %v775_v38 = vpop.f32.mrf.mxu1 }
 0x11b   : > { %v1460_v40 = vpack.c.bf16 %v1004_v35, %v1003_v34  ;;  %v952_v41 = vmul.f32 %v1757_v51, %v813_v36  ;;  %v776_v43 = vadd.f32 %v775_v38, %v686_v37 }
 0x11d   : > { %1512 = vst [vmem:[%s1773_s15 + $0x30] sm:$0xff] %v1460_v40   ;;  %v988_v42 = vadd.f32 %v1763_v55, %v952_v41  ;;  %v937_v49 = vmul.f32 %v1757_v51, %v776_v43 }
 0x11f   : > { %v1020_v45 = vmax.f32 %v988_v42, 0.0  ;;  %v726_v46 = vpop.f32.mrf.mxu2  ;;  %v973_v56 = vadd.f32 %v1763_v55, %v937_v49 }
 0x120   : > { %v815_v47 = vpop.f32.mrf.mxu3 }
 0x121   : > { %v1500_v48 = vpack.c.bf16 %v1020_v45, %v1019_v44  ;;  %v688_v50 = vpop.f32.mrf.mxu0  ;;  %v816_v53 = vadd.f32 %v815_v47, %v726_v46  ;;  %v1005_v62 = vmax.f32 %v973_v56, 0.0 }
 0x122   : > { %v777_v52 = vpop.f32.mrf.mxu1 }
 0x123   : > { %1520 = vst [vmem:[%s1773_s15 + $0x70] sm:$0xff] %v1500_v48   ;;  %v778_v54 = vadd.f32 %v777_v52, %v688_v50  ;;  %v953_v58 = vmul.f32 %v1757_v51, %v816_v53 }
 0x125   : > { %v938_v57 = vmul.f32 %v1757_v51, %v778_v54  ;;  %v989_v1 = vadd.f32 %v1763_v55, %v953_v58 }
 0x127   : > { %v974_v59 = vadd.f32 %v1763_v55, %v938_v57  ;;  %v728_v60 = vpop.f32.mrf.mxu2  ;;  %v1021_v5 = vmax.f32 %v989_v1, 0.0 }
 0x128   : > { %v817_v61 = vpop.f32.mrf.mxu3 }
 0x129   : > { %v1006_v63 = vmax.f32 %v974_v59, 0.0  ;;  %v818_v0 = vadd.f32 %v817_v61, %v728_v60 }
 0x12b   : > { %v1465_v2 = vpack.c.bf16 %v1006_v63, %v1005_v62  ;;  %v954_v3 = vmul.f32 %v1757_v51, %v818_v0 }
 0x12d   : > { %1513 = vst [vmem:[%s1773_s15 + $0x38] sm:$0xff] %v1465_v2   ;;  %v990_v4 = vadd.f32 %v1763_v55, %v954_v3 }
 0x12f   : > { %v1022_v6 = vmax.f32 %v990_v4, 0.0 }
 0x131   : > { %v1505_v7 = vpack.c.bf16 %v1022_v6, %v1021_v5 }
 0x133   : > { %1521 = vst [vmem:[%s1773_s15 + $0x78] sm:$0xff] %v1505_v7  }
 0x134 PF: > { %s14_s17 = sadd.s32 1, %s1586_s17   ;;  %s1864_s15 = smov %s1582_s16 }
 0x135   : > { %p11_p5 = scmp.ge.s32.totalorder %s14_s17, 4   ;;  %s1865_s16 = smov %s1867_s18 }
 0x137   :  { %13 = sbr.rel (!%p11_p5) target bundleno = 2 (0x2), region = 77 }

// kernel: _lambda_.15
= control target key start
LH: loop header
LB: loop body
LE: loop exit
PB: predicated region body
PF: predicated region fallthrough
CT: control target
= control target key end

     0   :  { %s2478_s6 = smov 0   ;;  %s3277_s0 = inlined_call_operand.vmem [shape: bf16[2,18,18,64], index: 0, kind: input, shape index: {}]   ;;  %s3278_s1 = inlined_call_operand.vmem [shape: bf16[2,16,16,64], index: 1, kind: output, shape index: {}]  }
   0x1 LB: > { %s2193_s7 = sadd.s32 4294967295, %s2466_s6   ;;  %p2197_p0 = scmp.ge.s32.totalorder %s2466_s6, 1  ;;  %s2466_s6 = sphi %s2478_s6, %s11_s6  }
   0x2   : > { %p87_p1 = scmp.lt.s32.totalorder %s2466_s6, 3 }
   0x4   : > { %p88_p2 = pnand %p2197_p0, %p87_p1 }
   0x5   : > { %p107_p3 = scmp.lt.s32.totalorder (!%p88_p2), %s2193_s7, 1 }
   0x6   : > { %91 = sbr.rel (%p88_p2) target bundleno = 246 (0xf6), region = 24 }
   0xb   : > { %s3280_s7 = smov (!%p107_p3, %s2193_s7), 1  ;;  %vm261_vm0 = vcmask 1046528   ;;  %vm518_vm1 = vcmask 1045504   ;;  %vm2105_vm2 = vcmask 519168  }
   0xc   : > { %s2451_s8 = smul.u32 216, %s3280_s7  ;;  %s2331_s12 = sshll.u32 %s3280_s7, 7 }
   0xd   : > { %s2569_s15 = scalar_lea.vmem %s3278_s1, %s2331_s12 }
   0xe   : > { %s2492_s11 = scalar_lea.vmem %s3277_s0, %s2451_s8 }
   0xf   : > { %v2333_v0 = vld [vmem:[%s2492_s11] sm:$0xff]   ;;  %v2201_v2 = vld [vmem:[%s2492_s11 + $0xc] sm:$0xff]   ;;  %v2443_v8 = vld [vmem:[%s2492_s11 + $0x18] sm:$0xff]  }
  0x10   : > { %v438_v1 = vld [vmem:[%s2492_s11] sm:$0xe]  ;;  %v2334_v3 = vunpack.c.l.bf16 %v2333_v0  ;;  %v2335_v4 = vunpack.c.h.bf16 %v2333_v0  ;;  %v760_v6 = vunpack.c.l.bf16 %v2201_v2  ;;  %v2249_v7 = vld [vmem:[%s2492_s11 + $0xc] sm:$0xe]  ;;  %v2499_v9 = vunpack.c.h.bf16 %v2201_v2  ;;  %v2313_v17 = vld [vmem:[%s2492_s11 + $0x18] sm:$0xe] }
  0x11   : > { %v486_v5 = vunpack.c.l.bf16 %v438_v1  ;;  %v1192_v10 = vunpack.c.l.bf16 %v2249_v7  ;;  %v2501_v11 = vunpack.c.l.bf16 %v2443_v8  ;;  %v2503_v12 = vunpack.c.h.bf16 %v2443_v8  ;;  %v149_v20 = vld [vmem:[%s2492_s11 + $0x8] sm:$0x1]  ;;  %v2233_v21 = vld [vmem:[%s2492_s11 + $0x14] sm:$0x1]  ;;  %v2297_v26 = vld [vmem:[%s2492_s11 + $0x20] sm:$0x1] }
  0x12   : > { %v262_v13 = vrot.slane %v2334_v3, 1  ;;  %v263_v14 = vrot.slane %v2335_v4, 1  ;;  %v520_v16 = vrot.slane %v2335_v4, 2  ;;  %v968_v18 = vrot.slane %v760_v6, 1  ;;  %v119_v27 = vld [vmem:[%s2492_s11 + $0xc] sm:$0xff]   ;;  %v2534_v54 = vld [vmem:[%s2492_s11 + $0x24] sm:$0xff]  }
  0x13   : > { %v519_v15 = vrot.slane %v486_v5, 2  ;;  %v969_v19 = vrot.slane %v2499_v9, 1  ;;  %v1224_v24 = vrot.slane %v1192_v10, 2  ;;  %v1225_v25 = vrot.slane %v2499_v9, 2  ;;  %v439_v48 = vld [vmem:[%s2492_s11 + $0xc] sm:$0xe] }
  0x14   : > { %v264_v22 = vsel %vm261_vm0, %v262_v13, %v263_v14  ;;  %v1673_v29 = vrot.slane %v2501_v11, 1  ;;  %v2516_v30 = vrot.slane %v2503_v12, 1  ;;  %v1897_v31 = vunpack.c.l.bf16 %v2313_v17  ;;  %v2250_v49 = vld [vmem:[%s2492_s11 + $0x18] sm:$0xe] }
  0x15   : > { %v521_v23 = vsel %vm518_vm1, %v519_v15, %v520_v16  ;;  %v374_v28 = vmax.f32 %v2334_v3, %v264_v22  ;;  %v970_v32 = vsel %vm261_vm0, %v968_v18, %v969_v19  ;;  %v2520_v33 = vrot.slane %v2503_v12, 2  ;;  %v2314_v3 = vld [vmem:[%s2492_s11 + $0x24] sm:$0xe]  ;;  %v150_v15 = vld [vmem:[%s2492_s11 + $0x14] sm:$0x1] }
  0x16   : > { %v197_v34 = vunpack.c.l.bf16 %v149_v20  ;;  %v904_v35 = vunpack.c.l.bf16 %v2233_v21  ;;  %v1929_v37 = vrot.slane %v1897_v31, 2  ;;  %v1609_v38 = vunpack.c.l.bf16 %v2297_v26 }
  0x17   : > { %v631_v36 = vmax.f32 %v374_v28, %v521_v23  ;;  %v167_v39 = vunpack.c.l.bf16 %v119_v27  ;;  %v1226_v45 = vsel %vm518_vm1, %v1224_v24, %v1225_v25  ;;  %v2525_v46 = vsel %vm261_vm0, %v1673_v29, %v2516_v30  ;;  %v2298_v24 = vld [vmem:[%s2492_s11 + $0x2c] sm:$0x1] }
  0x18   : > { %v265_v40 = vrot.slane %v197_v34, 1  ;;  %v522_v41 = vrot.slane %v197_v34, 2  ;;  %v971_v42 = vrot.slane %v904_v35, 1  ;;  %v1227_v43 = vrot.slane %v904_v35, 2 }
  0x19   : > { %v792_v44 = vmax.f32 %v631_v36, %v760_v6  ;;  %v1931_v47 = vsel %vm518_vm1, %v1929_v37, %v2520_v33  ;;  %v1676_v52 = vrot.slane %v1609_v38, 1  ;;  %v1932_v53 = vrot.slane %v1609_v38, 2 }
  0x1a   : > { %v266_v50 = vsel %vm261_vm0, %v263_v14, %v265_v40  ;;  %v523_v51 = vsel %vm518_vm1, %v520_v16, %v522_v41  ;;  %v972_v57 = vsel %vm261_vm0, %v969_v19, %v971_v42  ;;  %v1228_v58 = vsel %vm518_vm1, %v1225_v25, %v1227_v43  ;;  %v2234_v16 = vld [vmem:[%s2492_s11 + $0x20] sm:$0x1]  ;;  %v440_v43 = vld [vmem:[%s2492_s11 + $0x18] sm:$0xe] }
  0x1b   : > { %v1080_v55 = vmax.f32 %v792_v44, %v970_v32  ;;  %v375_v56 = vmax.f32 %v2335_v4, %v266_v50  ;;  %v2538_v59 = vunpack.c.h.bf16 %v119_v27  ;;  %v267_v60 = vrot.slane %v167_v39, 1 }
  0x1c   : > { %v487_v61 = vunpack.c.l.bf16 %v439_v48  ;;  %v1193_v62 = vunpack.c.l.bf16 %v2250_v49  ;;  %v1467_v1 = vunpack.c.l.bf16 %v2534_v54  ;;  %v2542_v2 = vunpack.c.h.bf16 %v2534_v54  ;;  %v2205_v49 = vld [vmem:[%s2492_s11 + $0x24] sm:$0xff]  }
  0x1d   : > { %v1336_v63 = vmax.f32 %v1080_v55, %v1226_v45  ;;  %v632_v0 = vmax.f32 %v375_v56, %v523_v51  ;;  %v1677_v4 = vsel %vm261_vm0, %v2516_v30, %v1676_v52  ;;  %v268_v5 = vrot.slane %v2538_v59, 1  ;;  %v2251_v55 = vld [vmem:[%s2492_s11 + $0x24] sm:$0xe] }
  0x1e   : > { %v524_v6 = vrot.slane %v487_v61, 2  ;;  %v525_v7 = vrot.slane %v2538_v59, 2  ;;  %v1933_v13 = vsel %vm518_vm1, %v2520_v33, %v1932_v53  ;;  %v1229_v14 = vrot.slane %v1193_v62, 2 }
  0x1f   : > { %v1497_v8 = vmax.f32 %v1336_v63, %v2501_v11  ;;  %v793_v10 = vmax.f32 %v632_v0, %v2499_v9  ;;  %v269_v17 = vsel %vm261_vm0, %v267_v60, %v268_v5  ;;  %v1678_v19 = vrot.slane %v1467_v1, 1 }
  0x20   : > { %v526_v18 = vsel %vm518_vm1, %v524_v6, %v525_v7  ;;  %v1898_v20 = vunpack.c.l.bf16 %v2314_v3  ;;  %v376_v23 = vmax.f32 %v167_v39, %v269_v17  ;;  %v1679_v9 = vrot.slane %v2542_v2, 1  ;;  %v2444_v6 = vld [vmem:[%s2492_s11 + $0x30] sm:$0xff]  }
  0x21   : > { %v1785_v21 = vmax.f32 %v1497_v8, %v2525_v46  ;;  %v1081_v22 = vmax.f32 %v793_v10, %v972_v57  ;;  %v1935_v26 = vrot.slane %v2542_v2, 2  ;;  %v198_v27 = vunpack.c.l.bf16 %v150_v15 }
  0x22   : > { %v1934_v25 = vrot.slane %v1898_v20, 2  ;;  %v905_v28 = vunpack.c.l.bf16 %v2234_v16  ;;  %v633_v32 = vmax.f32 %v376_v23, %v526_v18  ;;  %v1231_v34 = vsel %vm518_vm1, %v1229_v14, %v2520_v33 }
  0x23   : > { %v2041_v29 = vmax.f32 %v1785_v21, %v1931_v47  ;;  %v1337_v31 = vmax.f32 %v1081_v22, %v1228_v58  ;;  %v270_v35 = vrot.slane %v198_v27, 1  ;;  %v527_v36 = vrot.slane %v198_v27, 2 }
  0x24   : > { %v976_v37 = vrot.slane %v905_v28, 1  ;;  %v1610_v38 = vunpack.c.l.bf16 %v2298_v24  ;;  %v794_v41 = vmax.f32 %v633_v32, %v2501_v11  ;;  %v1232_v42 = vrot.slane %v905_v28, 2  ;;  %v2235_v24 = vld [vmem:[%s2492_s11 + $0x2c] sm:$0x1] }
  0x25   : > { %v2073_v39 = vpack.c.bf16 %v2041_v29, %v2041_v29  ;;  %v1498_v40 = vmax.f32 %v1337_v31, %v2503_v12  ;;  %v1680_v44 = vsel %vm261_vm0, %v1678_v19, %v1679_v9  ;;  %v1936_v45 = vsel %vm518_vm1, %v1934_v25, %v1935_v26 }
  0x26   : > { %v271_v47 = vsel %vm261_vm0, %v268_v5, %v270_v35  ;;  %v528_v48 = vsel %vm518_vm1, %v525_v7, %v527_v36  ;;  %v1082_v51 = vmax.f32 %v794_v41, %v2525_v46  ;;  %v977_v53 = vsel %vm261_vm0, %v2516_v30, %v976_v37 }
  0x27   : > { %2106 = vst.msk [vmem:[%s2569_s15] sm:$0xf] %vm2105_vm2, %v2073_v39  ;;  %v1786_v50 = vmax.f32 %v1498_v40, %v1677_v4  ;;  %v377_v52 = vmax.f32 %v2538_v59, %v271_v47  ;;  %v1233_v56 = vsel %vm518_vm1, %v2520_v33, %v1232_v42  ;;  %v1681_v57 = vrot.slane %v1610_v38, 1  ;;  %v2299_v39 = vld [vmem:[%s2492_s11 + $0x38] sm:$0x1]  ;;  %v123_v40 = vld [vmem:[%s2492_s11 + $0x24] sm:$0xff]  }
  0x28   : > { %v378_v58 = vmax.f32 %v2501_v11, %v2525_v46  ;;  %v488_v60 = vunpack.c.l.bf16 %v440_v43  ;;  %v1338_v62 = vmax.f32 %v1082_v51, %v1231_v34  ;;  %v764_v0 = vunpack.c.l.bf16 %v2205_v49  ;;  %v2315_v46 = vld [vmem:[%s2492_s11 + $0x30] sm:$0xe] }
  0x29   : > { %v2042_v61 = vmax.f32 %v1786_v50, %v1933_v13  ;;  %v634_v63 = vmax.f32 %v377_v52, %v528_v48  ;;  %v1937_v3 = vrot.slane %v1610_v38, 2  ;;  %v2592_v4 = vunpack.c.h.bf16 %v2205_v49 }
  0x2a   : > { %v529_v59 = vrot.slane %v488_v60, 2  ;;  %v1194_v5 = vunpack.c.l.bf16 %v2251_v55  ;;  %v1499_v8 = vmax.f32 %v1338_v62, %v1467_v1  ;;  %v978_v11 = vrot.slane %v764_v0, 1  ;;  %v151_v1 = vld [vmem:[%s2492_s11 + $0x20] sm:$0x1] }
  0x2b   : > { %v2074_v7 = vpack.c.bf16 %v2042_v61, %v2042_v61  ;;  %v795_v10 = vmax.f32 %v634_v63, %v2503_v12  ;;  %v979_v14 = vrot.slane %v2592_v4, 1  ;;  %v1235_v16 = vrot.slane %v2592_v4, 2  ;;  %v2252_v61 = vld [vmem:[%s2492_s11 + $0x30] sm:$0xe] }
  0x2c   : > { %v531_v13 = vsel %vm518_vm1, %v529_v59, %v2520_v33  ;;  %v1234_v15 = vrot.slane %v1194_v5, 2  ;;  %v1787_v17 = vmax.f32 %v1499_v8, %v1680_v44  ;;  %v2605_v54 = vunpack.c.l.bf16 %v2444_v6  ;;  %v2649_v59 = vld [vmem:[%s2492_s11 + $0x3c] sm:$0xff]  }
  0x2d   : > { %2107 = vst.msk [vmem:[%s2569_s15 + $0x4] sm:$0xf] %vm2105_vm2, %v2074_v7  ;;  %v1083_v18 = vmax.f32 %v795_v10, %v977_v53  ;;  %v635_v19 = vmax.f32 %v378_v58, %v531_v13  ;;  %v1682_v20 = vsel %vm261_vm0, %v1679_v9, %v1681_v57  ;;  %v980_v21 = vsel %vm261_vm0, %v978_v11, %v979_v14  ;;  %v441_v57 = vld [vmem:[%s2492_s11 + $0x24] sm:$0xe]  ;;  %v2316_v13 = vld [vmem:[%s2492_s11 + $0x3c] sm:$0xe] }
  0x2e   : > { %v2610_v22 = vunpack.c.h.bf16 %v2444_v6  ;;  %v1899_v23 = vunpack.c.l.bf16 %v2315_v46  ;;  %v2043_v25 = vmax.f32 %v1787_v17, %v1936_v45  ;;  %v1938_v28 = vsel %vm518_vm1, %v1935_v26, %v1937_v3 }
  0x2f   : > { %v1339_v27 = vmax.f32 %v1083_v18, %v1233_v56  ;;  %v796_v29 = vmax.f32 %v635_v19, %v764_v0  ;;  %v1236_v31 = vsel %vm518_vm1, %v1234_v15, %v1235_v16  ;;  %v1683_v9 = vrot.slane %v2605_v54, 1 }
  0x30   : > { %v2619_v32 = vrot.slane %v2610_v22, 1  ;;  %v199_v34 = vunpack.c.l.bf16 %v151_v1  ;;  %v2075_v35 = vpack.c.bf16 %v2043_v25, %v2043_v25  ;;  %v906_v38 = vunpack.c.l.bf16 %v2235_v24 }
  0x31   : > { %v1500_v36 = vmax.f32 %v1339_v27, %v2542_v2  ;;  %v1084_v37 = vmax.f32 %v796_v29, %v980_v21  ;;  %v1939_v41 = vrot.slane %v1899_v23, 2  ;;  %v2625_v26 = vrot.slane %v2610_v22, 2  ;;  %v152_v21 = vld [vmem:[%s2492_s11 + $0x2c] sm:$0x1] }
  0x32   : > { %v275_v42 = vrot.slane %v199_v34, 1  ;;  %v532_v43 = vrot.slane %v199_v34, 2  ;;  %2108 = vst.msk [vmem:[%s2569_s15 + $0x8] sm:$0xf] %vm2105_vm2, %v2075_v35  ;;  %v981_v47 = vrot.slane %v906_v38, 1  ;;  %v1237_v48 = vrot.slane %v906_v38, 2 }
  0x33   : > { %v1788_v44 = vmax.f32 %v1500_v36, %v1682_v20  ;;  %v1340_v45 = vmax.f32 %v1084_v37, %v1236_v31  ;;  %v1611_v50 = vunpack.c.l.bf16 %v2299_v39  ;;  %v171_v51 = vunpack.c.l.bf16 %v123_v40 }
  0x34   : > { %v276_v2 = vsel %vm261_vm0, %v2516_v30, %v275_v42  ;;  %v533_v49 = vsel %vm518_vm1, %v2520_v33, %v532_v43  ;;  %v2636_v55 = vsel %vm261_vm0, %v1683_v9, %v2619_v32  ;;  %v1941_v30 = vsel %vm518_vm1, %v1939_v41, %v2625_v26 }
  0x35   : > { %v2044_v52 = vmax.f32 %v1788_v44, %v1938_v28  ;;  %v1501_v53 = vmax.f32 %v1340_v45, %v2605_v54  ;;  %v379_v56 = vmax.f32 %v2503_v12, %v276_v2  ;;  %v982_v58 = vsel %vm261_vm0, %v979_v14, %v981_v47  ;;  %v2300_v28 = vld [vmem:[%s2492_s11 + $0x44] sm:$0x1] }
  0x36   : > { %v1238_v33 = vsel %vm518_vm1, %v1235_v16, %v1237_v48  ;;  %v2644_v60 = vunpack.c.h.bf16 %v123_v40  ;;  %v277_v3 = vrot.slane %v171_v51, 1  ;;  %v1686_v12 = vrot.slane %v1611_v50, 1 }
  0x37   : > { %v2076_v62 = vpack.c.bf16 %v2044_v52, %v2044_v52  ;;  %v1789_v63 = vmax.f32 %v1501_v53, %v2636_v55  ;;  %v636_v0 = vmax.f32 %v379_v56, %v533_v49  ;;  %v1942_v5 = vrot.slane %v1611_v50, 2  ;;  %v2209_v52 = vld [vmem:[%s2492_s11 + $0x3c] sm:$0xff]  }
  0x38   : > { %v278_v6 = vrot.slane %v2644_v60, 1  ;;  %v489_v7 = vunpack.c.l.bf16 %v441_v57  ;;  %v535_v11 = vrot.slane %v2644_v60, 2  ;;  %v1195_v46 = vunpack.c.l.bf16 %v2252_v61 }
  0x39   : > { %2109 = vst.msk [vmem:[%s2569_s15 + $0xc] sm:$0xf] %vm2105_vm2, %v2076_v62  ;;  %v2045_v8 = vmax.f32 %v1789_v63, %v1941_v30  ;;  %v797_v10 = vmax.f32 %v636_v0, %v2592_v4  ;;  %v1471_v16 = vunpack.c.l.bf16 %v2649_v59  ;;  %v2660_v17 = vunpack.c.h.bf16 %v2649_v59  ;;  %v2236_v4 = vld [vmem:[%s2492_s11 + $0x38] sm:$0x1]  ;;  %v2253_v63 = vld [vmem:[%s2492_s11 + $0x3c] sm:$0xe] }
  0x3a   : > { %v279_v14 = vsel %vm261_vm0, %v277_v3, %v278_v6  ;;  %v534_v15 = vrot.slane %v489_v7, 2  ;;  %v1239_v20 = vrot.slane %v1195_v46, 2  ;;  %v1900_v27 = vunpack.c.l.bf16 %v2316_v13  ;;  %v2445_v0 = vld [vmem:[%s2492_s11 + $0x48] sm:$0xff]  }
  0x3b   : > { %v2077_v18 = vpack.c.bf16 %v2045_v8, %v2045_v8  ;;  %v1085_v19 = vmax.f32 %v797_v10, %v982_v58  ;;  %v380_v1 = vmax.f32 %v171_v51, %v279_v14  ;;  %v1688_v24 = vrot.slane %v1471_v16, 1  ;;  %v442_v51 = vld [vmem:[%s2492_s11 + $0x30] sm:$0xe] }
  0x3c   : > { %v536_v23 = vsel %vm518_vm1, %v534_v15, %v535_v11  ;;  %v1689_v25 = vrot.slane %v2660_v17, 1  ;;  %v1687_v31 = vsel %vm261_vm0, %v2619_v32, %v1686_v12  ;;  %v1943_v9 = vsel %vm518_vm1, %v2625_v26, %v1942_v5 }
  0x3d   : > { %2110 = vst.msk [vmem:[%s2569_s15 + $0x10] sm:$0xf] %vm2105_vm2, %v2077_v18  ;;  %v1341_v29 = vmax.f32 %v1085_v19, %v1238_v33  ;;  %v637_v34 = vmax.f32 %v380_v1, %v536_v23  ;;  %v1944_v35 = vrot.slane %v1900_v27, 2  ;;  %v1945_v36 = vrot.slane %v2660_v17, 2 }
  0x3e   : > { %v200_v37 = vunpack.c.l.bf16 %v152_v21  ;;  %v907_v38 = vunpack.c.l.bf16 %v2236_v4  ;;  %v1241_v41 = vsel %vm518_vm1, %v1239_v20, %v2625_v26  ;;  %v1612_v42 = vunpack.c.l.bf16 %v2300_v28  ;;  %v153_v21 = vld [vmem:[%s2492_s11 + $0x38] sm:$0x1]  ;;  %v2237_v28 = vld [vmem:[%s2492_s11 + $0x44] sm:$0x1] }
  0x3f   : > { %v1502_v39 = vmax.f32 %v1341_v29, %v2610_v22  ;;  %v798_v40 = vmax.f32 %v637_v34, %v2605_v54  ;;  %v1690_v43 = vsel %vm261_vm0, %v1688_v24, %v1689_v25  ;;  %v382_v50 = vmax.f32 %v2605_v54, %v2636_v55 }
  0x40   : > { %v280_v44 = vrot.slane %v200_v37, 1  ;;  %v537_v45 = vrot.slane %v200_v37, 2  ;;  %v986_v47 = vrot.slane %v907_v38, 1  ;;  %v1242_v49 = vrot.slane %v907_v38, 2 }
  0x41   : > { %v1790_v48 = vmax.f32 %v1502_v39, %v1687_v31  ;;  %v1086_v2 = vmax.f32 %v798_v40, %v2636_v55  ;;  %v1946_v53 = vsel %vm518_vm1, %v1944_v35, %v1945_v36  ;;  %v1691_v30 = vrot.slane %v1612_v42, 1 }
  0x42   : > { %v281_v56 = vsel %vm261_vm0, %v278_v6, %v280_v44  ;;  %v538_v57 = vsel %vm518_vm1, %v535_v11, %v537_v45  ;;  %v987_v62 = vsel %vm261_vm0, %v2619_v32, %v986_v47  ;;  %v1243_v54 = vsel %vm518_vm1, %v2625_v26, %v1242_v49 }
  0x43   : > { %v2046_v58 = vmax.f32 %v1790_v48, %v1943_v9  ;;  %v1342_v33 = vmax.f32 %v1086_v2, %v1241_v41  ;;  %v381_v61 = vmax.f32 %v2644_v60, %v281_v56  ;;  %v1947_v55 = vrot.slane %v1612_v42, 2 }
  0x44   : > { %v490_v3 = vunpack.c.l.bf16 %v442_v51  ;;  %v768_v59 = vunpack.c.l.bf16 %v2209_v52  ;;  %v2694_v7 = vunpack.c.h.bf16 %v2209_v52  ;;  %v1196_v10 = vunpack.c.l.bf16 %v2253_v63  ;;  %v127_v51 = vld [vmem:[%s2492_s11 + $0x3c] sm:$0xff]  }
  0x45   : > { %v2078_v12 = vpack.c.bf16 %v2046_v58, %v2046_v58  ;;  %v1503_v5 = vmax.f32 %v1342_v33, %v1471_v16  ;;  %v638_v6 = vmax.f32 %v381_v61, %v538_v57  ;;  %v2696_v11 = vunpack.c.l.bf16 %v2445_v0  ;;  %v2317_v16 = vld [vmem:[%s2492_s11 + $0x48] sm:$0xe]  ;;  %v443_v57 = vld [vmem:[%s2492_s11 + $0x3c] sm:$0xe] }
  0x46   : > { %v539_v60 = vrot.slane %v490_v3, 2  ;;  %v988_v8 = vrot.slane %v768_v59, 1  ;;  %v1692_v14 = vsel %vm261_vm0, %v1689_v25, %v1691_v30  ;;  %v989_v15 = vrot.slane %v2694_v7, 1  ;;  %v2301_v25 = vld [vmem:[%s2492_s11 + $0x50] sm:$0x1] }
  0x47   : > { %2111 = vst.msk [vmem:[%s2569_s15 + $0x14] sm:$0xf] %vm2105_vm2, %v2078_v12  ;;  %v1791_v46 = vmax.f32 %v1503_v5, %v1690_v43  ;;  %v799_v13 = vmax.f32 %v638_v6, %v2610_v22  ;;  %v1244_v19 = vrot.slane %v1196_v10, 2  ;;  %v1245_v1 = vrot.slane %v2694_v7, 2  ;;  %v2254_v30 = vld [vmem:[%s2492_s11 + $0x48] sm:$0xe] }
  0x48   : > { %v541_v18 = vsel %vm518_vm1, %v539_v60, %v2625_v26  ;;  %v2707_v20 = vunpack.c.h.bf16 %v2445_v0  ;;  %v1948_v24 = vsel %vm518_vm1, %v1945_v36, %v1947_v55  ;;  %v990_v29 = vsel %vm261_vm0, %v988_v8, %v989_v15  ;;  %v2745_v12 = vld [vmem:[%s2492_s11 + $0x54] sm:$0xff]  }
  0x49   : > { %v2047_v4 = vmax.f32 %v1791_v46, %v1946_v53  ;;  %v1087_v23 = vmax.f32 %v799_v13, %v987_v62  ;;  %v639_v27 = vmax.f32 %v382_v50, %v541_v18  ;;  %v1693_v31 = vrot.slane %v2696_v11, 1  ;;  %v2318_v8 = vld [vmem:[%s2492_s11 + $0x54] sm:$0xe] }
  0x4a   : > { %v2716_v9 = vrot.slane %v2707_v20, 1  ;;  %v1901_v34 = vunpack.c.l.bf16 %v2317_v16  ;;  %v201_v39 = vunpack.c.l.bf16 %v153_v21  ;;  %v1246_v40 = vsel %vm518_vm1, %v1244_v19, %v1245_v1 }
  0x4b   : > { %v2079_v35 = vpack.c.bf16 %v2047_v4, %v2047_v4  ;;  %v1343_v37 = vmax.f32 %v1087_v23, %v1243_v54  ;;  %v800_v38 = vmax.f32 %v639_v27, %v768_v59  ;;  %v908_v41 = vunpack.c.l.bf16 %v2237_v28  ;;  %v154_v23 = vld [vmem:[%s2492_s11 + $0x44] sm:$0x1]  ;;  %v2302_v27 = vld [vmem:[%s2492_s11 + $0x5c] sm:$0x1] }
  0x4c   : > { %v1949_v36 = vrot.slane %v1901_v34, 2  ;;  %v1613_v42 = vunpack.c.l.bf16 %v2301_v25  ;;  %v285_v45 = vrot.slane %v201_v39, 1  ;;  %v542_v47 = vrot.slane %v201_v39, 2 }
  0x4d   : > { %2112 = vst.msk [vmem:[%s2569_s15 + $0x18] sm:$0xf] %vm2105_vm2, %v2079_v35  ;;  %v1504_v43 = vmax.f32 %v1343_v37, %v2660_v17  ;;  %v1088_v44 = vmax.f32 %v800_v38, %v990_v29  ;;  %v2724_v48 = vsel %vm261_vm0, %v1693_v31, %v2716_v9  ;;  %v2727_v2 = vrot.slane %v2707_v20, 2 }
  0x4e   : > { %v991_v49 = vrot.slane %v908_v41, 1  ;;  %v1247_v50 = vrot.slane %v908_v41, 2  ;;  %v286_v56 = vsel %vm261_vm0, %v2619_v32, %v285_v45  ;;  %v543_v17 = vsel %vm518_vm1, %v2625_v26, %v542_v47 }
  0x4f   : > { %v1792_v52 = vmax.f32 %v1504_v43, %v1692_v14  ;;  %v1344_v53 = vmax.f32 %v1088_v44, %v1246_v40  ;;  %v1951_v58 = vsel %vm518_vm1, %v1949_v36, %v2727_v2  ;;  %v383_v33 = vmax.f32 %v2610_v22, %v286_v56 }
  0x50   : > { %v992_v61 = vsel %vm261_vm0, %v989_v15, %v991_v49  ;;  %v1696_v62 = vrot.slane %v1613_v42, 1  ;;  %v1248_v32 = vsel %vm518_vm1, %v1245_v1, %v1247_v50  ;;  %v175_v54 = vunpack.c.l.bf16 %v127_v51 }
  0x51   : > { %v2048_v63 = vmax.f32 %v1792_v52, %v1948_v24  ;;  %v1505_v0 = vmax.f32 %v1344_v53, %v2696_v11  ;;  %v640_v55 = vmax.f32 %v383_v33, %v543_v17  ;;  %v2742_v26 = vunpack.c.h.bf16 %v127_v51  ;;  %v2238_v24 = vld [vmem:[%s2492_s11 + $0x50] sm:$0x1] }
  0x52   : > { %v491_v3 = vunpack.c.l.bf16 %v443_v57  ;;  %v1197_v59 = vunpack.c.l.bf16 %v2254_v30  ;;  %v1952_v6 = vrot.slane %v1613_v42, 2  ;;  %v287_v60 = vrot.slane %v175_v54, 1  ;;  %v444_v57 = vld [vmem:[%s2492_s11 + $0x48] sm:$0xe]  ;;  %v2213_v30 = vld [vmem:[%s2492_s11 + $0x54] sm:$0xff]  }
  0x53   : > { %v2080_v5 = vpack.c.bf16 %v2048_v63, %v2048_v63  ;;  %v1793_v22 = vmax.f32 %v1505_v0, %v2724_v48  ;;  %v801_v10 = vmax.f32 %v640_v55, %v2694_v7  ;;  %v288_v46 = vrot.slane %v2742_v26, 1  ;;  %v2255_v63 = vld [vmem:[%s2492_s11 + $0x54] sm:$0xe] }
  0x54   : > { %v544_v13 = vrot.slane %v491_v3, 2  ;;  %v545_v14 = vrot.slane %v2742_v26, 2  ;;  %v1249_v16 = vrot.slane %v1197_v59, 2  ;;  %v1475_v18 = vunpack.c.l.bf16 %v2745_v12  ;;  %v2446_v3 = vld [vmem:[%s2492_s11 + $0x60] sm:$0xff]  }
  0x55   : > { %2113 = vst.msk [vmem:[%s2569_s15 + $0x1c] sm:$0xf] %vm2105_vm2, %v2080_v5  ;;  %v2049_v15 = vmax.f32 %v1793_v22, %v1951_v58  ;;  %v2756_v19 = vunpack.c.h.bf16 %v2745_v12  ;;  %v1089_v1 = vmax.f32 %v801_v10, %v992_v61  ;;  %v289_v21 = vsel %vm261_vm0, %v287_v60, %v288_v46 }
  0x56   : > { %v546_v7 = vsel %vm518_vm1, %v544_v13, %v545_v14  ;;  %v1902_v4 = vunpack.c.l.bf16 %v2318_v8  ;;  %v1697_v25 = vsel %vm261_vm0, %v2716_v9, %v1696_v62  ;;  %v384_v29 = vmax.f32 %v175_v54, %v289_v21 }
  0x57   : > { %v2081_v28 = vpack.c.bf16 %v2049_v15, %v2049_v15  ;;  %v1698_v31 = vrot.slane %v1475_v18, 1  ;;  %v1345_v34 = vmax.f32 %v1089_v1, %v1248_v32  ;;  %v1699_v35 = vrot.slane %v2756_v19, 1  ;;  %v2319_v1 = vld [vmem:[%s2492_s11 + $0x60] sm:$0xe] }
  0x58   : > { %v1954_v37 = vrot.slane %v1902_v4, 2  ;;  %v1955_v38 = vrot.slane %v2756_v19, 2  ;;  %v641_v39 = vmax.f32 %v384_v29, %v546_v7  ;;  %v202_v40 = vunpack.c.l.bf16 %v154_v23  ;;  %v155_v23 = vld [vmem:[%s2492_s11 + $0x50] sm:$0x1] }
  0x59   : > { %2114 = vst.msk [vmem:[%s2569_s15 + $0x20] sm:$0xf] %vm2105_vm2, %v2081_v28  ;;  %v909_v36 = vunpack.c.l.bf16 %v2238_v24  ;;  %v1614_v41 = vunpack.c.l.bf16 %v2302_v27  ;;  %v1506_v42 = vmax.f32 %v1345_v34, %v2707_v20  ;;  %v1953_v43 = vsel %vm518_vm1, %v2727_v2, %v1952_v6  ;;  %v2239_v24 = vld [vmem:[%s2492_s11 + $0x5c] sm:$0x1] }
  0x5a   : > { %v1251_v44 = vsel %vm518_vm1, %v1249_v16, %v2727_v2  ;;  %v1700_v45 = vsel %vm261_vm0, %v1698_v31, %v1699_v35  ;;  %v802_v47 = vmax.f32 %v641_v39, %v2696_v11  ;;  %v290_v49 = vrot.slane %v202_v40, 1  ;;  %v2303_v31 = vld [vmem:[%s2492_s11 + $0x68] sm:$0x1] }
  0x5b   : > { %v547_v50 = vrot.slane %v202_v40, 2  ;;  %v996_v51 = vrot.slane %v909_v36, 1  ;;  %v1794_v52 = vmax.f32 %v1506_v42, %v1697_v25  ;;  %v1956_v53 = vsel %vm518_vm1, %v1954_v37, %v1955_v38 }
  0x5c   : > { %v1252_v56 = vrot.slane %v909_v36, 2  ;;  %v386_v17 = vmax.f32 %v2696_v11, %v2724_v48  ;;  %v1090_v58 = vmax.f32 %v802_v47, %v2724_v48  ;;  %v291_v33 = vsel %vm261_vm0, %v288_v46, %v290_v49 }
  0x5d   : > { %v548_v61 = vsel %vm518_vm1, %v545_v14, %v547_v50  ;;  %v1701_v62 = vrot.slane %v1614_v41, 1  ;;  %v2050_v0 = vmax.f32 %v1794_v52, %v1953_v43  ;;  %v385_v32 = vmax.f32 %v2742_v26, %v291_v33 }
  0x5e   : > { %v997_v54 = vsel %vm261_vm0, %v2716_v9, %v996_v51  ;;  %v1957_v55 = vrot.slane %v1614_v41, 2  ;;  %v1346_v11 = vmax.f32 %v1090_v58, %v1251_v44  ;;  %v1253_v59 = vsel %vm518_vm1, %v2727_v2, %v1252_v56 }
  0x5f   : > { %v492_v48 = vunpack.c.l.bf16 %v444_v57  ;;  %v772_v12 = vunpack.c.l.bf16 %v2213_v30  ;;  %v2082_v5 = vpack.c.bf16 %v2050_v0, %v2050_v0  ;;  %v642_v22 = vmax.f32 %v385_v32, %v548_v61  ;;  %v131_v57 = vld [vmem:[%s2492_s11 + $0x54] sm:$0xff]  }
  0x60   : > { %v2791_v6 = vunpack.c.h.bf16 %v2213_v30  ;;  %v1198_v60 = vunpack.c.l.bf16 %v2255_v63  ;;  %v1507_v26 = vmax.f32 %v1346_v11, %v1475_v18  ;;  %v2793_v46 = vunpack.c.l.bf16 %v2446_v3  ;;  %v445_v61 = vld [vmem:[%s2492_s11 + $0x54] sm:$0xe] }
  0x61   : > { %v549_v8 = vrot.slane %v492_v48, 2  ;;  %v998_v10 = vrot.slane %v772_v12, 1  ;;  %2115 = vst.msk [vmem:[%s2569_s15 + $0x24] sm:$0xf] %vm2105_vm2, %v2082_v5  ;;  %v803_v13 = vmax.f32 %v642_v22, %v2707_v20  ;;  %v1702_v14 = vsel %vm261_vm0, %v1699_v35, %v1701_v62  ;;  %v2256_v62 = vld [vmem:[%s2492_s11 + $0x60] sm:$0xe] }
  0x62   : > { %v999_v15 = vrot.slane %v2791_v6, 1  ;;  %v1254_v16 = vrot.slane %v1198_v60, 2  ;;  %v1795_v21 = vmax.f32 %v1507_v26, %v1700_v45  ;;  %v1255_v18 = vrot.slane %v2791_v6, 2  ;;  %v2842_v5 = vld [vmem:[%s2492_s11 + $0x6c] sm:$0xff]  }
  0x63   : > { %v551_v7 = vsel %vm518_vm1, %v549_v8, %v2727_v2  ;;  %v2804_v4 = vunpack.c.h.bf16 %v2446_v3  ;;  %v1091_v27 = vmax.f32 %v803_v13, %v997_v54  ;;  %v1958_v28 = vsel %vm518_vm1, %v1955_v38, %v1957_v55  ;;  %v2320_v8 = vld [vmem:[%s2492_s11 + $0x6c] sm:$0xe] }
  0x64   : > { %v643_v25 = vmax.f32 %v386_v17, %v551_v7  ;;  %v1703_v29 = vrot.slane %v2793_v46, 1  ;;  %v2051_v34 = vmax.f32 %v1795_v21, %v1956_v53  ;;  %v1000_v35 = vsel %vm261_vm0, %v998_v10, %v999_v15 }
  0x65   : > { %v2813_v37 = vrot.slane %v2804_v4, 1  ;;  %v1903_v39 = vunpack.c.l.bf16 %v2319_v1  ;;  %v1347_v40 = vmax.f32 %v1091_v27, %v1253_v59  ;;  %v203_v41 = vunpack.c.l.bf16 %v155_v23  ;;  %v156_v27 = vld [vmem:[%s2492_s11 + $0x5c] sm:$0x1] }
  0x66   : > { %v804_v36 = vmax.f32 %v643_v25, %v772_v12  ;;  %v910_v42 = vunpack.c.l.bf16 %v2239_v24  ;;  %v2083_v43 = vpack.c.bf16 %v2051_v34, %v2051_v34  ;;  %v1256_v38 = vsel %vm518_vm1, %v1254_v16, %v1255_v18  ;;  %v2304_v25 = vld [vmem:[%s2492_s11 + $0x74] sm:$0x1] }
  0x67   : > { %v1959_v44 = vrot.slane %v1903_v39, 2  ;;  %v1615_v45 = vunpack.c.l.bf16 %v2303_v31  ;;  %v1508_v47 = vmax.f32 %v1347_v40, %v2756_v19  ;;  %v295_v50 = vrot.slane %v203_v41, 1 }
  0x68   : > { %v1092_v49 = vmax.f32 %v804_v36, %v1000_v35  ;;  %v552_v51 = vrot.slane %v203_v41, 2  ;;  %2116 = vst.msk [vmem:[%s2569_s15 + $0x28] sm:$0xf] %vm2105_vm2, %v2083_v43  ;;  %v2821_v52 = vsel %vm261_vm0, %v1703_v29, %v2813_v37  ;;  %v2824_v53 = vrot.slane %v2804_v4, 2 }
  0x69   : > { %v1001_v56 = vrot.slane %v910_v42, 1  ;;  %v1257_v17 = vrot.slane %v910_v42, 2  ;;  %v1796_v30 = vmax.f32 %v1508_v47, %v1702_v14  ;;  %v296_v19 = vsel %vm261_vm0, %v2716_v9, %v295_v50 }
  0x6a   : > { %v1348_v58 = vmax.f32 %v1092_v49, %v1256_v38  ;;  %v553_v33 = vsel %vm518_vm1, %v2727_v2, %v552_v51  ;;  %v1961_v63 = vsel %vm518_vm1, %v1959_v44, %v2824_v53  ;;  %v387_v0 = vmax.f32 %v2707_v20, %v296_v19 }
  0x6b   : > { %v1002_v32 = vsel %vm261_vm0, %v999_v15, %v1001_v56  ;;  %v1706_v54 = vrot.slane %v1615_v45, 1  ;;  %v2052_v55 = vmax.f32 %v1796_v30, %v1958_v28  ;;  %v1258_v9 = vsel %vm518_vm1, %v1255_v18, %v1257_v17  ;;  %v2240_v28 = vld [vmem:[%s2492_s11 + $0x68] sm:$0x1] }
  0x6c   : > { %v1509_v3 = vmax.f32 %v1348_v58, %v2793_v46  ;;  %v179_v11 = vunpack.c.l.bf16 %v131_v57  ;;  %v644_v59 = vmax.f32 %v387_v0, %v553_v33  ;;  %v2839_v2 = vunpack.c.h.bf16 %v131_v57 }
  0x6d   : > { %v493_v48 = vunpack.c.l.bf16 %v445_v61  ;;  %v1199_v12 = vunpack.c.l.bf16 %v2256_v62  ;;  %v2084_v22 = vpack.c.bf16 %v2052_v55, %v2052_v55  ;;  %v1962_v60 = vrot.slane %v1615_v45, 2  ;;  %v446_v61 = vld [vmem:[%s2492_s11 + $0x60] sm:$0xe]  ;;  %v2217_v62 = vld [vmem:[%s2492_s11 + $0x6c] sm:$0xff]  }
  0x6e   : > { %v1797_v20 = vmax.f32 %v1509_v3, %v2821_v52  ;;  %v297_v26 = vrot.slane %v179_v11, 1  ;;  %v805_v10 = vmax.f32 %v644_v59, %v2791_v6  ;;  %v298_v13 = vrot.slane %v2839_v2, 1  ;;  %v2257_v55 = vld [vmem:[%s2492_s11 + $0x6c] sm:$0xe] }
  0x6f   : > { %v554_v14 = vrot.slane %v493_v48, 2  ;;  %v555_v15 = vrot.slane %v2839_v2, 2  ;;  %2117 = vst.msk [vmem:[%s2569_s15 + $0x2c] sm:$0xf] %vm2105_vm2, %v2084_v22  ;;  %v1259_v1 = vrot.slane %v1199_v12, 2  ;;  %v1479_v21 = vunpack.c.l.bf16 %v2842_v5  ;;  %v2447_v48 = vld [vmem:[%s2492_s11 + $0x78] sm:$0xff]  }
  0x70   : > { %v2053_v16 = vmax.f32 %v1797_v20, %v1961_v63  ;;  %v2853_v7 = vunpack.c.h.bf16 %v2842_v5  ;;  %v1093_v18 = vmax.f32 %v805_v10, %v1002_v32  ;;  %v299_v23 = vsel %vm261_vm0, %v297_v26, %v298_v13 }
  0x71   : > { %v556_v6 = vsel %vm518_vm1, %v554_v14, %v555_v15  ;;  %v1904_v24 = vunpack.c.l.bf16 %v2320_v8  ;;  %v1707_v31 = vsel %vm261_vm0, %v2813_v37, %v1706_v54  ;;  %v388_v34 = vmax.f32 %v179_v11, %v299_v23 }
  0x72   : > { %v2085_v29 = vpack.c.bf16 %v2053_v16, %v2053_v16  ;;  %v1708_v35 = vrot.slane %v1479_v21, 1  ;;  %v1349_v39 = vmax.f32 %v1093_v18, %v1258_v9  ;;  %v1709_v40 = vrot.slane %v2853_v7, 1  ;;  %v2321_v18 = vld [vmem:[%s2492_s11 + $0x78] sm:$0xe] }
  0x73   : > { %v1964_v36 = vrot.slane %v1904_v24, 2  ;;  %v1965_v41 = vrot.slane %v2853_v7, 2  ;;  %v645_v42 = vmax.f32 %v388_v34, %v556_v6  ;;  %v204_v43 = vunpack.c.l.bf16 %v156_v27  ;;  %v157_v27 = vld [vmem:[%s2492_s11 + $0x68] sm:$0x1] }
  0x74   : > { %2118 = vst.msk [vmem:[%s2569_s15 + $0x30] sm:$0xf] %vm2105_vm2, %v2085_v29  ;;  %v911_v38 = vunpack.c.l.bf16 %v2240_v28  ;;  %v1616_v44 = vunpack.c.l.bf16 %v2304_v25  ;;  %v1510_v45 = vmax.f32 %v1349_v39, %v2804_v4  ;;  %v1963_v47 = vsel %vm518_vm1, %v2824_v53, %v1962_v60  ;;  %v2241_v28 = vld [vmem:[%s2492_s11 + $0x74] sm:$0x1] }
  0x75   : > { %v1261_v49 = vsel %vm518_vm1, %v1259_v1, %v2824_v53  ;;  %v1710_v50 = vsel %vm261_vm0, %v1708_v35, %v1709_v40  ;;  %v806_v51 = vmax.f32 %v645_v42, %v2793_v46  ;;  %v300_v56 = vrot.slane %v204_v43, 1  ;;  %v2305_v35 = vld [vmem:[%s2492_s11 + $0x80] sm:$0x1] }
  0x76   : > { %v557_v17 = vrot.slane %v204_v43, 2  ;;  %v1006_v57 = vrot.slane %v911_v38, 1  ;;  %v1798_v30 = vmax.f32 %v1510_v45, %v1707_v31  ;;  %v1966_v58 = vsel %vm518_vm1, %v1964_v36, %v1965_v41 }
  0x77   : > { %v1262_v19 = vrot.slane %v911_v38, 2  ;;  %v390_v33 = vmax.f32 %v2793_v46, %v2821_v52  ;;  %v1094_v63 = vmax.f32 %v806_v51, %v2821_v52  ;;  %v301_v0 = vsel %vm261_vm0, %v298_v13, %v300_v56 }
  0x78   : > { %v558_v32 = vsel %vm518_vm1, %v555_v15, %v557_v17  ;;  %v1711_v54 = vrot.slane %v1616_v44, 1  ;;  %v2054_v3 = vmax.f32 %v1798_v30, %v1963_v47  ;;  %v389_v9 = vmax.f32 %v2839_v2, %v301_v0 }
  0x79   : > { %v1007_v11 = vsel %vm261_vm0, %v2813_v37, %v1006_v57  ;;  %v1967_v59 = vrot.slane %v1616_v44, 2  ;;  %v1350_v46 = vmax.f32 %v1094_v63, %v1261_v49  ;;  %v1263_v12 = vsel %vm518_vm1, %v2824_v53, %v1262_v19 }
  0x7a   : > { %v494_v52 = vunpack.c.l.bf16 %v446_v61  ;;  %v776_v5 = vunpack.c.l.bf16 %v2217_v62  ;;  %v2086_v22 = vpack.c.bf16 %v2054_v3, %v2054_v3  ;;  %v646_v20 = vmax.f32 %v389_v9, %v558_v32  ;;  %v135_v61 = vld [vmem:[%s2492_s11 + $0x6c] sm:$0xff]  }
  0x7b   : > { %v2888_v60 = vunpack.c.h.bf16 %v2217_v62  ;;  %v1200_v26 = vunpack.c.l.bf16 %v2257_v55  ;;  %v1511_v2 = vmax.f32 %v1350_v46, %v1479_v21  ;;  %v2890_v13 = vunpack.c.l.bf16 %v2447_v48  ;;  %v447_v32 = vld [vmem:[%s2492_s11 + $0x6c] sm:$0xe] }
  0x7c   : > { %v559_v8 = vrot.slane %v494_v52, 2  ;;  %v1008_v10 = vrot.slane %v776_v5, 1  ;;  %2119 = vst.msk [vmem:[%s2569_s15 + $0x34] sm:$0xf] %vm2105_vm2, %v2086_v22  ;;  %v807_v14 = vmax.f32 %v646_v20, %v2804_v4  ;;  %v1712_v15 = vsel %vm261_vm0, %v1709_v40, %v1711_v54  ;;  %v2258_v54 = vld [vmem:[%s2492_s11 + $0x78] sm:$0xe] }
  0x7d   : > { %v1009_v16 = vrot.slane %v2888_v60, 1  ;;  %v1264_v1 = vrot.slane %v1200_v26, 2  ;;  %v1799_v23 = vmax.f32 %v1511_v2, %v1710_v50  ;;  %v1265_v21 = vrot.slane %v2888_v60, 2  ;;  %v2939_v22 = vld [vmem:[%s2492_s11 + $0x84] sm:$0xff]  }
  0x7e   : > { %v561_v6 = vsel %vm518_vm1, %v559_v8, %v2824_v53  ;;  %v2901_v24 = vunpack.c.h.bf16 %v2447_v48  ;;  %v1095_v25 = vmax.f32 %v807_v14, %v1007_v11  ;;  %v1968_v29 = vsel %vm518_vm1, %v1965_v41, %v1967_v59  ;;  %v2322_v8 = vld [vmem:[%s2492_s11 + $0x84] sm:$0xe] }
  0x7f   : > { %v647_v31 = vmax.f32 %v390_v33, %v561_v6  ;;  %v1713_v34 = vrot.slane %v2890_v13, 1  ;;  %v2055_v39 = vmax.f32 %v1799_v23, %v1966_v58  ;;  %v1010_v40 = vsel %vm261_vm0, %v1008_v10, %v1009_v16 }
  0x80   : > { %v2910_v36 = vrot.slane %v2901_v24, 1  ;;  %v1905_v42 = vunpack.c.l.bf16 %v2321_v18  ;;  %v1351_v43 = vmax.f32 %v1095_v25, %v1263_v12  ;;  %v205_v44 = vunpack.c.l.bf16 %v157_v27  ;;  %v158_v25 = vld [vmem:[%s2492_s11 + $0x74] sm:$0x1] }
  0x81   : > { %v808_v38 = vmax.f32 %v647_v31, %v776_v5  ;;  %v912_v45 = vunpack.c.l.bf16 %v2241_v28  ;;  %v2087_v47 = vpack.c.bf16 %v2055_v39, %v2055_v39  ;;  %v1266_v41 = vsel %vm518_vm1, %v1264_v1, %v1265_v21  ;;  %v2306_v31 = vld [vmem:[%s2492_s11 + $0x8c] sm:$0x1] }
  0x82   : > { %v1969_v49 = vrot.slane %v1905_v42, 2  ;;  %v1617_v50 = vunpack.c.l.bf16 %v2305_v35  ;;  %v1512_v51 = vmax.f32 %v1351_v43, %v2853_v7  ;;  %v305_v17 = vrot.slane %v205_v44, 1 }
  0x83   : > { %v1096_v56 = vmax.f32 %v808_v38, %v1010_v40  ;;  %v562_v57 = vrot.slane %v205_v44, 2  ;;  %2120 = vst.msk [vmem:[%s2569_s15 + $0x38] sm:$0xf] %vm2105_vm2, %v2087_v47  ;;  %v2918_v30 = vsel %vm261_vm0, %v1713_v34, %v2910_v36  ;;  %v2921_v58 = vrot.slane %v2901_v24, 2 }
  0x84   : > { %v1011_v19 = vrot.slane %v912_v45, 1  ;;  %v1267_v33 = vrot.slane %v912_v45, 2  ;;  %v1800_v62 = vmax.f32 %v1512_v51, %v1712_v15  ;;  %v306_v7 = vsel %vm261_vm0, %v2813_v37, %v305_v17 }
  0x85   : > { %v1352_v63 = vmax.f32 %v1096_v56, %v1266_v41  ;;  %v563_v0 = vsel %vm518_vm1, %v2824_v53, %v562_v57  ;;  %v1971_v55 = vsel %vm518_vm1, %v1969_v49, %v2921_v58  ;;  %v391_v3 = vmax.f32 %v2804_v4, %v306_v7 }
  0x86   : > { %v1012_v9 = vsel %vm261_vm0, %v1009_v16, %v1011_v19  ;;  %v1716_v11 = vrot.slane %v1617_v50, 1  ;;  %v2056_v59 = vmax.f32 %v1800_v62, %v1968_v29  ;;  %v1268_v37 = vsel %vm518_vm1, %v1265_v21, %v1267_v33  ;;  %v2242_v29 = vld [vmem:[%s2492_s11 + $0x80] sm:$0x1] }
  0x87   : > { %v1513_v48 = vmax.f32 %v1352_v63, %v2890_v13  ;;  %v183_v46 = vunpack.c.l.bf16 %v135_v61  ;;  %v648_v12 = vmax.f32 %v391_v3, %v563_v0  ;;  %v2936_v53 = vunpack.c.h.bf16 %v135_v61 }
  0x88   : > { %v495_v52 = vunpack.c.l.bf16 %v447_v32  ;;  %v1201_v5 = vunpack.c.l.bf16 %v2258_v54  ;;  %v2088_v20 = vpack.c.bf16 %v2056_v59, %v2056_v59  ;;  %v1972_v26 = vrot.slane %v1617_v50, 2  ;;  %v448_v32 = vld [vmem:[%s2492_s11 + $0x78] sm:$0xe]  ;;  %v2221_v54 = vld [vmem:[%s2492_s11 + $0x84] sm:$0xff]  }
  0x89   : > { %v1801_v4 = vmax.f32 %v1513_v48, %v2918_v30  ;;  %v307_v2 = vrot.slane %v183_v46, 1  ;;  %v809_v10 = vmax.f32 %v648_v12, %v2888_v60  ;;  %v308_v14 = vrot.slane %v2936_v53, 1  ;;  %v2259_v59 = vld [vmem:[%s2492_s11 + $0x84] sm:$0xe] }
  0x8a   : > { %v564_v15 = vrot.slane %v495_v52, 2  ;;  %v565_v16 = vrot.slane %v2936_v53, 2  ;;  %2121 = vst.msk [vmem:[%s2569_s15 + $0x3c] sm:$0xf] %vm2105_vm2, %v2088_v20  ;;  %v1269_v18 = vrot.slane %v1201_v5, 2  ;;  %v1483_v23 = vunpack.c.l.bf16 %v2939_v22  ;;  %v2448_v52 = vld [vmem:[%s2492_s11 + $0x90] sm:$0xff]  }
  0x8b   : > { %v2057_v1 = vmax.f32 %v1801_v4, %v1971_v55  ;;  %v2950_v6 = vunpack.c.h.bf16 %v2939_v22  ;;  %v1097_v21 = vmax.f32 %v809_v10, %v1012_v9  ;;  %v309_v27 = vsel %vm261_vm0, %v307_v2, %v308_v14 }
  0x8c   : > { %v566_v60 = vsel %vm518_vm1, %v564_v15, %v565_v16  ;;  %v1906_v28 = vunpack.c.l.bf16 %v2322_v8  ;;  %v1717_v35 = vsel %vm261_vm0, %v2910_v36, %v1716_v11  ;;  %v392_v39 = vmax.f32 %v183_v46, %v309_v27 }
  0x8d   : > { %v2089_v34 = vpack.c.bf16 %v2057_v1, %v2057_v1  ;;  %v1718_v40 = vrot.slane %v1483_v23, 1  ;;  %v1353_v42 = vmax.f32 %v1097_v21, %v1268_v37  ;;  %v1719_v43 = vrot.slane %v2950_v6, 1  ;;  %v2323_v21 = vld [vmem:[%s2492_s11 + $0x90] sm:$0xe] }
  0x8e   : > { %v1974_v38 = vrot.slane %v1906_v28, 2  ;;  %v1975_v44 = vrot.slane %v2950_v6, 2  ;;  %v649_v45 = vmax.f32 %v392_v39, %v566_v60  ;;  %v206_v47 = vunpack.c.l.bf16 %v158_v25  ;;  %v159_v25 = vld [vmem:[%s2492_s11 + $0x80] sm:$0x1] }
  0x8f   : > { %2122 = vst.msk [vmem:[%s2569_s15 + $0x40] sm:$0xf] %vm2105_vm2, %v2089_v34  ;;  %v913_v41 = vunpack.c.l.bf16 %v2242_v29  ;;  %v1618_v49 = vunpack.c.l.bf16 %v2306_v31  ;;  %v1514_v50 = vmax.f32 %v1353_v42, %v2901_v24  ;;  %v1973_v51 = vsel %vm518_vm1, %v2921_v58, %v1972_v26  ;;  %v2243_v29 = vld [vmem:[%s2492_s11 + $0x8c] sm:$0x1] }
  0x90   : > { %v1271_v56 = vsel %vm518_vm1, %v1269_v18, %v2921_v58  ;;  %v1720_v17 = vsel %vm261_vm0, %v1718_v40, %v1719_v43  ;;  %v810_v57 = vmax.f32 %v649_v45, %v2890_v13  ;;  %v310_v19 = vrot.slane %v206_v47, 1  ;;  %v2307_v40 = vld [vmem:[%s2492_s11 + $0x98] sm:$0x1] }
  0x91   : > { %v567_v33 = vrot.slane %v206_v47, 2  ;;  %v1016_v61 = vrot.slane %v913_v41, 1  ;;  %v1802_v62 = vmax.f32 %v1514_v50, %v1717_v35  ;;  %v1976_v63 = vsel %vm518_vm1, %v1974_v38, %v1975_v44 }
  0x92   : > { %v1272_v7 = vrot.slane %v913_v41, 2  ;;  %v394_v0 = vmax.f32 %v2890_v13, %v2918_v30  ;;  %v1098_v55 = vmax.f32 %v810_v57, %v2918_v30  ;;  %v311_v3 = vsel %vm261_vm0, %v308_v14, %v310_v19 }
  0x93   : > { %v568_v9 = vsel %vm518_vm1, %v565_v16, %v567_v33  ;;  %v1721_v11 = vrot.slane %v1618_v49, 1  ;;  %v2058_v48 = vmax.f32 %v1802_v62, %v1973_v51  ;;  %v393_v37 = vmax.f32 %v2936_v53, %v311_v3 }
  0x94   : > { %v1017_v46 = vsel %vm261_vm0, %v2910_v36, %v1016_v61  ;;  %v1977_v12 = vrot.slane %v1618_v49, 2  ;;  %v1354_v13 = vmax.f32 %v1098_v55, %v1271_v56  ;;  %v1273_v5 = vsel %vm518_vm1, %v2921_v58, %v1272_v7 }
  0x95   : > { %v496_v30 = vunpack.c.l.bf16 %v448_v32  ;;  %v780_v22 = vunpack.c.l.bf16 %v2221_v54  ;;  %v2090_v20 = vpack.c.bf16 %v2058_v48, %v2058_v48  ;;  %v650_v4 = vmax.f32 %v393_v37, %v568_v9  ;;  %v139_v32 = vld [vmem:[%s2492_s11 + $0x84] sm:$0xff]  }
  0x96   : > { %v2985_v26 = vunpack.c.h.bf16 %v2221_v54  ;;  %v1202_v2 = vunpack.c.l.bf16 %v2259_v59  ;;  %v1515_v53 = vmax.f32 %v1354_v13, %v1483_v23  ;;  %v2987_v14 = vunpack.c.l.bf16 %v2448_v52  ;;  %v449_v9 = vld [vmem:[%s2492_s11 + $0x84] sm:$0xe] }
  0x97   : > { %v569_v8 = vrot.slane %v496_v30, 2  ;;  %v1018_v10 = vrot.slane %v780_v22, 1  ;;  %2123 = vst.msk [vmem:[%s2569_s15 + $0x44] sm:$0xf] %vm2105_vm2, %v2090_v20  ;;  %v811_v15 = vmax.f32 %v650_v4, %v2901_v24  ;;  %v1722_v16 = vsel %vm261_vm0, %v1719_v43, %v1721_v11  ;;  %v2260_v11 = vld [vmem:[%s2492_s11 + $0x90] sm:$0xe] }
  0x98   : > { %v1019_v1 = vrot.slane %v2985_v26, 1  ;;  %v1274_v18 = vrot.slane %v1202_v2, 2  ;;  %v1803_v27 = vmax.f32 %v1515_v53, %v1720_v17  ;;  %v1275_v23 = vrot.slane %v2985_v26, 2  ;;  %v3036_v20 = vld [vmem:[%s2492_s11 + $0x9c] sm:$0xff]  }
  0x99   : > { %v571_v60 = vsel %vm518_vm1, %v569_v8, %v2921_v58  ;;  %v2998_v28 = vunpack.c.h.bf16 %v2448_v52  ;;  %v1099_v31 = vmax.f32 %v811_v15, %v1017_v46  ;;  %v1978_v34 = vsel %vm518_vm1, %v1975_v44, %v1977_v12  ;;  %v2324_v8 = vld [vmem:[%s2492_s11 + $0x9c] sm:$0xe] }
  0x9a   : > { %v651_v35 = vmax.f32 %v394_v0, %v571_v60  ;;  %v1723_v39 = vrot.slane %v2987_v14, 1  ;;  %v2059_v42 = vmax.f32 %v1803_v27, %v1976_v63  ;;  %v1020_v43 = vsel %vm261_vm0, %v1018_v10, %v1019_v1 }
  0x9b   : > { %v3007_v38 = vrot.slane %v2998_v28, 1  ;;  %v1907_v45 = vunpack.c.l.bf16 %v2323_v21  ;;  %v1355_v47 = vmax.f32 %v1099_v31, %v1273_v5  ;;  %v207_v49 = vunpack.c.l.bf16 %v159_v25  ;;  %v160_v31 = vld [vmem:[%s2492_s11 + $0x8c] sm:$0x1] }
  0x9c   : > { %v812_v41 = vmax.f32 %v651_v35, %v780_v22  ;;  %v914_v50 = vunpack.c.l.bf16 %v2243_v29  ;;  %v2091_v51 = vpack.c.bf16 %v2059_v42, %v2059_v42  ;;  %v1276_v44 = vsel %vm518_vm1, %v1274_v18, %v1275_v23  ;;  %v2308_v42 = vld [vmem:[%s2492_s11 + $0xa4] sm:$0x1] }
  0x9d   : > { %v1979_v56 = vrot.slane %v1907_v45, 2  ;;  %v1619_v17 = vunpack.c.l.bf16 %v2307_v40  ;;  %v1516_v57 = vmax.f32 %v1355_v47, %v2950_v6  ;;  %v315_v33 = vrot.slane %v207_v49, 1 }
  0x9e   : > { %v1100_v19 = vmax.f32 %v812_v41, %v1020_v43  ;;  %v572_v61 = vrot.slane %v207_v49, 2  ;;  %2124 = vst.msk [vmem:[%s2569_s15 + $0x48] sm:$0xf] %vm2105_vm2, %v2091_v51  ;;  %v3015_v62 = vsel %vm261_vm0, %v1723_v39, %v3007_v38  ;;  %v3018_v63 = vrot.slane %v2998_v28, 2 }
  0x9f   : > { %v1021_v7 = vrot.slane %v914_v50, 1  ;;  %v1277_v0 = vrot.slane %v914_v50, 2  ;;  %v1804_v54 = vmax.f32 %v1516_v57, %v1722_v16  ;;  %v316_v6 = vsel %vm261_vm0, %v2910_v36, %v315_v33 }
  0xa0   : > { %v1356_v55 = vmax.f32 %v1100_v19, %v1276_v44  ;;  %v573_v3 = vsel %vm518_vm1, %v2921_v58, %v572_v61  ;;  %v1981_v59 = vsel %vm518_vm1, %v1979_v56, %v3018_v63  ;;  %v395_v48 = vmax.f32 %v2901_v24, %v316_v6 }
  0xa1   : > { %v1022_v37 = vsel %vm261_vm0, %v1019_v1, %v1021_v7  ;;  %v1726_v46 = vrot.slane %v1619_v17, 1  ;;  %v2060_v12 = vmax.f32 %v1804_v54, %v1978_v34  ;;  %v1278_v36 = vsel %vm518_vm1, %v1275_v23, %v1277_v0  ;;  %v2244_v34 = vld [vmem:[%s2492_s11 + $0x98] sm:$0x1] }
  0xa2   : > { %v1517_v52 = vmax.f32 %v1356_v55, %v2987_v14  ;;  %v187_v13 = vunpack.c.l.bf16 %v139_v32  ;;  %v652_v5 = vmax.f32 %v395_v48, %v573_v3  ;;  %v3033_v58 = vunpack.c.h.bf16 %v139_v32  ;;  %v450_v3 = vld [vmem:[%s2492_s11 + $0x90] sm:$0xe] }
  0xa3   : > { %v497_v30 = vunpack.c.l.bf16 %v449_v9  ;;  %v1203_v22 = vunpack.c.l.bf16 %v2260_v11  ;;  %v2092_v4 = vpack.c.bf16 %v2060_v12, %v2060_v12  ;;  %v1982_v2 = vrot.slane %v1619_v17, 2  ;;  %v2225_v9 = vld [vmem:[%s2492_s11 + $0x9c] sm:$0xff]  }
  0xa4   : > { %v1805_v24 = vmax.f32 %v1517_v52, %v3015_v62  ;;  %v317_v53 = vrot.slane %v187_v13, 1  ;;  %v813_v10 = vmax.f32 %v652_v5, %v2985_v26  ;;  %v318_v15 = vrot.slane %v3033_v58, 1  ;;  %v2449_v5 = vld [vmem:[%s2492_s11 + $0xa8] sm:$0xff]  }
  0xa5   : > { %v574_v16 = vrot.slane %v497_v30, 2  ;;  %v575_v1 = vrot.slane %v3033_v58, 2  ;;  %2125 = vst.msk [vmem:[%s2569_s15 + $0x4c] sm:$0xf] %vm2105_vm2, %v2092_v4  ;;  %v1279_v21 = vrot.slane %v1203_v22, 2  ;;  %v1487_v27 = vunpack.c.l.bf16 %v3036_v20 }
  0xa6   : > { %v2061_v18 = vmax.f32 %v1805_v24, %v1981_v59  ;;  %v3047_v60 = vunpack.c.h.bf16 %v3036_v20  ;;  %v1101_v23 = vmax.f32 %v813_v10, %v1022_v37  ;;  %v319_v25 = vsel %vm261_vm0, %v317_v53, %v318_v15 }
  0xa7   : > { %v576_v26 = vsel %vm518_vm1, %v574_v16, %v575_v1  ;;  %v1908_v29 = vunpack.c.l.bf16 %v2324_v8  ;;  %v396_v39 = vmax.f32 %v187_v13, %v319_v25  ;;  %v1728_v40 = vrot.slane %v1487_v27, 1 }
  0xa8   : > { %v2093_v35 = vpack.c.bf16 %v2061_v18, %v2061_v18  ;;  %v1357_v43 = vmax.f32 %v1101_v23, %v1278_v36  ;;  %v1729_v45 = vrot.slane %v3047_v60, 1  ;;  %v1985_v41 = vrot.slane %v3047_v60, 2 }
  0xa9   : > { %v1984_v47 = vrot.slane %v1908_v29, 2  ;;  %v1727_v49 = vsel %vm261_vm0, %v3007_v38, %v1726_v46  ;;  %v653_v50 = vmax.f32 %v396_v39, %v576_v26  ;;  %v208_v51 = vunpack.c.l.bf16 %v160_v31  ;;  %v2261_v46 = vld [vmem:[%s2492_s11 + $0x9c] sm:$0xe]  ;;  %v161_v29 = vld [vmem:[%s2492_s11 + $0x98] sm:$0x1] }
  0xaa   : > { %2126 = vst.msk [vmem:[%s2569_s15 + $0x50] sm:$0xf] %vm2105_vm2, %v2093_v35  ;;  %v915_v44 = vunpack.c.l.bf16 %v2244_v34  ;;  %v1518_v56 = vmax.f32 %v1357_v43, %v2998_v28  ;;  %v1983_v17 = vsel %vm518_vm1, %v3018_v63, %v1982_v2  ;;  %v1281_v57 = vsel %vm518_vm1, %v1279_v21, %v3018_v63  ;;  %v2245_v31 = vld [vmem:[%s2492_s11 + $0xa4] sm:$0x1] }
  0xab   : > { %v1620_v19 = vunpack.c.l.bf16 %v2308_v42  ;;  %v814_v33 = vmax.f32 %v653_v50, %v2987_v14  ;;  %v320_v61 = vrot.slane %v208_v51, 1  ;;  %v577_v7 = vrot.slane %v208_v51, 2  ;;  %v2309_v42 = vld [vmem:[%s2492_s11 + $0xb0] sm:$0x1] }
  0xac   : > { %v1026_v0 = vrot.slane %v915_v44, 1  ;;  %v1806_v32 = vmax.f32 %v1518_v56, %v1727_v49  ;;  %v1730_v54 = vsel %vm261_vm0, %v1728_v40, %v1729_v45  ;;  %v1986_v55 = vsel %vm518_vm1, %v1984_v47, %v1985_v41 }
  0xad   : > { %v398_v6 = vmax.f32 %v2987_v14, %v3015_v62  ;;  %v1102_v11 = vmax.f32 %v814_v33, %v3015_v62  ;;  %v321_v59 = vsel %vm261_vm0, %v318_v15, %v320_v61  ;;  %v578_v48 = vsel %vm518_vm1, %v575_v1, %v577_v7  ;;  %v2325_v15 = vld [vmem:[%s2492_s11 + $0xa8] sm:$0xe] }
  0xae   : > { %v1282_v37 = vrot.slane %v915_v44, 2  ;;  %v2062_v12 = vmax.f32 %v1806_v32, %v1983_v17  ;;  %v397_v52 = vmax.f32 %v3033_v58, %v321_v59  ;;  %v1731_v36 = vrot.slane %v1620_v19, 1 }
  0xaf   : > { %v1987_v13 = vrot.slane %v1620_v19, 2  ;;  %v1358_v30 = vmax.f32 %v1102_v11, %v1281_v57  ;;  %v1027_v14 = vsel %vm261_vm0, %v3007_v38, %v1026_v0  ;;  %v498_v22 = vunpack.c.l.bf16 %v450_v3 }
  0xb0   : > { %v784_v62 = vunpack.c.l.bf16 %v2225_v9  ;;  %v2094_v20 = vpack.c.bf16 %v2062_v12, %v2062_v12  ;;  %v654_v4 = vmax.f32 %v397_v52, %v578_v48  ;;  %v3082_v24 = vunpack.c.h.bf16 %v2225_v9  ;;  %v143_v9 = vld [vmem:[%s2492_s11 + $0x9c] sm:$0xff]  }
  0xb1   : > { %v1204_v2 = vunpack.c.l.bf16 %v2261_v46  ;;  %v1519_v53 = vmax.f32 %v1358_v30, %v1487_v27  ;;  %v579_v58 = vrot.slane %v498_v22, 2  ;;  %v3084_v10 = vunpack.c.l.bf16 %v2449_v5  ;;  %v451_v46 = vld [vmem:[%s2492_s11 + $0x9c] sm:$0xe] }
  0xb2   : > { %v1028_v8 = vrot.slane %v784_v62, 1  ;;  %2127 = vst.msk [vmem:[%s2569_s15 + $0x54] sm:$0xf] %vm2105_vm2, %v2094_v20  ;;  %v815_v16 = vmax.f32 %v654_v4, %v2998_v28  ;;  %v1029_v1 = vrot.slane %v3082_v24, 1  ;;  %v1285_v21 = vrot.slane %v3082_v24, 2  ;;  %v3137_v20 = vld [vmem:[%s2492_s11 + $0xb4] sm:$0xff]  }
  0xb3   : > { %v1284_v18 = vrot.slane %v1204_v2, 2  ;;  %v1807_v23 = vmax.f32 %v1519_v53, %v1730_v54  ;;  %v1283_v25 = vsel %vm518_vm1, %v3018_v63, %v1282_v37  ;;  %v581_v27 = vsel %vm518_vm1, %v579_v58, %v3018_v63  ;;  %v2326_v58 = vld [vmem:[%s2492_s11 + $0xb4] sm:$0xe] }
  0xb4   : > { %v3096_v26 = vunpack.c.h.bf16 %v2449_v5  ;;  %v1103_v34 = vmax.f32 %v815_v16, %v1027_v14  ;;  %v1732_v35 = vsel %vm261_vm0, %v1729_v45, %v1731_v36  ;;  %v655_v39 = vmax.f32 %v398_v6, %v581_v27  ;;  %v2262_v36 = vld [vmem:[%s2492_s11 + $0xa8] sm:$0xe] }
  0xb5   : > { %v1733_v40 = vrot.slane %v3084_v10, 1  ;;  %v2063_v43 = vmax.f32 %v1807_v23, %v1986_v55  ;;  %v1030_v47 = vsel %vm261_vm0, %v1028_v8, %v1029_v1  ;;  %v1286_v49 = vsel %vm518_vm1, %v1284_v18, %v1285_v21 }
  0xb6   : > { %v1909_v50 = vunpack.c.l.bf16 %v2325_v15  ;;  %v1359_v51 = vmax.f32 %v1103_v34, %v1283_v25  ;;  %v816_v44 = vmax.f32 %v655_v39, %v784_v62  ;;  %v209_v56 = vunpack.c.l.bf16 %v161_v29  ;;  %v162_v34 = vld [vmem:[%s2492_s11 + $0xa4] sm:$0x1] }
  0xb7   : > { %v916_v17 = vunpack.c.l.bf16 %v2245_v31  ;;  %v2095_v57 = vpack.c.bf16 %v2063_v43, %v2063_v43  ;;  %v3106_v19 = vrot.slane %v3096_v26, 1  ;;  %v1621_v33 = vunpack.c.l.bf16 %v2309_v42 }
  0xb8   : > { %v1989_v45 = vrot.slane %v1909_v50, 2  ;;  %v1520_v61 = vmax.f32 %v1359_v51, %v3047_v60  ;;  %v1104_v7 = vmax.f32 %v816_v44, %v1030_v47  ;;  %v325_v0 = vrot.slane %v209_v56, 1  ;;  %v2310_v47 = vld [vmem:[%s2492_s11 + $0xbc] sm:$0x1] }
  0xb9   : > { %v582_v32 = vrot.slane %v209_v56, 2  ;;  %2128 = vst.msk [vmem:[%s2569_s15 + $0x58] sm:$0xf] %vm2105_vm2, %v2095_v57  ;;  %v1988_v54 = vsel %vm518_vm1, %v1985_v41, %v1987_v13  ;;  %v3115_v55 = vrot.slane %v3096_v26, 2  ;;  %v1031_v6 = vrot.slane %v916_v17, 1 }
  0xba   : > { %v1287_v3 = vrot.slane %v916_v17, 2  ;;  %v1808_v11 = vmax.f32 %v1520_v61, %v1732_v35  ;;  %v1360_v59 = vmax.f32 %v1104_v7, %v1286_v49  ;;  %v326_v48 = vsel %vm261_vm0, %v3007_v38, %v325_v0  ;;  %v2246_v35 = vld [vmem:[%s2492_s11 + $0xb0] sm:$0x1] }
  0xbb   : > { %v583_v37 = vsel %vm518_vm1, %v3018_v63, %v582_v32  ;;  %v3125_v60 = vsel %vm261_vm0, %v1733_v40, %v3106_v19  ;;  %v1991_v41 = vsel %vm518_vm1, %v1989_v45, %v3115_v55  ;;  %v399_v12 = vmax.f32 %v2998_v28, %v326_v48  ;;  %v452_v48 = vld [vmem:[%s2492_s11 + $0xa8] sm:$0xe] }
  0xbc   : > { %v1736_v52 = vrot.slane %v1621_v33, 1  ;;  %v2064_v13 = vmax.f32 %v1808_v11, %v1988_v54  ;;  %v1521_v38 = vmax.f32 %v1360_v59, %v3084_v10  ;;  %v1032_v5 = vsel %vm261_vm0, %v1029_v1, %v1031_v6 }
  0xbd   : > { %v191_v63 = vunpack.c.l.bf16 %v143_v9  ;;  %v656_v30 = vmax.f32 %v399_v12, %v583_v37  ;;  %v1288_v14 = vsel %vm518_vm1, %v1285_v21, %v1287_v3  ;;  %v3134_v22 = vunpack.c.h.bf16 %v143_v9  ;;  %v2229_v37 = vld [vmem:[%s2492_s11 + $0xb4] sm:$0xff]  }
  0xbe   : > { %v499_v62 = vunpack.c.l.bf16 %v451_v46  ;;  %v2096_v4 = vpack.c.bf16 %v2064_v13, %v2064_v13  ;;  %v1809_v28 = vmax.f32 %v1521_v38, %v3125_v60  ;;  %v1205_v53 = vunpack.c.l.bf16 %v2262_v36  ;;  %v2263_v36 = vld [vmem:[%s2492_s11 + $0xb4] sm:$0xe] }
  0xbf   : > { %v327_v2 = vrot.slane %v191_v63, 1  ;;  %v817_v8 = vmax.f32 %v656_v30, %v3082_v24  ;;  %v328_v15 = vrot.slane %v3134_v22, 1  ;;  %v585_v1 = vrot.slane %v3134_v22, 2  ;;  %v2450_v30 = vld [vmem:[%s2492_s11 + $0xc0] sm:$0xff]  }
  0xc0   : > { %v584_v16 = vrot.slane %v499_v62, 2  ;;  %2129 = vst.msk [vmem:[%s2569_s15 + $0x5c] sm:$0xf] %vm2105_vm2, %v2096_v4  ;;  %v2065_v18 = vmax.f32 %v1809_v28, %v1991_v41  ;;  %v1992_v21 = vrot.slane %v1621_v33, 2  ;;  %v1491_v23 = vunpack.c.l.bf16 %v3137_v20 }
  0xc1   : > { %v3148_v25 = vunpack.c.h.bf16 %v3137_v20  ;;  %v1105_v27 = vmax.f32 %v817_v8, %v1032_v5  ;;  %v329_v29 = vsel %vm261_vm0, %v327_v2, %v328_v15  ;;  %v1910_v31 = vunpack.c.l.bf16 %v2326_v58 }
  0xc2   : > { %v586_v24 = vsel %vm518_vm1, %v584_v16, %v585_v1  ;;  %v2097_v39 = vpack.c.bf16 %v2065_v18, %v2065_v18  ;;  %v400_v40 = vmax.f32 %v191_v63, %v329_v29  ;;  %v1289_v42 = vrot.slane %v1205_v53, 2 }
  0xc3   : > { %v1738_v43 = vrot.slane %v1491_v23, 1  ;;  %v1361_v49 = vmax.f32 %v1105_v27, %v1288_v14  ;;  %v1739_v50 = vrot.slane %v3148_v25, 1  ;;  %v1994_v51 = vrot.slane %v1910_v31, 2  ;;  %v163_v31 = vld [vmem:[%s2492_s11 + $0xb0] sm:$0x1] }
  0xc4   : > { %v1995_v44 = vrot.slane %v3148_v25, 2  ;;  %2130 = vst.msk [vmem:[%s2569_s15 + $0x60] sm:$0xf] %vm2105_vm2, %v2097_v39  ;;  %v1737_v56 = vsel %vm261_vm0, %v3106_v19, %v1736_v52  ;;  %v657_v17 = vmax.f32 %v400_v40, %v586_v24  ;;  %v210_v57 = vunpack.c.l.bf16 %v162_v34  ;;  %v2247_v34 = vld [vmem:[%s2492_s11 + $0xbc] sm:$0x1] }
  0xc5   : > { %v917_v45 = vunpack.c.l.bf16 %v2246_v35  ;;  %v1522_v33 = vmax.f32 %v1361_v49, %v3096_v26  ;;  %v1993_v61 = vsel %vm518_vm1, %v3115_v55, %v1992_v21  ;;  %v1622_v7 = vunpack.c.l.bf16 %v2310_v47  ;;  %v2327_v21 = vld [vmem:[%s2492_s11 + $0xc0] sm:$0xe] }
  0xc6   : > { %v818_v0 = vmax.f32 %v657_v17, %v3084_v10  ;;  %v330_v32 = vrot.slane %v210_v57, 1  ;;  %v587_v54 = vrot.slane %v210_v57, 2  ;;  %v1291_v9 = vsel %vm518_vm1, %v1289_v42, %v3115_v55 }
  0xc7   : > { %v1036_v6 = vrot.slane %v917_v45, 1  ;;  %v1810_v3 = vmax.f32 %v1522_v33, %v1737_v56  ;;  %v1740_v11 = vsel %vm261_vm0, %v1738_v43, %v1739_v50  ;;  %v1996_v59 = vsel %vm518_vm1, %v1994_v51, %v1995_v44 }
  0xc8   : > { %v1106_v46 = vmax.f32 %v818_v0, %v3125_v60  ;;  %v331_v41 = vsel %vm261_vm0, %v328_v15, %v330_v32  ;;  %v588_v12 = vsel %vm518_vm1, %v585_v1, %v587_v54  ;;  %v402_v52 = vmax.f32 %v3084_v10, %v3125_v60 }
  0xc9   : > { %v2066_v13 = vmax.f32 %v1810_v3, %v1993_v61  ;;  %v401_v38 = vmax.f32 %v3134_v22, %v331_v41  ;;  %v1292_v5 = vrot.slane %v917_v45, 2  ;;  %v1741_v63 = vrot.slane %v1622_v7, 1  ;;  %v2311_v3 = vld [vmem:[%s2492_s11 + $0xc8] sm:$0x1] }
  0xca   : > { %v1362_v14 = vmax.f32 %v1106_v46, %v1291_v9  ;;  %v1037_v62 = vsel %vm261_vm0, %v3106_v19, %v1036_v6  ;;  %v500_v20 = vunpack.c.l.bf16 %v452_v48  ;;  %v788_v4 = vunpack.c.l.bf16 %v2229_v37  ;;  %v147_v48 = vld [vmem:[%s2492_s11 + $0xb4] sm:$0xff]  }
  0xcb   : > { %v2098_v28 = vpack.c.bf16 %v2066_v13, %v2066_v13  ;;  %v658_v2 = vmax.f32 %v401_v38, %v588_v12  ;;  %v3183_v53 = vunpack.c.h.bf16 %v2229_v37  ;;  %v1206_v10 = vunpack.c.l.bf16 %v2263_v36  ;;  %v2264_v38 = vld [vmem:[%s2492_s11 + $0xc0] sm:$0xe] }
  0xcc   : > { %v1523_v60 = vmax.f32 %v1362_v14, %v1491_v23  ;;  %v589_v22 = vrot.slane %v500_v20, 2  ;;  %v1038_v58 = vrot.slane %v788_v4, 1  ;;  %v3185_v8 = vunpack.c.l.bf16 %v2450_v30 }
  0xcd   : > { %2131 = vst.msk [vmem:[%s2569_s15 + $0x64] sm:$0xf] %vm2105_vm2, %v2098_v28  ;;  %v819_v15 = vmax.f32 %v658_v2, %v3096_v26  ;;  %v1293_v16 = vsel %vm518_vm1, %v3115_v55, %v1292_v5  ;;  %v1039_v1 = vrot.slane %v3183_v53, 1  ;;  %v1294_v18 = vrot.slane %v1206_v10, 2 }
  0xce   : > { %v1811_v27 = vmax.f32 %v1523_v60, %v1740_v11  ;;  %v591_v29 = vsel %vm518_vm1, %v589_v22, %v3115_v55  ;;  %v1295_v23 = vrot.slane %v3183_v53, 2  ;;  %v3197_v24 = vunpack.c.h.bf16 %v2450_v30 }
  0xcf   : > { %v1107_v35 = vmax.f32 %v819_v15, %v1037_v62  ;;  %v1742_v39 = vsel %vm261_vm0, %v1739_v50, %v1741_v63  ;;  %v1997_v40 = vrot.slane %v1622_v7, 2  ;;  %v659_v42 = vmax.f32 %v402_v52, %v591_v29  ;;  %v453_v52 = vld [vmem:[%s2492_s11 + $0xb4] sm:$0xe] }
  0xd0   : > { %v2067_v43 = vmax.f32 %v1811_v27, %v1996_v59  ;;  %v1040_v47 = vsel %vm261_vm0, %v1038_v58, %v1039_v1  ;;  %v1743_v49 = vrot.slane %v3185_v8, 1  ;;  %v1911_v51 = vunpack.c.l.bf16 %v2327_v21 }
  0xd1   : > { %v1363_v56 = vmax.f32 %v1107_v35, %v1293_v16  ;;  %v820_v17 = vmax.f32 %v659_v42, %v788_v4  ;;  %v211_v57 = vunpack.c.l.bf16 %v163_v31  ;;  %v918_v45 = vunpack.c.l.bf16 %v2247_v34  ;;  %v164_v31 = vld [vmem:[%s2492_s11 + $0xbc] sm:$0x1]  ;;  %v2248_v34 = vld [vmem:[%s2492_s11 + $0xc8] sm:$0x1] }
  0xd2   : > { %v2099_v33 = vpack.c.bf16 %v2067_v43, %v2067_v43  ;;  %v1296_v61 = vsel %vm518_vm1, %v1294_v18, %v1295_v23  ;;  %v3206_v50 = vrot.slane %v3197_v24, 1  ;;  %v1999_v7 = vrot.slane %v1911_v51, 2  ;;  %v2295_v18 = vld [vmem:[%s2492_s11 + $0xcc] sm:$0xff]  }
  0xd3   : > { %v1524_v0 = vmax.f32 %v1363_v56, %v3148_v25  ;;  %v1108_v32 = vmax.f32 %v820_v17, %v1040_v47  ;;  %v335_v54 = vrot.slane %v211_v57, 1  ;;  %v592_v6 = vrot.slane %v211_v57, 2 }
  0xd4   : > { %2132 = vst.msk [vmem:[%s2569_s15 + $0x68] sm:$0xf] %vm2105_vm2, %v2099_v33  ;;  %v1998_v9 = vsel %vm518_vm1, %v1995_v44, %v1997_v40  ;;  %v3216_v11 = vrot.slane %v3197_v24, 2  ;;  %v1041_v59 = vrot.slane %v918_v45, 1  ;;  %v3226_v36 = vsel %vm261_vm0, %v1743_v49, %v3206_v50  ;;  %v2328_v40 = vld [vmem:[%s2492_s11 + $0xcc] sm:$0xe] }
  0xd5   : > { %v1812_v37 = vmax.f32 %v1524_v0, %v1742_v39  ;;  %v1364_v46 = vmax.f32 %v1108_v32, %v1296_v61  ;;  %v336_v41 = vsel %vm261_vm0, %v3106_v19, %v335_v54  ;;  %v593_v12 = vsel %vm518_vm1, %v3115_v55, %v592_v6 }
  0xd6   : > { %v2001_v25 = vsel %vm518_vm1, %v1999_v7, %v3216_v11  ;;  %v403_v44 = vmax.f32 %v3096_v26, %v336_v41  ;;  %v1623_v13 = vunpack.c.l.bf16 %v2311_v3  ;;  %v1297_v19 = vrot.slane %v918_v45, 2 }
  0xd7   : > { %v2068_v5 = vmax.f32 %v1812_v37, %v1998_v9  ;;  %v1525_v63 = vmax.f32 %v1364_v46, %v3185_v8  ;;  %v195_v30 = vunpack.c.l.bf16 %v147_v48  ;;  %v1042_v55 = vsel %vm261_vm0, %v1039_v1, %v1041_v59  ;;  %v2312_v9 = vld [vmem:[%s2492_s11 + $0xd4] sm:$0x1] }
  0xd8   : > { %v660_v14 = vmax.f32 %v403_v44, %v593_v12  ;;  %v196_v62 = vunpack.c.h.bf16 %v147_v48  ;;  %v501_v20 = vunpack.c.l.bf16 %v453_v52  ;;  %v1207_v2 = vunpack.c.l.bf16 %v2264_v38 }
  0xd9   : > { %v2100_v4 = vpack.c.bf16 %v2068_v5, %v2068_v5  ;;  %v1813_v28 = vmax.f32 %v1525_v63, %v3226_v36  ;;  %v337_v26 = vrot.slane %v195_v30, 1  ;;  %v1298_v16 = vsel %vm518_vm1, %v1295_v23, %v1297_v19 }
  0xda   : > { %v821_v10 = vmax.f32 %v660_v14, %v3183_v53  ;;  %v338_v60 = vrot.slane %v196_v62, 1  ;;  %v594_v22 = vrot.slane %v501_v20, 2  ;;  %v595_v58 = vrot.slane %v196_v62, 2 }
  0xdb   : > { %2133 = vst.msk [vmem:[%s2569_s15 + $0x6c] sm:$0xf] %vm2105_vm2, %v2100_v4  ;;  %v2069_v15 = vmax.f32 %v1813_v28, %v2001_v25  ;;  %v1746_v1 = vrot.slane %v1623_v13, 1  ;;  %v2002_v35 = vrot.slane %v1623_v13, 2  ;;  %v1299_v43 = vrot.slane %v1207_v2, 2 }
  0xdc   : > { %v1109_v21 = vmax.f32 %v821_v10, %v1042_v55  ;;  %v339_v27 = vsel %vm261_vm0, %v337_v26, %v338_v60  ;;  %v596_v29 = vsel %vm518_vm1, %v594_v22, %v595_v58  ;;  %v1495_v47 = vunpack.c.l.bf16 %v2295_v18 }
  0xdd   : > { %v2101_v53 = vpack.c.bf16 %v2069_v15, %v2069_v15  ;;  %v404_v39 = vmax.f32 %v195_v30, %v339_v27  ;;  %v1496_v49 = vunpack.c.h.bf16 %v2295_v18  ;;  %v1747_v23 = vsel %vm261_vm0, %v3206_v50, %v1746_v1 }
  0xde   : > { %v1365_v42 = vmax.f32 %v1109_v21, %v1298_v16  ;;  %v212_v56 = vunpack.c.l.bf16 %v164_v31  ;;  %v919_v17 = vunpack.c.l.bf16 %v2248_v34  ;;  %v1912_v45 = vunpack.c.l.bf16 %v2328_v40 }
  0xdf   : > { %2134 = vst.msk [vmem:[%s2569_s15 + $0x70] sm:$0xf] %vm2105_vm2, %v2101_v53  ;;  %v661_v51 = vmax.f32 %v404_v39, %v596_v29  ;;  %v2003_v33 = vsel %vm518_vm1, %v3216_v11, %v2002_v35  ;;  %v1301_v54 = vsel %vm518_vm1, %v1299_v43, %v3216_v11  ;;  %v1748_v6 = vrot.slane %v1495_v47, 1 }
  0xe0   : > { %v1526_v57 = vmax.f32 %v1365_v42, %v3197_v24  ;;  %v340_v7 = vrot.slane %v212_v56, 1  ;;  %v597_v0 = vrot.slane %v212_v56, 2  ;;  %v1749_v3 = vrot.slane %v1496_v49, 1 }
  0xe1   : > { %v822_v61 = vmax.f32 %v661_v51, %v3185_v8  ;;  %v1046_v46 = vrot.slane %v919_v17, 1  ;;  %v2004_v12 = vrot.slane %v1912_v45, 2  ;;  %v2005_v8 = vrot.slane %v1496_v49, 2 }
  0xe2   : > { %v1814_v32 = vmax.f32 %v1526_v57, %v1747_v23  ;;  %v341_v48 = vsel %vm261_vm0, %v338_v60, %v340_v7  ;;  %v598_v37 = vsel %vm518_vm1, %v595_v58, %v597_v0  ;;  %v1302_v44 = vrot.slane %v919_v17, 2 }
  0xe3   : > { %v1110_v59 = vmax.f32 %v822_v61, %v3226_v36  ;;  %v405_v52 = vmax.f32 %v196_v62, %v341_v48  ;;  %v1624_v13 = vunpack.c.l.bf16 %v2312_v9  ;;  %v1750_v5 = vsel %vm261_vm0, %v1748_v6, %v1749_v3 }
  0xe4   : > { %v2070_v41 = vmax.f32 %v1814_v32, %v2003_v33  ;;  %v1047_v36 = vsel %vm261_vm0, %v3206_v50, %v1046_v46  ;;  %v2006_v30 = vsel %vm518_vm1, %v2004_v12, %v2005_v8  ;;  %v1303_v62 = vsel %vm518_vm1, %v3216_v11, %v1302_v44 }
  0xe5   : > { %v1366_v25 = vmax.f32 %v1110_v59, %v1301_v54  ;;  %v662_v63 = vmax.f32 %v405_v52, %v598_v37  ;;  %v1751_v20 = vrot.slane %v1624_v13, 1  ;;  %v2007_v26 = vrot.slane %v1624_v13, 2 }
  0xe6   : > { %v2102_v38 = vpack.c.bf16 %v2070_v41, %v2070_v41 }
  0xe7   : > { %v1527_v19 = vmax.f32 %v1366_v25, %v1495_v47  ;;  %v823_v14 = vmax.f32 %v662_v63, %v3197_v24  ;;  %v1752_v60 = vsel %vm261_vm0, %v1749_v3, %v1751_v20  ;;  %v2008_v22 = vsel %vm518_vm1, %v2005_v8, %v2007_v26 }
  0xe8   : > { %2135 = vst.msk [vmem:[%s2569_s15 + $0x74] sm:$0xf] %vm2105_vm2, %v2102_v38 }
  0xe9   : > { %v1815_v55 = vmax.f32 %v1527_v19, %v1750_v5  ;;  %v1111_v4 = vmax.f32 %v823_v14, %v1047_v36 }
  0xeb   : > { %v2071_v28 = vmax.f32 %v1815_v55, %v2006_v30  ;;  %v1367_v2 = vmax.f32 %v1111_v4, %v1303_v62 }
  0xed   : > { %v2103_v10 = vpack.c.bf16 %v2071_v28, %v2071_v28  ;;  %v1528_v50 = vmax.f32 %v1367_v2, %v1496_v49 }
  0xef   : > { %2136 = vst.msk [vmem:[%s2569_s15 + $0x78] sm:$0xf] %vm2105_vm2, %v2103_v10  ;;  %v1816_v58 = vmax.f32 %v1528_v50, %v1752_v60 }
  0xf1   : > { %v2072_v24 = vmax.f32 %v1816_v58, %v2008_v22 }
  0xf3   : > { %v2104_v15 = vpack.c.bf16 %v2072_v24, %v2072_v24 }
  0xf5   : > { %2137 = vst.msk [vmem:[%s2569_s15 + $0x7c] sm:$0xf] %vm2105_vm2, %v2104_v15 }
  0xf6 PF: > { %s11_s6 = sadd.s32 1, %s2466_s6  }
  0xf7   : > { %p8_p4 = scmp.ge.s32.totalorder %s11_s6, 4  }
  0xf9   :  { %10 = sbr.rel (!%p8_p4) target bundleno = 1 (0x1), region = 56 }

// kernel: _lambda_.16
= control target key start
LH: loop header
LB: loop body
LE: loop exit
PB: predicated region body
PF: predicated region fallthrough
CT: control target
= control target key end

     0   :  { %s1977_s1 = inlined_call_operand.vmem [shape: bf16[640,128], index: 1, kind: input, shape index: {}]   ;;  %s1978_s0 = inlined_call_operand.vmem [shape: bf16[128,640], index: 0, kind: input, shape index: {}]   ;;  %s1979_s2 = inlined_call_operand.vmem [shape: f32[1,128], index: 2, kind: input, shape index: {}]   ;;  %s1980_s3 = inlined_call_operand.vmem [shape: f32[1,128], index: 3, kind: input, shape index: {}]   ;;  %s1981_s4 = inlined_call_operand.vmem [shape: bf16[128,128], index: 4, kind: output, shape index: {}]  }
   0x1   :  { %v1384_v0 = vld [vmem:[%s1977_s1 + $0x38] sm:$0xff]  ;;  %v1383_v1 = vld [vmem:[%s1977_s1 + $0x30] sm:$0xff]  ;;  %v1382_v2 = vld [vmem:[%s1977_s1 + $0x28] sm:$0xff] }
   0x2   :  { %1464 = vmatpush.bf16.msra.mxu1 %v1384_v0  ;;  %1465 = vmatpush.bf16.msra.mxu2 %v1384_v0  ;;  %v1381_v3 = vld [vmem:[%s1977_s1 + $0x20] sm:$0xff]  ;;  %v1380_v4 = vld [vmem:[%s1977_s1 + $0x18] sm:$0xff]  ;;  %v1379_v5 = vld [vmem:[%s1977_s1 + $0x10] sm:$0xff] }
   0x3   :  { %1466 = vmatpush.bf16.msra.mxu3 %v1384_v0  ;;  %629 = vmatpush.bf16.msra.mxu0 %v1384_v0  ;;  %v1378_v6 = vld [vmem:[%s1977_s1 + $0x8] sm:$0xff]  ;;  %v1377_v7 = vld [vmem:[%s1977_s1] sm:$0xff]  ;;  %v1059_v8 = vld [vmem:[%s1978_s0 + $0x50] sm:$0xf] }
   0x4   :  { %v1349_v9 = vld [vmem:[%s1978_s0 + $0x60] sm:$0xf0]  ;;  %v1099_v10 = vld [vmem:[%s1978_s0 + $0xa0] sm:$0xf]  ;;  %v1359_v11 = vld [vmem:[%s1978_s0 + $0xb0] sm:$0xf0] }
   0x5   :  { %v1139_v12 = vld [vmem:[%s1978_s0 + $0xf0] sm:$0xf]  ;;  %v1369_v13 = vld [vmem:[%s1978_s0 + $0x100] sm:$0xf0]  ;;  %v1019_v14 = vld [vmem:[%s1978_s0] sm:$0xf]  ;;  %v1060_v18 = vor.u32 %v1349_v9, %v1059_v8  ;;  %v1100_v19 = vor.u32 %v1359_v11, %v1099_v10 }
   0x6   :  { %1467 = vmatpush.bf16.msra.mxu1 %v1383_v1  ;;  %1468 = vmatpush.bf16.msra.mxu2 %v1383_v1  ;;  %v1339_v15 = vld [vmem:[%s1978_s0 + $0x10] sm:$0xf0]  ;;  %v1400_v16 = vld [vmem:[%s1977_s1 + $0xb8] sm:$0xff]  ;;  %v1140_v20 = vor.u32 %v1369_v13, %v1139_v12  ;;  %v1398_v28 = vld [vmem:[%s1977_s1 + $0xa8] sm:$0xff] }
   0x7   :  { %1469 = vmatpush.bf16.msra.mxu3 %v1383_v1  ;;  %630 = vmatpush.bf16.msra.mxu0 %v1383_v1  ;;  %v1392_v17 = vld [vmem:[%s1977_s1 + $0x78] sm:$0xff]  ;;  %v1020_v21 = vor.u32 %v1339_v15, %v1019_v14  ;;  %v1399_v24 = vld [vmem:[%s1977_s1 + $0xb0] sm:$0xff]  ;;  %v1390_v29 = vld [vmem:[%s1977_s1 + $0x68] sm:$0xff] }
   0x8   :  { %v1408_v22 = vld [vmem:[%s1977_s1 + $0xf8] sm:$0xff]  ;;  %v1391_v25 = vld [vmem:[%s1977_s1 + $0x70] sm:$0xff]  ;;  %v1406_v30 = vld [vmem:[%s1977_s1 + $0xe8] sm:$0xff] }
   0x9   :  { %v1416_v23 = vld [vmem:[%s1977_s1 + $0x138] sm:$0xff]  ;;  %v1407_v26 = vld [vmem:[%s1977_s1 + $0xf0] sm:$0xff]  ;;  %v1414_v31 = vld [vmem:[%s1977_s1 + $0x128] sm:$0xff] }
   0xa   :  { %1470 = vmatpush.bf16.msra.mxu1 %v1382_v2  ;;  %1471 = vmatpush.bf16.msra.mxu2 %v1382_v2  ;;  %v1415_v27 = vld [vmem:[%s1977_s1 + $0x130] sm:$0xff]  ;;  %v1397_v32 = vld [vmem:[%s1977_s1 + $0xa0] sm:$0xff]  ;;  %v1079_v36 = vld [vmem:[%s1978_s0 + $0x78] sm:$0xf] }
   0xb   :  { %1472 = vmatpush.bf16.msra.mxu3 %v1382_v2  ;;  %631 = vmatpush.bf16.msra.mxu0 %v1382_v2  ;;  %v1389_v33 = vld [vmem:[%s1977_s1 + $0x60] sm:$0xff]  ;;  %v1354_v37 = vld [vmem:[%s1978_s0 + $0x88] sm:$0xf0]  ;;  %v1119_v38 = vld [vmem:[%s1978_s0 + $0xc8] sm:$0xf] }
   0xc   :  { %v1405_v34 = vld [vmem:[%s1977_s1 + $0xe0] sm:$0xff]  ;;  %v1364_v39 = vld [vmem:[%s1978_s0 + $0xd8] sm:$0xf0]  ;;  %v1159_v40 = vld [vmem:[%s1978_s0 + $0x118] sm:$0xf]  ;;  %v1080_v46 = vor.u32 %v1354_v37, %v1079_v36 }
   0xd   :  { %v1413_v35 = vld [vmem:[%s1977_s1 + $0x120] sm:$0xff]  ;;  %v1374_v41 = vld [vmem:[%s1978_s0 + $0x128] sm:$0xf0]  ;;  %v1039_v42 = vld [vmem:[%s1978_s0 + $0x28] sm:$0xf]  ;;  %v1120_v47 = vor.u32 %v1364_v39, %v1119_v38 }
   0xe   :  { %1473 = vmatpush.bf16.msra.mxu1 %v1381_v3  ;;  %1474 = vmatpush.bf16.msra.mxu2 %v1381_v3  ;;  %v1344_v43 = vld [vmem:[%s1978_s0 + $0x38] sm:$0xf0]  ;;  %v1160_v48 = vor.u32 %v1374_v41, %v1159_v40  ;;  %v1395_v52 = vld [vmem:[%s1977_s1 + $0x90] sm:$0xff]  ;;  %v1394_v56 = vld [vmem:[%s1977_s1 + $0x88] sm:$0xff] }
   0xf   :  { %1475 = vmatpush.bf16.msra.mxu3 %v1381_v3  ;;  %632 = vmatpush.bf16.msra.mxu0 %v1381_v3  ;;  %v1396_v44 = vld [vmem:[%s1977_s1 + $0x98] sm:$0xff]  ;;  %v1040_v49 = vor.u32 %v1344_v43, %v1039_v42  ;;  %v1387_v53 = vld [vmem:[%s1977_s1 + $0x50] sm:$0xff]  ;;  %v1386_v57 = vld [vmem:[%s1977_s1 + $0x48] sm:$0xff] }
  0x10   :  { %v1388_v45 = vld [vmem:[%s1977_s1 + $0x58] sm:$0xff]  ;;  %v1403_v54 = vld [vmem:[%s1977_s1 + $0xd0] sm:$0xff]  ;;  %v1402_v58 = vld [vmem:[%s1977_s1 + $0xc8] sm:$0xff] }
  0x11   :  { %v1404_v50 = vld [vmem:[%s1977_s1 + $0xd8] sm:$0xff]  ;;  %v1411_v55 = vld [vmem:[%s1977_s1 + $0x110] sm:$0xff]  ;;  %v1410_v59 = vld [vmem:[%s1977_s1 + $0x108] sm:$0xff] }
  0x12   :  { %1476 = vmatpush.bf16.msra.mxu1 %v1380_v4  ;;  %1477 = vmatpush.bf16.msra.mxu2 %v1380_v4  ;;  %v1412_v51 = vld [vmem:[%s1977_s1 + $0x118] sm:$0xff]  ;;  %v1393_v60 = vld [vmem:[%s1977_s1 + $0x80] sm:$0xff]  ;;  %v1027_v2 = vld [vmem:[%s1978_s0 + $0x8] sm:$0xf] }
  0x13   :  { %1478 = vmatpush.bf16.msra.mxu3 %v1380_v4  ;;  %633 = vmatpush.bf16.msra.mxu0 %v1380_v4  ;;  %v1385_v61 = vld [vmem:[%s1977_s1 + $0x40] sm:$0xff]  ;;  %v1021_v1 = vld [vmem:[%s1978_s0 + $0x14] sm:$0xf0]  ;;  %v1340_v3 = vld [vmem:[%s1978_s0 + $0x18] sm:$0xf0] }
  0x14   :  { %v1401_v62 = vld [vmem:[%s1977_s1 + $0xc0] sm:$0xff]  ;;  %v1338_v4 = vld [vmem:[%s1978_s0 + $0xc] sm:$0xf]  ;;  %v1028_v9 = vor.u32 %v1340_v3, %v1027_v2  ;;  %v1047_v14 = vld [vmem:[%s1978_s0 + $0x30] sm:$0xf] }
  0x15   :  { %v1409_v63 = vld [vmem:[%s1977_s1 + $0x100] sm:$0xff]  ;;  %v1342_v12 = vld [vmem:[%s1978_s0 + $0x2c] sm:$0xf]  ;;  %v1352_v36 = vld [vmem:[%s1978_s0 + $0x7c] sm:$0xf] }
  0x16   :  { %1479 = vmatpush.bf16.msra.mxu1 %v1379_v5  ;;  %1480 = vmatpush.bf16.msra.mxu2 %v1379_v5  ;;  %v1337_v0 = vld [vmem:[%s1978_s0 + $0x4] sm:$0xf]  ;;  %v1041_v13 = vld [vmem:[%s1978_s0 + $0x3c] sm:$0xf0]  ;;  %v1081_v37 = vld [vmem:[%s1978_s0 + $0x8c] sm:$0xf0] }
  0x17   :  { %1481 = vmatpush.bf16.msra.mxu3 %v1379_v5  ;;  %634 = vmatpush.bf16.msra.mxu0 %v1379_v5  ;;  %v1029_v5 = vld [vmem:[%s1978_s0 + $0x1c] sm:$0xf0]  ;;  %v1024_v8 = vor.u32 %v1337_v0, %v1021_v1  ;;  %v1345_v15 = vld [vmem:[%s1978_s0 + $0x40] sm:$0xf0]  ;;  %v1355_v39 = vld [vmem:[%s1978_s0 + $0x90] sm:$0xf0] }
  0x18   :  { %v1032_v10 = vor.u32 %v1338_v4, %v1029_v5  ;;  %v1087_v38 = vld [vmem:[%s1978_s0 + $0x80] sm:$0xf]  ;;  %v1353_v40 = vld [vmem:[%s1978_s0 + $0x84] sm:$0xf]  ;;  %v1089_v41 = vld [vmem:[%s1978_s0 + $0x94] sm:$0xf0] }
  0x19   :  { %v1095_v42 = vld [vmem:[%s1978_s0 + $0x88] sm:$0xf]  ;;  %v1356_v43 = vld [vmem:[%s1978_s0 + $0x98] sm:$0xf0]  ;;  %v1363_v0 = vld [vmem:[%s1978_s0 + $0xd4] sm:$0xf] }
  0x1a   :  { %1482 = vmatpush.bf16.msra.mxu1 %v1378_v6  ;;  %1483 = vmatpush.bf16.msra.mxu2 %v1378_v6  ;;  %v1129_v1 = vld [vmem:[%s1978_s0 + $0xe4] sm:$0xf0]  ;;  %v1135_v2 = vld [vmem:[%s1978_s0 + $0xd8] sm:$0xf]  ;;  %v1366_v3 = vld [vmem:[%s1978_s0 + $0xe8] sm:$0xf0] }
  0x1b   :  { %1484 = vmatpush.bf16.msra.mxu3 %v1378_v6  ;;  %635 = vmatpush.bf16.msra.mxu0 %v1378_v6  ;;  %v1035_v6 = vld [vmem:[%s1978_s0 + $0x10] sm:$0xf] }
  0x1e   :  { %1485 = vmatpush.bf16.msra.mxu1 %v1377_v7  ;;  %1486 = vmatpush.bf16.msra.mxu2 %v1377_v7 }
  0x1f   :  { %1487 = vmatpush.bf16.msra.mxu3 %v1377_v7  ;;  %636 = vmatpush.bf16.msra.mxu0 %v1377_v7  ;;  %v1341_v7 = vld [vmem:[%s1978_s0 + $0x20] sm:$0xf0] }
  0x20   :  { %v1036_v11 = vor.u32 %v1341_v7, %v1035_v6  ;;  %v1132_v6 = vor.u32 %v1363_v0, %v1129_v1  ;;  %v1136_v7 = vor.u32 %v1366_v3, %v1135_v2  ;;  %v1908_v1 = vld [vmem:[%s1980_s3] ss:$0 sm:$0xff] }
  0x21   :  { %647 = vmatmul.bf16.vlgmr.msra.gmra.mxu1 %v1060_v18  ;;  %657 = vmatmul.bf16.vlgmr.msra.gmra.mxu2 %v1100_v19  ;;  %v1055_v18 = vld [vmem:[%s1978_s0 + $0x38] sm:$0xf]  ;;  %v1346_v19 = vld [vmem:[%s1978_s0 + $0x48] sm:$0xf0] }
  0x22   :  { %727 = vmatpush.bf16.msrb.mxu2 %v1400_v16  ;;  %678 = vmatpush.bf16.msrb.mxu1 %v1392_v17  ;;  %v1343_v16 = vld [vmem:[%s1978_s0 + $0x34] sm:$0xf]  ;;  %v1049_v17 = vld [vmem:[%s1978_s0 + $0x44] sm:$0xf0] }
  0x23   :  { %667 = vmatmul.bf16.vlgmr.msra.gmra.mxu3 %v1140_v20  ;;  %637 = vmatmul.bf16.vlgmr.msra.gmra.mxu0 %v1020_v21  ;;  %v1044_v20 = vor.u32 %v1342_v12, %v1041_v13  ;;  %v1048_v21 = vor.u32 %v1345_v15, %v1047_v14  ;;  %v1368_v12 = vld [vmem:[%s1978_s0 + $0xfc] sm:$0xf]  ;;  %v1149_v13 = vld [vmem:[%s1978_s0 + $0x10c] sm:$0xf0]  ;;  %v1155_v14 = vld [vmem:[%s1978_s0 + $0x100] sm:$0xf] }
  0x24   :  { %776 = vmatpush.bf16.msrb.mxu3 %v1408_v22  ;;  %825 = vmatpush.bf16.msrb.mxu0 %v1416_v23  ;;  %v1052_v22 = vor.u32 %v1343_v16, %v1049_v17  ;;  %v1056_v23 = vor.u32 %v1346_v19, %v1055_v18  ;;  %v1371_v15 = vld [vmem:[%s1978_s0 + $0x110] sm:$0xf0]  ;;  %v1152_v19 = vor.u32 %v1368_v12, %v1149_v13 }
  0x26   :  { %728 = vmatpush.bf16.msrb.mxu2 %v1399_v24  ;;  %679 = vmatpush.bf16.msrb.mxu1 %v1391_v25  ;;  %v1347_v24 = vld [vmem:[%s1978_s0 + $0x54] sm:$0xf]  ;;  %v1061_v25 = vld [vmem:[%s1978_s0 + $0x64] sm:$0xf0] }
  0x28   :  { %777 = vmatpush.bf16.msrb.mxu3 %v1407_v26  ;;  %826 = vmatpush.bf16.msrb.mxu0 %v1415_v27  ;;  %v1067_v26 = vld [vmem:[%s1978_s0 + $0x58] sm:$0xf]  ;;  %v1350_v27 = vld [vmem:[%s1978_s0 + $0x68] sm:$0xf0] }
  0x2a   :  { %729 = vmatpush.bf16.msrb.mxu2 %v1398_v28  ;;  %680 = vmatpush.bf16.msrb.mxu1 %v1390_v29  ;;  %v1348_v28 = vld [vmem:[%s1978_s0 + $0x5c] sm:$0xf]  ;;  %v1069_v29 = vld [vmem:[%s1978_s0 + $0x6c] sm:$0xf0] }
  0x2c   :  { %778 = vmatpush.bf16.msrb.mxu3 %v1406_v30  ;;  %827 = vmatpush.bf16.msrb.mxu0 %v1414_v31  ;;  %v1075_v30 = vld [vmem:[%s1978_s0 + $0x60] sm:$0xf]  ;;  %v1351_v31 = vld [vmem:[%s1978_s0 + $0x70] sm:$0xf0] }
  0x2e   :  { %730 = vmatpush.bf16.msrb.mxu2 %v1397_v32  ;;  %681 = vmatpush.bf16.msrb.mxu1 %v1389_v33  ;;  %v1064_v32 = vor.u32 %v1347_v24, %v1061_v25  ;;  %v1068_v33 = vor.u32 %v1350_v27, %v1067_v26  ;;  %v1372_v26 = vld [vmem:[%s1978_s0 + $0x11c] sm:$0xf]  ;;  %v1161_v27 = vld [vmem:[%s1978_s0 + $0x12c] sm:$0xf0] }
  0x30   :  { %779 = vmatpush.bf16.msrb.mxu3 %v1405_v34  ;;  %828 = vmatpush.bf16.msrb.mxu0 %v1413_v35  ;;  %v1072_v34 = vor.u32 %v1348_v28, %v1069_v29  ;;  %v1076_v35 = vor.u32 %v1351_v31, %v1075_v30  ;;  %v1167_v28 = vld [vmem:[%s1978_s0 + $0x120] sm:$0xf]  ;;  %v1375_v29 = vld [vmem:[%s1978_s0 + $0x130] sm:$0xf0]  ;;  %v1373_v30 = vld [vmem:[%s1978_s0 + $0x124] sm:$0xf] }
  0x31   :  { %652 = vmatmul.bf16.gmra.mxu1 %v1080_v46  ;;  %662 = vmatmul.bf16.gmra.mxu2 %v1120_v47  ;;  %v1092_v46 = vor.u32 %v1353_v40, %v1089_v41  ;;  %v1096_v47 = vor.u32 %v1356_v43, %v1095_v42  ;;  %v1169_v31 = vld [vmem:[%s1978_s0 + $0x134] sm:$0xf0] }
  0x32   :  { %731 = vmatpush.bf16.msrb.mxu2 %v1396_v44  ;;  %682 = vmatpush.bf16.msrb.mxu1 %v1388_v45  ;;  %v1084_v44 = vor.u32 %v1352_v36, %v1081_v37  ;;  %v1088_v45 = vor.u32 %v1355_v39, %v1087_v38  ;;  %v1164_v36 = vor.u32 %v1372_v26, %v1161_v27 }
  0x33   :  { %672 = vmatmul.bf16.gmra.mxu3 %v1160_v48  ;;  %642 = vmatmul.bf16.gmra.mxu0 %v1040_v49  ;;  %v1357_v48 = vld [vmem:[%s1978_s0 + $0xa4] sm:$0xf]  ;;  %v1101_v49 = vld [vmem:[%s1978_s0 + $0xb4] sm:$0xf0]  ;;  %v1168_v37 = vor.u32 %v1375_v29, %v1167_v28  ;;  %v1172_v39 = vor.u32 %v1373_v30, %v1169_v31 }
  0x34   :  { %780 = vmatpush.bf16.msrb.mxu3 %v1404_v50  ;;  %829 = vmatpush.bf16.msrb.mxu0 %v1412_v51  ;;  %v1107_v50 = vld [vmem:[%s1978_s0 + $0xa8] sm:$0xf]  ;;  %v1360_v51 = vld [vmem:[%s1978_s0 + $0xb8] sm:$0xf0] }
  0x36   :  { %732 = vmatpush.bf16.msrb.mxu2 %v1395_v52  ;;  %683 = vmatpush.bf16.msrb.mxu1 %v1387_v53  ;;  %v1358_v52 = vld [vmem:[%s1978_s0 + $0xac] sm:$0xf]  ;;  %v1109_v53 = vld [vmem:[%s1978_s0 + $0xbc] sm:$0xf0] }
  0x38   :  { %781 = vmatpush.bf16.msrb.mxu3 %v1403_v54  ;;  %830 = vmatpush.bf16.msrb.mxu0 %v1411_v55  ;;  %v1115_v54 = vld [vmem:[%s1978_s0 + $0xb0] sm:$0xf]  ;;  %v1361_v55 = vld [vmem:[%s1978_s0 + $0xc0] sm:$0xf0] }
  0x3a   :  { %733 = vmatpush.bf16.msrb.mxu2 %v1394_v56  ;;  %684 = vmatpush.bf16.msrb.mxu1 %v1386_v57  ;;  %v1104_v56 = vor.u32 %v1357_v48, %v1101_v49  ;;  %v1108_v57 = vor.u32 %v1360_v51, %v1107_v50 }
  0x3c   :  { %782 = vmatpush.bf16.msrb.mxu3 %v1402_v58  ;;  %831 = vmatpush.bf16.msrb.mxu0 %v1410_v59  ;;  %v1112_v58 = vor.u32 %v1358_v52, %v1109_v53  ;;  %v1116_v59 = vor.u32 %v1361_v55, %v1115_v54 }
  0x3e   :  { %734 = vmatpush.bf16.msrb.mxu2 %v1393_v60  ;;  %685 = vmatpush.bf16.msrb.mxu1 %v1385_v61  ;;  %v1362_v60 = vld [vmem:[%s1978_s0 + $0xcc] sm:$0xf]  ;;  %v1121_v61 = vld [vmem:[%s1978_s0 + $0xdc] sm:$0xf0] }
  0x3f   :  { %v1124_v4 = vor.u32 %v1362_v60, %v1121_v61 }
  0x40   :  { %783 = vmatpush.bf16.msrb.mxu3 %v1401_v62  ;;  %832 = vmatpush.bf16.msrb.mxu0 %v1409_v63  ;;  %v1127_v62 = vld [vmem:[%s1978_s0 + $0xd0] sm:$0xf]  ;;  %v1365_v63 = vld [vmem:[%s1978_s0 + $0xe0] sm:$0xf0] }
  0x41   :  { %686 = vmatmul.bf16.vlgmr.msrb.gmra.mxu1 %v1024_v8  ;;  %735 = vmatmul.bf16.vlgmr.msrb.gmra.mxu2 %v1028_v9  ;;  %v1128_v5 = vor.u32 %v1365_v63, %v1127_v62  ;;  %v1367_v8 = vld [vmem:[%s1978_s0 + $0xf4] sm:$0xf]  ;;  %v1141_v9 = vld [vmem:[%s1978_s0 + $0x104] sm:$0xf0] }
  0x42   :  { %v1144_v16 = vor.u32 %v1367_v8, %v1141_v9 }
  0x43   :  { %784 = vmatmul.bf16.vlgmr.msrb.gmra.mxu3 %v1032_v10  ;;  %833 = vmatmul.bf16.vlgmr.msrb.gmra.mxu0 %v1036_v11  ;;  %v1147_v10 = vld [vmem:[%s1978_s0 + $0xf8] sm:$0xf]  ;;  %v1370_v11 = vld [vmem:[%s1978_s0 + $0x108] sm:$0xf0] }
  0x44   :  { %v1148_v17 = vor.u32 %v1370_v11, %v1147_v10 }
  0x51   :  { %691 = vmatmul.bf16.gmra.mxu1 %v1044_v20  ;;  %740 = vmatmul.bf16.gmra.mxu2 %v1048_v21  ;;  %v1156_v20 = vor.u32 %v1371_v15, %v1155_v14 }
  0x53   :  { %789 = vmatmul.bf16.gmra.mxu3 %v1052_v22  ;;  %838 = vmatmul.bf16.gmra.mxu0 %v1056_v23 }
  0x61   :  { %696 = vmatmul.bf16.gmra.mxu1 %v1064_v32  ;;  %745 = vmatmul.bf16.gmra.mxu2 %v1068_v33  ;;  %v1175_v32 = vld [vmem:[%s1978_s0 + $0x128] sm:$0xf]  ;;  %v1376_v33 = vld [vmem:[%s1978_s0 + $0x138] sm:$0xf0] }
  0x62   :  { %v1176_v40 = vor.u32 %v1376_v33, %v1175_v32 }
  0x63   :  { %794 = vmatmul.bf16.gmra.mxu3 %v1072_v34  ;;  %843 = vmatmul.bf16.gmra.mxu0 %v1076_v35 }
  0x71   :  { %701 = vmatmul.bf16.gmra.mxu1 %v1084_v44  ;;  %750 = vmatmul.bf16.gmra.mxu2 %v1088_v45 }
  0x73   :  { %799 = vmatmul.bf16.gmra.mxu3 %v1092_v46  ;;  %848 = vmatmul.bf16.gmra.mxu0 %v1096_v47 }
  0x81   :  { %706 = vmatmul.bf16.gmra.mxu1 %v1104_v56  ;;  %755 = vmatmul.bf16.gmra.mxu2 %v1108_v57 }
  0x83   :  { %804 = vmatmul.bf16.gmra.mxu3 %v1112_v58  ;;  %853 = vmatmul.bf16.gmra.mxu0 %v1116_v59  ;;  %v1902_v58 = vld [vmem:[%s1979_s2] ss:$0 sm:$0xff] }
  0x91   :  { %711 = vmatmul.bf16.gmra.mxu1 %v1124_v4  ;;  %760 = vmatmul.bf16.gmra.mxu2 %v1128_v5 }
  0x93   :  { %809 = vmatmul.bf16.gmra.mxu3 %v1132_v6  ;;  %858 = vmatmul.bf16.gmra.mxu0 %v1136_v7 }
  0x9e   :  { %v1851_v18 = vpop.f32.mrf.mxu1 }
  0xa0   :  { %v638_v21 = vpop.f32.mrf.mxu0 }
  0xa1   :  { %716 = vmatmul.bf16.gmra.mxu1 %v1144_v16  ;;  %765 = vmatmul.bf16.gmra.mxu2 %v1148_v17 }
  0xa3   :  { %814 = vmatmul.bf16.gmra.mxu3 %v1152_v19  ;;  %863 = vmatmul.bf16.gmra.mxu0 %v1156_v20 }
  0xa4   :  { %v1853_v22 = vpop.f32.mrf.mxu2 }
  0xa6   :  { %v1855_v23 = vpop.f32.mrf.mxu3  ;;  %v1857_v24 = vpop.f32.mrf.mxu1 }
  0xa8   :  { %v640_v25 = vpop.f32.mrf.mxu0 }
  0xac   :  { %v1883_v34 = vpop.f32.mrf.mxu2 }
  0xae   :  { %v1885_v35 = vpop.f32.mrf.mxu3  ;;  %v1887_v38 = vpop.f32.mrf.mxu1 }
  0xb0   :  { %v643_v41 = vpop.f32.mrf.mxu0 }
  0xb1   :  { %721 = vmatmul.bf16.gmra.mxu1 %v1164_v36  ;;  %770 = vmatmul.bf16.gmra.mxu2 %v1168_v37 }
  0xb3   :  { %819 = vmatmul.bf16.gmra.mxu3 %v1172_v39  ;;  %868 = vmatmul.bf16.gmra.mxu0 %v1176_v40 }
  0xb4   :  { %v1889_v42 = vpop.f32.mrf.mxu2 }
  0xb6   :  { %v1891_v43 = vpop.f32.mrf.mxu3  ;;  %v1893_v44 = vpop.f32.mrf.mxu1 }
  0xb8   :  { %v645_v45 = vpop.f32.mrf.mxu0 }
  0xbc   :  { %v1895_v46 = vpop.f32.mrf.mxu2 }
  0xbe   :  { %v1897_v47 = vpop.f32.mrf.mxu3  ;;  %v687_v48 = vpop.f32.mrf.mxu1 }
  0xbf   :  { %v688_v50 = vadd.f32 %v687_v48, %v638_v21 }
  0xc0   :  { %v834_v49 = vpop.f32.mrf.mxu0 }
  0xc4   :  { %v736_v51 = vpop.f32.mrf.mxu2 }
  0xc5   :  { %v737_v52 = vadd.f32 %v736_v51, %v688_v50 }
  0xc6   :  { %v785_v53 = vpop.f32.mrf.mxu3  ;;  %v689_v54 = vpop.f32.mrf.mxu1 }
  0xc7   :  { %v786_v55 = vadd.f32 %v785_v53, %v737_v52  ;;  %v690_v59 = vadd.f32 %v689_v54, %v640_v25 }
  0xc8   :  { %v836_v56 = vpop.f32.mrf.mxu0 }
  0xc9   :  { %v835_v57 = vadd.f32 %v834_v49, %v786_v55 }
  0xcb   :  { %v929_v0 = vmul.f32 %v1902_v58, %v835_v57 }
  0xcc   :  { %v738_v60 = vpop.f32.mrf.mxu2 }
  0xcd   :  { %v739_v61 = vadd.f32 %v738_v60, %v690_v59  ;;  %v949_v5 = vadd.f32 %v1908_v1, %v929_v0 }
  0xce   :  { %v787_v62 = vpop.f32.mrf.mxu3  ;;  %v692_v63 = vpop.f32.mrf.mxu1 }
  0xcf   :  { %v788_v2 = vadd.f32 %v787_v62, %v739_v61  ;;  %v693_v7 = vadd.f32 %v692_v63, %v643_v41  ;;  %v965_v13 = vmax.f32 %v949_v5, 0.0 }
  0xd0   :  { %v839_v3 = vpop.f32.mrf.mxu0 }
  0xd1   :  { %v837_v4 = vadd.f32 %v836_v56, %v788_v2 }
  0xd3   :  { %v930_v6 = vmul.f32 %v1902_v58, %v837_v4 }
  0xd4   :  { %v741_v8 = vpop.f32.mrf.mxu2 }
  0xd5   :  { %v950_v9 = vadd.f32 %v1908_v1, %v930_v6  ;;  %v742_v10 = vadd.f32 %v741_v8, %v693_v7 }
  0xd6   :  { %v790_v11 = vpop.f32.mrf.mxu3  ;;  %v694_v12 = vpop.f32.mrf.mxu1 }
  0xd7   :  { %v966_v14 = vmax.f32 %v950_v9, 0.0  ;;  %v791_v15 = vadd.f32 %v790_v11, %v742_v10  ;;  %v695_v20 = vadd.f32 %v694_v12, %v645_v45 }
  0xd8   :  { %v841_v16 = vpop.f32.mrf.mxu0 }
  0xd9   :  { %v1420_v17 = vpack.c.bf16 %v966_v14, %v965_v13  ;;  %v840_v19 = vadd.f32 %v839_v3, %v791_v15 }
  0xdb   :  { %1421 = vst [vmem:[%s1981_s4] sm:$0xff] %v1420_v17   ;;  %v931_v28 = vmul.f32 %v1902_v58, %v840_v19 }
  0xdc   :  { %v743_v21 = vpop.f32.mrf.mxu2 }
  0xdd   :  { %v744_v25 = vadd.f32 %v743_v21, %v695_v20  ;;  %v951_v32 = vadd.f32 %v1908_v1, %v931_v28 }
  0xde   :  { %v792_v26 = vpop.f32.mrf.mxu3  ;;  %v697_v27 = vpop.f32.mrf.mxu1 }
  0xdf   :  { %v793_v29 = vadd.f32 %v792_v26, %v744_v25  ;;  %v698_v36 = vadd.f32 %v697_v27, %v1851_v18  ;;  %v967_v48 = vmax.f32 %v951_v32, 0.0 }
  0xe0   :  { %v844_v30 = vpop.f32.mrf.mxu0 }
  0xe1   :  { %v842_v31 = vadd.f32 %v841_v16, %v793_v29 }
  0xe3   :  { %v932_v33 = vmul.f32 %v1902_v58, %v842_v31 }
  0xe4   :  { %v746_v37 = vpop.f32.mrf.mxu2 }
  0xe5   :  { %v952_v39 = vadd.f32 %v1908_v1, %v932_v33  ;;  %v747_v40 = vadd.f32 %v746_v37, %v698_v36 }
  0xe6   :  { %v795_v41 = vpop.f32.mrf.mxu3  ;;  %v699_v45 = vpop.f32.mrf.mxu1 }
  0xe7   :  { %v968_v49 = vmax.f32 %v952_v39, 0.0  ;;  %v796_v50 = vadd.f32 %v795_v41, %v747_v40  ;;  %v700_v54 = vadd.f32 %v699_v45, %v1857_v24 }
  0xe8   :  { %v846_v51 = vpop.f32.mrf.mxu0 }
  0xe9   :  { %v1425_v52 = vpack.c.bf16 %v968_v49, %v967_v48  ;;  %v845_v53 = vadd.f32 %v844_v30, %v796_v50 }
  0xeb   :  { %1457 = vst [vmem:[%s1981_s4 + $0x8] sm:$0xff] %v1425_v52   ;;  %v933_v59 = vmul.f32 %v1902_v58, %v845_v53 }
  0xec   :  { %v748_v55 = vpop.f32.mrf.mxu2 }
  0xed   :  { %v749_v18 = vadd.f32 %v748_v55, %v700_v54  ;;  %v953_v63 = vadd.f32 %v1908_v1, %v933_v59 }
  0xee   :  { %v797_v56 = vpop.f32.mrf.mxu3  ;;  %v702_v57 = vpop.f32.mrf.mxu1 }
  0xef   :  { %v798_v60 = vadd.f32 %v797_v56, %v749_v18  ;;  %v703_v2 = vadd.f32 %v702_v57, %v1887_v38  ;;  %v969_v7 = vmax.f32 %v953_v63, 0.0 }
  0xf0   :  { %v849_v61 = vpop.f32.mrf.mxu0 }
  0xf1   :  { %v847_v62 = vadd.f32 %v846_v51, %v798_v60 }
  0xf3   :  { %v934_v0 = vmul.f32 %v1902_v58, %v847_v62 }
  0xf4   :  { %v751_v3 = vpop.f32.mrf.mxu2 }
  0xf5   :  { %v954_v4 = vadd.f32 %v1908_v1, %v934_v0  ;;  %v752_v5 = vadd.f32 %v751_v3, %v703_v2 }
  0xf6   :  { %v800_v24 = vpop.f32.mrf.mxu3  ;;  %v704_v6 = vpop.f32.mrf.mxu1 }
  0xf7   :  { %v970_v8 = vmax.f32 %v954_v4, 0.0  ;;  %v801_v9 = vadd.f32 %v800_v24, %v752_v5  ;;  %v705_v13 = vadd.f32 %v704_v6, %v1893_v44 }
  0xf8   :  { %v851_v10 = vpop.f32.mrf.mxu0 }
  0xf9   :  { %v1430_v11 = vpack.c.bf16 %v970_v8, %v969_v7  ;;  %v850_v12 = vadd.f32 %v849_v61, %v801_v9 }
  0xfb   :  { %1458 = vst [vmem:[%s1981_s4 + $0x10] sm:$0xff] %v1430_v11   ;;  %v935_v17 = vmul.f32 %v1902_v58, %v850_v12 }
  0xfc   :  { %v753_v14 = vpop.f32.mrf.mxu2 }
  0xfd   :  { %v754_v38 = vadd.f32 %v753_v14, %v705_v13  ;;  %v955_v25 = vadd.f32 %v1908_v1, %v935_v17 }
  0xfe   :  { %v802_v15 = vpop.f32.mrf.mxu3  ;;  %v707_v16 = vpop.f32.mrf.mxu1 }
  0xff   :  { %v803_v19 = vadd.f32 %v802_v15, %v754_v38  ;;  %v708_v27 = vadd.f32 %v707_v16, %v1853_v22  ;;  %v971_v32 = vmax.f32 %v955_v25, 0.0 }
 0x100   :  { %v854_v20 = vpop.f32.mrf.mxu0 }
 0x101   :  { %v852_v21 = vadd.f32 %v851_v10, %v803_v19 }
 0x103   :  { %v936_v26 = vmul.f32 %v1902_v58, %v852_v21 }
 0x104   :  { %v756_v28 = vpop.f32.mrf.mxu2 }
 0x105   :  { %v956_v29 = vadd.f32 %v1908_v1, %v936_v26  ;;  %v757_v30 = vadd.f32 %v756_v28, %v708_v27 }
 0x106   :  { %v805_v44 = vpop.f32.mrf.mxu3  ;;  %v709_v31 = vpop.f32.mrf.mxu1 }
 0x107   :  { %v972_v33 = vmax.f32 %v956_v29, 0.0  ;;  %v806_v36 = vadd.f32 %v805_v44, %v757_v30  ;;  %v710_v41 = vadd.f32 %v709_v31, %v1883_v34 }
 0x108   :  { %v856_v37 = vpop.f32.mrf.mxu0 }
 0x109   :  { %v1435_v39 = vpack.c.bf16 %v972_v33, %v971_v32  ;;  %v855_v40 = vadd.f32 %v854_v20, %v806_v36 }
 0x10b   :  { %1459 = vst [vmem:[%s1981_s4 + $0x18] sm:$0xff] %v1435_v39   ;;  %v937_v50 = vmul.f32 %v1902_v58, %v855_v40 }
 0x10c   :  { %v758_v45 = vpop.f32.mrf.mxu2 }
 0x10d   :  { %v759_v22 = vadd.f32 %v758_v45, %v710_v41  ;;  %v957_v54 = vadd.f32 %v1908_v1, %v937_v50 }
 0x10e   :  { %v807_v48 = vpop.f32.mrf.mxu3  ;;  %v712_v49 = vpop.f32.mrf.mxu1 }
 0x10f   :  { %v808_v51 = vadd.f32 %v807_v48, %v759_v22  ;;  %v713_v18 = vadd.f32 %v712_v49, %v1889_v42  ;;  %v973_v61 = vmax.f32 %v957_v54, 0.0 }
 0x110   :  { %v859_v52 = vpop.f32.mrf.mxu0 }
 0x111   :  { %v857_v53 = vadd.f32 %v856_v37, %v808_v51 }
 0x113   :  { %v938_v55 = vmul.f32 %v1902_v58, %v857_v53 }
 0x114   :  { %v761_v56 = vpop.f32.mrf.mxu2 }
 0x115   :  { %v958_v57 = vadd.f32 %v1908_v1, %v938_v55  ;;  %v762_v59 = vadd.f32 %v761_v56, %v713_v18 }
 0x116   :  { %v810_v34 = vpop.f32.mrf.mxu3  ;;  %v714_v60 = vpop.f32.mrf.mxu1 }
 0x117   :  { %v974_v62 = vmax.f32 %v958_v57, 0.0  ;;  %v811_v63 = vadd.f32 %v810_v34, %v762_v59  ;;  %v715_v4 = vadd.f32 %v714_v60, %v1895_v46 }
 0x118   :  { %v861_v0 = vpop.f32.mrf.mxu0 }
 0x119   :  { %v1440_v2 = vpack.c.bf16 %v974_v62, %v973_v61  ;;  %v860_v3 = vadd.f32 %v859_v52, %v811_v63 }
 0x11b   :  { %1460 = vst [vmem:[%s1981_s4 + $0x20] sm:$0xff] %v1440_v2   ;;  %v939_v7 = vmul.f32 %v1902_v58, %v860_v3 }
 0x11c   :  { %v763_v5 = vpop.f32.mrf.mxu2 }
 0x11d   :  { %v764_v42 = vadd.f32 %v763_v5, %v715_v4  ;;  %v959_v11 = vadd.f32 %v1908_v1, %v939_v7 }
 0x11e   :  { %v812_v24 = vpop.f32.mrf.mxu3  ;;  %v717_v6 = vpop.f32.mrf.mxu1 }
 0x11f   :  { %v813_v8 = vadd.f32 %v812_v24, %v764_v42  ;;  %v718_v13 = vadd.f32 %v717_v6, %v1855_v23  ;;  %v975_v17 = vmax.f32 %v959_v11, 0.0 }
 0x120   :  { %v864_v10 = vpop.f32.mrf.mxu0 }
 0x121   :  { %v862_v9 = vadd.f32 %v861_v0, %v813_v8 }
 0x123   :  { %v940_v12 = vmul.f32 %v1902_v58, %v862_v9 }
 0x124   :  { %v766_v14 = vpop.f32.mrf.mxu2 }
 0x125   :  { %v960_v38 = vadd.f32 %v1908_v1, %v940_v12  ;;  %v767_v15 = vadd.f32 %v766_v14, %v718_v13 }
 0x126   :  { %v815_v46 = vpop.f32.mrf.mxu3  ;;  %v719_v16 = vpop.f32.mrf.mxu1 }
 0x127   :  { %v976_v19 = vmax.f32 %v960_v38, 0.0  ;;  %v816_v20 = vadd.f32 %v815_v46, %v767_v15  ;;  %v720_v26 = vadd.f32 %v719_v16, %v1885_v35 }
 0x128   :  { %v866_v27 = vpop.f32.mrf.mxu0 }
 0x129   :  { %v1445_v21 = vpack.c.bf16 %v976_v19, %v975_v17  ;;  %v865_v25 = vadd.f32 %v864_v10, %v816_v20 }
 0x12b   :  { %1461 = vst [vmem:[%s1981_s4 + $0x28] sm:$0xff] %v1445_v21   ;;  %v941_v44 = vmul.f32 %v1902_v58, %v865_v25 }
 0x12c   :  { %v768_v28 = vpop.f32.mrf.mxu2 }
 0x12d   :  { %v769_v23 = vadd.f32 %v768_v28, %v720_v26  ;;  %v961_v33 = vadd.f32 %v1908_v1, %v941_v44 }
 0x12e   :  { %v817_v29 = vpop.f32.mrf.mxu3  ;;  %v722_v30 = vpop.f32.mrf.mxu1 }
 0x12f   :  { %v818_v31 = vadd.f32 %v817_v29, %v769_v23  ;;  %v723_v37 = vadd.f32 %v722_v30, %v1891_v43  ;;  %v977_v22 = vmax.f32 %v961_v33, 0.0 }
 0x130   :  { %v869_v45 = vpop.f32.mrf.mxu0 }
 0x131   :  { %v867_v32 = vadd.f32 %v866_v27, %v818_v31 }
 0x133   :  { %v942_v36 = vmul.f32 %v1902_v58, %v867_v32 }
 0x134   :  { %v771_v39 = vpop.f32.mrf.mxu2 }
 0x135   :  { %v962_v40 = vadd.f32 %v1908_v1, %v942_v36  ;;  %v772_v41 = vadd.f32 %v771_v39, %v723_v37 }
 0x136   :  { %v820_v35 = vpop.f32.mrf.mxu3  ;;  %v724_v50 = vpop.f32.mrf.mxu1 }
 0x137   :  { %v978_v48 = vmax.f32 %v962_v40, 0.0  ;;  %v821_v49 = vadd.f32 %v820_v35, %v772_v41  ;;  %v725_v53 = vadd.f32 %v724_v50, %v1897_v47 }
 0x138   :  { %v871_v57 = vpop.f32.mrf.mxu0 }
 0x139   :  { %v1450_v51 = vpack.c.bf16 %v978_v48, %v977_v22  ;;  %v870_v52 = vadd.f32 %v869_v45, %v821_v49 }
 0x13b   :  { %1462 = vst [vmem:[%s1981_s4 + $0x30] sm:$0xff] %v1450_v51   ;;  %v943_v18 = vmul.f32 %v1902_v58, %v870_v52 }
 0x13c   :  { %v773_v54 = vpop.f32.mrf.mxu2 }
 0x13d   :  { %v774_v43 = vadd.f32 %v773_v54, %v725_v53  ;;  %v963_v34 = vadd.f32 %v1908_v1, %v943_v18 }
 0x13e   :  { %v822_v55 = vpop.f32.mrf.mxu3 }
 0x13f   :  { %v823_v56 = vadd.f32 %v822_v55, %v774_v43  ;;  %v979_v62 = vmax.f32 %v963_v34, 0.0 }
 0x141   :  { %v872_v59 = vadd.f32 %v871_v57, %v823_v56 }
 0x143   :  { %v944_v60 = vmul.f32 %v1902_v58, %v872_v59 }
 0x145   :  { %v964_v61 = vadd.f32 %v1908_v1, %v944_v60 }
 0x147   :  { %v980_v63 = vmax.f32 %v964_v61, 0.0 }
 0x149   :  { %v1455_v0 = vpack.c.bf16 %v980_v63, %v979_v62 }
 0x14b   :  { %1463 = vst [vmem:[%s1981_s4 + $0x38] sm:$0xff] %v1455_v0  }

// kernel: _lambda_.17
= control target key start
LH: loop header
LB: loop body
LE: loop exit
PB: predicated region body
PF: predicated region fallthrough
CT: control target
= control target key end

     0   :  { %s2096_s1 = inlined_call_operand.vmem [shape: bf16[640,128], index: 1, kind: input, shape index: {}]   ;;  %s2097_s0 = inlined_call_operand.vmem [shape: bf16[128,640], index: 0, kind: input, shape index: {}]   ;;  %s2098_s2 = inlined_call_operand.vmem [shape: f32[1,128], index: 2, kind: input, shape index: {}]   ;;  %s2099_s3 = inlined_call_operand.vmem [shape: f32[1,128], index: 3, kind: input, shape index: {}]   ;;  %s2100_s4 = inlined_call_operand.vmem [shape: bf16[128,128], index: 4, kind: input, shape index: {}]   ;;  %s2101_s5 = inlined_call_operand.vmem [shape: bf16[128,128], index: 5, kind: output, shape index: {}]  }
   0x1   :  { %v1435_v0 = vld [vmem:[%s2096_s1 + $0x38] sm:$0xff]  ;;  %v1434_v1 = vld [vmem:[%s2096_s1 + $0x30] sm:$0xff]  ;;  %v1433_v2 = vld [vmem:[%s2096_s1 + $0x28] sm:$0xff] }
   0x2   :  { %1554 = vmatpush.bf16.msra.mxu1 %v1435_v0  ;;  %1555 = vmatpush.bf16.msra.mxu2 %v1435_v0  ;;  %v1432_v3 = vld [vmem:[%s2096_s1 + $0x20] sm:$0xff]  ;;  %v1431_v4 = vld [vmem:[%s2096_s1 + $0x18] sm:$0xff]  ;;  %v1430_v5 = vld [vmem:[%s2096_s1 + $0x10] sm:$0xff] }
   0x3   :  { %1556 = vmatpush.bf16.msra.mxu3 %v1435_v0  ;;  %632 = vmatpush.bf16.msra.mxu0 %v1435_v0  ;;  %v1429_v6 = vld [vmem:[%s2096_s1 + $0x8] sm:$0xff]  ;;  %v1428_v7 = vld [vmem:[%s2096_s1] sm:$0xff]  ;;  %v1110_v8 = vld [vmem:[%s2097_s0 + $0x50] sm:$0xf] }
   0x4   :  { %v1400_v9 = vld [vmem:[%s2097_s0 + $0x60] sm:$0xf0]  ;;  %v1150_v10 = vld [vmem:[%s2097_s0 + $0xa0] sm:$0xf]  ;;  %v1410_v11 = vld [vmem:[%s2097_s0 + $0xb0] sm:$0xf0] }
   0x5   :  { %v1190_v12 = vld [vmem:[%s2097_s0 + $0xf0] sm:$0xf]  ;;  %v1420_v13 = vld [vmem:[%s2097_s0 + $0x100] sm:$0xf0]  ;;  %v1070_v14 = vld [vmem:[%s2097_s0] sm:$0xf]  ;;  %v1111_v18 = vor.u32 %v1400_v9, %v1110_v8  ;;  %v1151_v19 = vor.u32 %v1410_v11, %v1150_v10 }
   0x6   :  { %1557 = vmatpush.bf16.msra.mxu1 %v1434_v1  ;;  %1558 = vmatpush.bf16.msra.mxu2 %v1434_v1  ;;  %v1390_v15 = vld [vmem:[%s2097_s0 + $0x10] sm:$0xf0]  ;;  %v1451_v16 = vld [vmem:[%s2096_s1 + $0xb8] sm:$0xff]  ;;  %v1191_v20 = vor.u32 %v1420_v13, %v1190_v12  ;;  %v1449_v28 = vld [vmem:[%s2096_s1 + $0xa8] sm:$0xff] }
   0x7   :  { %1559 = vmatpush.bf16.msra.mxu3 %v1434_v1  ;;  %633 = vmatpush.bf16.msra.mxu0 %v1434_v1  ;;  %v1443_v17 = vld [vmem:[%s2096_s1 + $0x78] sm:$0xff]  ;;  %v1071_v21 = vor.u32 %v1390_v15, %v1070_v14  ;;  %v1450_v24 = vld [vmem:[%s2096_s1 + $0xb0] sm:$0xff]  ;;  %v1441_v29 = vld [vmem:[%s2096_s1 + $0x68] sm:$0xff] }
   0x8   :  { %v1459_v22 = vld [vmem:[%s2096_s1 + $0xf8] sm:$0xff]  ;;  %v1442_v25 = vld [vmem:[%s2096_s1 + $0x70] sm:$0xff]  ;;  %v1457_v30 = vld [vmem:[%s2096_s1 + $0xe8] sm:$0xff] }
   0x9   :  { %v1467_v23 = vld [vmem:[%s2096_s1 + $0x138] sm:$0xff]  ;;  %v1458_v26 = vld [vmem:[%s2096_s1 + $0xf0] sm:$0xff]  ;;  %v1465_v31 = vld [vmem:[%s2096_s1 + $0x128] sm:$0xff] }
   0xa   :  { %1560 = vmatpush.bf16.msra.mxu1 %v1433_v2  ;;  %1561 = vmatpush.bf16.msra.mxu2 %v1433_v2  ;;  %v1466_v27 = vld [vmem:[%s2096_s1 + $0x130] sm:$0xff]  ;;  %v1448_v32 = vld [vmem:[%s2096_s1 + $0xa0] sm:$0xff]  ;;  %v1130_v36 = vld [vmem:[%s2097_s0 + $0x78] sm:$0xf] }
   0xb   :  { %1562 = vmatpush.bf16.msra.mxu3 %v1433_v2  ;;  %634 = vmatpush.bf16.msra.mxu0 %v1433_v2  ;;  %v1440_v33 = vld [vmem:[%s2096_s1 + $0x60] sm:$0xff]  ;;  %v1405_v37 = vld [vmem:[%s2097_s0 + $0x88] sm:$0xf0]  ;;  %v1170_v38 = vld [vmem:[%s2097_s0 + $0xc8] sm:$0xf] }
   0xc   :  { %v1456_v34 = vld [vmem:[%s2096_s1 + $0xe0] sm:$0xff]  ;;  %v1415_v39 = vld [vmem:[%s2097_s0 + $0xd8] sm:$0xf0]  ;;  %v1210_v40 = vld [vmem:[%s2097_s0 + $0x118] sm:$0xf]  ;;  %v1131_v46 = vor.u32 %v1405_v37, %v1130_v36 }
   0xd   :  { %v1464_v35 = vld [vmem:[%s2096_s1 + $0x120] sm:$0xff]  ;;  %v1425_v41 = vld [vmem:[%s2097_s0 + $0x128] sm:$0xf0]  ;;  %v1090_v42 = vld [vmem:[%s2097_s0 + $0x28] sm:$0xf]  ;;  %v1171_v47 = vor.u32 %v1415_v39, %v1170_v38 }
   0xe   :  { %1563 = vmatpush.bf16.msra.mxu1 %v1432_v3  ;;  %1564 = vmatpush.bf16.msra.mxu2 %v1432_v3  ;;  %v1395_v43 = vld [vmem:[%s2097_s0 + $0x38] sm:$0xf0]  ;;  %v1211_v48 = vor.u32 %v1425_v41, %v1210_v40  ;;  %v1446_v52 = vld [vmem:[%s2096_s1 + $0x90] sm:$0xff]  ;;  %v1445_v56 = vld [vmem:[%s2096_s1 + $0x88] sm:$0xff] }
   0xf   :  { %1565 = vmatpush.bf16.msra.mxu3 %v1432_v3  ;;  %635 = vmatpush.bf16.msra.mxu0 %v1432_v3  ;;  %v1447_v44 = vld [vmem:[%s2096_s1 + $0x98] sm:$0xff]  ;;  %v1091_v49 = vor.u32 %v1395_v43, %v1090_v42  ;;  %v1438_v53 = vld [vmem:[%s2096_s1 + $0x50] sm:$0xff]  ;;  %v1437_v57 = vld [vmem:[%s2096_s1 + $0x48] sm:$0xff] }
  0x10   :  { %v1439_v45 = vld [vmem:[%s2096_s1 + $0x58] sm:$0xff]  ;;  %v1454_v54 = vld [vmem:[%s2096_s1 + $0xd0] sm:$0xff]  ;;  %v1453_v58 = vld [vmem:[%s2096_s1 + $0xc8] sm:$0xff] }
  0x11   :  { %v1455_v50 = vld [vmem:[%s2096_s1 + $0xd8] sm:$0xff]  ;;  %v1462_v55 = vld [vmem:[%s2096_s1 + $0x110] sm:$0xff]  ;;  %v1461_v59 = vld [vmem:[%s2096_s1 + $0x108] sm:$0xff] }
  0x12   :  { %1566 = vmatpush.bf16.msra.mxu1 %v1431_v4  ;;  %1567 = vmatpush.bf16.msra.mxu2 %v1431_v4  ;;  %v1463_v51 = vld [vmem:[%s2096_s1 + $0x118] sm:$0xff]  ;;  %v1444_v60 = vld [vmem:[%s2096_s1 + $0x80] sm:$0xff]  ;;  %v1078_v2 = vld [vmem:[%s2097_s0 + $0x8] sm:$0xf] }
  0x13   :  { %1568 = vmatpush.bf16.msra.mxu3 %v1431_v4  ;;  %636 = vmatpush.bf16.msra.mxu0 %v1431_v4  ;;  %v1436_v61 = vld [vmem:[%s2096_s1 + $0x40] sm:$0xff]  ;;  %v1072_v1 = vld [vmem:[%s2097_s0 + $0x14] sm:$0xf0]  ;;  %v1391_v3 = vld [vmem:[%s2097_s0 + $0x18] sm:$0xf0] }
  0x14   :  { %v1452_v62 = vld [vmem:[%s2096_s1 + $0xc0] sm:$0xff]  ;;  %v1389_v4 = vld [vmem:[%s2097_s0 + $0xc] sm:$0xf]  ;;  %v1079_v9 = vor.u32 %v1391_v3, %v1078_v2  ;;  %v1098_v14 = vld [vmem:[%s2097_s0 + $0x30] sm:$0xf] }
  0x15   :  { %v1460_v63 = vld [vmem:[%s2096_s1 + $0x100] sm:$0xff]  ;;  %v1393_v12 = vld [vmem:[%s2097_s0 + $0x2c] sm:$0xf]  ;;  %v1403_v36 = vld [vmem:[%s2097_s0 + $0x7c] sm:$0xf] }
  0x16   :  { %1569 = vmatpush.bf16.msra.mxu1 %v1430_v5  ;;  %1570 = vmatpush.bf16.msra.mxu2 %v1430_v5  ;;  %v1388_v0 = vld [vmem:[%s2097_s0 + $0x4] sm:$0xf]  ;;  %v1092_v13 = vld [vmem:[%s2097_s0 + $0x3c] sm:$0xf0]  ;;  %v1132_v37 = vld [vmem:[%s2097_s0 + $0x8c] sm:$0xf0] }
  0x17   :  { %1571 = vmatpush.bf16.msra.mxu3 %v1430_v5  ;;  %637 = vmatpush.bf16.msra.mxu0 %v1430_v5  ;;  %v1080_v5 = vld [vmem:[%s2097_s0 + $0x1c] sm:$0xf0]  ;;  %v1075_v8 = vor.u32 %v1388_v0, %v1072_v1  ;;  %v1396_v15 = vld [vmem:[%s2097_s0 + $0x40] sm:$0xf0]  ;;  %v1406_v39 = vld [vmem:[%s2097_s0 + $0x90] sm:$0xf0] }
  0x18   :  { %v1083_v10 = vor.u32 %v1389_v4, %v1080_v5  ;;  %v1138_v38 = vld [vmem:[%s2097_s0 + $0x80] sm:$0xf]  ;;  %v1404_v40 = vld [vmem:[%s2097_s0 + $0x84] sm:$0xf]  ;;  %v1140_v41 = vld [vmem:[%s2097_s0 + $0x94] sm:$0xf0] }
  0x19   :  { %v1146_v42 = vld [vmem:[%s2097_s0 + $0x88] sm:$0xf]  ;;  %v1407_v43 = vld [vmem:[%s2097_s0 + $0x98] sm:$0xf0]  ;;  %v1414_v0 = vld [vmem:[%s2097_s0 + $0xd4] sm:$0xf] }
  0x1a   :  { %1572 = vmatpush.bf16.msra.mxu1 %v1429_v6  ;;  %1573 = vmatpush.bf16.msra.mxu2 %v1429_v6  ;;  %v1180_v1 = vld [vmem:[%s2097_s0 + $0xe4] sm:$0xf0]  ;;  %v1186_v2 = vld [vmem:[%s2097_s0 + $0xd8] sm:$0xf]  ;;  %v1417_v3 = vld [vmem:[%s2097_s0 + $0xe8] sm:$0xf0] }
  0x1b   :  { %1574 = vmatpush.bf16.msra.mxu3 %v1429_v6  ;;  %638 = vmatpush.bf16.msra.mxu0 %v1429_v6  ;;  %v1086_v6 = vld [vmem:[%s2097_s0 + $0x10] sm:$0xf] }
  0x1e   :  { %1575 = vmatpush.bf16.msra.mxu1 %v1428_v7  ;;  %1576 = vmatpush.bf16.msra.mxu2 %v1428_v7 }
  0x1f   :  { %1577 = vmatpush.bf16.msra.mxu3 %v1428_v7  ;;  %639 = vmatpush.bf16.msra.mxu0 %v1428_v7  ;;  %v1392_v7 = vld [vmem:[%s2097_s0 + $0x20] sm:$0xf0] }
  0x20   :  { %v1087_v11 = vor.u32 %v1392_v7, %v1086_v6  ;;  %v1183_v6 = vor.u32 %v1414_v0, %v1180_v1  ;;  %v1187_v7 = vor.u32 %v1417_v3, %v1186_v2  ;;  %v1469_v1 = vld [vmem:[%s2100_s4] sm:$0xff]  }
  0x21   :  { %650 = vmatmul.bf16.vlgmr.msra.gmra.mxu1 %v1111_v18  ;;  %660 = vmatmul.bf16.vlgmr.msra.gmra.mxu2 %v1151_v19  ;;  %v1106_v18 = vld [vmem:[%s2097_s0 + $0x38] sm:$0xf]  ;;  %v1397_v19 = vld [vmem:[%s2097_s0 + $0x48] sm:$0xf0] }
  0x22   :  { %730 = vmatpush.bf16.msrb.mxu2 %v1451_v16  ;;  %681 = vmatpush.bf16.msrb.mxu1 %v1443_v17  ;;  %v1394_v16 = vld [vmem:[%s2097_s0 + $0x34] sm:$0xf]  ;;  %v1100_v17 = vld [vmem:[%s2097_s0 + $0x44] sm:$0xf0] }
  0x23   :  { %670 = vmatmul.bf16.vlgmr.msra.gmra.mxu3 %v1191_v20  ;;  %640 = vmatmul.bf16.vlgmr.msra.gmra.mxu0 %v1071_v21  ;;  %v1095_v20 = vor.u32 %v1393_v12, %v1092_v13  ;;  %v1099_v21 = vor.u32 %v1396_v15, %v1098_v14  ;;  %v1419_v12 = vld [vmem:[%s2097_s0 + $0xfc] sm:$0xf]  ;;  %v1200_v13 = vld [vmem:[%s2097_s0 + $0x10c] sm:$0xf0]  ;;  %v1206_v14 = vld [vmem:[%s2097_s0 + $0x100] sm:$0xf] }
  0x24   :  { %779 = vmatpush.bf16.msrb.mxu3 %v1459_v22  ;;  %828 = vmatpush.bf16.msrb.mxu0 %v1467_v23  ;;  %v1103_v22 = vor.u32 %v1394_v16, %v1100_v17  ;;  %v1107_v23 = vor.u32 %v1397_v19, %v1106_v18  ;;  %v1422_v15 = vld [vmem:[%s2097_s0 + $0x110] sm:$0xf0]  ;;  %v1203_v19 = vor.u32 %v1419_v12, %v1200_v13 }
  0x26   :  { %731 = vmatpush.bf16.msrb.mxu2 %v1450_v24  ;;  %682 = vmatpush.bf16.msrb.mxu1 %v1442_v25  ;;  %v1398_v24 = vld [vmem:[%s2097_s0 + $0x54] sm:$0xf]  ;;  %v1112_v25 = vld [vmem:[%s2097_s0 + $0x64] sm:$0xf0] }
  0x28   :  { %780 = vmatpush.bf16.msrb.mxu3 %v1458_v26  ;;  %829 = vmatpush.bf16.msrb.mxu0 %v1466_v27  ;;  %v1118_v26 = vld [vmem:[%s2097_s0 + $0x58] sm:$0xf]  ;;  %v1401_v27 = vld [vmem:[%s2097_s0 + $0x68] sm:$0xf0] }
  0x2a   :  { %732 = vmatpush.bf16.msrb.mxu2 %v1449_v28  ;;  %683 = vmatpush.bf16.msrb.mxu1 %v1441_v29  ;;  %v1399_v28 = vld [vmem:[%s2097_s0 + $0x5c] sm:$0xf]  ;;  %v1120_v29 = vld [vmem:[%s2097_s0 + $0x6c] sm:$0xf0] }
  0x2c   :  { %781 = vmatpush.bf16.msrb.mxu3 %v1457_v30  ;;  %830 = vmatpush.bf16.msrb.mxu0 %v1465_v31  ;;  %v1126_v30 = vld [vmem:[%s2097_s0 + $0x60] sm:$0xf]  ;;  %v1402_v31 = vld [vmem:[%s2097_s0 + $0x70] sm:$0xf0] }
  0x2e   :  { %733 = vmatpush.bf16.msrb.mxu2 %v1448_v32  ;;  %684 = vmatpush.bf16.msrb.mxu1 %v1440_v33  ;;  %v1115_v32 = vor.u32 %v1398_v24, %v1112_v25  ;;  %v1119_v33 = vor.u32 %v1401_v27, %v1118_v26  ;;  %v1423_v26 = vld [vmem:[%s2097_s0 + $0x11c] sm:$0xf]  ;;  %v1212_v27 = vld [vmem:[%s2097_s0 + $0x12c] sm:$0xf0] }
  0x30   :  { %782 = vmatpush.bf16.msrb.mxu3 %v1456_v34  ;;  %831 = vmatpush.bf16.msrb.mxu0 %v1464_v35  ;;  %v1123_v34 = vor.u32 %v1399_v28, %v1120_v29  ;;  %v1127_v35 = vor.u32 %v1402_v31, %v1126_v30  ;;  %v1218_v28 = vld [vmem:[%s2097_s0 + $0x120] sm:$0xf]  ;;  %v1426_v29 = vld [vmem:[%s2097_s0 + $0x130] sm:$0xf0]  ;;  %v1424_v30 = vld [vmem:[%s2097_s0 + $0x124] sm:$0xf] }
  0x31   :  { %655 = vmatmul.bf16.gmra.mxu1 %v1131_v46  ;;  %665 = vmatmul.bf16.gmra.mxu2 %v1171_v47  ;;  %v1143_v46 = vor.u32 %v1404_v40, %v1140_v41  ;;  %v1147_v47 = vor.u32 %v1407_v43, %v1146_v42  ;;  %v1220_v31 = vld [vmem:[%s2097_s0 + $0x134] sm:$0xf0] }
  0x32   :  { %734 = vmatpush.bf16.msrb.mxu2 %v1447_v44  ;;  %685 = vmatpush.bf16.msrb.mxu1 %v1439_v45  ;;  %v1135_v44 = vor.u32 %v1403_v36, %v1132_v37  ;;  %v1139_v45 = vor.u32 %v1406_v39, %v1138_v38  ;;  %v1215_v36 = vor.u32 %v1423_v26, %v1212_v27 }
  0x33   :  { %675 = vmatmul.bf16.gmra.mxu3 %v1211_v48  ;;  %645 = vmatmul.bf16.gmra.mxu0 %v1091_v49  ;;  %v1408_v48 = vld [vmem:[%s2097_s0 + $0xa4] sm:$0xf]  ;;  %v1152_v49 = vld [vmem:[%s2097_s0 + $0xb4] sm:$0xf0]  ;;  %v1219_v37 = vor.u32 %v1426_v29, %v1218_v28  ;;  %v1223_v39 = vor.u32 %v1424_v30, %v1220_v31 }
  0x34   :  { %783 = vmatpush.bf16.msrb.mxu3 %v1455_v50  ;;  %832 = vmatpush.bf16.msrb.mxu0 %v1463_v51  ;;  %v1158_v50 = vld [vmem:[%s2097_s0 + $0xa8] sm:$0xf]  ;;  %v1411_v51 = vld [vmem:[%s2097_s0 + $0xb8] sm:$0xf0] }
  0x36   :  { %735 = vmatpush.bf16.msrb.mxu2 %v1446_v52  ;;  %686 = vmatpush.bf16.msrb.mxu1 %v1438_v53  ;;  %v1409_v52 = vld [vmem:[%s2097_s0 + $0xac] sm:$0xf]  ;;  %v1160_v53 = vld [vmem:[%s2097_s0 + $0xbc] sm:$0xf0] }
  0x38   :  { %784 = vmatpush.bf16.msrb.mxu3 %v1454_v54  ;;  %833 = vmatpush.bf16.msrb.mxu0 %v1462_v55  ;;  %v1166_v54 = vld [vmem:[%s2097_s0 + $0xb0] sm:$0xf]  ;;  %v1412_v55 = vld [vmem:[%s2097_s0 + $0xc0] sm:$0xf0] }
  0x3a   :  { %736 = vmatpush.bf16.msrb.mxu2 %v1445_v56  ;;  %687 = vmatpush.bf16.msrb.mxu1 %v1437_v57  ;;  %v1155_v56 = vor.u32 %v1408_v48, %v1152_v49  ;;  %v1159_v57 = vor.u32 %v1411_v51, %v1158_v50 }
  0x3c   :  { %785 = vmatpush.bf16.msrb.mxu3 %v1453_v58  ;;  %834 = vmatpush.bf16.msrb.mxu0 %v1461_v59  ;;  %v1163_v58 = vor.u32 %v1409_v52, %v1160_v53  ;;  %v1167_v59 = vor.u32 %v1412_v55, %v1166_v54 }
  0x3e   :  { %737 = vmatpush.bf16.msrb.mxu2 %v1444_v60  ;;  %688 = vmatpush.bf16.msrb.mxu1 %v1436_v61  ;;  %v1413_v60 = vld [vmem:[%s2097_s0 + $0xcc] sm:$0xf]  ;;  %v1172_v61 = vld [vmem:[%s2097_s0 + $0xdc] sm:$0xf0] }
  0x3f   :  { %v1175_v4 = vor.u32 %v1413_v60, %v1172_v61 }
  0x40   :  { %786 = vmatpush.bf16.msrb.mxu3 %v1452_v62  ;;  %835 = vmatpush.bf16.msrb.mxu0 %v1460_v63  ;;  %v1178_v62 = vld [vmem:[%s2097_s0 + $0xd0] sm:$0xf]  ;;  %v1416_v63 = vld [vmem:[%s2097_s0 + $0xe0] sm:$0xf0] }
  0x41   :  { %689 = vmatmul.bf16.vlgmr.msrb.gmra.mxu1 %v1075_v8  ;;  %738 = vmatmul.bf16.vlgmr.msrb.gmra.mxu2 %v1079_v9  ;;  %v1179_v5 = vor.u32 %v1416_v63, %v1178_v62  ;;  %v1418_v8 = vld [vmem:[%s2097_s0 + $0xf4] sm:$0xf]  ;;  %v1192_v9 = vld [vmem:[%s2097_s0 + $0x104] sm:$0xf0]  ;;  %v2003_v62 = vld [vmem:[%s2099_s3] ss:$0 sm:$0xff] }
  0x42   :  { %v1195_v16 = vor.u32 %v1418_v8, %v1192_v9  ;;  %v1471_v9 = vunpack.c.h.bf16 %v1469_v1 }
  0x43   :  { %787 = vmatmul.bf16.vlgmr.msrb.gmra.mxu3 %v1083_v10  ;;  %836 = vmatmul.bf16.vlgmr.msrb.gmra.mxu0 %v1087_v11  ;;  %v1198_v10 = vld [vmem:[%s2097_s0 + $0xf8] sm:$0xf]  ;;  %v1421_v11 = vld [vmem:[%s2097_s0 + $0x108] sm:$0xf0] }
  0x44   :  { %v1199_v17 = vor.u32 %v1421_v11, %v1198_v10 }
  0x51   :  { %694 = vmatmul.bf16.gmra.mxu1 %v1095_v20  ;;  %743 = vmatmul.bf16.gmra.mxu2 %v1099_v21  ;;  %v1207_v20 = vor.u32 %v1422_v15, %v1206_v14 }
  0x53   :  { %792 = vmatmul.bf16.gmra.mxu3 %v1103_v22  ;;  %841 = vmatmul.bf16.gmra.mxu0 %v1107_v23 }
  0x61   :  { %699 = vmatmul.bf16.gmra.mxu1 %v1115_v32  ;;  %748 = vmatmul.bf16.gmra.mxu2 %v1119_v33  ;;  %v1226_v32 = vld [vmem:[%s2097_s0 + $0x128] sm:$0xf]  ;;  %v1427_v33 = vld [vmem:[%s2097_s0 + $0x138] sm:$0xf0] }
  0x62   :  { %v1227_v40 = vor.u32 %v1427_v33, %v1226_v32  ;;  %v1540_v33 = vld [vmem:[%s2100_s4 + $0x8] sm:$0xff]  }
  0x63   :  { %797 = vmatmul.bf16.gmra.mxu3 %v1123_v34  ;;  %846 = vmatmul.bf16.gmra.mxu0 %v1127_v35 }
  0x71   :  { %704 = vmatmul.bf16.gmra.mxu1 %v1135_v44  ;;  %753 = vmatmul.bf16.gmra.mxu2 %v1139_v45 }
  0x73   :  { %802 = vmatmul.bf16.gmra.mxu3 %v1143_v46  ;;  %851 = vmatmul.bf16.gmra.mxu0 %v1147_v47 }
  0x81   :  { %709 = vmatmul.bf16.gmra.mxu1 %v1155_v56  ;;  %758 = vmatmul.bf16.gmra.mxu2 %v1159_v57 }
  0x83   :  { %807 = vmatmul.bf16.gmra.mxu3 %v1163_v58  ;;  %856 = vmatmul.bf16.gmra.mxu0 %v1167_v59  ;;  %v1997_v58 = vld [vmem:[%s2098_s2] ss:$0 sm:$0xff] }
  0x91   :  { %714 = vmatmul.bf16.gmra.mxu1 %v1175_v4  ;;  %763 = vmatmul.bf16.gmra.mxu2 %v1179_v5 }
  0x93   :  { %812 = vmatmul.bf16.gmra.mxu3 %v1183_v6  ;;  %861 = vmatmul.bf16.gmra.mxu0 %v1187_v7  ;;  %v1470_v6 = vunpack.c.l.bf16 %v1469_v1 }
  0x9e   :  { %v1946_v18 = vpop.f32.mrf.mxu1 }
  0xa0   :  { %v641_v21 = vpop.f32.mrf.mxu0 }
  0xa1   :  { %719 = vmatmul.bf16.gmra.mxu1 %v1195_v16  ;;  %768 = vmatmul.bf16.gmra.mxu2 %v1199_v17 }
  0xa3   :  { %817 = vmatmul.bf16.gmra.mxu3 %v1203_v19  ;;  %866 = vmatmul.bf16.gmra.mxu0 %v1207_v20 }
  0xa4   :  { %v1948_v22 = vpop.f32.mrf.mxu2 }
  0xa6   :  { %v1950_v23 = vpop.f32.mrf.mxu3  ;;  %v1952_v24 = vpop.f32.mrf.mxu1 }
  0xa8   :  { %v643_v25 = vpop.f32.mrf.mxu0 }
  0xac   :  { %v1978_v34 = vpop.f32.mrf.mxu2 }
  0xae   :  { %v1980_v35 = vpop.f32.mrf.mxu3  ;;  %v1982_v38 = vpop.f32.mrf.mxu1 }
  0xb0   :  { %v646_v41 = vpop.f32.mrf.mxu0 }
  0xb1   :  { %724 = vmatmul.bf16.gmra.mxu1 %v1215_v36  ;;  %773 = vmatmul.bf16.gmra.mxu2 %v1219_v37 }
  0xb3   :  { %822 = vmatmul.bf16.gmra.mxu3 %v1223_v39  ;;  %871 = vmatmul.bf16.gmra.mxu0 %v1227_v40 }
  0xb4   :  { %v1984_v42 = vpop.f32.mrf.mxu2 }
  0xb6   :  { %v1986_v43 = vpop.f32.mrf.mxu3  ;;  %v1988_v44 = vpop.f32.mrf.mxu1 }
  0xb8   :  { %v648_v45 = vpop.f32.mrf.mxu0 }
  0xbc   :  { %v1990_v46 = vpop.f32.mrf.mxu2 }
  0xbe   :  { %v1992_v47 = vpop.f32.mrf.mxu3  ;;  %v690_v48 = vpop.f32.mrf.mxu1 }
  0xbf   :  { %v691_v50 = vadd.f32 %v690_v48, %v641_v21 }
  0xc0   :  { %v837_v49 = vpop.f32.mrf.mxu0 }
  0xc4   :  { %v739_v51 = vpop.f32.mrf.mxu2 }
  0xc5   :  { %v740_v52 = vadd.f32 %v739_v51, %v691_v50 }
  0xc6   :  { %v788_v53 = vpop.f32.mrf.mxu3  ;;  %v692_v54 = vpop.f32.mrf.mxu1 }
  0xc7   :  { %v789_v55 = vadd.f32 %v788_v53, %v740_v52  ;;  %v693_v59 = vadd.f32 %v692_v54, %v643_v25 }
  0xc8   :  { %v839_v56 = vpop.f32.mrf.mxu0 }
  0xc9   :  { %v838_v57 = vadd.f32 %v837_v49, %v789_v55  ;;  %v1475_v49 = vunpack.c.h.bf16 %v1540_v33 }
  0xcb   :  { %v932_v61 = vmul.f32 %v1997_v58, %v838_v57 }
  0xcc   :  { %v741_v60 = vpop.f32.mrf.mxu2 }
  0xcd   :  { %v742_v63 = vadd.f32 %v741_v60, %v693_v59  ;;  %v952_v5 = vadd.f32 %v2003_v62, %v932_v61 }
  0xce   :  { %v790_v0 = vpop.f32.mrf.mxu3  ;;  %v695_v2 = vpop.f32.mrf.mxu1 }
  0xcf   :  { %v791_v3 = vadd.f32 %v790_v0, %v742_v63  ;;  %v696_v10 = vadd.f32 %v695_v2, %v646_v41  ;;  %v1000_v12 = vadd.f32 %v1470_v6, %v952_v5  ;;  %v1474_v41 = vunpack.c.l.bf16 %v1540_v33  ;;  %v1541_v6 = vld [vmem:[%s2100_s4 + $0x10] sm:$0xff]  }
  0xd0   :  { %v842_v4 = vpop.f32.mrf.mxu0 }
  0xd1   :  { %v840_v7 = vadd.f32 %v839_v56, %v791_v3  ;;  %v1016_v21 = vmax.f32 %v1000_v12, 0.0 }
  0xd3   :  { %v933_v8 = vmul.f32 %v1997_v58, %v840_v7 }
  0xd4   :  { %v744_v11 = vpop.f32.mrf.mxu2 }
  0xd5   :  { %v953_v13 = vadd.f32 %v2003_v62, %v933_v8  ;;  %v745_v14 = vadd.f32 %v744_v11, %v696_v10  ;;  %v1478_v11 = vunpack.c.l.bf16 %v1541_v6 }
  0xd6   :  { %v793_v15 = vpop.f32.mrf.mxu3  ;;  %v697_v16 = vpop.f32.mrf.mxu1 }
  0xd7   :  { %v1001_v17 = vadd.f32 %v1471_v9, %v953_v13  ;;  %v794_v19 = vadd.f32 %v793_v15, %v745_v14  ;;  %v698_v28 = vadd.f32 %v697_v16, %v648_v45  ;;  %v1479_v13 = vunpack.c.h.bf16 %v1541_v6 }
  0xd8   :  { %v844_v20 = vpop.f32.mrf.mxu0 }
  0xd9   :  { %v1017_v25 = vmax.f32 %v1001_v17, 0.0  ;;  %v843_v26 = vadd.f32 %v842_v4, %v794_v19 }
  0xdb   :  { %v1503_v27 = vpack.c.bf16 %v1017_v25, %v1016_v21  ;;  %v934_v30 = vmul.f32 %v1997_v58, %v843_v26 }
  0xdc   :  { %v746_v29 = vpop.f32.mrf.mxu2 }
  0xdd   :  { %1504 = vst [vmem:[%s2101_s5] sm:$0xff] %v1503_v27   ;;  %v747_v31 = vadd.f32 %v746_v29, %v698_v28  ;;  %v954_v40 = vadd.f32 %v2003_v62, %v934_v30 }
  0xde   :  { %v795_v32 = vpop.f32.mrf.mxu3  ;;  %v700_v36 = vpop.f32.mrf.mxu1 }
  0xdf   :  { %v796_v37 = vadd.f32 %v795_v32, %v747_v31  ;;  %v701_v50 = vadd.f32 %v700_v36, %v1946_v18  ;;  %v1002_v52 = vadd.f32 %v1474_v41, %v954_v40 }
  0xe0   :  { %v847_v39 = vpop.f32.mrf.mxu0 }
  0xe1   :  { %v845_v45 = vadd.f32 %v844_v20, %v796_v37  ;;  %v1018_v61 = vmax.f32 %v1002_v52, 0.0 }
  0xe3   :  { %v935_v48 = vmul.f32 %v1997_v58, %v845_v45 }
  0xe4   :  { %v749_v51 = vpop.f32.mrf.mxu2 }
  0xe5   :  { %v955_v53 = vadd.f32 %v2003_v62, %v935_v48  ;;  %v750_v54 = vadd.f32 %v749_v51, %v701_v50 }
  0xe6   :  { %v798_v55 = vpop.f32.mrf.mxu3  ;;  %v702_v56 = vpop.f32.mrf.mxu1 }
  0xe7   :  { %v1003_v57 = vadd.f32 %v1475_v49, %v955_v53  ;;  %v799_v59 = vadd.f32 %v798_v55, %v750_v54  ;;  %v703_v2 = vadd.f32 %v702_v56, %v1952_v24 }
  0xe8   :  { %v849_v60 = vpop.f32.mrf.mxu0 }
  0xe9   :  { %v1019_v63 = vmax.f32 %v1003_v57, 0.0  ;;  %v848_v0 = vadd.f32 %v847_v39, %v799_v59  ;;  %v1542_v39 = vld [vmem:[%s2100_s4 + $0x18] sm:$0xff]  }
  0xea   :  { %v1482_v49 = vunpack.c.l.bf16 %v1542_v39  ;;  %v1483_v51 = vunpack.c.h.bf16 %v1542_v39 }
  0xeb   :  { %v1508_v1 = vpack.c.bf16 %v1019_v63, %v1018_v61  ;;  %v936_v18 = vmul.f32 %v1997_v58, %v848_v0 }
  0xec   :  { %v751_v3 = vpop.f32.mrf.mxu2 }
  0xed   :  { %1547 = vst [vmem:[%s2101_s5 + $0x8] sm:$0xff] %v1508_v1   ;;  %v752_v4 = vadd.f32 %v751_v3, %v703_v2  ;;  %v956_v10 = vadd.f32 %v2003_v62, %v936_v18 }
  0xee   :  { %v800_v5 = vpop.f32.mrf.mxu3  ;;  %v705_v7 = vpop.f32.mrf.mxu1 }
  0xef   :  { %v801_v8 = vadd.f32 %v800_v5, %v752_v4  ;;  %v706_v14 = vadd.f32 %v705_v7, %v1982_v38  ;;  %v1004_v16 = vadd.f32 %v1478_v11, %v956_v10  ;;  %v1543_v7 = vld [vmem:[%s2100_s4 + $0x20] sm:$0xff]  }
  0xf0   :  { %v852_v9 = vpop.f32.mrf.mxu0 }
  0xf1   :  { %v850_v24 = vadd.f32 %v849_v60, %v801_v8  ;;  %v1020_v28 = vmax.f32 %v1004_v16, 0.0 }
  0xf3   :  { %v937_v12 = vmul.f32 %v1997_v58, %v850_v24  ;;  %v1486_v24 = vunpack.c.l.bf16 %v1543_v7 }
  0xf4   :  { %v754_v15 = vpop.f32.mrf.mxu2 }
  0xf5   :  { %v957_v17 = vadd.f32 %v2003_v62, %v937_v12  ;;  %v755_v19 = vadd.f32 %v754_v15, %v706_v14 }
  0xf6   :  { %v803_v20 = vpop.f32.mrf.mxu3  ;;  %v707_v21 = vpop.f32.mrf.mxu1 }
  0xf7   :  { %v1005_v25 = vadd.f32 %v1479_v13, %v957_v17  ;;  %v804_v26 = vadd.f32 %v803_v20, %v755_v19  ;;  %v708_v32 = vadd.f32 %v707_v21, %v1988_v44  ;;  %v1487_v13 = vunpack.c.h.bf16 %v1543_v7 }
  0xf8   :  { %v854_v27 = vpop.f32.mrf.mxu0 }
  0xf9   :  { %v1021_v29 = vmax.f32 %v1005_v25, 0.0  ;;  %v853_v30 = vadd.f32 %v852_v9, %v804_v26 }
  0xfb   :  { %v1513_v31 = vpack.c.bf16 %v1021_v29, %v1020_v28  ;;  %v938_v38 = vmul.f32 %v1997_v58, %v853_v30 }
  0xfc   :  { %v756_v33 = vpop.f32.mrf.mxu2 }
  0xfd   :  { %1548 = vst [vmem:[%s2101_s5 + $0x10] sm:$0xff] %v1513_v31   ;;  %v757_v36 = vadd.f32 %v756_v33, %v708_v32  ;;  %v958_v48 = vadd.f32 %v2003_v62, %v938_v38 }
  0xfe   :  { %v805_v37 = vpop.f32.mrf.mxu3  ;;  %v710_v40 = vpop.f32.mrf.mxu1 }
  0xff   :  { %v806_v41 = vadd.f32 %v805_v37, %v757_v36  ;;  %v711_v52 = vadd.f32 %v710_v40, %v1948_v22  ;;  %v1006_v54 = vadd.f32 %v1482_v49, %v958_v48  ;;  %v1544_v37 = vld [vmem:[%s2100_s4 + $0x28] sm:$0xff]  }
 0x100   :  { %v857_v45 = vpop.f32.mrf.mxu0 }
 0x101   :  { %v855_v44 = vadd.f32 %v854_v27, %v806_v41  ;;  %v1022_v0 = vmax.f32 %v1006_v54, 0.0 }
 0x103   :  { %v939_v50 = vmul.f32 %v1997_v58, %v855_v44  ;;  %v1491_v44 = vunpack.c.h.bf16 %v1544_v37 }
 0x104   :  { %v759_v53 = vpop.f32.mrf.mxu2 }
 0x105   :  { %v959_v55 = vadd.f32 %v2003_v62, %v939_v50  ;;  %v760_v56 = vadd.f32 %v759_v53, %v711_v52 }
 0x106   :  { %v808_v57 = vpop.f32.mrf.mxu3  ;;  %v712_v59 = vpop.f32.mrf.mxu1 }
 0x107   :  { %v1007_v60 = vadd.f32 %v1483_v51, %v959_v55  ;;  %v809_v61 = vadd.f32 %v808_v57, %v760_v56  ;;  %v713_v18 = vadd.f32 %v712_v59, %v1978_v34 }
 0x108   :  { %v859_v63 = vpop.f32.mrf.mxu0 }
 0x109   :  { %v1023_v1 = vmax.f32 %v1007_v60, 0.0  ;;  %v858_v2 = vadd.f32 %v857_v45, %v809_v61  ;;  %v1490_v45 = vunpack.c.l.bf16 %v1544_v37 }
 0x10b   :  { %v1518_v3 = vpack.c.bf16 %v1023_v1, %v1022_v0  ;;  %v940_v22 = vmul.f32 %v1997_v58, %v858_v2 }
 0x10c   :  { %v761_v4 = vpop.f32.mrf.mxu2 }
 0x10d   :  { %1549 = vst [vmem:[%s2101_s5 + $0x18] sm:$0xff] %v1518_v3   ;;  %v762_v5 = vadd.f32 %v761_v4, %v713_v18  ;;  %v960_v11 = vadd.f32 %v2003_v62, %v940_v22  ;;  %v1545_v22 = vld [vmem:[%s2100_s4 + $0x30] sm:$0xff]  }
 0x10e   :  { %v810_v6 = vpop.f32.mrf.mxu3  ;;  %v715_v8 = vpop.f32.mrf.mxu1 }
 0x10f   :  { %v811_v9 = vadd.f32 %v810_v6, %v762_v5  ;;  %v716_v14 = vadd.f32 %v715_v8, %v1984_v42  ;;  %v1008_v16 = vadd.f32 %v1486_v24, %v960_v11  ;;  %v1494_v8 = vunpack.c.l.bf16 %v1545_v22 }
 0x110   :  { %v862_v10 = vpop.f32.mrf.mxu0 }
 0x111   :  { %v860_v34 = vadd.f32 %v859_v63, %v811_v9  ;;  %v1024_v28 = vmax.f32 %v1008_v16, 0.0 }
 0x113   :  { %v941_v12 = vmul.f32 %v1997_v58, %v860_v34 }
 0x114   :  { %v764_v15 = vpop.f32.mrf.mxu2 }
 0x115   :  { %v961_v17 = vadd.f32 %v2003_v62, %v941_v12  ;;  %v765_v19 = vadd.f32 %v764_v15, %v716_v14 }
 0x116   :  { %v813_v20 = vpop.f32.mrf.mxu3  ;;  %v717_v21 = vpop.f32.mrf.mxu1 }
 0x117   :  { %v1009_v25 = vadd.f32 %v1487_v13, %v961_v17  ;;  %v814_v26 = vadd.f32 %v813_v20, %v765_v19  ;;  %v718_v32 = vadd.f32 %v717_v21, %v1990_v46 }
 0x118   :  { %v864_v27 = vpop.f32.mrf.mxu0 }
 0x119   :  { %v1025_v29 = vmax.f32 %v1009_v25, 0.0  ;;  %v863_v30 = vadd.f32 %v862_v10, %v814_v26  ;;  %v1495_v10 = vunpack.c.h.bf16 %v1545_v22 }
 0x11b   :  { %v1523_v31 = vpack.c.bf16 %v1025_v29, %v1024_v28  ;;  %v942_v42 = vmul.f32 %v1997_v58, %v863_v30  ;;  %v1546_v30 = vld [vmem:[%s2100_s4 + $0x38] sm:$0xff]  }
 0x11c   :  { %v766_v33 = vpop.f32.mrf.mxu2  ;;  %v1499_v37 = vunpack.c.h.bf16 %v1546_v30 }
 0x11d   :  { %1550 = vst [vmem:[%s2101_s5 + $0x20] sm:$0xff] %v1523_v31   ;;  %v767_v38 = vadd.f32 %v766_v33, %v718_v32  ;;  %v962_v41 = vadd.f32 %v2003_v62, %v942_v42 }
 0x11e   :  { %v815_v36 = vpop.f32.mrf.mxu3  ;;  %v720_v39 = vpop.f32.mrf.mxu1 }
 0x11f   :  { %v816_v40 = vadd.f32 %v815_v36, %v767_v38  ;;  %v721_v50 = vadd.f32 %v720_v39, %v1950_v23  ;;  %v1010_v52 = vadd.f32 %v1490_v45, %v962_v41  ;;  %v1498_v38 = vunpack.c.l.bf16 %v1546_v30 }
 0x120   :  { %v867_v46 = vpop.f32.mrf.mxu0 }
 0x121   :  { %v865_v48 = vadd.f32 %v864_v27, %v816_v40  ;;  %v1026_v60 = vmax.f32 %v1010_v52, 0.0 }
 0x123   :  { %v943_v49 = vmul.f32 %v1997_v58, %v865_v48 }
 0x124   :  { %v769_v51 = vpop.f32.mrf.mxu2 }
 0x125   :  { %v963_v53 = vadd.f32 %v2003_v62, %v943_v49  ;;  %v770_v54 = vadd.f32 %v769_v51, %v721_v50 }
 0x126   :  { %v818_v55 = vpop.f32.mrf.mxu3  ;;  %v722_v56 = vpop.f32.mrf.mxu1 }
 0x127   :  { %v1011_v57 = vadd.f32 %v1491_v44, %v963_v53  ;;  %v819_v59 = vadd.f32 %v818_v55, %v770_v54  ;;  %v723_v1 = vadd.f32 %v722_v56, %v1980_v35 }
 0x128   :  { %v869_v2 = vpop.f32.mrf.mxu0 }
 0x129   :  { %v1027_v61 = vmax.f32 %v1011_v57, 0.0  ;;  %v868_v63 = vadd.f32 %v867_v46, %v819_v59 }
 0x12b   :  { %v1528_v0 = vpack.c.bf16 %v1027_v61, %v1026_v60  ;;  %v944_v23 = vmul.f32 %v1997_v58, %v868_v63 }
 0x12c   :  { %v771_v3 = vpop.f32.mrf.mxu2 }
 0x12d   :  { %1551 = vst [vmem:[%s2101_s5 + $0x28] sm:$0xff] %v1528_v0   ;;  %v772_v18 = vadd.f32 %v771_v3, %v723_v1  ;;  %v964_v7 = vadd.f32 %v2003_v62, %v944_v23 }
 0x12e   :  { %v820_v4 = vpop.f32.mrf.mxu3  ;;  %v725_v5 = vpop.f32.mrf.mxu1 }
 0x12f   :  { %v821_v6 = vadd.f32 %v820_v4, %v772_v18  ;;  %v726_v11 = vadd.f32 %v725_v5, %v1986_v43  ;;  %v1012_v34 = vadd.f32 %v1494_v8, %v964_v7 }
 0x130   :  { %v872_v15 = vpop.f32.mrf.mxu0 }
 0x131   :  { %v870_v35 = vadd.f32 %v869_v2, %v821_v6  ;;  %v1028_v20 = vmax.f32 %v1012_v34, 0.0 }
 0x133   :  { %v945_v9 = vmul.f32 %v1997_v58, %v870_v35 }
 0x134   :  { %v774_v24 = vpop.f32.mrf.mxu2 }
 0x135   :  { %v965_v12 = vadd.f32 %v2003_v62, %v945_v9  ;;  %v775_v13 = vadd.f32 %v774_v24, %v726_v11 }
 0x136   :  { %v823_v14 = vpop.f32.mrf.mxu3  ;;  %v727_v19 = vpop.f32.mrf.mxu1 }
 0x137   :  { %v1013_v16 = vadd.f32 %v1495_v10, %v965_v12  ;;  %v824_v17 = vadd.f32 %v823_v14, %v775_v13  ;;  %v728_v27 = vadd.f32 %v727_v19, %v1992_v47 }
 0x138   :  { %v874_v33 = vpop.f32.mrf.mxu0 }
 0x139   :  { %v1029_v21 = vmax.f32 %v1013_v16, 0.0  ;;  %v873_v25 = vadd.f32 %v872_v15, %v824_v17 }
 0x13b   :  { %v1533_v26 = vpack.c.bf16 %v1029_v21, %v1028_v20  ;;  %v946_v43 = vmul.f32 %v1997_v58, %v873_v25 }
 0x13c   :  { %v776_v28 = vpop.f32.mrf.mxu2 }
 0x13d   :  { %1552 = vst [vmem:[%s2101_s5 + $0x30] sm:$0xff] %v1533_v26   ;;  %v777_v29 = vadd.f32 %v776_v28, %v728_v27  ;;  %v966_v42 = vadd.f32 %v2003_v62, %v946_v43 }
 0x13e   :  { %v825_v31 = vpop.f32.mrf.mxu3 }
 0x13f   :  { %v826_v32 = vadd.f32 %v825_v31, %v777_v29  ;;  %v1014_v39 = vadd.f32 %v1498_v38, %v966_v42 }
 0x141   :  { %v875_v36 = vadd.f32 %v874_v33, %v826_v32  ;;  %v1030_v45 = vmax.f32 %v1014_v39, 0.0 }
 0x143   :  { %v947_v47 = vmul.f32 %v1997_v58, %v875_v36 }
 0x145   :  { %v967_v40 = vadd.f32 %v2003_v62, %v947_v47 }
 0x147   :  { %v1015_v41 = vadd.f32 %v1499_v37, %v967_v40 }
 0x149   :  { %v1031_v48 = vmax.f32 %v1015_v41, 0.0 }
 0x14b   :  { %v1538_v46 = vpack.c.bf16 %v1031_v48, %v1030_v45 }
 0x14d   :  { %1553 = vst [vmem:[%s2101_s5 + $0x38] sm:$0xff] %v1538_v46  }

// kernel: _lambda_.18
= control target key start
LH: loop header
LB: loop body
LE: loop exit
PB: predicated region body
PF: predicated region fallthrough
CT: control target
= control target key end

     0   :  { %9 = vsyncpa [#allocation4], 0  ;;  %s1129_s0 = inlined_call_operand.vmem [shape: bf16[32,640], index: 0, kind: input, shape index: {}]   ;;  %s1130_s1 = inlined_call_operand.vmem [shape: bf16[640,128], index: 1, kind: input, shape index: {}]   ;;  %s1131_s2 = inlined_call_operand.hbm [shape: f32[1,128], index: 2, kind: input, shape index: {}]   ;;  %s1132_s3 = inlined_call_operand.hbm [shape: f32[1,128], index: 3, kind: input, shape index: {}]   ;;  %s1133_s4 = inlined_call_operand.vmem [shape: bf16[32,128], index: 4, kind: output, shape index: {}]  }
   0x1   :  { %s20_s17 = sshll.u32 %s1131_s2, 4  ;;  %s21_s17 = int_to_ptr.hbm [resolvable:$true] %s20_s17 }
   0x2   :  { %10 = vsyncpa [#allocation6], 0  ;;  %s910_s18 = smov [#allocation3]   ;;  %s31_s22 = sshll.u32 %s1132_s3, 4  ;;  %s32_s22 = int_to_ptr.hbm [resolvable:$true] %s31_s22 }
   0x3   :  { %s22_s19 = sshll.u32 %s910_s18, 4  ;;  %s911_s23 = smov [#allocation5]   ;;  %s23_s19 = int_to_ptr.vmem [resolvable:$true] %s22_s19 }
   0x4   :  { %25 = dma.hbm_to_vmem [thread:$0]  %s21_s17, 16, %s23_s19, [#allocation4]  }
   0x5   :  { %s33_s24 = sshll.u32 %s911_s23, 4  ;;  %s34_s24 = int_to_ptr.vmem [resolvable:$true] %s33_s24 }
   0x6   :  { %36 = dma.hbm_to_vmem [thread:$0]  %s32_s22, 16, %s34_s24, [#allocation6]  }
   0x7   :  { %906 = dma.done.wait [#allocation4], 16  }
   0x8   :  { %907 = vsyncadd [#allocation4], 4294967280 }
   0x9   :  { %908 = dma.done.wait [#allocation6], 16  }
   0xa   :  { %909 = vsyncadd [#allocation6], 4294967280  ;;  %v802_v0 = vld [vmem:[%s1130_s1 + $0x38] sm:$0xff]  ;;  %v801_v4 = vld [vmem:[%s1130_s1 + $0x30] sm:$0xff] }
   0xb   :  { %v810_v1 = vld [vmem:[%s1130_s1 + $0x78] sm:$0xff]  ;;  %441 = vmatpush.bf16.msra.mxu0 %v802_v0  ;;  %v809_v5 = vld [vmem:[%s1130_s1 + $0x70] sm:$0xff]  ;;  %v800_v8 = vld [vmem:[%s1130_s1 + $0x28] sm:$0xff] }
   0xc   :  { %v818_v2 = vld [vmem:[%s1130_s1 + $0xb8] sm:$0xff]  ;;  %460 = vmatpush.bf16.msra.mxu1 %v810_v1  ;;  %v817_v6 = vld [vmem:[%s1130_s1 + $0xb0] sm:$0xff]  ;;  %v808_v9 = vld [vmem:[%s1130_s1 + $0x68] sm:$0xff] }
   0xd   :  { %v826_v3 = vld [vmem:[%s1130_s1 + $0xf8] sm:$0xff]  ;;  %479 = vmatpush.bf16.msra.mxu2 %v818_v2  ;;  %v825_v7 = vld [vmem:[%s1130_s1 + $0xf0] sm:$0xff]  ;;  %v816_v10 = vld [vmem:[%s1130_s1 + $0xa8] sm:$0xff] }
   0xe   :  { %498 = vmatpush.bf16.msra.mxu3 %v826_v3  ;;  %v824_v11 = vld [vmem:[%s1130_s1 + $0xe8] sm:$0xff]  ;;  %v799_v12 = vld [vmem:[%s1130_s1 + $0x20] sm:$0xff]  ;;  %v798_v16 = vld [vmem:[%s1130_s1 + $0x18] sm:$0xff] }
   0xf   :  { %442 = vmatpush.bf16.msra.mxu0 %v801_v4  ;;  %v807_v13 = vld [vmem:[%s1130_s1 + $0x60] sm:$0xff]  ;;  %v806_v17 = vld [vmem:[%s1130_s1 + $0x58] sm:$0xff]  ;;  %v797_v20 = vld [vmem:[%s1130_s1 + $0x10] sm:$0xff] }
  0x10   :  { %461 = vmatpush.bf16.msra.mxu1 %v809_v5  ;;  %v815_v14 = vld [vmem:[%s1130_s1 + $0xa0] sm:$0xff]  ;;  %v814_v18 = vld [vmem:[%s1130_s1 + $0x98] sm:$0xff]  ;;  %v805_v21 = vld [vmem:[%s1130_s1 + $0x50] sm:$0xff] }
  0x11   :  { %480 = vmatpush.bf16.msra.mxu2 %v817_v6  ;;  %v823_v15 = vld [vmem:[%s1130_s1 + $0xe0] sm:$0xff]  ;;  %v822_v19 = vld [vmem:[%s1130_s1 + $0xd8] sm:$0xff]  ;;  %v813_v22 = vld [vmem:[%s1130_s1 + $0x90] sm:$0xff] }
  0x12   :  { %499 = vmatpush.bf16.msra.mxu3 %v825_v7  ;;  %v821_v23 = vld [vmem:[%s1130_s1 + $0xd0] sm:$0xff]  ;;  %v796_v24 = vld [vmem:[%s1130_s1 + $0x8] sm:$0xff]  ;;  %v795_v28 = vld [vmem:[%s1130_s1] sm:$0xff] }
  0x13   :  { %443 = vmatpush.bf16.msra.mxu0 %v800_v8  ;;  %v804_v25 = vld [vmem:[%s1130_s1 + $0x48] sm:$0xff]  ;;  %v803_v29 = vld [vmem:[%s1130_s1 + $0x40] sm:$0xff]  ;;  %v787_v33 = vld [vmem:[%s1129_s0 + $0x10] sm:$0xf0] }
  0x14   :  { %462 = vmatpush.bf16.msra.mxu1 %v808_v9  ;;  %v812_v26 = vld [vmem:[%s1130_s1 + $0x88] sm:$0xff]  ;;  %v811_v30 = vld [vmem:[%s1130_s1 + $0x80] sm:$0xff]  ;;  %v589_v35 = vld [vmem:[%s1129_s0 + $0x14] sm:$0xf0] }
  0x15   :  { %481 = vmatpush.bf16.msra.mxu2 %v816_v10  ;;  %v820_v27 = vld [vmem:[%s1130_s1 + $0xc8] sm:$0xff]  ;;  %v819_v31 = vld [vmem:[%s1130_s1 + $0xc0] sm:$0xff]  ;;  %v788_v37 = vld [vmem:[%s1129_s0 + $0x18] sm:$0xf0] }
  0x16   :  { %500 = vmatpush.bf16.msra.mxu3 %v824_v11  ;;  %v587_v32 = vld [vmem:[%s1129_s0] sm:$0xf]  ;;  %v785_v34 = vld [vmem:[%s1129_s0 + $0x4] sm:$0xf]  ;;  %v595_v36 = vld [vmem:[%s1129_s0 + $0x8] sm:$0xf] }
  0x17   :  { %444 = vmatpush.bf16.msra.mxu0 %v799_v12  ;;  %v786_v38 = vld [vmem:[%s1129_s0 + $0xc] sm:$0xf]  ;;  %v597_v39 = vld [vmem:[%s1129_s0 + $0x1c] sm:$0xf0]  ;;  %v834_v40 = vld [vmem:[%s1130_s1 + $0x138] sm:$0xff]  ;;  %v588_v41 = vor.u32 %v787_v33, %v587_v32  ;;  %v592_v42 = vor.u32 %v785_v34, %v589_v35  ;;  %v596_v43 = vor.u32 %v788_v37, %v595_v36 }
  0x18   :  { %463 = vmatpush.bf16.msra.mxu1 %v807_v13  ;;  %v600_v44 = vor.u32 %v786_v38, %v597_v39  ;;  %v833_v45 = vld [vmem:[%s1130_s1 + $0x130] sm:$0xff]  ;;  %v832_v46 = vld [vmem:[%s1130_s1 + $0x128] sm:$0xff]  ;;  %v831_v47 = vld [vmem:[%s1130_s1 + $0x120] sm:$0xff] }
  0x19   :  { %482 = vmatpush.bf16.msra.mxu2 %v815_v14  ;;  %v607_v48 = vld [vmem:[%s1129_s0 + $0x28] sm:$0xf]  ;;  %v792_v49 = vld [vmem:[%s1129_s0 + $0x38] sm:$0xf0]  ;;  %v790_v50 = vld [vmem:[%s1129_s0 + $0x2c] sm:$0xf] }
  0x1a   :  { %501 = vmatpush.bf16.msra.mxu3 %v823_v15  ;;  %v609_v51 = vld [vmem:[%s1129_s0 + $0x3c] sm:$0xf0]  ;;  %v615_v52 = vld [vmem:[%s1129_s0 + $0x30] sm:$0xf]  ;;  %v793_v53 = vld [vmem:[%s1129_s0 + $0x40] sm:$0xf0]  ;;  %v608_v57 = vor.u32 %v792_v49, %v607_v48 }
  0x1b   :  { %445 = vmatpush.bf16.msra.mxu0 %v798_v16  ;;  %v791_v54 = vld [vmem:[%s1129_s0 + $0x34] sm:$0xf]  ;;  %v617_v55 = vld [vmem:[%s1129_s0 + $0x44] sm:$0xf0]  ;;  %v830_v56 = vld [vmem:[%s1130_s1 + $0x118] sm:$0xff]  ;;  %v612_v58 = vor.u32 %v790_v50, %v609_v51  ;;  %v616_v59 = vor.u32 %v793_v53, %v615_v52 }
  0x1c   :  { %464 = vmatpush.bf16.msra.mxu1 %v806_v17  ;;  %v620_v60 = vor.u32 %v791_v54, %v617_v55  ;;  %v829_v61 = vld [vmem:[%s1130_s1 + $0x110] sm:$0xff]  ;;  %v828_v62 = vld [vmem:[%s1130_s1 + $0x108] sm:$0xff]  ;;  %v827_v63 = vld [vmem:[%s1130_s1 + $0x100] sm:$0xff] }
  0x1d   :  { %483 = vmatpush.bf16.msra.mxu2 %v814_v18  ;;  %v603_v0 = vld [vmem:[%s1129_s0 + $0x10] sm:$0xf]  ;;  %v789_v1 = vld [vmem:[%s1129_s0 + $0x20] sm:$0xf0]  ;;  %v623_v2 = vld [vmem:[%s1129_s0 + $0x38] sm:$0xf] }
  0x1e   :  { %502 = vmatpush.bf16.msra.mxu3 %v822_v19  ;;  %v794_v3 = vld [vmem:[%s1129_s0 + $0x48] sm:$0xf0]  ;;  %v604_v4 = vor.u32 %v789_v1, %v603_v0  ;;  %v856_v34 = vld [vmem:[#allocation3] ss:$0 sm:$0xff] }
  0x1f   :  { %446 = vmatpush.bf16.msra.mxu0 %v797_v20  ;;  %v624_v5 = vor.u32 %v794_v3, %v623_v2 }
  0x20   :  { %465 = vmatpush.bf16.msra.mxu1 %v805_v21 }
  0x21   :  { %484 = vmatpush.bf16.msra.mxu2 %v813_v22 }
  0x22   :  { %503 = vmatpush.bf16.msra.mxu3 %v821_v23 }
  0x23   :  { %447 = vmatpush.bf16.msra.mxu0 %v796_v24 }
  0x24   :  { %466 = vmatpush.bf16.msra.mxu1 %v804_v25 }
  0x25   :  { %485 = vmatpush.bf16.msra.mxu2 %v812_v26 }
  0x26   :  { %504 = vmatpush.bf16.msra.mxu3 %v820_v27 }
  0x27   :  { %448 = vmatpush.bf16.msra.mxu0 %v795_v28 }
  0x28   :  { %467 = vmatpush.bf16.msra.mxu1 %v803_v29 }
  0x29   :  { %486 = vmatpush.bf16.msra.mxu2 %v811_v30 }
  0x2a   :  { %505 = vmatpush.bf16.msra.mxu3 %v819_v31  ;;  %449 = vmatmul.bf16.vlgmr.msra.gmra.mxu0 %v588_v41 }
  0x2b   :  { %517 = vmatpush.bf16.msrb.mxu0 %v834_v40  ;;  %468 = vmatmul.bf16.vlgmr.msra.gmra.mxu1 %v592_v42 }
  0x2c   :  { %846 = vmatpush.bf16.msrb.mxu1 %v834_v40  ;;  %487 = vmatmul.bf16.vlgmr.msra.gmra.mxu2 %v596_v43  ;;  %v857_v40 = vld [vmem:[#allocation5] ss:$0 sm:$0xff] }
  0x2d   :  { %506 = vmatmul.bf16.vlgmr.msra.gmra.mxu3 %v600_v44 }
  0x2f   :  { %518 = vmatpush.bf16.msrb.mxu0 %v833_v45 }
  0x30   :  { %847 = vmatpush.bf16.msrb.mxu1 %v833_v45 }
  0x33   :  { %519 = vmatpush.bf16.msrb.mxu0 %v832_v46 }
  0x34   :  { %848 = vmatpush.bf16.msrb.mxu1 %v832_v46 }
  0x37   :  { %520 = vmatpush.bf16.msrb.mxu0 %v831_v47 }
  0x38   :  { %849 = vmatpush.bf16.msrb.mxu1 %v831_v47 }
  0x3a   :  { %454 = vmatmul.bf16.gmra.mxu0 %v608_v57 }
  0x3b   :  { %521 = vmatpush.bf16.msrb.mxu0 %v830_v56  ;;  %473 = vmatmul.bf16.gmra.mxu1 %v612_v58 }
  0x3c   :  { %850 = vmatpush.bf16.msrb.mxu1 %v830_v56  ;;  %492 = vmatmul.bf16.gmra.mxu2 %v616_v59 }
  0x3d   :  { %511 = vmatmul.bf16.gmra.mxu3 %v620_v60 }
  0x3f   :  { %522 = vmatpush.bf16.msrb.mxu0 %v829_v61 }
  0x40   :  { %851 = vmatpush.bf16.msrb.mxu1 %v829_v61 }
  0x43   :  { %523 = vmatpush.bf16.msrb.mxu0 %v828_v62 }
  0x44   :  { %852 = vmatpush.bf16.msrb.mxu1 %v828_v62 }
  0x47   :  { %524 = vmatpush.bf16.msrb.mxu0 %v827_v63 }
  0x48   :  { %853 = vmatpush.bf16.msrb.mxu1 %v827_v63 }
  0x4a   :  { %525 = vmatmul.bf16.vlgmr.msrb.gmra.mxu0 %v604_v4 }
  0x4b   :  { %530 = vmatmul.bf16.vlgmr.msrb.gmra.mxu1 %v624_v5 }
  0xa7   :  { %v450_v6 = vpop.f32.mrf.mxu0 }
  0xa8   :  { %v469_v7 = vpop.f32.mrf.mxu1 }
  0xa9   :  { %v470_v19 = vadd.f32 %v469_v7, %v450_v6 }
  0xaf   :  { %v488_v8 = vpop.f32.mrf.mxu2  ;;  %v452_v10 = vpop.f32.mrf.mxu0 }
  0xb0   :  { %v507_v9 = vpop.f32.mrf.mxu3  ;;  %v471_v11 = vpop.f32.mrf.mxu1  ;;  %v489_v22 = vadd.f32 %v488_v8, %v470_v19 }
  0xb1   :  { %v472_v28 = vadd.f32 %v471_v11, %v452_v10 }
  0xb2   :  { %v508_v27 = vadd.f32 %v507_v9, %v489_v22 }
  0xb7   :  { %v490_v12 = vpop.f32.mrf.mxu2  ;;  %v455_v13 = vpop.f32.mrf.mxu0 }
  0xb8   :  { %v474_v14 = vpop.f32.mrf.mxu1  ;;  %v509_v15 = vpop.f32.mrf.mxu3  ;;  %v491_v31 = vadd.f32 %v490_v12, %v472_v28 }
  0xb9   :  { %v475_v20 = vadd.f32 %v474_v14, %v455_v13 }
  0xba   :  { %v510_v37 = vadd.f32 %v509_v15, %v491_v31 }
  0xbf   :  { %v493_v16 = vpop.f32.mrf.mxu2  ;;  %v457_v17 = vpop.f32.mrf.mxu0 }
  0xc0   :  { %v476_v18 = vpop.f32.mrf.mxu1  ;;  %v512_v21 = vpop.f32.mrf.mxu3  ;;  %v494_v23 = vadd.f32 %v493_v16, %v475_v20 }
  0xc1   :  { %v477_v30 = vadd.f32 %v476_v18, %v457_v17 }
  0xc2   :  { %v513_v29 = vadd.f32 %v512_v21, %v494_v23 }
  0xc7   :  { %v495_v24 = vpop.f32.mrf.mxu2  ;;  %v526_v25 = vpop.f32.mrf.mxu0 }
  0xc8   :  { %v531_v26 = vpop.f32.mrf.mxu1  ;;  %v496_v32 = vadd.f32 %v495_v24, %v477_v30  ;;  %v527_v33 = vadd.f32 %v526_v25, %v508_v27  ;;  %v514_v36 = vpop.f32.mrf.mxu3 }
  0xc9   :  { %v532_v35 = vadd.f32 %v531_v26, %v513_v29 }
  0xca   :  { %v515_v38 = vadd.f32 %v514_v36, %v496_v32  ;;  %v555_v39 = vmul.f32 %v856_v34, %v527_v33 }
  0xcb   :  { %v557_v41 = vmul.f32 %v856_v34, %v532_v35 }
  0xcc   :  { %v563_v46 = vadd.f32 %v857_v40, %v555_v39 }
  0xcd   :  { %v565_v47 = vadd.f32 %v857_v40, %v557_v41 }
  0xce   :  { %v567_v52 = vmax.f32 %v563_v46, 0.0 }
  0xcf   :  { %v528_v42 = vpop.f32.mrf.mxu0  ;;  %v569_v53 = vmax.f32 %v565_v47, 0.0 }
  0xd0   :  { %v533_v43 = vpop.f32.mrf.mxu1  ;;  %v529_v44 = vadd.f32 %v528_v42, %v510_v37 }
  0xd1   :  { %v534_v45 = vadd.f32 %v533_v43, %v515_v38 }
  0xd2   :  { %v556_v48 = vmul.f32 %v856_v34, %v529_v44 }
  0xd3   :  { %v558_v49 = vmul.f32 %v856_v34, %v534_v45 }
  0xd4   :  { %v564_v50 = vadd.f32 %v857_v40, %v556_v48 }
  0xd5   :  { %v566_v51 = vadd.f32 %v857_v40, %v558_v49 }
  0xd6   :  { %v568_v54 = vmax.f32 %v564_v50, 0.0 }
  0xd7   :  { %v570_v55 = vmax.f32 %v566_v51, 0.0 }
  0xd8   :  { %v838_v56 = vpack.c.bf16 %v568_v54, %v567_v52 }
  0xd9   :  { %v843_v57 = vpack.c.bf16 %v570_v55, %v569_v53 }
  0xda   :  { %839 = vst [vmem:[%s1133_s4] sm:$0xff] %v838_v56  }
  0xdb   :  { %845 = vst [vmem:[%s1133_s4 + $0x8] sm:$0xff] %v843_v57  }
  0xdc   :  { %583 = vsyncpa [#allocation4], 1 }
  0xdd   :  { %584 = vsyncpa [#allocation6], 1 }

// kernel: _lambda_.19
= control target key start
LH: loop header
LB: loop body
LE: loop exit
PB: predicated region body
PF: predicated region fallthrough
CT: control target
= control target key end

     0   :  { %9 = vsyncpa [#allocation4], 0  ;;  %s284_s18 = smov [#allocation3]   ;;  %s352_s0 = inlined_call_operand.vmem [shape: bf16[32,128], index: 0, kind: input, shape index: {}]   ;;  %s353_s1 = inlined_call_operand.vmem [shape: bf16[128,128], index: 1, kind: input, shape index: {}]   ;;  %s354_s2 = inlined_call_operand.vmem [shape: f32[1,128], index: 2, kind: input, shape index: {}]   ;;  %s355_s3 = inlined_call_operand.hbm [shape: f32[1,128], index: 3, kind: input, shape index: {}]   ;;  %s356_s4 = inlined_call_operand.vmem [shape: bf16[32,128], index: 4, kind: output, shape index: {}]  }
   0x1   :  { %s21_s17 = sshll.u32 %s355_s3, 4  ;;  %s23_s19 = sshll.u32 %s284_s18, 4  ;;  %s22_s17 = int_to_ptr.hbm [resolvable:$true] %s21_s17  ;;  %s24_s19 = int_to_ptr.vmem [resolvable:$true] %s23_s19 }
   0x2   :  { %26 = dma.hbm_to_vmem [thread:$0]  %s22_s17, 16, %s24_s19, [#allocation4]  }
   0x3   :  { %282 = dma.done.wait [#allocation4], 16  }
   0x4   :  { %283 = vsyncadd [#allocation4], 4294967280  ;;  %v235_v0 = vld [vmem:[%s353_s1 + $0x38] sm:$0xff]  ;;  %v234_v1 = vld [vmem:[%s353_s1 + $0x30] sm:$0xff] }
   0x5   :  { %123 = vmatpush.bf16.msra.mxu0 %v235_v0  ;;  %247 = vmatpush.bf16.msra.mxu1 %v235_v0  ;;  %v233_v2 = vld [vmem:[%s353_s1 + $0x28] sm:$0xff]  ;;  %v232_v3 = vld [vmem:[%s353_s1 + $0x20] sm:$0xff]  ;;  %v231_v4 = vld [vmem:[%s353_s1 + $0x18] sm:$0xff] }
   0x6   :  { %v230_v5 = vld [vmem:[%s353_s1 + $0x10] sm:$0xff]  ;;  %v229_v6 = vld [vmem:[%s353_s1 + $0x8] sm:$0xff]  ;;  %v228_v7 = vld [vmem:[%s353_s1] sm:$0xff] }
   0x7   :  { %v226_v8 = vld [vmem:[%s352_s0] sm:$0xff]  ;;  %v227_v9 = vld [vmem:[%s352_s0 + $0x8] sm:$0xff] }
   0x8   :  { %v256_v12 = vld [vmem:[%s354_s2] ss:$0 sm:$0xff] }
   0x9   :  { %124 = vmatpush.bf16.msra.mxu0 %v234_v1  ;;  %248 = vmatpush.bf16.msra.mxu1 %v234_v1  ;;  %v257_v14 = vld [vmem:[#allocation3] ss:$0 sm:$0xff] }
   0xd   :  { %125 = vmatpush.bf16.msra.mxu0 %v233_v2  ;;  %249 = vmatpush.bf16.msra.mxu1 %v233_v2 }
  0x11   :  { %126 = vmatpush.bf16.msra.mxu0 %v232_v3  ;;  %250 = vmatpush.bf16.msra.mxu1 %v232_v3 }
  0x15   :  { %127 = vmatpush.bf16.msra.mxu0 %v231_v4  ;;  %251 = vmatpush.bf16.msra.mxu1 %v231_v4 }
  0x19   :  { %128 = vmatpush.bf16.msra.mxu0 %v230_v5  ;;  %252 = vmatpush.bf16.msra.mxu1 %v230_v5 }
  0x1d   :  { %129 = vmatpush.bf16.msra.mxu0 %v229_v6  ;;  %253 = vmatpush.bf16.msra.mxu1 %v229_v6 }
  0x21   :  { %130 = vmatpush.bf16.msra.mxu0 %v228_v7  ;;  %254 = vmatpush.bf16.msra.mxu1 %v228_v7 }
  0x24   :  { %131 = vmatmul.bf16.vlgmr.msra.gmra.mxu0 %v226_v8  ;;  %136 = vmatmul.bf16.vlgmr.msra.gmra.mxu1 %v227_v9 }
  0xa1   :  { %v132_v10 = vpop.f32.mrf.mxu0  ;;  %v137_v11 = vpop.f32.mrf.mxu1 }
  0xa2   :  { %v161_v13 = vmul.f32 %v256_v12, %v132_v10  ;;  %v163_v15 = vmul.f32 %v256_v12, %v137_v11 }
  0xa4   :  { %v169_v20 = vadd.f32 %v257_v14, %v161_v13  ;;  %v171_v21 = vadd.f32 %v257_v14, %v163_v15 }
  0xa9   :  { %v134_v16 = vpop.f32.mrf.mxu0  ;;  %v139_v17 = vpop.f32.mrf.mxu1 }
  0xaa   :  { %v162_v18 = vmul.f32 %v256_v12, %v134_v16  ;;  %v164_v19 = vmul.f32 %v256_v12, %v139_v17 }
  0xac   :  { %v170_v22 = vadd.f32 %v257_v14, %v162_v18  ;;  %v172_v23 = vadd.f32 %v257_v14, %v164_v19 }
  0xae   :  { %v239_v24 = vpack.c.bf16 %v170_v22, %v169_v20  ;;  %v244_v25 = vpack.c.bf16 %v172_v23, %v171_v21 }
  0xb0   :  { %240 = vst [vmem:[%s356_s4] sm:$0xff] %v239_v24  }
  0xb1   :  { %246 = vst [vmem:[%s356_s4 + $0x8] sm:$0xff] %v244_v25  }
  0xb2   :  { %185 = vsyncpa [#allocation4], 1 }

// kernel: _lambda_.20
= control target key start
LH: loop header
LB: loop body
LE: loop exit
PB: predicated region body
PF: predicated region fallthrough
CT: control target
= control target key end

     0   :  { %s1108_s18 = smov 0   ;;  %s1110_s19 = smov 0   ;;  %s1233_s0 = inlined_call_operand.vmem [shape: bf16[32,1152], index: 0, kind: input, shape index: {}]   ;;  %s1234_s1 = inlined_call_operand.vmem [shape: bf16[1152,128], index: 1, kind: input, shape index: {}]   ;;  %s1235_s2 = inlined_call_operand.vmem [shape: f32[1,128], index: 2, kind: input, shape index: {}]   ;;  %s1236_s3 = inlined_call_operand.vmem [shape: f32[1,128], index: 3, kind: input, shape index: {}]   ;;  %s1237_s4 = inlined_call_operand.vmem [shape: bf16[32,128], index: 4, kind: input, shape index: {}]   ;;  %s1238_s5 = inlined_call_operand.vmem [shape: bf16[32,128], index: 5, kind: output, shape index: {}]  }
   0x1   :  { %s1112_s20 = smov 0   ;;  %s1114_s21 = smov 0  }
   0x2   :  { %s1116_s22 = smov 0  }
   0x3 LB: > { %s24_s23 = sadd.s32 1, %s1071_s21  ;;  %p43_p1 = scmp.ne.s32.totalorder %s1063_s19, %s1059_s18  ;;  %s1075_s22 = sphi %s1116_s22, %s15_s22   ;;  %s1071_s21 = sphi %s1114_s21, %s1242_s21   ;;  %s1067_s20 = sphi %s1112_s20, %s1241_s20   ;;  %s1063_s19 = sphi %s1110_s19, %s1240_s19   ;;  %s1059_s18 = sphi %s1108_s18, %s1239_s18  }
   0x4   : > { %p25_p0 = scmp.ge.s32.totalorder %s24_s23, 3  ;;  %p44_p2 = scmp.eq.s32.totalorder %s1075_s22, 0 }
   0x5   : > { %s36_s25 = sadd.s32 1, %s1063_s19  ;;  %p795_p5 = scmp.ge.s32.totalorder %s1075_s22, 3 }
   0x6   : > { %s1244_s23 = smov (%p25_p0, %s24_s23), 0  ;;  %p45_p3 = por %p44_p2, %p43_p1 }
   0x7   : > { %s32_s24 = ssub.s32 %s1071_s21, %s1244_s23  ;;  %204 = sbr.rel (%p795_p5) target bundleno = 25 (0x19), region = 28 }
   0x8   : > { %p34_p4 = scmp.eq.s32.totalorder %s32_s24, 0 }
   0xa   : > { %s1143_s26 = scalar_select %p34_p4, %s1063_s19, %s36_s25  }
   0xc   : > { %207 = sbr.rel (!%p45_p3) target bundleno = 25 (0x19), region = 32  ;;  %s209_s27 = sand.u32 (%p45_p3), 1, %s1063_s19  }
   0xd   : > { %s933_s28 = smul.u32 (%p45_p3), 12, %s1071_s21 }
   0xe   : > { %s992_s29 = smul.u32 (%p45_p3), 48, %s209_s27 }
   0xf   : > { %s217_s7 = scalar_lea.vmem (%p45_p3), %s1233_s0, %s933_s28 }
  0x10   : > { %v232_v0 = vld [vmem:[%s217_s7] sm:$0xff] (%p45_p3)  ;;  %v236_v2 = vld [vmem:[%s217_s7 + $0x48] sm:$0xff] (%p45_p3)  ;;  %s211_s8 = scalar_lea.vmem (%p45_p3), [#allocation3], %s992_s29  ;;  %v801_v6 = vld [vmem:[%s217_s7 + $0x50] sm:$0xf] (%p45_p3) }
  0x11   : > { %v234_v1 = vld [vmem:[%s217_s7 + $0x24] sm:$0xff]  ;;  %233 = vst [vmem:[%s211_s8] sm:$0xff] %v232_v0  ;;  %v238_v3 = vld [vmem:[%s217_s7 + $0x6c] sm:$0xff]  ;;  %v803_v7 = vld [vmem:[%s217_s7 + $0x74] sm:$0xf] }
  0x12   : > { %235 = vst [vmem:[%s211_s8 + $0xc] sm:$0xff] %v234_v1  ;;  %v797_v4 = vld [vmem:[%s217_s7 + $0x8] sm:$0xf]  ;;  %v799_v5 = vld [vmem:[%s217_s7 + $0x2c] sm:$0xf] }
  0x13   : > { %237 = vst [vmem:[%s211_s8 + $0x18] sm:$0xff] %v236_v2 }
  0x14   : > { %239 = vst [vmem:[%s211_s8 + $0x24] sm:$0xff] %v238_v3 }
  0x15   : > { %798 = vst [vmem:[%s211_s8 + $0x8] sm:$0xf] %v797_v4 }
  0x16   : > { %800 = vst [vmem:[%s211_s8 + $0x14] sm:$0xf] %v799_v5 }
  0x17   : > { %802 = vst [vmem:[%s211_s8 + $0x20] sm:$0xf] %v801_v6 }
  0x18   : > { %804 = vst [vmem:[%s211_s8 + $0x2c] sm:$0xf] %v803_v7 }
  0x19 PF: > { %p805_p6 = scmp.ge.s32.totalorder %s1075_s22, 1  ;;  %p269_p7 = scmp.lt.s32.totalorder %s1075_s22, 4 }
  0x1b   : > { %p270_p8 = pnand %p805_p6, %p269_p7 }
  0x1c   : > { %s276_s9 = sand.u32 (!%p270_p8), 1, %s1059_s18   ;;  %s315_s10 = smul.u32 (!%p270_p8), 48, %s1067_s20 }
  0x1d   : > { %273 = sbr.rel (%p270_p8) target bundleno = 257 (0x101), region = 62  ;;  %p807_p10 = scmp.ne.s32.totalorder (!%p270_p8), %s1067_s20, 0 }
  0x1e   : > { %s993_s11 = smul.u32 (!%p270_p8), 48, %s276_s9  ;;  %p316_p9 = scmp.lt.s32.totalorder (!%p270_p8), %s315_s10, 143 }
  0x20   : > { %s1160_s16 = scalar_lea.vmem (!%p270_p8), [#allocation3], %s993_s11 }
  0x22   : > { %s1246_s10 = smov (!%p316_p9, %s315_s10), 143  ;;  %336 = sbr.rel (%p807_p10) target bundleno = 44 (0x2c), region = 70 }
  0x23   : > { %s806_s12 = sshll.u32 %s1246_s10, 2 }
  0x24   : > { %s1158_s15 = scalar_lea.vmem %s1234_s1, %s806_s12 }
  0x27   : > { %v1077_v8 = vmov 0.0  }
  0x28   : > { %337 = vst [vmem:[#allocation2 + $0x10] sm:$0xff] %v1077_v8 }
  0x29   : > { %338 = vst [vmem:[#allocation2] sm:$0xff] %v1077_v8 }
  0x2a   : > { %339 = vst [vmem:[#allocation2 + $0x18] sm:$0xff] %v1077_v8 }
  0x2b   : > { %340 = vst [vmem:[#allocation2 + $0x8] sm:$0xff] %v1077_v8 }
  0x2c PF: > { %v947_v9 = vld [vmem:[%s1158_s15 + $0x38] sm:$0xff]  ;;  %v946_v12 = vld [vmem:[%s1158_s15 + $0x30] sm:$0xff]  ;;  %v945_v15 = vld [vmem:[%s1158_s15 + $0x28] sm:$0xff]  ;;  %p928_p11 = scmp.ne.s32.totalorder %s1067_s20, 2 }
  0x2d   : > { %v955_v10 = vld [vmem:[%s1158_s15 + $0x78] sm:$0xff]  ;;  %577 = vmatpush.bf16.msra.mxu0 %v947_v9  ;;  %v954_v13 = vld [vmem:[%s1158_s15 + $0x70] sm:$0xff]  ;;  %984 = vmatpush.bf16.msra.mxu3 %v947_v9  ;;  %v953_v16 = vld [vmem:[%s1158_s15 + $0x68] sm:$0xff] }
  0x2e   : > { %v963_v11 = vld [vmem:[%s1158_s15 + $0xb8] sm:$0xff]  ;;  %596 = vmatpush.bf16.msra.mxu1 %v955_v10  ;;  %v962_v14 = vld [vmem:[%s1158_s15 + $0xb0] sm:$0xff]  ;;  %v961_v17 = vld [vmem:[%s1158_s15 + $0xa8] sm:$0xff] }
  0x2f   : > { %615 = vmatpush.bf16.msra.mxu2 %v963_v11  ;;  %v944_v18 = vld [vmem:[%s1158_s15 + $0x20] sm:$0xff]  ;;  %v943_v21 = vld [vmem:[%s1158_s15 + $0x18] sm:$0xff]  ;;  %v942_v24 = vld [vmem:[%s1158_s15 + $0x10] sm:$0xff] }
  0x30   : > { %v952_v19 = vld [vmem:[%s1158_s15 + $0x60] sm:$0xff]  ;;  %v951_v22 = vld [vmem:[%s1158_s15 + $0x58] sm:$0xff]  ;;  %v950_v25 = vld [vmem:[%s1158_s15 + $0x50] sm:$0xff] }
  0x31   : > { %578 = vmatpush.bf16.msra.mxu0 %v946_v12  ;;  %985 = vmatpush.bf16.msra.mxu3 %v946_v12  ;;  %v960_v20 = vld [vmem:[%s1158_s15 + $0xa0] sm:$0xff]  ;;  %v959_v23 = vld [vmem:[%s1158_s15 + $0x98] sm:$0xff]  ;;  %v958_v26 = vld [vmem:[%s1158_s15 + $0x90] sm:$0xff] }
  0x32   : > { %597 = vmatpush.bf16.msra.mxu1 %v954_v13  ;;  %v941_v27 = vld [vmem:[%s1158_s15 + $0x8] sm:$0xff]  ;;  %v940_v30 = vld [vmem:[%s1158_s15] sm:$0xff]  ;;  %v341_v54 = vld [vmem:[#allocation2 + $0x10] sm:$0xff] }
  0x33   : > { %616 = vmatpush.bf16.msra.mxu2 %v962_v14  ;;  %v949_v28 = vld [vmem:[%s1158_s15 + $0x48] sm:$0xff]  ;;  %v948_v31 = vld [vmem:[%s1158_s15 + $0x40] sm:$0xff]  ;;  %v343_v4 = vld [vmem:[#allocation2 + $0x18] sm:$0xff] }
  0x34   : > { %v957_v29 = vld [vmem:[%s1158_s15 + $0x88] sm:$0xff]  ;;  %v956_v32 = vld [vmem:[%s1158_s15 + $0x80] sm:$0xff] }
  0x35   : > { %579 = vmatpush.bf16.msra.mxu0 %v945_v15  ;;  %986 = vmatpush.bf16.msra.mxu3 %v945_v15  ;;  %v810_v33 = vld [vmem:[%s1160_s16] sm:$0xf]  ;;  %v935_v34 = vld [vmem:[%s1160_s16 + $0x8] sm:$0xf0]  ;;  %v934_v35 = vld [vmem:[%s1160_s16 + $0x4] sm:$0xf] }
  0x36   : > { %598 = vmatpush.bf16.msra.mxu1 %v953_v16  ;;  %v812_v36 = vld [vmem:[%s1160_s16 + $0xc] sm:$0xf0]  ;;  %v818_v37 = vld [vmem:[%s1160_s16 + $0x8] sm:$0xf]  ;;  %v936_v38 = vld [vmem:[%s1160_s16 + $0x10] sm:$0xf0]  ;;  %v811_v41 = vor.u32 %v935_v34, %v810_v33 }
  0x37   : > { %617 = vmatpush.bf16.msra.mxu2 %v961_v17  ;;  %v822_v39 = vld [vmem:[%s1160_s16 + $0x18] sm:$0xf]  ;;  %v938_v40 = vld [vmem:[%s1160_s16 + $0x20] sm:$0xf0]  ;;  %v815_v42 = vor.u32 %v934_v35, %v812_v36  ;;  %v819_v43 = vor.u32 %v936_v38, %v818_v37  ;;  %v937_v45 = vld [vmem:[%s1160_s16 + $0x1c] sm:$0xf] }
  0x38   : > { %v823_v44 = vor.u32 %v938_v40, %v822_v39  ;;  %v824_v46 = vld [vmem:[%s1160_s16 + $0x24] sm:$0xf0]  ;;  %v830_v47 = vld [vmem:[%s1160_s16 + $0x20] sm:$0xf]  ;;  %v939_v48 = vld [vmem:[%s1160_s16 + $0x28] sm:$0xf0] }
  0x39   : > { %580 = vmatpush.bf16.msra.mxu0 %v944_v18  ;;  %987 = vmatpush.bf16.msra.mxu3 %v944_v18  ;;  %v827_v49 = vor.u32 %v937_v45, %v824_v46  ;;  %v831_v50 = vor.u32 %v939_v48, %v830_v47  ;;  %v342_v61 = vld [vmem:[#allocation2] sm:$0xff]  ;;  %v344_v11 = vld [vmem:[#allocation2 + $0x8] sm:$0xff] }
  0x3a   : > { %599 = vmatpush.bf16.msra.mxu1 %v952_v19 }
  0x3b   : > { %618 = vmatpush.bf16.msra.mxu2 %v960_v20 }
  0x3d   : > { %581 = vmatpush.bf16.msra.mxu0 %v943_v21  ;;  %988 = vmatpush.bf16.msra.mxu3 %v943_v21 }
  0x3e   : > { %600 = vmatpush.bf16.msra.mxu1 %v951_v22 }
  0x3f   : > { %619 = vmatpush.bf16.msra.mxu2 %v959_v23 }
  0x41   : > { %582 = vmatpush.bf16.msra.mxu0 %v942_v24  ;;  %989 = vmatpush.bf16.msra.mxu3 %v942_v24 }
  0x42   : > { %601 = vmatpush.bf16.msra.mxu1 %v950_v25 }
  0x43   : > { %620 = vmatpush.bf16.msra.mxu2 %v958_v26 }
  0x45   : > { %583 = vmatpush.bf16.msra.mxu0 %v941_v27  ;;  %990 = vmatpush.bf16.msra.mxu3 %v941_v27 }
  0x46   : > { %602 = vmatpush.bf16.msra.mxu1 %v949_v28 }
  0x47   : > { %621 = vmatpush.bf16.msra.mxu2 %v957_v29 }
  0x49   : > { %584 = vmatpush.bf16.msra.mxu0 %v940_v30  ;;  %991 = vmatpush.bf16.msra.mxu3 %v940_v30 }
  0x4a   : > { %603 = vmatpush.bf16.msra.mxu1 %v948_v31 }
  0x4b   : > { %622 = vmatpush.bf16.msra.mxu2 %v956_v32 }
  0x4c   : > { %585 = vmatmul.bf16.vlgmr.msra.gmra.mxu0 %v811_v41  ;;  %590 = vmatmul.bf16.vlgmr.msra.gmra.mxu3 %v823_v44 }
  0x4d   : > { %604 = vmatmul.bf16.vlgmr.msra.gmra.mxu1 %v815_v42 }
  0x4e   : > { %623 = vmatmul.bf16.vlgmr.msra.gmra.mxu2 %v819_v43 }
  0x5d   : > { %609 = vmatmul.bf16.gmra.mxu1 %v827_v49 }
  0x5e   : > { %628 = vmatmul.bf16.gmra.mxu2 %v831_v50 }
  0xc9   : > { %v586_v52 = vpop.f32.mrf.mxu0 }
  0xca   : > { %v605_v51 = vpop.f32.mrf.mxu1 }
  0xcb   : > { %v606_v53 = vadd.f32 %v605_v51, %v586_v52 }
  0xcf   : > { %v591_v2 = vpop.f32.mrf.mxu3 }
  0xd1   : > { %v624_v55 = vpop.f32.mrf.mxu2  ;;  %v588_v59 = vpop.f32.mrf.mxu0 }
  0xd2   : > { %v625_v56 = vadd.f32 %v624_v55, %v606_v53  ;;  %v607_v57 = vpop.f32.mrf.mxu1 }
  0xd3   : > { %v608_v60 = vadd.f32 %v607_v57, %v588_v59 }
  0xd4   : > { %v634_v58 = vadd.f32 %v625_v56, %v341_v54 }
  0xd6   : > { %638 = vst [vmem:[#allocation2 + $0x10] sm:$0xff] %v634_v58 }
  0xd7   : > { %v593_v9 = vpop.f32.mrf.mxu3 }
  0xd9   : > { %v626_v62 = vpop.f32.mrf.mxu2 }
  0xda   : > { %v627_v63 = vadd.f32 %v626_v62, %v608_v60  ;;  %v610_v0 = vpop.f32.mrf.mxu1 }
  0xdb   : > { %v611_v3 = vadd.f32 %v610_v0, %v591_v2 }
  0xdc   : > { %v635_v1 = vadd.f32 %v627_v63, %v342_v61 }
  0xde   : > { %639 = vst [vmem:[#allocation2] sm:$0xff] %v635_v1 }
  0xe1   : > { %v629_v5 = vpop.f32.mrf.mxu2 }
  0xe2   : > { %v630_v6 = vadd.f32 %v629_v5, %v611_v3  ;;  %v612_v8 = vpop.f32.mrf.mxu1 }
  0xe3   : > { %v613_v10 = vadd.f32 %v612_v8, %v593_v9 }
  0xe4   : > { %v636_v7 = vadd.f32 %v630_v6, %v343_v4 }
  0xe6   : > { %640 = vst [vmem:[#allocation2 + $0x18] sm:$0xff] %v636_v7 }
  0xe9   : > { %v631_v12 = vpop.f32.mrf.mxu2 }
  0xea   : > { %v632_v13 = vadd.f32 %v631_v12, %v613_v10  ;;  %645 = sbr.rel (%p928_p11) target bundleno = 257 (0x101), region = 74 }
  0xec   : > { %v637_v14 = vadd.f32 %v632_v13, %v344_v11 }
  0xee   : > { %641 = vst [vmem:[#allocation2 + $0x8] sm:$0xff] %v637_v14 }
  0xef   : > { %v646_v15 = vld [vmem:[#allocation2 + $0x10] sm:$0xff]  ;;  %v647_v16 = vld [vmem:[#allocation2] sm:$0xff]  ;;  %v648_v20 = vld [vmem:[#allocation2 + $0x18] sm:$0xff] }
  0xf0   : > { %v1035_v17 = vld [vmem:[%s1235_s2] ss:$0 sm:$0xff]  ;;  %v982_v26 = vld [vmem:[%s1237_s4 + $0x8] sm:$0xff]  }
  0xf1   : > { %v1036_v18 = vld [vmem:[%s1236_s3] ss:$0 sm:$0xff]  ;;  %v654_v22 = vmul.f32 %v1035_v17, %v646_v15  ;;  %v655_v23 = vmul.f32 %v1035_v17, %v647_v16  ;;  %v656_v27 = vmul.f32 %v1035_v17, %v648_v20  ;;  %v970_v29 = vunpack.c.l.bf16 %v982_v26 }
  0xf2   : > { %v965_v19 = vld [vmem:[%s1237_s4] sm:$0xff]   ;;  %v971_v30 = vunpack.c.h.bf16 %v982_v26 }
  0xf3   : > { %v966_v24 = vunpack.c.l.bf16 %v965_v19  ;;  %v967_v25 = vunpack.c.h.bf16 %v965_v19  ;;  %v662_v31 = vadd.f32 %v1036_v18, %v654_v22  ;;  %v663_v32 = vadd.f32 %v1036_v18, %v655_v23 }
  0xf4   : > { %v664_v33 = vadd.f32 %v1036_v18, %v656_v27 }
  0xf5   : > { %v649_v21 = vld [vmem:[#allocation2 + $0x8] sm:$0xff]  ;;  %v674_v35 = vadd.f32 %v966_v24, %v662_v31  ;;  %v675_v36 = vadd.f32 %v967_v25, %v663_v32 }
  0xf6   : > { %v657_v28 = vmul.f32 %v1035_v17, %v649_v21  ;;  %v676_v37 = vadd.f32 %v970_v29, %v664_v33 }
  0xf7   : > { %v678_v39 = vmax.f32 %v674_v35, 0.0  ;;  %v679_v40 = vmax.f32 %v675_v36, 0.0 }
  0xf8   : > { %v665_v34 = vadd.f32 %v1036_v18, %v657_v28  ;;  %v680_v41 = vmax.f32 %v676_v37, 0.0 }
  0xf9   : > { %v975_v43 = vpack.c.bf16 %v679_v40, %v678_v39 }
  0xfa   : > { %v677_v38 = vadd.f32 %v971_v30, %v665_v34 }
  0xfb   : > { %976 = vst [vmem:[%s1238_s5] sm:$0xff] %v975_v43  }
  0xfc   : > { %v681_v42 = vmax.f32 %v677_v38, 0.0 }
  0xfe   : > { %v980_v44 = vpack.c.bf16 %v681_v42, %v680_v41 }
 0x100   : > { %983 = vst [vmem:[%s1238_s5 + $0x8] sm:$0xff] %v980_v44  }
 0x101 PF: > { %s15_s22 = sadd.s32 1, %s1075_s22   ;;  %s1239_s18 = smov %s1063_s19 }
 0x102   : > { %p12_p12 = scmp.ge.s32.totalorder %s15_s22, 5   ;;  %s1240_s19 = smov %s1143_s26 }
 0x103   : > { %s1241_s20 = smov %s1071_s21  ;;  %s1242_s21 = smov %s1244_s23 }
 0x104   :  { %14 = sbr.rel (!%p12_p12) target bundleno = 3 (0x3), region = 121 }

// kernel: _lambda_.21
= control target key start
LH: loop header
LB: loop body
LE: loop exit
PB: predicated region body
PF: predicated region fallthrough
CT: control target
= control target key end

     0   :  { %s1201_s15 = smov 0   ;;  %s1203_s16 = smov 0   ;;  %s1394_s0 = inlined_call_operand.vmem [shape: bf16[16,1152], index: 0, kind: input, shape index: {}]   ;;  %s1395_s1 = inlined_call_operand.vmem [shape: bf16[1152,256], index: 1, kind: input, shape index: {}]   ;;  %s1396_s2 = inlined_call_operand.vmem [shape: f32[1,256], index: 2, kind: input, shape index: {}]   ;;  %s1397_s3 = inlined_call_operand.vmem [shape: f32[1,256], index: 3, kind: input, shape index: {}]   ;;  %s1398_s4 = inlined_call_operand.vmem [shape: bf16[16,256], index: 4, kind: output, shape index: {}]  }
   0x1   :  { %s1205_s17 = smov 0   ;;  %s1207_s18 = smov 0  }
   0x2   :  { %s1209_s19 = smov 0  }
   0x3 LB: > { %s23_s20 = sadd.s32 1, %s1169_s18  ;;  %p42_p1 = scmp.ne.s32.totalorder %s1161_s16, %s1157_s15  ;;  %s1173_s19 = sphi %s1209_s19, %s14_s19   ;;  %s1169_s18 = sphi %s1207_s18, %s1402_s18   ;;  %s1165_s17 = sphi %s1205_s17, %s1401_s17   ;;  %s1161_s16 = sphi %s1203_s16, %s1400_s16   ;;  %s1157_s15 = sphi %s1201_s15, %s1399_s15  }
   0x4   : > { %p24_p0 = scmp.ge.s32.totalorder %s23_s20, 3  ;;  %p43_p2 = scmp.eq.s32.totalorder %s1173_s19, 0 }
   0x5   : > { %s35_s22 = sadd.s32 1, %s1161_s16  ;;  %p820_p5 = scmp.ge.s32.totalorder %s1173_s19, 3 }
   0x6   : > { %s1404_s20 = smov (%p24_p0, %s23_s20), 0  ;;  %p44_p3 = por %p43_p2, %p42_p1 }
   0x7   : > { %s31_s21 = ssub.s32 %s1169_s18, %s1404_s20  ;;  %168 = sbr.rel (%p820_p5) target bundleno = 21 (0x15), region = 24 }
   0x8   : > { %p33_p4 = scmp.eq.s32.totalorder %s31_s21, 0 }
   0xa   : > { %s1236_s23 = scalar_select %p33_p4, %s1161_s16, %s35_s22  }
   0xc   : > { %171 = sbr.rel (!%p44_p3) target bundleno = 21 (0x15), region = 28  ;;  %s173_s24 = sand.u32 (%p44_p3), 1, %s1161_s16  }
   0xd   : > { %s1039_s25 = smul.u32 (%p44_p3), 12, %s1169_s18 }
   0xe   : > { %s1092_s26 = smul.u32 (%p44_p3), 24, %s173_s24 }
   0xf   : > { %s181_s29 = scalar_lea.vmem (%p44_p3), %s1394_s0, %s1039_s25 }
  0x10   : > { %v196_v0 = vld [vmem:[%s181_s29] sm:$0xff] (%p44_p3)  ;;  %v822_v2 = vld [vmem:[%s181_s29 + $0x8] sm:$0xf] (%p44_p3)  ;;  %s175_s30 = scalar_lea.vmem (%p44_p3), [#allocation3], %s1092_s26  ;;  %v824_v3 = vld [vmem:[%s181_s29 + $0x2c] sm:$0xf] (%p44_p3) }
  0x11   : > { %v198_v1 = vld [vmem:[%s181_s29 + $0x24] sm:$0xff]  ;;  %197 = vst [vmem:[%s175_s30] sm:$0xff] %v196_v0 }
  0x12   : > { %199 = vst [vmem:[%s175_s30 + $0xc] sm:$0xff] %v198_v1 }
  0x13   : > { %823 = vst [vmem:[%s175_s30 + $0x8] sm:$0xf] %v822_v2 }
  0x14   : > { %825 = vst [vmem:[%s175_s30 + $0x14] sm:$0xf] %v824_v3 }
  0x15 PF: > { %p826_p6 = scmp.ge.s32.totalorder %s1173_s19, 1  ;;  %p226_p7 = scmp.lt.s32.totalorder %s1173_s19, 4 }
  0x17   : > { %p227_p8 = pnand %p826_p6, %p226_p7 }
  0x18   : > { %s233_s5 = sand.u32 (!%p227_p8), 1, %s1157_s15   ;;  %s267_s6 = smul.u32 (!%p227_p8), 48, %s1165_s17 }
  0x19   : > { %230 = sbr.rel (%p227_p8) target bundleno = 263 (0x107), region = 58  ;;  %p829_p10 = scmp.ne.s32.totalorder (!%p227_p8), %s1165_s17, 0 }
  0x1a   : > { %s1093_s7 = smul.u32 (!%p227_p8), 24, %s233_s5  ;;  %p268_p9 = scmp.lt.s32.totalorder (!%p227_p8), %s267_s6, 143 }
  0x1c   : > { %s1253_s12 = scalar_lea.vmem (!%p227_p8), [#allocation3], %s1093_s7 }
  0x1e   : > { %s1406_s6 = smov (!%p268_p9, %s267_s6), 143  ;;  %284 = sbr.rel (%p829_p10) target bundleno = 40 (0x28), region = 66 }
  0x1f   : > { %s1040_s8 = sshll.u32 %s1406_s6, 3 }
  0x20   : > { %s1251_s11 = scalar_lea.vmem %s1395_s1, %s1040_s8 }
  0x23   : > { %v1175_v4 = vmov 0.0  }
  0x24   : > { %285 = vst [vmem:[#allocation2 + $0x10] sm:$0xff] %v1175_v4 }
  0x25   : > { %286 = vst [vmem:[#allocation2] sm:$0xff] %v1175_v4 }
  0x26   : > { %287 = vst [vmem:[#allocation2 + $0x18] sm:$0xff] %v1175_v4 }
  0x27   : > { %288 = vst [vmem:[#allocation2 + $0x8] sm:$0xff] %v1175_v4 }
  0x28 PF: > { %v900_v5 = vld [vmem:[%s1251_s11 + $0x70] sm:$0xf]  ;;  %v1059_v6 = vld [vmem:[%s1251_s11 + $0x74] sm:$0xf0]  ;;  %v892_v14 = vld [vmem:[%s1251_s11 + $0x60] sm:$0xf] }
  0x29   : > { %v964_v7 = vld [vmem:[%s1251_s11 + $0xf0] sm:$0xf]  ;;  %v901_v8 = vor.u32 %v1059_v6, %v900_v5  ;;  %v1075_v9 = vld [vmem:[%s1251_s11 + $0xf4] sm:$0xf0]  ;;  %v1057_v15 = vld [vmem:[%s1251_s11 + $0x64] sm:$0xf0] }
  0x2a   : > { %v1028_v10 = vld [vmem:[%s1251_s11 + $0x170] sm:$0xf]  ;;  %v1091_v11 = vld [vmem:[%s1251_s11 + $0x174] sm:$0xf0]  ;;  %v965_v12 = vor.u32 %v1075_v9, %v964_v7  ;;  %v956_v16 = vld [vmem:[%s1251_s11 + $0xe0] sm:$0xf]  ;;  %v893_v17 = vor.u32 %v1057_v15, %v892_v14 }
  0x2b   : > { %v1029_v13 = vor.u32 %v1091_v11, %v1028_v10  ;;  %601 = vmatpush.bf16.msra.mxu0 %v901_v8  ;;  %v1073_v18 = vld [vmem:[%s1251_s11 + $0xe4] sm:$0xf0]  ;;  %v1020_v19 = vld [vmem:[%s1251_s11 + $0x160] sm:$0xf]  ;;  %v884_v23 = vld [vmem:[%s1251_s11 + $0x50] sm:$0xf] }
  0x2c   : > { %v1089_v20 = vld [vmem:[%s1251_s11 + $0x164] sm:$0xf0]  ;;  %615 = vmatpush.bf16.msra.mxu1 %v965_v12  ;;  %v957_v21 = vor.u32 %v1073_v18, %v956_v16  ;;  %v1055_v24 = vld [vmem:[%s1251_s11 + $0x54] sm:$0xf0]  ;;  %v948_v25 = vld [vmem:[%s1251_s11 + $0xd0] sm:$0xf] }
  0x2d   : > { %629 = vmatpush.bf16.msra.mxu2 %v1029_v13  ;;  %v1021_v22 = vor.u32 %v1089_v20, %v1020_v19  ;;  %v1071_v26 = vld [vmem:[%s1251_s11 + $0xd4] sm:$0xf0]  ;;  %v1012_v27 = vld [vmem:[%s1251_s11 + $0x150] sm:$0xf]  ;;  %v885_v29 = vor.u32 %v1055_v24, %v884_v23  ;;  %v876_v30 = vld [vmem:[%s1251_s11 + $0x40] sm:$0xf] }
  0x2e   : > { %v1087_v28 = vld [vmem:[%s1251_s11 + $0x154] sm:$0xf0]  ;;  %v1053_v31 = vld [vmem:[%s1251_s11 + $0x44] sm:$0xf0]  ;;  %v949_v32 = vor.u32 %v1071_v26, %v948_v25  ;;  %v940_v34 = vld [vmem:[%s1251_s11 + $0xc0] sm:$0xf] }
  0x2f   : > { %602 = vmatpush.bf16.msra.mxu0 %v893_v17  ;;  %v1013_v33 = vor.u32 %v1087_v28, %v1012_v27  ;;  %v1058_v35 = vld [vmem:[%s1251_s11 + $0x74] sm:$0xf]  ;;  %v902_v36 = vld [vmem:[%s1251_s11 + $0x78] sm:$0xf0]  ;;  %v1069_v37 = vld [vmem:[%s1251_s11 + $0xc4] sm:$0xf0]  ;;  %v877_v42 = vor.u32 %v1053_v31, %v876_v30 }
  0x30   : > { %616 = vmatpush.bf16.msra.mxu1 %v957_v21  ;;  %v1004_v38 = vld [vmem:[%s1251_s11 + $0x140] sm:$0xf]  ;;  %v1085_v39 = vld [vmem:[%s1251_s11 + $0x144] sm:$0xf0]  ;;  %v905_v40 = vor.u32 %v1058_v35, %v902_v36  ;;  %v1056_v41 = vld [vmem:[%s1251_s11 + $0x64] sm:$0xf]  ;;  %v941_v46 = vor.u32 %v1069_v37, %v940_v34 }
  0x31   : > { %630 = vmatpush.bf16.msra.mxu2 %v1021_v22  ;;  %v868_v43 = vld [vmem:[%s1251_s11 + $0x30] sm:$0xf]  ;;  %v1051_v44 = vld [vmem:[%s1251_s11 + $0x34] sm:$0xf0]  ;;  %v894_v45 = vld [vmem:[%s1251_s11 + $0x68] sm:$0xf0]  ;;  %v1005_v47 = vor.u32 %v1085_v39, %v1004_v38 }
  0x32   : > { %643 = vmatpush.bf16.msra.mxu3 %v905_v40  ;;  %v932_v48 = vld [vmem:[%s1251_s11 + $0xb0] sm:$0xf]  ;;  %v1067_v49 = vld [vmem:[%s1251_s11 + $0xb4] sm:$0xf0]  ;;  %v897_v51 = vor.u32 %v1056_v41, %v894_v45  ;;  %v1054_v53 = vld [vmem:[%s1251_s11 + $0x54] sm:$0xf]  ;;  %v869_v55 = vor.u32 %v1051_v44, %v868_v43 }
  0x33   : > { %603 = vmatpush.bf16.msra.mxu0 %v885_v29  ;;  %v996_v50 = vld [vmem:[%s1251_s11 + $0x130] sm:$0xf]  ;;  %v1083_v52 = vld [vmem:[%s1251_s11 + $0x134] sm:$0xf0]  ;;  %v886_v54 = vld [vmem:[%s1251_s11 + $0x58] sm:$0xf0]  ;;  %v933_v59 = vor.u32 %v1067_v49, %v932_v48 }
  0x34   : > { %617 = vmatpush.bf16.msra.mxu1 %v949_v32  ;;  %v860_v56 = vld [vmem:[%s1251_s11 + $0x20] sm:$0xf]  ;;  %v1049_v57 = vld [vmem:[%s1251_s11 + $0x24] sm:$0xf0]  ;;  %v889_v58 = vor.u32 %v1054_v53, %v886_v54  ;;  %v997_v60 = vor.u32 %v1083_v52, %v996_v50  ;;  %v1052_v62 = vld [vmem:[%s1251_s11 + $0x44] sm:$0xf] }
  0x35   : > { %631 = vmatpush.bf16.msra.mxu2 %v1013_v33  ;;  %v924_v61 = vld [vmem:[%s1251_s11 + $0xa0] sm:$0xf]  ;;  %v878_v63 = vld [vmem:[%s1251_s11 + $0x48] sm:$0xf0]  ;;  %v1065_v0 = vld [vmem:[%s1251_s11 + $0xa4] sm:$0xf0]  ;;  %v861_v3 = vor.u32 %v1049_v57, %v860_v56 }
  0x36   : > { %644 = vmatpush.bf16.msra.mxu3 %v897_v51  ;;  %v988_v1 = vld [vmem:[%s1251_s11 + $0x120] sm:$0xf]  ;;  %v1081_v2 = vld [vmem:[%s1251_s11 + $0x124] sm:$0xf0]  ;;  %v852_v4 = vld [vmem:[%s1251_s11 + $0x10] sm:$0xf]  ;;  %v881_v6 = vor.u32 %v1052_v62, %v878_v63  ;;  %v925_v7 = vor.u32 %v1065_v0, %v924_v61 }
  0x37   : > { %604 = vmatpush.bf16.msra.mxu0 %v877_v42  ;;  %v1047_v5 = vld [vmem:[%s1251_s11 + $0x14] sm:$0xf0]  ;;  %v989_v8 = vor.u32 %v1081_v2, %v988_v1  ;;  %v916_v9 = vld [vmem:[%s1251_s11 + $0x90] sm:$0xf]  ;;  %v1050_v10 = vld [vmem:[%s1251_s11 + $0x34] sm:$0xf] }
  0x38   : > { %618 = vmatpush.bf16.msra.mxu1 %v941_v46  ;;  %v870_v11 = vld [vmem:[%s1251_s11 + $0x38] sm:$0xf0]  ;;  %v1063_v12 = vld [vmem:[%s1251_s11 + $0x94] sm:$0xf0]  ;;  %v980_v13 = vld [vmem:[%s1251_s11 + $0x110] sm:$0xf]  ;;  %v853_v15 = vor.u32 %v1047_v5, %v852_v4 }
  0x39   : > { %632 = vmatpush.bf16.msra.mxu2 %v1005_v47  ;;  %v1079_v14 = vld [vmem:[%s1251_s11 + $0x114] sm:$0xf0]  ;;  %v844_v16 = vld [vmem:[%s1251_s11] sm:$0xf]  ;;  %v1045_v17 = vld [vmem:[%s1251_s11 + $0x4] sm:$0xf0]  ;;  %v873_v19 = vor.u32 %v1050_v10, %v870_v11  ;;  %v917_v20 = vor.u32 %v1063_v12, %v916_v9 }
  0x3a   : > { %645 = vmatpush.bf16.msra.mxu3 %v889_v58  ;;  %v908_v18 = vld [vmem:[%s1251_s11 + $0x80] sm:$0xf]  ;;  %v981_v21 = vor.u32 %v1079_v14, %v980_v13  ;;  %v1061_v22 = vld [vmem:[%s1251_s11 + $0x84] sm:$0xf0]  ;;  %v1048_v23 = vld [vmem:[%s1251_s11 + $0x24] sm:$0xf]  ;;  %v845_v31 = vor.u32 %v1045_v17, %v844_v16 }
  0x3b   : > { %605 = vmatpush.bf16.msra.mxu0 %v869_v55  ;;  %v862_v24 = vld [vmem:[%s1251_s11 + $0x28] sm:$0xf0]  ;;  %v972_v25 = vld [vmem:[%s1251_s11 + $0x100] sm:$0xf]  ;;  %v1077_v26 = vld [vmem:[%s1251_s11 + $0x104] sm:$0xf0]  ;;  %v909_v36 = vor.u32 %v1061_v22, %v908_v18 }
  0x3c   : > { %619 = vmatpush.bf16.msra.mxu1 %v933_v59  ;;  %v1074_v27 = vld [vmem:[%s1251_s11 + $0xf4] sm:$0xf]  ;;  %v966_v28 = vld [vmem:[%s1251_s11 + $0xf8] sm:$0xf0]  ;;  %v840_v32 = vld [vmem:[%s1253_s12 + $0x8] sm:$0xf]  ;;  %v865_v33 = vor.u32 %v1048_v23, %v862_v24  ;;  %v973_v37 = vor.u32 %v1077_v26, %v972_v25 }
  0x3d   : > { %633 = vmatpush.bf16.msra.mxu2 %v997_v60  ;;  %v1090_v29 = vld [vmem:[%s1251_s11 + $0x174] sm:$0xf]  ;;  %v1030_v30 = vld [vmem:[%s1251_s11 + $0x178] sm:$0xf0]  ;;  %v832_v34 = vld [vmem:[%s1253_s12] sm:$0xf]  ;;  %v969_v41 = vor.u32 %v1074_v27, %v966_v28 }
  0x3e   : > { %646 = vmatpush.bf16.msra.mxu3 %v881_v6  ;;  %v1042_v35 = vld [vmem:[%s1253_s12 + $0x8] sm:$0xf0]  ;;  %v1043_v38 = vld [vmem:[%s1253_s12 + $0x10] sm:$0xf0]  ;;  %v1041_v39 = vld [vmem:[%s1253_s12 + $0x4] sm:$0xf]  ;;  %v1033_v42 = vor.u32 %v1090_v29, %v1030_v30 }
  0x3f   : > { %606 = vmatpush.bf16.msra.mxu0 %v861_v3  ;;  %v834_v40 = vld [vmem:[%s1253_s12 + $0xc] sm:$0xf0]  ;;  %v1072_v43 = vld [vmem:[%s1251_s11 + $0xe4] sm:$0xf]  ;;  %v1046_v44 = vld [vmem:[%s1251_s11 + $0x14] sm:$0xf]  ;;  %v833_v49 = vor.u32 %v1042_v35, %v832_v34  ;;  %v1332_v50 = vor.u32 %v1043_v38, %v840_v32 }
  0x40   : > { %620 = vmatpush.bf16.msra.mxu1 %v925_v7  ;;  %v854_v45 = vld [vmem:[%s1251_s11 + $0x18] sm:$0xf0]  ;;  %v958_v46 = vld [vmem:[%s1251_s11 + $0xe8] sm:$0xf0]  ;;  %v1088_v47 = vld [vmem:[%s1251_s11 + $0x164] sm:$0xf]  ;;  %v1334_v51 = vor.u32 %v1041_v39, %v834_v40 }
  0x41   : > { %634 = vmatpush.bf16.msra.mxu2 %v989_v8  ;;  %v1022_v48 = vld [vmem:[%s1251_s11 + $0x168] sm:$0xf0]  ;;  %v857_v52 = vor.u32 %v1046_v44, %v854_v45  ;;  %v961_v53 = vor.u32 %v1072_v43, %v958_v46  ;;  %v1070_v55 = vld [vmem:[%s1251_s11 + $0xd4] sm:$0xf]  ;;  %v1044_v56 = vld [vmem:[%s1251_s11 + $0x4] sm:$0xf] }
  0x42   : > { %647 = vmatpush.bf16.msra.mxu3 %v873_v19  ;;  %v1025_v54 = vor.u32 %v1088_v47, %v1022_v48  ;;  %v846_v57 = vld [vmem:[%s1251_s11 + $0x8] sm:$0xf0]  ;;  %v950_v58 = vld [vmem:[%s1251_s11 + $0xd8] sm:$0xf0]  ;;  %v1086_v59 = vld [vmem:[%s1251_s11 + $0x154] sm:$0xf] }
  0x43   : > { %607 = vmatpush.bf16.msra.mxu0 %v853_v15  ;;  %v1014_v60 = vld [vmem:[%s1251_s11 + $0x158] sm:$0xf0]  ;;  %v849_v61 = vor.u32 %v1044_v56, %v846_v57  ;;  %v953_v62 = vor.u32 %v1070_v55, %v950_v58  ;;  %v1068_v0 = vld [vmem:[%s1251_s11 + $0xc4] sm:$0xf]  ;;  %v942_v1 = vld [vmem:[%s1251_s11 + $0xc8] sm:$0xf0] }
  0x44   : > { %621 = vmatpush.bf16.msra.mxu1 %v917_v20  ;;  %v1017_v63 = vor.u32 %v1086_v59, %v1014_v60  ;;  %v1084_v2 = vld [vmem:[%s1251_s11 + $0x144] sm:$0xf]  ;;  %v1006_v3 = vld [vmem:[%s1251_s11 + $0x148] sm:$0xf0]  ;;  %v945_v4 = vor.u32 %v1068_v0, %v942_v1  ;;  %v1066_v6 = vld [vmem:[%s1251_s11 + $0xb4] sm:$0xf] }
  0x45   : > { %635 = vmatpush.bf16.msra.mxu2 %v981_v21  ;;  %v1009_v5 = vor.u32 %v1084_v2, %v1006_v3  ;;  %v934_v7 = vld [vmem:[%s1251_s11 + $0xb8] sm:$0xf0]  ;;  %v1082_v8 = vld [vmem:[%s1251_s11 + $0x134] sm:$0xf]  ;;  %v1064_v12 = vld [vmem:[%s1251_s11 + $0xa4] sm:$0xf] }
  0x46   : > { %648 = vmatpush.bf16.msra.mxu3 %v865_v33  ;;  %v998_v9 = vld [vmem:[%s1251_s11 + $0x138] sm:$0xf0]  ;;  %v937_v10 = vor.u32 %v1066_v6, %v934_v7  ;;  %v926_v13 = vld [vmem:[%s1251_s11 + $0xa8] sm:$0xf0]  ;;  %v1080_v14 = vld [vmem:[%s1251_s11 + $0x124] sm:$0xf] }
  0x47   : > { %608 = vmatpush.bf16.msra.mxu0 %v845_v31  ;;  %v1001_v11 = vor.u32 %v1082_v8, %v998_v9  ;;  %v990_v15 = vld [vmem:[%s1251_s11 + $0x128] sm:$0xf0]  ;;  %v929_v16 = vor.u32 %v1064_v12, %v926_v13  ;;  %v1062_v18 = vld [vmem:[%s1251_s11 + $0x94] sm:$0xf]  ;;  %v918_v19 = vld [vmem:[%s1251_s11 + $0x98] sm:$0xf0] }
  0x48   : > { %622 = vmatpush.bf16.msra.mxu1 %v909_v36  ;;  %v993_v17 = vor.u32 %v1080_v14, %v990_v15  ;;  %v1078_v20 = vld [vmem:[%s1251_s11 + $0x114] sm:$0xf]  ;;  %v982_v21 = vld [vmem:[%s1251_s11 + $0x118] sm:$0xf0]  ;;  %v921_v22 = vor.u32 %v1062_v18, %v918_v19  ;;  %v1060_v24 = vld [vmem:[%s1251_s11 + $0x84] sm:$0xf] }
  0x49   : > { %636 = vmatpush.bf16.msra.mxu2 %v973_v37  ;;  %v985_v23 = vor.u32 %v1078_v20, %v982_v21  ;;  %v910_v25 = vld [vmem:[%s1251_s11 + $0x88] sm:$0xf0]  ;;  %v1076_v26 = vld [vmem:[%s1251_s11 + $0x104] sm:$0xf]  ;;  %v289_v33 = vld [vmem:[#allocation2 + $0x10] sm:$0xff]  ;;  %p1034_p11 = scmp.ne.s32.totalorder %s1165_s17, 2 }
  0x4a   : > { %609 = vmatmul.bf16.vlgmr.msra.gmra.mxu0 %v833_v49  ;;  %649 = vmatpush.bf16.msra.mxu3 %v857_v52  ;;  %v974_v27 = vld [vmem:[%s1251_s11 + $0x108] sm:$0xf0]  ;;  %v913_v28 = vor.u32 %v1060_v24, %v910_v25  ;;  %v291_v40 = vld [vmem:[#allocation2 + $0x18] sm:$0xff]  ;;  %v290_v48 = vld [vmem:[#allocation2] sm:$0xff] }
  0x4b   : > { %657 = vmatpush.bf16.msrb.mxu0 %v969_v41  ;;  %623 = vmatmul.bf16.vlgmr.msra.gmra.mxu1 %v1334_v51  ;;  %v977_v29 = vor.u32 %v1076_v26, %v974_v27 }
  0x4c   : > { %671 = vmatpush.bf16.msrb.mxu1 %v1033_v42  ;;  %637 = vmatmul.bf16.vlgmr.msra.gmra.mxu2 %v1332_v50 }
  0x4e   : > { %650 = vmatpush.bf16.msra.mxu3 %v849_v61 }
  0x4f   : > { %658 = vmatpush.bf16.msrb.mxu0 %v961_v53 }
  0x50   : > { %672 = vmatpush.bf16.msrb.mxu1 %v1025_v54  ;;  %v292_v54 = vld [vmem:[#allocation2 + $0x8] sm:$0xff] }
  0x51   : > { %651 = vmatmul.bf16.vlgmr.msra.gmra.mxu3 %v833_v49 }
  0x53   : > { %659 = vmatpush.bf16.msrb.mxu0 %v953_v62 }
  0x54   : > { %673 = vmatpush.bf16.msrb.mxu1 %v1017_v63 }
  0x57   : > { %660 = vmatpush.bf16.msrb.mxu0 %v945_v4 }
  0x58   : > { %674 = vmatpush.bf16.msrb.mxu1 %v1009_v5 }
  0x5b   : > { %661 = vmatpush.bf16.msrb.mxu0 %v937_v10 }
  0x5c   : > { %675 = vmatpush.bf16.msrb.mxu1 %v1001_v11 }
  0x5f   : > { %662 = vmatpush.bf16.msrb.mxu0 %v929_v16 }
  0x60   : > { %676 = vmatpush.bf16.msrb.mxu1 %v993_v17 }
  0x63   : > { %663 = vmatpush.bf16.msrb.mxu0 %v921_v22 }
  0x64   : > { %677 = vmatpush.bf16.msrb.mxu1 %v985_v23 }
  0x67   : > { %664 = vmatpush.bf16.msrb.mxu0 %v913_v28 }
  0x68   : > { %678 = vmatpush.bf16.msrb.mxu1 %v977_v29 }
  0x6a   : > { %665 = vmatmul.bf16.vlgmr.msrb.gmra.mxu0 %v1334_v51 }
  0x6b   : > { %679 = vmatmul.bf16.vlgmr.msrb.gmra.mxu1 %v1332_v50 }
  0xc7   : > { %v610_v30 = vpop.f32.mrf.mxu0 }
  0xc8   : > { %v624_v31 = vpop.f32.mrf.mxu1 }
  0xc9   : > { %v625_v32 = vadd.f32 %v624_v31, %v610_v30 }
  0xcf   : > { %v638_v34 = vpop.f32.mrf.mxu2  ;;  %v612_v36 = vpop.f32.mrf.mxu0 }
  0xd0   : > { %v639_v35 = vadd.f32 %v638_v34, %v625_v32  ;;  %v626_v37 = vpop.f32.mrf.mxu1 }
  0xd1   : > { %v627_v39 = vadd.f32 %v626_v37, %v612_v36 }
  0xd2   : > { %v685_v38 = vadd.f32 %v639_v35, %v289_v33 }
  0xd4   : > { %689 = vst [vmem:[#allocation2 + $0x10] sm:$0xff] %v685_v38  ;;  %v652_v44 = vpop.f32.mrf.mxu3 }
  0xd7   : > { %v640_v41 = vpop.f32.mrf.mxu2 }
  0xd8   : > { %v641_v42 = vadd.f32 %v640_v41, %v627_v39 }
  0xda   : > { %v687_v43 = vadd.f32 %v641_v42, %v291_v40 }
  0xdc   : > { %691 = vst [vmem:[#allocation2 + $0x18] sm:$0xff] %v687_v43  ;;  %v654_v51 = vpop.f32.mrf.mxu3 }
  0xe7   : > { %v666_v45 = vpop.f32.mrf.mxu0 }
  0xe8   : > { %v680_v46 = vpop.f32.mrf.mxu1  ;;  %v667_v47 = vadd.f32 %v666_v45, %v652_v44 }
  0xea   : > { %v681_v49 = vadd.f32 %v680_v46, %v667_v47 }
  0xec   : > { %v686_v50 = vadd.f32 %v681_v49, %v290_v48 }
  0xee   : > { %690 = vst [vmem:[#allocation2] sm:$0xff] %v686_v50 }
  0xef   : > { %v668_v52 = vpop.f32.mrf.mxu0 }
  0xf0   : > { %v669_v53 = vadd.f32 %v668_v52, %v654_v51  ;;  %v682_v55 = vpop.f32.mrf.mxu1 }
  0xf2   : > { %v683_v56 = vadd.f32 %v682_v55, %v669_v53  ;;  %696 = sbr.rel (%p1034_p11) target bundleno = 263 (0x107), region = 70 }
  0xf4   : > { %v688_v57 = vadd.f32 %v683_v56, %v292_v54 }
  0xf6   : > { %692 = vst [vmem:[#allocation2 + $0x8] sm:$0xff] %v688_v57 }
  0xf7   : > { %v697_v58 = vld [vmem:[#allocation2 + $0x10] sm:$0xff]  ;;  %v698_v59 = vld [vmem:[#allocation2] sm:$0xff]  ;;  %v699_v0 = vld [vmem:[#allocation2 + $0x18] sm:$0xff] }
  0xf8   : > { %v701_v60 = vld [vmem:[%s1396_s2] sm:$0x3] }
  0xf9   : > { %v703_v61 = vperm.slane %v701_v60, 0  ;;  %v704_v62 = vperm.slane %v701_v60, 1  ;;  %v711_v63 = vld [vmem:[%s1397_s3] sm:$0x3] }
  0xfa   : > { %v713_v2 = vperm.slane %v711_v63, 0  ;;  %v714_v3 = vperm.slane %v711_v63, 1 }
  0xfb   : > { %v707_v4 = vmul.f32 %v703_v61, %v697_v58  ;;  %v708_v5 = vmul.f32 %v704_v62, %v698_v59  ;;  %v709_v6 = vmul.f32 %v703_v61, %v699_v0 }
  0xfd   : > { %v700_v1 = vld [vmem:[#allocation2 + $0x8] sm:$0xff]  ;;  %v717_v8 = vadd.f32 %v713_v2, %v707_v4  ;;  %v718_v9 = vadd.f32 %v714_v3, %v708_v5  ;;  %v719_v10 = vadd.f32 %v713_v2, %v709_v6 }
  0xfe   : > { %v710_v7 = vmul.f32 %v704_v62, %v700_v1 }
  0xff   : > { %v721_v12 = vmax.f32 %v717_v8, 0.0  ;;  %v722_v13 = vmax.f32 %v718_v9, 0.0  ;;  %v723_v14 = vmax.f32 %v719_v10, 0.0 }
 0x100   : > { %v720_v11 = vadd.f32 %v714_v3, %v710_v7 }
 0x101   : > { %v725_v16 = vpack.c.bf16 %v722_v13, %v721_v12 }
 0x102   : > { %v724_v15 = vmax.f32 %v720_v11, 0.0 }
 0x103   : > { %727 = vst [vmem:[%s1398_s4] sm:$0xff] %v725_v16 }
 0x104   : > { %v726_v17 = vpack.c.bf16 %v724_v15, %v723_v14 }
 0x106   : > { %728 = vst [vmem:[%s1398_s4 + $0x8] sm:$0xff] %v726_v17 }
 0x107 PF: > { %s14_s19 = sadd.s32 1, %s1173_s19   ;;  %s1399_s15 = smov %s1161_s16 }
 0x108   : > { %p11_p12 = scmp.ge.s32.totalorder %s14_s19, 5   ;;  %s1400_s16 = smov %s1236_s23 }
 0x109   : > { %s1401_s17 = smov %s1169_s18  ;;  %s1402_s18 = smov %s1404_s20 }
 0x10a   :  { %13 = sbr.rel (!%p11_p12) target bundleno = 3 (0x3), region = 114 }

// kernel: _lambda_.22
= control target key start
LH: loop header
LB: loop body
LE: loop exit
PB: predicated region body
PF: predicated region fallthrough
CT: control target
= control target key end

     0   :  { %s425_s1 = inlined_call_operand.vmem [shape: bf16[128,256], index: 1, kind: input, shape index: {}]   ;;  %s426_s0 = inlined_call_operand.vmem [shape: bf16[16,128], index: 0, kind: input, shape index: {}]   ;;  %s427_s2 = inlined_call_operand.vmem [shape: f32[1,256], index: 2, kind: input, shape index: {}]   ;;  %s428_s3 = inlined_call_operand.vmem [shape: f32[1,256], index: 3, kind: input, shape index: {}]   ;;  %s429_s4 = inlined_call_operand.vmem [shape: bf16[16,256], index: 4, kind: output, shape index: {}]  }
   0x1   :  { %v266_v0 = vld [vmem:[%s425_s1 + $0x70] sm:$0xf]  ;;  %v288_v1 = vld [vmem:[%s425_s1 + $0x74] sm:$0xf0]  ;;  %v287_v2 = vld [vmem:[%s425_s1 + $0x74] sm:$0xf] }
   0x2   :  { %v267_v3 = vor.u32 %v288_v1, %v266_v0  ;;  %v268_v4 = vld [vmem:[%s425_s1 + $0x78] sm:$0xf0]  ;;  %v258_v5 = vld [vmem:[%s425_s1 + $0x60] sm:$0xf]  ;;  %v286_v6 = vld [vmem:[%s425_s1 + $0x64] sm:$0xf0] }
   0x3   :  { %v271_v7 = vor.u32 %v287_v2, %v268_v4  ;;  %v285_v8 = vld [vmem:[%s425_s1 + $0x64] sm:$0xf]  ;;  %v260_v9 = vld [vmem:[%s425_s1 + $0x68] sm:$0xf0]  ;;  %v259_v10 = vor.u32 %v286_v6, %v258_v5  ;;  %v250_v12 = vld [vmem:[%s425_s1 + $0x50] sm:$0xf] }
   0x4   :  { %133 = vmatpush.bf16.msra.mxu0 %v267_v3  ;;  %v263_v11 = vor.u32 %v285_v8, %v260_v9  ;;  %v284_v13 = vld [vmem:[%s425_s1 + $0x54] sm:$0xf0]  ;;  %v283_v14 = vld [vmem:[%s425_s1 + $0x54] sm:$0xf]  ;;  %v252_v15 = vld [vmem:[%s425_s1 + $0x58] sm:$0xf0] }
   0x5   :  { %147 = vmatpush.bf16.msra.mxu1 %v271_v7  ;;  %v251_v16 = vor.u32 %v284_v13, %v250_v12  ;;  %v255_v17 = vor.u32 %v283_v14, %v252_v15  ;;  %v242_v18 = vld [vmem:[%s425_s1 + $0x40] sm:$0xf]  ;;  %v282_v19 = vld [vmem:[%s425_s1 + $0x44] sm:$0xf0]  ;;  %v281_v20 = vld [vmem:[%s425_s1 + $0x44] sm:$0xf] }
   0x6   :  { %v244_v21 = vld [vmem:[%s425_s1 + $0x48] sm:$0xf0]  ;;  %v243_v22 = vor.u32 %v282_v19, %v242_v18  ;;  %v234_v24 = vld [vmem:[%s425_s1 + $0x30] sm:$0xf]  ;;  %v280_v25 = vld [vmem:[%s425_s1 + $0x34] sm:$0xf0] }
   0x7   :  { %v247_v23 = vor.u32 %v281_v20, %v244_v21  ;;  %v279_v26 = vld [vmem:[%s425_s1 + $0x34] sm:$0xf]  ;;  %v236_v27 = vld [vmem:[%s425_s1 + $0x38] sm:$0xf0]  ;;  %v235_v28 = vor.u32 %v280_v25, %v234_v24  ;;  %v226_v30 = vld [vmem:[%s425_s1 + $0x20] sm:$0xf] }
   0x8   :  { %134 = vmatpush.bf16.msra.mxu0 %v259_v10  ;;  %v239_v29 = vor.u32 %v279_v26, %v236_v27  ;;  %v278_v31 = vld [vmem:[%s425_s1 + $0x24] sm:$0xf0]  ;;  %v277_v32 = vld [vmem:[%s425_s1 + $0x24] sm:$0xf]  ;;  %v228_v33 = vld [vmem:[%s425_s1 + $0x28] sm:$0xf0] }
   0x9   :  { %148 = vmatpush.bf16.msra.mxu1 %v263_v11  ;;  %v227_v34 = vor.u32 %v278_v31, %v226_v30  ;;  %v231_v35 = vor.u32 %v277_v32, %v228_v33  ;;  %v218_v36 = vld [vmem:[%s425_s1 + $0x10] sm:$0xf]  ;;  %v276_v37 = vld [vmem:[%s425_s1 + $0x14] sm:$0xf0]  ;;  %v275_v38 = vld [vmem:[%s425_s1 + $0x14] sm:$0xf] }
   0xa   :  { %v220_v39 = vld [vmem:[%s425_s1 + $0x18] sm:$0xf0]  ;;  %v219_v40 = vor.u32 %v276_v37, %v218_v36  ;;  %v210_v42 = vld [vmem:[%s425_s1] sm:$0xf]  ;;  %v274_v43 = vld [vmem:[%s425_s1 + $0x4] sm:$0xf0] }
   0xb   :  { %v223_v41 = vor.u32 %v275_v38, %v220_v39  ;;  %v273_v44 = vld [vmem:[%s425_s1 + $0x4] sm:$0xf]  ;;  %v212_v45 = vld [vmem:[%s425_s1 + $0x8] sm:$0xf0]  ;;  %v211_v46 = vor.u32 %v274_v43, %v210_v42  ;;  %v176_v49 = vld [vmem:[%s427_s2] sm:$0x3] }
   0xc   :  { %135 = vmatpush.bf16.msra.mxu0 %v251_v16  ;;  %v215_v47 = vor.u32 %v273_v44, %v212_v45  ;;  %v272_v48 = vld [vmem:[%s426_s0] sm:$0xff]  ;;  %v178_v51 = vperm.slane %v176_v49, 0  ;;  %v179_v52 = vperm.slane %v176_v49, 1 }
   0xd   :  { %149 = vmatpush.bf16.msra.mxu1 %v255_v17  ;;  %v186_v50 = vld [vmem:[%s428_s3] sm:$0x3] }
   0xe   :  { %v188_v53 = vperm.slane %v186_v50, 0  ;;  %v189_v55 = vperm.slane %v186_v50, 1 }
  0x10   :  { %136 = vmatpush.bf16.msra.mxu0 %v243_v22 }
  0x11   :  { %150 = vmatpush.bf16.msra.mxu1 %v247_v23 }
  0x14   :  { %137 = vmatpush.bf16.msra.mxu0 %v235_v28 }
  0x15   :  { %151 = vmatpush.bf16.msra.mxu1 %v239_v29 }
  0x18   :  { %138 = vmatpush.bf16.msra.mxu0 %v227_v34 }
  0x19   :  { %152 = vmatpush.bf16.msra.mxu1 %v231_v35 }
  0x1c   :  { %139 = vmatpush.bf16.msra.mxu0 %v219_v40 }
  0x1d   :  { %153 = vmatpush.bf16.msra.mxu1 %v223_v41 }
  0x20   :  { %140 = vmatpush.bf16.msra.mxu0 %v211_v46 }
  0x21   :  { %154 = vmatpush.bf16.msra.mxu1 %v215_v47 }
  0x23   :  { %141 = vmatmul.bf16.vlgmr.msra.gmra.mxu0 %v272_v48 }
  0x24   :  { %155 = vmatmul.bf16.vlgmr.msra.gmra.mxu1 %v272_v48 }
  0xa0   :  { %v142_v54 = vpop.f32.mrf.mxu0 }
  0xa1   :  { %v182_v56 = vmul.f32 %v178_v51, %v142_v54  ;;  %v156_v57 = vpop.f32.mrf.mxu1 }
  0xa2   :  { %v183_v58 = vmul.f32 %v179_v52, %v156_v57 }
  0xa3   :  { %v192_v59 = vadd.f32 %v188_v53, %v182_v56 }
  0xa4   :  { %v193_v60 = vadd.f32 %v189_v55, %v183_v58 }
  0xa6   :  { %v196_v61 = vpack.c.bf16 %v193_v60, %v192_v59 }
  0xa8   :  { %198 = vst [vmem:[%s429_s4] sm:$0xff] %v196_v61  ;;  %v144_v62 = vpop.f32.mrf.mxu0 }
  0xa9   :  { %v184_v63 = vmul.f32 %v178_v51, %v144_v62  ;;  %v158_v0 = vpop.f32.mrf.mxu1 }
  0xaa   :  { %v185_v1 = vmul.f32 %v179_v52, %v158_v0 }
  0xab   :  { %v194_v2 = vadd.f32 %v188_v53, %v184_v63 }
  0xac   :  { %v195_v3 = vadd.f32 %v189_v55, %v185_v1 }
  0xae   :  { %v197_v4 = vpack.c.bf16 %v195_v3, %v194_v2 }
  0xb0   :  { %199 = vst [vmem:[%s429_s4 + $0x8] sm:$0xff] %v197_v4 }

// kernel: _lambda_.23
= control target key start
LH: loop header
LB: loop body
LE: loop exit
PB: predicated region body
PF: predicated region fallthrough
CT: control target
= control target key end

     0   :  { %s1284_s18 = smov 0   ;;  %s1286_s19 = smov 0   ;;  %s1483_s0 = inlined_call_operand.vmem [shape: bf16[16,2304], index: 0, kind: input, shape index: {}]   ;;  %s1484_s1 = inlined_call_operand.vmem [shape: bf16[2304,256], index: 1, kind: input, shape index: {}]   ;;  %s1485_s2 = inlined_call_operand.vmem [shape: f32[1,256], index: 2, kind: input, shape index: {}]   ;;  %s1486_s3 = inlined_call_operand.vmem [shape: f32[1,256], index: 3, kind: input, shape index: {}]   ;;  %s1487_s4 = inlined_call_operand.vmem [shape: bf16[16,256], index: 4, kind: input, shape index: {}]   ;;  %s1488_s5 = inlined_call_operand.vmem [shape: bf16[16,256], index: 5, kind: output, shape index: {}]  }
   0x1   :  { %s1288_s20 = smov 0   ;;  %s1290_s21 = smov 0  }
   0x2   :  { %s1292_s22 = smov 0  }
   0x3 LB: > { %s24_s23 = sadd.s32 1, %s1247_s21  ;;  %p43_p1 = scmp.ne.s32.totalorder %s1239_s19, %s1235_s18  ;;  %s1251_s22 = sphi %s1292_s22, %s15_s22   ;;  %s1247_s21 = sphi %s1290_s21, %s1492_s21   ;;  %s1243_s20 = sphi %s1288_s20, %s1491_s20   ;;  %s1239_s19 = sphi %s1286_s19, %s1490_s19   ;;  %s1235_s18 = sphi %s1284_s18, %s1489_s18  }
   0x4   : > { %p25_p0 = scmp.ge.s32.totalorder %s24_s23, 6  ;;  %p44_p2 = scmp.eq.s32.totalorder %s1251_s22, 0 }
   0x5   : > { %s36_s25 = sadd.s32 1, %s1239_s19  ;;  %p898_p5 = scmp.ge.s32.totalorder %s1251_s22, 6 }
   0x6   : > { %s1494_s23 = smov (%p25_p0, %s24_s23), 0  ;;  %p45_p3 = por %p44_p2, %p43_p1 }
   0x7   : > { %s32_s24 = ssub.s32 %s1247_s21, %s1494_s23  ;;  %205 = sbr.rel (%p898_p5) target bundleno = 21 (0x15), region = 28 }
   0x8   : > { %p34_p4 = scmp.eq.s32.totalorder %s32_s24, 0 }
   0xa   : > { %s1319_s26 = scalar_select %p34_p4, %s1239_s19, %s36_s25  }
   0xc   : > { %208 = sbr.rel (!%p45_p3) target bundleno = 21 (0x15), region = 32  ;;  %s210_s27 = sand.u32 (%p45_p3), 1, %s1239_s19  }
   0xd   : > { %s1117_s28 = smul.u32 (%p45_p3), 12, %s1247_s21 }
   0xe   : > { %s1170_s29 = smul.u32 (%p45_p3), 24, %s210_s27 }
   0xf   : > { %s218_s7 = scalar_lea.vmem (%p45_p3), %s1483_s0, %s1117_s28 }
  0x10   : > { %v233_v0 = vld [vmem:[%s218_s7] sm:$0xff] (%p45_p3)  ;;  %v235_v1 = vld [vmem:[%s218_s7 + $0x48] sm:$0xff] (%p45_p3)  ;;  %s212_s8 = scalar_lea.vmem (%p45_p3), [#allocation3], %s1170_s29  ;;  %v902_v3 = vld [vmem:[%s218_s7 + $0x50] sm:$0xf] (%p45_p3) }
  0x11   : > { %v900_v2 = vld [vmem:[%s218_s7 + $0x8] sm:$0xf]  ;;  %234 = vst [vmem:[%s212_s8] sm:$0xff] %v233_v0 }
  0x12   : > { %236 = vst [vmem:[%s212_s8 + $0xc] sm:$0xff] %v235_v1 }
  0x13   : > { %901 = vst [vmem:[%s212_s8 + $0x8] sm:$0xf] %v900_v2 }
  0x14   : > { %903 = vst [vmem:[%s212_s8 + $0x14] sm:$0xf] %v902_v3 }
  0x15 PF: > { %p904_p6 = scmp.ge.s32.totalorder %s1251_s22, 1  ;;  %p263_p7 = scmp.lt.s32.totalorder %s1251_s22, 7 }
  0x17   : > { %p264_p8 = pnand %p904_p6, %p263_p7 }
  0x18   : > { %s270_s9 = sand.u32 (!%p264_p8), 1, %s1235_s18   ;;  %s312_s10 = smul.u32 (!%p264_p8), 48, %s1243_s20 }
  0x19   : > { %267 = sbr.rel (%p264_p8) target bundleno = 265 (0x109), region = 62  ;;  %p907_p10 = scmp.ne.s32.totalorder (!%p264_p8), %s1243_s20, 0 }
  0x1a   : > { %s1171_s11 = smul.u32 (!%p264_p8), 24, %s270_s9  ;;  %p313_p9 = scmp.lt.s32.totalorder (!%p264_p8), %s312_s10, 287 }
  0x1c   : > { %s1336_s16 = scalar_lea.vmem (!%p264_p8), [#allocation3], %s1171_s11 }
  0x1e   : > { %s1496_s10 = smov (!%p313_p9, %s312_s10), 287  ;;  %336 = sbr.rel (%p907_p10) target bundleno = 40 (0x28), region = 70 }
  0x1f   : > { %s1118_s12 = sshll.u32 %s1496_s10, 3 }
  0x20   : > { %s1334_s15 = scalar_lea.vmem %s1484_s1, %s1118_s12 }
  0x23   : > { %v1253_v4 = vmov 0.0  }
  0x24   : > { %337 = vst [vmem:[#allocation2 + $0x10] sm:$0xff] %v1253_v4 }
  0x25   : > { %338 = vst [vmem:[#allocation2] sm:$0xff] %v1253_v4 }
  0x26   : > { %339 = vst [vmem:[#allocation2 + $0x18] sm:$0xff] %v1253_v4 }
  0x27   : > { %340 = vst [vmem:[#allocation2 + $0x8] sm:$0xff] %v1253_v4 }
  0x28 PF: > { %v978_v5 = vld [vmem:[%s1334_s15 + $0x70] sm:$0xf]  ;;  %v1137_v6 = vld [vmem:[%s1334_s15 + $0x74] sm:$0xf0]  ;;  %v970_v14 = vld [vmem:[%s1334_s15 + $0x60] sm:$0xf] }
  0x29   : > { %v1042_v7 = vld [vmem:[%s1334_s15 + $0xf0] sm:$0xf]  ;;  %v979_v8 = vor.u32 %v1137_v6, %v978_v5  ;;  %v1153_v9 = vld [vmem:[%s1334_s15 + $0xf4] sm:$0xf0]  ;;  %v1135_v15 = vld [vmem:[%s1334_s15 + $0x64] sm:$0xf0] }
  0x2a   : > { %v1106_v10 = vld [vmem:[%s1334_s15 + $0x170] sm:$0xf]  ;;  %v1169_v11 = vld [vmem:[%s1334_s15 + $0x174] sm:$0xf0]  ;;  %v1043_v12 = vor.u32 %v1153_v9, %v1042_v7  ;;  %v1034_v16 = vld [vmem:[%s1334_s15 + $0xe0] sm:$0xf]  ;;  %v971_v17 = vor.u32 %v1135_v15, %v970_v14 }
  0x2b   : > { %v1107_v13 = vor.u32 %v1169_v11, %v1106_v10  ;;  %653 = vmatpush.bf16.msra.mxu0 %v979_v8  ;;  %v1151_v18 = vld [vmem:[%s1334_s15 + $0xe4] sm:$0xf0]  ;;  %v1098_v19 = vld [vmem:[%s1334_s15 + $0x160] sm:$0xf]  ;;  %v962_v23 = vld [vmem:[%s1334_s15 + $0x50] sm:$0xf] }
  0x2c   : > { %v1167_v20 = vld [vmem:[%s1334_s15 + $0x164] sm:$0xf0]  ;;  %667 = vmatpush.bf16.msra.mxu1 %v1043_v12  ;;  %v1035_v21 = vor.u32 %v1151_v18, %v1034_v16  ;;  %v1133_v24 = vld [vmem:[%s1334_s15 + $0x54] sm:$0xf0]  ;;  %v1026_v25 = vld [vmem:[%s1334_s15 + $0xd0] sm:$0xf] }
  0x2d   : > { %681 = vmatpush.bf16.msra.mxu2 %v1107_v13  ;;  %v1099_v22 = vor.u32 %v1167_v20, %v1098_v19  ;;  %v1149_v26 = vld [vmem:[%s1334_s15 + $0xd4] sm:$0xf0]  ;;  %v1090_v27 = vld [vmem:[%s1334_s15 + $0x150] sm:$0xf]  ;;  %v963_v29 = vor.u32 %v1133_v24, %v962_v23  ;;  %v954_v30 = vld [vmem:[%s1334_s15 + $0x40] sm:$0xf] }
  0x2e   : > { %v1165_v28 = vld [vmem:[%s1334_s15 + $0x154] sm:$0xf0]  ;;  %v1131_v31 = vld [vmem:[%s1334_s15 + $0x44] sm:$0xf0]  ;;  %v1027_v32 = vor.u32 %v1149_v26, %v1026_v25  ;;  %v1018_v34 = vld [vmem:[%s1334_s15 + $0xc0] sm:$0xf] }
  0x2f   : > { %654 = vmatpush.bf16.msra.mxu0 %v971_v17  ;;  %v1091_v33 = vor.u32 %v1165_v28, %v1090_v27  ;;  %v1136_v35 = vld [vmem:[%s1334_s15 + $0x74] sm:$0xf]  ;;  %v980_v36 = vld [vmem:[%s1334_s15 + $0x78] sm:$0xf0]  ;;  %v1147_v37 = vld [vmem:[%s1334_s15 + $0xc4] sm:$0xf0]  ;;  %v955_v42 = vor.u32 %v1131_v31, %v954_v30 }
  0x30   : > { %668 = vmatpush.bf16.msra.mxu1 %v1035_v21  ;;  %v1082_v38 = vld [vmem:[%s1334_s15 + $0x140] sm:$0xf]  ;;  %v1163_v39 = vld [vmem:[%s1334_s15 + $0x144] sm:$0xf0]  ;;  %v983_v40 = vor.u32 %v1136_v35, %v980_v36  ;;  %v1134_v41 = vld [vmem:[%s1334_s15 + $0x64] sm:$0xf]  ;;  %v1019_v46 = vor.u32 %v1147_v37, %v1018_v34 }
  0x31   : > { %682 = vmatpush.bf16.msra.mxu2 %v1099_v22  ;;  %v946_v43 = vld [vmem:[%s1334_s15 + $0x30] sm:$0xf]  ;;  %v1129_v44 = vld [vmem:[%s1334_s15 + $0x34] sm:$0xf0]  ;;  %v972_v45 = vld [vmem:[%s1334_s15 + $0x68] sm:$0xf0]  ;;  %v1083_v47 = vor.u32 %v1163_v39, %v1082_v38 }
  0x32   : > { %695 = vmatpush.bf16.msra.mxu3 %v983_v40  ;;  %v1010_v48 = vld [vmem:[%s1334_s15 + $0xb0] sm:$0xf]  ;;  %v1145_v49 = vld [vmem:[%s1334_s15 + $0xb4] sm:$0xf0]  ;;  %v975_v51 = vor.u32 %v1134_v41, %v972_v45  ;;  %v1132_v53 = vld [vmem:[%s1334_s15 + $0x54] sm:$0xf]  ;;  %v947_v55 = vor.u32 %v1129_v44, %v946_v43 }
  0x33   : > { %655 = vmatpush.bf16.msra.mxu0 %v963_v29  ;;  %v1074_v50 = vld [vmem:[%s1334_s15 + $0x130] sm:$0xf]  ;;  %v1161_v52 = vld [vmem:[%s1334_s15 + $0x134] sm:$0xf0]  ;;  %v964_v54 = vld [vmem:[%s1334_s15 + $0x58] sm:$0xf0]  ;;  %v1011_v59 = vor.u32 %v1145_v49, %v1010_v48 }
  0x34   : > { %669 = vmatpush.bf16.msra.mxu1 %v1027_v32  ;;  %v938_v56 = vld [vmem:[%s1334_s15 + $0x20] sm:$0xf]  ;;  %v1127_v57 = vld [vmem:[%s1334_s15 + $0x24] sm:$0xf0]  ;;  %v967_v58 = vor.u32 %v1132_v53, %v964_v54  ;;  %v1075_v60 = vor.u32 %v1161_v52, %v1074_v50  ;;  %v1130_v62 = vld [vmem:[%s1334_s15 + $0x44] sm:$0xf] }
  0x35   : > { %683 = vmatpush.bf16.msra.mxu2 %v1091_v33  ;;  %v1002_v61 = vld [vmem:[%s1334_s15 + $0xa0] sm:$0xf]  ;;  %v956_v63 = vld [vmem:[%s1334_s15 + $0x48] sm:$0xf0]  ;;  %v1143_v0 = vld [vmem:[%s1334_s15 + $0xa4] sm:$0xf0]  ;;  %v939_v3 = vor.u32 %v1127_v57, %v938_v56 }
  0x36   : > { %696 = vmatpush.bf16.msra.mxu3 %v975_v51  ;;  %v1066_v1 = vld [vmem:[%s1334_s15 + $0x120] sm:$0xf]  ;;  %v1159_v2 = vld [vmem:[%s1334_s15 + $0x124] sm:$0xf0]  ;;  %v930_v4 = vld [vmem:[%s1334_s15 + $0x10] sm:$0xf]  ;;  %v959_v6 = vor.u32 %v1130_v62, %v956_v63  ;;  %v1003_v7 = vor.u32 %v1143_v0, %v1002_v61 }
  0x37   : > { %656 = vmatpush.bf16.msra.mxu0 %v955_v42  ;;  %v1125_v5 = vld [vmem:[%s1334_s15 + $0x14] sm:$0xf0]  ;;  %v1067_v8 = vor.u32 %v1159_v2, %v1066_v1  ;;  %v994_v9 = vld [vmem:[%s1334_s15 + $0x90] sm:$0xf]  ;;  %v1128_v10 = vld [vmem:[%s1334_s15 + $0x34] sm:$0xf] }
  0x38   : > { %670 = vmatpush.bf16.msra.mxu1 %v1019_v46  ;;  %v948_v11 = vld [vmem:[%s1334_s15 + $0x38] sm:$0xf0]  ;;  %v1141_v12 = vld [vmem:[%s1334_s15 + $0x94] sm:$0xf0]  ;;  %v1058_v13 = vld [vmem:[%s1334_s15 + $0x110] sm:$0xf]  ;;  %v931_v15 = vor.u32 %v1125_v5, %v930_v4 }
  0x39   : > { %684 = vmatpush.bf16.msra.mxu2 %v1083_v47  ;;  %v1157_v14 = vld [vmem:[%s1334_s15 + $0x114] sm:$0xf0]  ;;  %v922_v16 = vld [vmem:[%s1334_s15] sm:$0xf]  ;;  %v1123_v17 = vld [vmem:[%s1334_s15 + $0x4] sm:$0xf0]  ;;  %v951_v19 = vor.u32 %v1128_v10, %v948_v11  ;;  %v995_v20 = vor.u32 %v1141_v12, %v994_v9 }
  0x3a   : > { %697 = vmatpush.bf16.msra.mxu3 %v967_v58  ;;  %v986_v18 = vld [vmem:[%s1334_s15 + $0x80] sm:$0xf]  ;;  %v1059_v21 = vor.u32 %v1157_v14, %v1058_v13  ;;  %v1139_v22 = vld [vmem:[%s1334_s15 + $0x84] sm:$0xf0]  ;;  %v1126_v23 = vld [vmem:[%s1334_s15 + $0x24] sm:$0xf]  ;;  %v923_v31 = vor.u32 %v1123_v17, %v922_v16 }
  0x3b   : > { %657 = vmatpush.bf16.msra.mxu0 %v947_v55  ;;  %v940_v24 = vld [vmem:[%s1334_s15 + $0x28] sm:$0xf0]  ;;  %v1050_v25 = vld [vmem:[%s1334_s15 + $0x100] sm:$0xf]  ;;  %v1155_v26 = vld [vmem:[%s1334_s15 + $0x104] sm:$0xf0]  ;;  %v987_v36 = vor.u32 %v1139_v22, %v986_v18 }
  0x3c   : > { %671 = vmatpush.bf16.msra.mxu1 %v1011_v59  ;;  %v1152_v27 = vld [vmem:[%s1334_s15 + $0xf4] sm:$0xf]  ;;  %v1044_v28 = vld [vmem:[%s1334_s15 + $0xf8] sm:$0xf0]  ;;  %v918_v32 = vld [vmem:[%s1336_s16 + $0x8] sm:$0xf]  ;;  %v943_v33 = vor.u32 %v1126_v23, %v940_v24  ;;  %v1051_v37 = vor.u32 %v1155_v26, %v1050_v25 }
  0x3d   : > { %685 = vmatpush.bf16.msra.mxu2 %v1075_v60  ;;  %v1168_v29 = vld [vmem:[%s1334_s15 + $0x174] sm:$0xf]  ;;  %v1108_v30 = vld [vmem:[%s1334_s15 + $0x178] sm:$0xf0]  ;;  %v910_v34 = vld [vmem:[%s1336_s16] sm:$0xf]  ;;  %v1047_v41 = vor.u32 %v1152_v27, %v1044_v28 }
  0x3e   : > { %698 = vmatpush.bf16.msra.mxu3 %v959_v6  ;;  %v1120_v35 = vld [vmem:[%s1336_s16 + $0x8] sm:$0xf0]  ;;  %v1121_v38 = vld [vmem:[%s1336_s16 + $0x10] sm:$0xf0]  ;;  %v1119_v39 = vld [vmem:[%s1336_s16 + $0x4] sm:$0xf]  ;;  %v1111_v42 = vor.u32 %v1168_v29, %v1108_v30 }
  0x3f   : > { %658 = vmatpush.bf16.msra.mxu0 %v939_v3  ;;  %v912_v40 = vld [vmem:[%s1336_s16 + $0xc] sm:$0xf0]  ;;  %v1150_v43 = vld [vmem:[%s1334_s15 + $0xe4] sm:$0xf]  ;;  %v1124_v44 = vld [vmem:[%s1334_s15 + $0x14] sm:$0xf]  ;;  %v911_v49 = vor.u32 %v1120_v35, %v910_v34  ;;  %v1415_v50 = vor.u32 %v1121_v38, %v918_v32 }
  0x40   : > { %672 = vmatpush.bf16.msra.mxu1 %v1003_v7  ;;  %v932_v45 = vld [vmem:[%s1334_s15 + $0x18] sm:$0xf0]  ;;  %v1036_v46 = vld [vmem:[%s1334_s15 + $0xe8] sm:$0xf0]  ;;  %v1166_v47 = vld [vmem:[%s1334_s15 + $0x164] sm:$0xf]  ;;  %v1417_v51 = vor.u32 %v1119_v39, %v912_v40 }
  0x41   : > { %686 = vmatpush.bf16.msra.mxu2 %v1067_v8  ;;  %v1100_v48 = vld [vmem:[%s1334_s15 + $0x168] sm:$0xf0]  ;;  %v935_v52 = vor.u32 %v1124_v44, %v932_v45  ;;  %v1039_v53 = vor.u32 %v1150_v43, %v1036_v46  ;;  %v1148_v55 = vld [vmem:[%s1334_s15 + $0xd4] sm:$0xf]  ;;  %v1122_v56 = vld [vmem:[%s1334_s15 + $0x4] sm:$0xf] }
  0x42   : > { %699 = vmatpush.bf16.msra.mxu3 %v951_v19  ;;  %v1103_v54 = vor.u32 %v1166_v47, %v1100_v48  ;;  %v924_v57 = vld [vmem:[%s1334_s15 + $0x8] sm:$0xf0]  ;;  %v1028_v58 = vld [vmem:[%s1334_s15 + $0xd8] sm:$0xf0]  ;;  %v1164_v59 = vld [vmem:[%s1334_s15 + $0x154] sm:$0xf] }
  0x43   : > { %659 = vmatpush.bf16.msra.mxu0 %v931_v15  ;;  %v1092_v60 = vld [vmem:[%s1334_s15 + $0x158] sm:$0xf0]  ;;  %v927_v61 = vor.u32 %v1122_v56, %v924_v57  ;;  %v1031_v62 = vor.u32 %v1148_v55, %v1028_v58  ;;  %v1146_v0 = vld [vmem:[%s1334_s15 + $0xc4] sm:$0xf]  ;;  %v1020_v1 = vld [vmem:[%s1334_s15 + $0xc8] sm:$0xf0] }
  0x44   : > { %673 = vmatpush.bf16.msra.mxu1 %v995_v20  ;;  %v1095_v63 = vor.u32 %v1164_v59, %v1092_v60  ;;  %v1162_v2 = vld [vmem:[%s1334_s15 + $0x144] sm:$0xf]  ;;  %v1084_v3 = vld [vmem:[%s1334_s15 + $0x148] sm:$0xf0]  ;;  %v1023_v4 = vor.u32 %v1146_v0, %v1020_v1  ;;  %v1144_v6 = vld [vmem:[%s1334_s15 + $0xb4] sm:$0xf] }
  0x45   : > { %687 = vmatpush.bf16.msra.mxu2 %v1059_v21  ;;  %v1087_v5 = vor.u32 %v1162_v2, %v1084_v3  ;;  %v1012_v7 = vld [vmem:[%s1334_s15 + $0xb8] sm:$0xf0]  ;;  %v1160_v8 = vld [vmem:[%s1334_s15 + $0x134] sm:$0xf]  ;;  %v1142_v12 = vld [vmem:[%s1334_s15 + $0xa4] sm:$0xf] }
  0x46   : > { %700 = vmatpush.bf16.msra.mxu3 %v943_v33  ;;  %v1076_v9 = vld [vmem:[%s1334_s15 + $0x138] sm:$0xf0]  ;;  %v1015_v10 = vor.u32 %v1144_v6, %v1012_v7  ;;  %v1004_v13 = vld [vmem:[%s1334_s15 + $0xa8] sm:$0xf0]  ;;  %v1158_v14 = vld [vmem:[%s1334_s15 + $0x124] sm:$0xf] }
  0x47   : > { %660 = vmatpush.bf16.msra.mxu0 %v923_v31  ;;  %v1079_v11 = vor.u32 %v1160_v8, %v1076_v9  ;;  %v1068_v15 = vld [vmem:[%s1334_s15 + $0x128] sm:$0xf0]  ;;  %v1007_v16 = vor.u32 %v1142_v12, %v1004_v13  ;;  %v1140_v18 = vld [vmem:[%s1334_s15 + $0x94] sm:$0xf]  ;;  %v996_v19 = vld [vmem:[%s1334_s15 + $0x98] sm:$0xf0] }
  0x48   : > { %674 = vmatpush.bf16.msra.mxu1 %v987_v36  ;;  %v1071_v17 = vor.u32 %v1158_v14, %v1068_v15  ;;  %v1156_v20 = vld [vmem:[%s1334_s15 + $0x114] sm:$0xf]  ;;  %v1060_v21 = vld [vmem:[%s1334_s15 + $0x118] sm:$0xf0]  ;;  %v999_v22 = vor.u32 %v1140_v18, %v996_v19  ;;  %v1138_v24 = vld [vmem:[%s1334_s15 + $0x84] sm:$0xf] }
  0x49   : > { %688 = vmatpush.bf16.msra.mxu2 %v1051_v37  ;;  %v1063_v23 = vor.u32 %v1156_v20, %v1060_v21  ;;  %v988_v25 = vld [vmem:[%s1334_s15 + $0x88] sm:$0xf0]  ;;  %v1154_v26 = vld [vmem:[%s1334_s15 + $0x104] sm:$0xf]  ;;  %v341_v33 = vld [vmem:[#allocation2 + $0x10] sm:$0xff]  ;;  %p1112_p11 = scmp.ne.s32.totalorder %s1243_s20, 5 }
  0x4a   : > { %661 = vmatmul.bf16.vlgmr.msra.gmra.mxu0 %v911_v49  ;;  %701 = vmatpush.bf16.msra.mxu3 %v935_v52  ;;  %v1052_v27 = vld [vmem:[%s1334_s15 + $0x108] sm:$0xf0]  ;;  %v991_v28 = vor.u32 %v1138_v24, %v988_v25  ;;  %v343_v40 = vld [vmem:[#allocation2 + $0x18] sm:$0xff]  ;;  %v342_v48 = vld [vmem:[#allocation2] sm:$0xff] }
  0x4b   : > { %709 = vmatpush.bf16.msrb.mxu0 %v1047_v41  ;;  %675 = vmatmul.bf16.vlgmr.msra.gmra.mxu1 %v1417_v51  ;;  %v1055_v29 = vor.u32 %v1154_v26, %v1052_v27 }
  0x4c   : > { %723 = vmatpush.bf16.msrb.mxu1 %v1111_v42  ;;  %689 = vmatmul.bf16.vlgmr.msra.gmra.mxu2 %v1415_v50 }
  0x4e   : > { %702 = vmatpush.bf16.msra.mxu3 %v927_v61 }
  0x4f   : > { %710 = vmatpush.bf16.msrb.mxu0 %v1039_v53 }
  0x50   : > { %724 = vmatpush.bf16.msrb.mxu1 %v1103_v54  ;;  %v344_v54 = vld [vmem:[#allocation2 + $0x8] sm:$0xff] }
  0x51   : > { %703 = vmatmul.bf16.vlgmr.msra.gmra.mxu3 %v911_v49 }
  0x53   : > { %711 = vmatpush.bf16.msrb.mxu0 %v1031_v62 }
  0x54   : > { %725 = vmatpush.bf16.msrb.mxu1 %v1095_v63 }
  0x57   : > { %712 = vmatpush.bf16.msrb.mxu0 %v1023_v4 }
  0x58   : > { %726 = vmatpush.bf16.msrb.mxu1 %v1087_v5 }
  0x5b   : > { %713 = vmatpush.bf16.msrb.mxu0 %v1015_v10 }
  0x5c   : > { %727 = vmatpush.bf16.msrb.mxu1 %v1079_v11 }
  0x5f   : > { %714 = vmatpush.bf16.msrb.mxu0 %v1007_v16 }
  0x60   : > { %728 = vmatpush.bf16.msrb.mxu1 %v1071_v17 }
  0x63   : > { %715 = vmatpush.bf16.msrb.mxu0 %v999_v22 }
  0x64   : > { %729 = vmatpush.bf16.msrb.mxu1 %v1063_v23 }
  0x67   : > { %716 = vmatpush.bf16.msrb.mxu0 %v991_v28 }
  0x68   : > { %730 = vmatpush.bf16.msrb.mxu1 %v1055_v29 }
  0x6a   : > { %717 = vmatmul.bf16.vlgmr.msrb.gmra.mxu0 %v1417_v51 }
  0x6b   : > { %731 = vmatmul.bf16.vlgmr.msrb.gmra.mxu1 %v1415_v50 }
  0xc7   : > { %v662_v30 = vpop.f32.mrf.mxu0 }
  0xc8   : > { %v676_v31 = vpop.f32.mrf.mxu1 }
  0xc9   : > { %v677_v32 = vadd.f32 %v676_v31, %v662_v30 }
  0xcf   : > { %v690_v34 = vpop.f32.mrf.mxu2  ;;  %v664_v36 = vpop.f32.mrf.mxu0 }
  0xd0   : > { %v691_v35 = vadd.f32 %v690_v34, %v677_v32  ;;  %v678_v37 = vpop.f32.mrf.mxu1 }
  0xd1   : > { %v679_v39 = vadd.f32 %v678_v37, %v664_v36 }
  0xd2   : > { %v737_v38 = vadd.f32 %v691_v35, %v341_v33 }
  0xd4   : > { %741 = vst [vmem:[#allocation2 + $0x10] sm:$0xff] %v737_v38  ;;  %v704_v44 = vpop.f32.mrf.mxu3 }
  0xd7   : > { %v692_v41 = vpop.f32.mrf.mxu2 }
  0xd8   : > { %v693_v42 = vadd.f32 %v692_v41, %v679_v39 }
  0xda   : > { %v739_v43 = vadd.f32 %v693_v42, %v343_v40 }
  0xdc   : > { %743 = vst [vmem:[#allocation2 + $0x18] sm:$0xff] %v739_v43  ;;  %v706_v51 = vpop.f32.mrf.mxu3 }
  0xe7   : > { %v718_v45 = vpop.f32.mrf.mxu0 }
  0xe8   : > { %v732_v46 = vpop.f32.mrf.mxu1  ;;  %v719_v47 = vadd.f32 %v718_v45, %v704_v44 }
  0xea   : > { %v733_v49 = vadd.f32 %v732_v46, %v719_v47 }
  0xec   : > { %v738_v50 = vadd.f32 %v733_v49, %v342_v48 }
  0xee   : > { %742 = vst [vmem:[#allocation2] sm:$0xff] %v738_v50 }
  0xef   : > { %v720_v52 = vpop.f32.mrf.mxu0 }
  0xf0   : > { %v721_v53 = vadd.f32 %v720_v52, %v706_v51  ;;  %v734_v55 = vpop.f32.mrf.mxu1 }
  0xf2   : > { %v735_v56 = vadd.f32 %v734_v55, %v721_v53  ;;  %748 = sbr.rel (%p1112_p11) target bundleno = 265 (0x109), region = 74 }
  0xf4   : > { %v740_v57 = vadd.f32 %v735_v56, %v344_v54 }
  0xf6   : > { %744 = vst [vmem:[#allocation2 + $0x8] sm:$0xff] %v740_v57 }
  0xf7   : > { %v749_v58 = vld [vmem:[#allocation2 + $0x10] sm:$0xff]  ;;  %v750_v59 = vld [vmem:[#allocation2] sm:$0xff]  ;;  %v751_v1 = vld [vmem:[#allocation2 + $0x18] sm:$0xff] }
  0xf8   : > { %v753_v60 = vld [vmem:[%s1485_s2] sm:$0x3]  ;;  %v774_v7 = vld [vmem:[%s1487_s4 + $0x8] sm:$0xff] }
  0xf9   : > { %v755_v61 = vperm.slane %v753_v60, 0  ;;  %v756_v62 = vperm.slane %v753_v60, 1  ;;  %v763_v63 = vld [vmem:[%s1486_s3] sm:$0x3]  ;;  %v777_v12 = vunpack.c.l.bf16 %v774_v7  ;;  %v778_v13 = vunpack.c.h.bf16 %v774_v7 }
  0xfa   : > { %v773_v0 = vld [vmem:[%s1487_s4] sm:$0xff]  ;;  %v765_v2 = vperm.slane %v763_v63, 0  ;;  %v766_v3 = vperm.slane %v763_v63, 1 }
  0xfb   : > { %v775_v4 = vunpack.c.l.bf16 %v773_v0  ;;  %v776_v5 = vunpack.c.h.bf16 %v773_v0  ;;  %v759_v8 = vmul.f32 %v755_v61, %v749_v58  ;;  %v760_v9 = vmul.f32 %v756_v62, %v750_v59 }
  0xfc   : > { %v761_v10 = vmul.f32 %v755_v61, %v751_v1 }
  0xfd   : > { %v752_v6 = vld [vmem:[#allocation2 + $0x8] sm:$0xff]  ;;  %v769_v14 = vadd.f32 %v765_v2, %v759_v8  ;;  %v770_v15 = vadd.f32 %v766_v3, %v760_v9 }
  0xfe   : > { %v762_v11 = vmul.f32 %v756_v62, %v752_v6  ;;  %v771_v16 = vadd.f32 %v765_v2, %v761_v10 }
  0xff   : > { %v779_v18 = vadd.f32 %v775_v4, %v769_v14  ;;  %v780_v19 = vadd.f32 %v776_v5, %v770_v15 }
 0x100   : > { %v772_v17 = vadd.f32 %v766_v3, %v762_v11  ;;  %v781_v20 = vadd.f32 %v777_v12, %v771_v16 }
 0x101   : > { %v783_v22 = vmax.f32 %v779_v18, 0.0  ;;  %v784_v23 = vmax.f32 %v780_v19, 0.0 }
 0x102   : > { %v782_v21 = vadd.f32 %v778_v13, %v772_v17  ;;  %v785_v24 = vmax.f32 %v781_v20, 0.0 }
 0x103   : > { %v787_v26 = vpack.c.bf16 %v784_v23, %v783_v22 }
 0x104   : > { %v786_v25 = vmax.f32 %v782_v21, 0.0 }
 0x105   : > { %789 = vst [vmem:[%s1488_s5] sm:$0xff] %v787_v26 }
 0x106   : > { %v788_v27 = vpack.c.bf16 %v786_v25, %v785_v24 }
 0x108   : > { %790 = vst [vmem:[%s1488_s5 + $0x8] sm:$0xff] %v788_v27 }
 0x109 PF: > { %s15_s22 = sadd.s32 1, %s1251_s22   ;;  %s1489_s18 = smov %s1239_s19 }
 0x10a   : > { %p12_p12 = scmp.ge.s32.totalorder %s15_s22, 8   ;;  %s1490_s19 = smov %s1319_s26 }
 0x10b   : > { %s1491_s20 = smov %s1247_s21  ;;  %s1492_s21 = smov %s1494_s23 }
 0x10c   :  { %14 = sbr.rel (!%p12_p12) target bundleno = 3 (0x3), region = 121 }

// kernel: _lambda_.24
= control target key start
LH: loop header
LB: loop body
LE: loop exit
PB: predicated region body
PF: predicated region fallthrough
CT: control target
= control target key end

     0   :  { %s1857_s15 = smov 0   ;;  %s1859_s16 = smov 0   ;;  %s2162_s0 = inlined_call_operand.vmem [shape: bf16[16,2304], index: 0, kind: input, shape index: {}]   ;;  %s2163_s1 = inlined_call_operand.vmem [shape: bf16[2304,512], index: 1, kind: input, shape index: {}]   ;;  %s2164_s2 = inlined_call_operand.vmem [shape: f32[1,512], index: 2, kind: input, shape index: {}]   ;;  %s2165_s3 = inlined_call_operand.vmem [shape: f32[1,512], index: 3, kind: input, shape index: {}]   ;;  %s2166_s4 = inlined_call_operand.vmem [shape: bf16[16,512], index: 4, kind: output, shape index: {}]  }
   0x1   :  { %s1861_s17 = smov 0   ;;  %s1863_s18 = smov 0  }
   0x2   :  { %s1865_s19 = smov 0  }
   0x3 LB: > { %s23_s20 = sadd.s32 1, %s1825_s18  ;;  %p42_p1 = scmp.ne.s32.totalorder %s1817_s16, %s1813_s15  ;;  %s1829_s19 = sphi %s1865_s19, %s14_s19   ;;  %s1825_s18 = sphi %s1863_s18, %s2170_s18   ;;  %s1821_s17 = sphi %s1861_s17, %s2169_s17   ;;  %s1817_s16 = sphi %s1859_s16, %s2168_s16   ;;  %s1813_s15 = sphi %s1857_s15, %s2167_s15  }
   0x4   : > { %p24_p0 = scmp.ge.s32.totalorder %s23_s20, 6  ;;  %p43_p2 = scmp.eq.s32.totalorder %s1829_s19, 0 }
   0x5   : > { %s35_s22 = sadd.s32 1, %s1817_s16  ;;  %p1236_p5 = scmp.ge.s32.totalorder %s1829_s19, 6 }
   0x6   : > { %s2172_s20 = smov (%p24_p0, %s23_s20), 0  ;;  %p44_p3 = por %p43_p2, %p42_p1 }
   0x7   : > { %s31_s21 = ssub.s32 %s1825_s18, %s2172_s20  ;;  %168 = sbr.rel (%p1236_p5) target bundleno = 21 (0x15), region = 24 }
   0x8   : > { %p33_p4 = scmp.eq.s32.totalorder %s31_s21, 0 }
   0xa   : > { %s1892_s23 = scalar_select %p33_p4, %s1817_s16, %s35_s22  }
   0xc   : > { %171 = sbr.rel (!%p44_p3) target bundleno = 21 (0x15), region = 28  ;;  %s173_s24 = sand.u32 (%p44_p3), 1, %s1817_s16  }
   0xd   : > { %s1647_s25 = smul.u32 (%p44_p3), 12, %s1825_s18 }
   0xe   : > { %s1748_s26 = smul.u32 (%p44_p3), 24, %s173_s24 }
   0xf   : > { %s181_s29 = scalar_lea.vmem (%p44_p3), %s2162_s0, %s1647_s25 }
  0x10   : > { %v196_v0 = vld [vmem:[%s181_s29] sm:$0xff] (%p44_p3)  ;;  %v198_v1 = vld [vmem:[%s181_s29 + $0x48] sm:$0xff] (%p44_p3)  ;;  %s175_s30 = scalar_lea.vmem (%p44_p3), [#allocation3], %s1748_s26  ;;  %v1240_v3 = vld [vmem:[%s181_s29 + $0x50] sm:$0xf] (%p44_p3) }
  0x11   : > { %v1238_v2 = vld [vmem:[%s181_s29 + $0x8] sm:$0xf]  ;;  %197 = vst [vmem:[%s175_s30] sm:$0xff] %v196_v0 }
  0x12   : > { %199 = vst [vmem:[%s175_s30 + $0xc] sm:$0xff] %v198_v1 }
  0x13   : > { %1239 = vst [vmem:[%s175_s30 + $0x8] sm:$0xf] %v1238_v2 }
  0x14   : > { %1241 = vst [vmem:[%s175_s30 + $0x14] sm:$0xf] %v1240_v3 }
  0x15 PF: > { %p1242_p6 = scmp.ge.s32.totalorder %s1829_s19, 1  ;;  %p226_p7 = scmp.lt.s32.totalorder %s1829_s19, 7 }
  0x17   : > { %p227_p8 = pnand %p1242_p6, %p226_p7 }
  0x18   : > { %s233_s5 = sand.u32 (!%p227_p8), 1, %s1813_s15   ;;  %s267_s6 = smul.u32 (!%p227_p8), 48, %s1821_s17 }
  0x19   : > { %230 = sbr.rel (%p227_p8) target bundleno = 307 (0x133), region = 58  ;;  %p1245_p10 = scmp.ne.s32.totalorder (!%p227_p8), %s1821_s17, 0 }
  0x1a   : > { %s1749_s7 = smul.u32 (!%p227_p8), 24, %s233_s5  ;;  %p268_p9 = scmp.lt.s32.totalorder (!%p227_p8), %s267_s6, 287 }
  0x1c   : > { %s1909_s12 = scalar_lea.vmem (!%p227_p8), [#allocation3], %s1749_s7 }
  0x1e   : > { %s2174_s6 = smov (!%p268_p9, %s267_s6), 287  ;;  %284 = sbr.rel (%p1245_p10) target bundleno = 44 (0x2c), region = 66 }
  0x1f   : > { %s1648_s8 = sshll.u32 %s2174_s6, 4 }
  0x20   : > { %s1907_s11 = scalar_lea.vmem %s2163_s1, %s1648_s8 }
  0x23   : > { %v1831_v4 = vmov 0.0  }
  0x24   : > { %285 = vst [vmem:[#allocation2 + $0x30] sm:$0xff] %v1831_v4 }
  0x25   : > { %286 = vst [vmem:[#allocation2] sm:$0xff] %v1831_v4 }
  0x26   : > { %287 = vst [vmem:[#allocation2 + $0x18] sm:$0xff] %v1831_v4 }
  0x27   : > { %288 = vst [vmem:[#allocation2 + $0x10] sm:$0xff] %v1831_v4 }
  0x28   : > { %289 = vst [vmem:[#allocation2 + $0x8] sm:$0xff] %v1831_v4 }
  0x29   : > { %290 = vst [vmem:[#allocation2 + $0x20] sm:$0xff] %v1831_v4 }
  0x2a   : > { %291 = vst [vmem:[#allocation2 + $0x28] sm:$0xff] %v1831_v4 }
  0x2b   : > { %292 = vst [vmem:[#allocation2 + $0x38] sm:$0xff] %v1831_v4 }
  0x2c PF: > { %v1372_v5 = vld [vmem:[%s1907_s11 + $0xe0] sm:$0xf]  ;;  %v1682_v6 = vld [vmem:[%s1907_s11 + $0xec] sm:$0xf0]  ;;  %v1680_v14 = vld [vmem:[%s1907_s11 + $0xe4] sm:$0xf] }
  0x2d   : > { %v1500_v7 = vld [vmem:[%s1907_s11 + $0x1e0] sm:$0xf]  ;;  %v1373_v8 = vor.u32 %v1682_v6, %v1372_v5  ;;  %v1714_v9 = vld [vmem:[%s1907_s11 + $0x1ec] sm:$0xf0]  ;;  %v1374_v15 = vld [vmem:[%s1907_s11 + $0xf0] sm:$0xf0] }
  0x2e   : > { %v1628_v10 = vld [vmem:[%s1907_s11 + $0x2e0] sm:$0xf]  ;;  %v1746_v11 = vld [vmem:[%s1907_s11 + $0x2ec] sm:$0xf0]  ;;  %v1501_v12 = vor.u32 %v1714_v9, %v1500_v7  ;;  %v1377_v17 = vor.u32 %v1680_v14, %v1374_v15  ;;  %v1676_v25 = vld [vmem:[%s1907_s11 + $0xc4] sm:$0xf] }
  0x2f   : > { %v1629_v13 = vor.u32 %v1746_v11, %v1628_v10  ;;  %v1356_v16 = vld [vmem:[%s1907_s11 + $0xc0] sm:$0xf]  ;;  %897 = vmatpush.bf16.msra.mxu0 %v1373_v8  ;;  %v1678_v18 = vld [vmem:[%s1907_s11 + $0xcc] sm:$0xf0]  ;;  %v1358_v27 = vld [vmem:[%s1907_s11 + $0xd0] sm:$0xf0] }
  0x30   : > { %v1484_v19 = vld [vmem:[%s1907_s11 + $0x1c0] sm:$0xf]  ;;  %v1710_v20 = vld [vmem:[%s1907_s11 + $0x1cc] sm:$0xf0]  ;;  %911 = vmatpush.bf16.msra.mxu1 %v1501_v12  ;;  %v1357_v21 = vor.u32 %v1678_v18, %v1356_v16  ;;  %939 = vmatpush.bf16.msra.mxu3 %v1377_v17  ;;  %v1361_v30 = vor.u32 %v1676_v25, %v1358_v27  ;;  %v1672_v36 = vld [vmem:[%s1907_s11 + $0xa4] sm:$0xf] }
  0x31   : > { %925 = vmatpush.bf16.msra.mxu2 %v1629_v13  ;;  %v1485_v22 = vor.u32 %v1710_v20, %v1484_v19  ;;  %v1612_v23 = vld [vmem:[%s1907_s11 + $0x2c0] sm:$0xf]  ;;  %v1742_v24 = vld [vmem:[%s1907_s11 + $0x2cc] sm:$0xf0]  ;;  %v1342_v37 = vld [vmem:[%s1907_s11 + $0xb0] sm:$0xf0] }
  0x32   : > { %v1613_v26 = vor.u32 %v1742_v24, %v1612_v23  ;;  %v1340_v28 = vld [vmem:[%s1907_s11 + $0xa0] sm:$0xf]  ;;  %v1674_v29 = vld [vmem:[%s1907_s11 + $0xac] sm:$0xf0]  ;;  %v1345_v43 = vor.u32 %v1672_v36, %v1342_v37  ;;  %v1668_v47 = vld [vmem:[%s1907_s11 + $0x84] sm:$0xf] }
  0x33   : > { %v1468_v31 = vld [vmem:[%s1907_s11 + $0x1a0] sm:$0xf]  ;;  %v1706_v32 = vld [vmem:[%s1907_s11 + $0x1ac] sm:$0xf0]  ;;  %898 = vmatpush.bf16.msra.mxu0 %v1357_v21  ;;  %v1341_v34 = vor.u32 %v1674_v29, %v1340_v28  ;;  %v1326_v48 = vld [vmem:[%s1907_s11 + $0x90] sm:$0xf0] }
  0x34   : > { %v1596_v33 = vld [vmem:[%s1907_s11 + $0x2a0] sm:$0xf]  ;;  %v1738_v35 = vld [vmem:[%s1907_s11 + $0x2ac] sm:$0xf0]  ;;  %912 = vmatpush.bf16.msra.mxu1 %v1485_v22  ;;  %v1469_v38 = vor.u32 %v1706_v32, %v1468_v31  ;;  %940 = vmatpush.bf16.msra.mxu3 %v1361_v30  ;;  %v1329_v55 = vor.u32 %v1668_v47, %v1326_v48  ;;  %v1664_v59 = vld [vmem:[%s1907_s11 + $0x64] sm:$0xf] }
  0x35   : > { %926 = vmatpush.bf16.msra.mxu2 %v1613_v26  ;;  %v1597_v39 = vor.u32 %v1738_v35, %v1596_v33  ;;  %v1324_v40 = vld [vmem:[%s1907_s11 + $0x80] sm:$0xf]  ;;  %v1670_v41 = vld [vmem:[%s1907_s11 + $0x8c] sm:$0xf0]  ;;  %v1310_v60 = vld [vmem:[%s1907_s11 + $0x70] sm:$0xf0] }
  0x36   : > { %v1452_v42 = vld [vmem:[%s1907_s11 + $0x180] sm:$0xf]  ;;  %v1702_v44 = vld [vmem:[%s1907_s11 + $0x18c] sm:$0xf0]  ;;  %v1325_v49 = vor.u32 %v1670_v41, %v1324_v40  ;;  %v1313_v3 = vor.u32 %v1664_v59, %v1310_v60  ;;  %v1660_v7 = vld [vmem:[%s1907_s11 + $0x44] sm:$0xf] }
  0x37   : > { %v1580_v45 = vld [vmem:[%s1907_s11 + $0x280] sm:$0xf]  ;;  %v1734_v46 = vld [vmem:[%s1907_s11 + $0x28c] sm:$0xf0]  ;;  %899 = vmatpush.bf16.msra.mxu0 %v1341_v34  ;;  %v1453_v50 = vor.u32 %v1702_v44, %v1452_v42  ;;  %v1294_v8 = vld [vmem:[%s1907_s11 + $0x50] sm:$0xf0] }
  0x38   : > { %913 = vmatpush.bf16.msra.mxu1 %v1469_v38  ;;  %v1581_v51 = vor.u32 %v1734_v46, %v1580_v45  ;;  %v1308_v52 = vld [vmem:[%s1907_s11 + $0x60] sm:$0xf]  ;;  %v1666_v53 = vld [vmem:[%s1907_s11 + $0x6c] sm:$0xf0]  ;;  %941 = vmatpush.bf16.msra.mxu3 %v1345_v43  ;;  %v1297_v15 = vor.u32 %v1660_v7, %v1294_v8  ;;  %v1656_v19 = vld [vmem:[%s1907_s11 + $0x24] sm:$0xf] }
  0x39   : > { %927 = vmatpush.bf16.msra.mxu2 %v1597_v39  ;;  %v1436_v54 = vld [vmem:[%s1907_s11 + $0x160] sm:$0xf]  ;;  %v1698_v56 = vld [vmem:[%s1907_s11 + $0x16c] sm:$0xf0]  ;;  %v1309_v61 = vor.u32 %v1666_v53, %v1308_v52  ;;  %v1278_v20 = vld [vmem:[%s1907_s11 + $0x30] sm:$0xf0] }
  0x3a   : > { %v1564_v57 = vld [vmem:[%s1907_s11 + $0x260] sm:$0xf]  ;;  %v1730_v58 = vld [vmem:[%s1907_s11 + $0x26c] sm:$0xf0]  ;;  %v1437_v62 = vor.u32 %v1698_v56, %v1436_v54  ;;  %v1281_v29 = vor.u32 %v1656_v19, %v1278_v20  ;;  %v1652_v31 = vld [vmem:[%s1907_s11 + $0x4] sm:$0xf] }
  0x3b   : > { %900 = vmatpush.bf16.msra.mxu0 %v1325_v49  ;;  %v1565_v63 = vor.u32 %v1730_v58, %v1564_v57  ;;  %v1292_v0 = vld [vmem:[%s1907_s11 + $0x40] sm:$0xf]  ;;  %v1662_v1 = vld [vmem:[%s1907_s11 + $0x4c] sm:$0xf0]  ;;  %v1262_v32 = vld [vmem:[%s1907_s11 + $0x10] sm:$0xf0] }
  0x3c   : > { %914 = vmatpush.bf16.msra.mxu1 %v1453_v50  ;;  %v1420_v2 = vld [vmem:[%s1907_s11 + $0x140] sm:$0xf]  ;;  %942 = vmatpush.bf16.msra.mxu3 %v1329_v55  ;;  %v1694_v4 = vld [vmem:[%s1907_s11 + $0x14c] sm:$0xf0]  ;;  %v1293_v9 = vor.u32 %v1662_v1, %v1292_v0  ;;  %v1712_v33 = vld [vmem:[%s1907_s11 + $0x1e4] sm:$0xf]  ;;  %v1265_v44 = vor.u32 %v1652_v31, %v1262_v32 }
  0x3d   : > { %928 = vmatpush.bf16.msra.mxu2 %v1581_v51  ;;  %v1548_v5 = vld [vmem:[%s1907_s11 + $0x240] sm:$0xf]  ;;  %v1726_v6 = vld [vmem:[%s1907_s11 + $0x24c] sm:$0xf0]  ;;  %v1421_v10 = vor.u32 %v1694_v4, %v1420_v2  ;;  %v1502_v34 = vld [vmem:[%s1907_s11 + $0x1f0] sm:$0xf0] }
  0x3e   : > { %v1549_v11 = vor.u32 %v1726_v6, %v1548_v5  ;;  %v1276_v12 = vld [vmem:[%s1907_s11 + $0x20] sm:$0xf]  ;;  %v1658_v13 = vld [vmem:[%s1907_s11 + $0x2c] sm:$0xf0]  ;;  %v1744_v35 = vld [vmem:[%s1907_s11 + $0x2e4] sm:$0xf]  ;;  %v1505_v45 = vor.u32 %v1712_v33, %v1502_v34 }
  0x3f   : > { %901 = vmatpush.bf16.msra.mxu0 %v1309_v61  ;;  %v1404_v14 = vld [vmem:[%s1907_s11 + $0x120] sm:$0xf]  ;;  %v1690_v16 = vld [vmem:[%s1907_s11 + $0x12c] sm:$0xf0]  ;;  %v1277_v21 = vor.u32 %v1658_v13, %v1276_v12  ;;  %v1630_v37 = vld [vmem:[%s1907_s11 + $0x2f0] sm:$0xf0] }
  0x40   : > { %915 = vmatpush.bf16.msra.mxu1 %v1437_v62  ;;  %943 = vmatpush.bf16.msra.mxu3 %v1313_v3  ;;  %v1532_v17 = vld [vmem:[%s1907_s11 + $0x220] sm:$0xf]  ;;  %v1722_v18 = vld [vmem:[%s1907_s11 + $0x22c] sm:$0xf0]  ;;  %v1405_v24 = vor.u32 %v1690_v16, %v1404_v14  ;;  %v1380_v38 = vld [vmem:[%s1907_s11 + $0xe8] sm:$0xf]  ;;  %v1633_v47 = vor.u32 %v1744_v35, %v1630_v37 }
  0x41   : > { %929 = vmatpush.bf16.msra.mxu2 %v1565_v63  ;;  %v1260_v22 = vld [vmem:[%s1907_s11] sm:$0xf]  ;;  %v1654_v23 = vld [vmem:[%s1907_s11 + $0xc] sm:$0xf0]  ;;  %v1533_v25 = vor.u32 %v1722_v18, %v1532_v17  ;;  %v1683_v39 = vld [vmem:[%s1907_s11 + $0xf4] sm:$0xf0] }
  0x42   : > { %v1388_v26 = vld [vmem:[%s1907_s11 + $0x100] sm:$0xf]  ;;  %v1686_v27 = vld [vmem:[%s1907_s11 + $0x10c] sm:$0xf0]  ;;  %v1261_v36 = vor.u32 %v1654_v23, %v1260_v22  ;;  %v1508_v42 = vld [vmem:[%s1907_s11 + $0x1e8] sm:$0xf]  ;;  %v1381_v48 = vor.u32 %v1683_v39, %v1380_v38 }
  0x43   : > { %902 = vmatpush.bf16.msra.mxu0 %v1293_v9  ;;  %v1516_v28 = vld [vmem:[%s1907_s11 + $0x200] sm:$0xf]  ;;  %v1718_v30 = vld [vmem:[%s1907_s11 + $0x20c] sm:$0xf0]  ;;  %v1389_v40 = vor.u32 %v1686_v27, %v1388_v26  ;;  %v1715_v43 = vld [vmem:[%s1907_s11 + $0x1f4] sm:$0xf0] }
  0x44   : > { %916 = vmatpush.bf16.msra.mxu1 %v1421_v10  ;;  %944 = vmatpush.bf16.msra.mxu3 %v1297_v15  ;;  %v1517_v41 = vor.u32 %v1718_v30, %v1516_v28  ;;  %v1708_v46 = vld [vmem:[%s1907_s11 + $0x1c4] sm:$0xf]  ;;  %v1486_v49 = vld [vmem:[%s1907_s11 + $0x1d0] sm:$0xf0]  ;;  %v1509_v52 = vor.u32 %v1715_v43, %v1508_v42  ;;  %v1364_v53 = vld [vmem:[%s1907_s11 + $0xc8] sm:$0xf] }
  0x45   : > { %930 = vmatpush.bf16.msra.mxu2 %v1549_v11  ;;  %v1740_v50 = vld [vmem:[%s1907_s11 + $0x2c4] sm:$0xf]  ;;  %v1614_v51 = vld [vmem:[%s1907_s11 + $0x2d0] sm:$0xf0]  ;;  %v1679_v54 = vld [vmem:[%s1907_s11 + $0xd4] sm:$0xf0]  ;;  %v1489_v59 = vor.u32 %v1708_v46, %v1486_v49 }
  0x46   : > { %v1492_v55 = vld [vmem:[%s1907_s11 + $0x1c8] sm:$0xf]  ;;  %v1711_v56 = vld [vmem:[%s1907_s11 + $0x1d4] sm:$0xf0]  ;;  %v1650_v58 = vld [vmem:[%s1909_s12 + $0x8] sm:$0xf0]  ;;  %v1617_v0 = vor.u32 %v1740_v50, %v1614_v51  ;;  %v1365_v1 = vor.u32 %v1679_v54, %v1364_v53 }
  0x47   : > { %903 = vmatpush.bf16.msra.mxu0 %v1277_v21  ;;  %v1248_v57 = vld [vmem:[%s1909_s12] sm:$0xf]  ;;  %v1704_v60 = vld [vmem:[%s1907_s11 + $0x1a4] sm:$0xf]  ;;  %v1470_v61 = vld [vmem:[%s1907_s11 + $0x1b0] sm:$0xf0]  ;;  %v1493_v5 = vor.u32 %v1711_v56, %v1492_v55 }
  0x48   : > { %917 = vmatpush.bf16.msra.mxu1 %v1405_v24  ;;  %945 = vmatpush.bf16.msra.mxu3 %v1281_v29  ;;  %v1736_v62 = vld [vmem:[%s1907_s11 + $0x2a4] sm:$0xf]  ;;  %v1997_v63 = vor.u32 %v1650_v58, %v1248_v57  ;;  %v1598_v2 = vld [vmem:[%s1907_s11 + $0x2b0] sm:$0xf0]  ;;  %v1348_v3 = vld [vmem:[%s1907_s11 + $0xa8] sm:$0xf]  ;;  %v1473_v13 = vor.u32 %v1704_v60, %v1470_v61 }
  0x49   : > { %931 = vmatpush.bf16.msra.mxu2 %v1533_v25  ;;  %v1675_v4 = vld [vmem:[%s1907_s11 + $0xb4] sm:$0xf0]  ;;  %v1476_v6 = vld [vmem:[%s1907_s11 + $0x1a8] sm:$0xf]  ;;  %v1649_v7 = vld [vmem:[%s1909_s12 + $0x4] sm:$0xf]  ;;  %v1601_v15 = vor.u32 %v1736_v62, %v1598_v2 }
  0x4a   : > { %v1250_v8 = vld [vmem:[%s1909_s12 + $0xc] sm:$0xf0]  ;;  %v1707_v9 = vld [vmem:[%s1907_s11 + $0x1b4] sm:$0xf0]  ;;  %v1256_v11 = vld [vmem:[%s1909_s12 + $0x8] sm:$0xf]  ;;  %v1349_v16 = vor.u32 %v1675_v4, %v1348_v3 }
  0x4b   : > { %904 = vmatpush.bf16.msra.mxu0 %v1261_v36  ;;  %v2007_v10 = vor.u32 %v1649_v7, %v1250_v8  ;;  %v1651_v12 = vld [vmem:[%s1909_s12 + $0x10] sm:$0xf0]  ;;  %v1700_v17 = vld [vmem:[%s1907_s11 + $0x184] sm:$0xf]  ;;  %v1477_v20 = vor.u32 %v1707_v9, %v1476_v6  ;;  %v1332_v22 = vld [vmem:[%s1907_s11 + $0x88] sm:$0xf] }
  0x4c   : > { %918 = vmatpush.bf16.msra.mxu1 %v1389_v40  ;;  %946 = vmatpush.bf16.msra.mxu3 %v1265_v44  ;;  %v2012_v14 = vor.u32 %v1651_v12, %v1256_v11  ;;  %v1454_v18 = vld [vmem:[%s1907_s11 + $0x190] sm:$0xf0]  ;;  %v1732_v19 = vld [vmem:[%s1907_s11 + $0x284] sm:$0xf]  ;;  %v1671_v23 = vld [vmem:[%s1907_s11 + $0x94] sm:$0xf0] }
  0x4d   : > { %932 = vmatpush.bf16.msra.mxu2 %v1517_v41  ;;  %v1582_v21 = vld [vmem:[%s1907_s11 + $0x290] sm:$0xf0]  ;;  %v1460_v24 = vld [vmem:[%s1907_s11 + $0x188] sm:$0xf]  ;;  %v1703_v25 = vld [vmem:[%s1907_s11 + $0x194] sm:$0xf0]  ;;  %v1457_v26 = vor.u32 %v1700_v17, %v1454_v18  ;;  %v1333_v28 = vor.u32 %v1671_v23, %v1332_v22 }
  0x4e   : > { %905 = vmatmul.bf16.vlgmr.msra.gmra.mxu0 %v1997_v63  ;;  %v1585_v27 = vor.u32 %v1732_v19, %v1582_v21  ;;  %v1696_v29 = vld [vmem:[%s1907_s11 + $0x164] sm:$0xf]  ;;  %v1438_v30 = vld [vmem:[%s1907_s11 + $0x170] sm:$0xf0]  ;;  %v1461_v32 = vor.u32 %v1703_v25, %v1460_v24  ;;  %v1316_v34 = vld [vmem:[%s1907_s11 + $0x68] sm:$0xf] }
  0x4f   : > { %953 = vmatpush.bf16.msrb.mxu0 %v1505_v45  ;;  %947 = vmatmul.bf16.vlgmr.msra.gmra.mxu3 %v1997_v63  ;;  %v1728_v31 = vld [vmem:[%s1907_s11 + $0x264] sm:$0xf]  ;;  %v1566_v33 = vld [vmem:[%s1907_s11 + $0x270] sm:$0xf0]  ;;  %v1667_v35 = vld [vmem:[%s1907_s11 + $0x74] sm:$0xf0]  ;;  %v1441_v38 = vor.u32 %v1696_v29, %v1438_v30 }
  0x50   : > { %967 = vmatpush.bf16.msrb.mxu1 %v1633_v47  ;;  %995 = vmatpush.bf16.msrb.mxu3 %v1509_v52  ;;  %v1444_v36 = vld [vmem:[%s1907_s11 + $0x168] sm:$0xf]  ;;  %v1699_v37 = vld [vmem:[%s1907_s11 + $0x174] sm:$0xf0]  ;;  %v1569_v39 = vor.u32 %v1728_v31, %v1566_v33  ;;  %v1317_v40 = vor.u32 %v1667_v35, %v1316_v34  ;;  %v1692_v41 = vld [vmem:[%s1907_s11 + $0x144] sm:$0xf] }
  0x51   : > { %981 = vmatpush.bf16.msrb.mxu2 %v1381_v48  ;;  %919 = vmatmul.bf16.vlgmr.msra.gmra.mxu1 %v2007_v10  ;;  %v1422_v42 = vld [vmem:[%s1907_s11 + $0x150] sm:$0xf0]  ;;  %v1724_v43 = vld [vmem:[%s1907_s11 + $0x244] sm:$0xf]  ;;  %v1445_v44 = vor.u32 %v1699_v37, %v1444_v36  ;;  %v1300_v46 = vld [vmem:[%s1907_s11 + $0x48] sm:$0xf] }
  0x52   : > { %933 = vmatmul.bf16.vlgmr.msra.gmra.mxu2 %v2012_v14  ;;  %v1550_v45 = vld [vmem:[%s1907_s11 + $0x250] sm:$0xf0]  ;;  %v1663_v47 = vld [vmem:[%s1907_s11 + $0x54] sm:$0xf0]  ;;  %v1428_v48 = vld [vmem:[%s1907_s11 + $0x148] sm:$0xf]  ;;  %v1425_v50 = vor.u32 %v1692_v41, %v1422_v42 }
  0x53   : > { %954 = vmatpush.bf16.msrb.mxu0 %v1489_v59  ;;  %v1695_v49 = vld [vmem:[%s1907_s11 + $0x154] sm:$0xf0]  ;;  %v1553_v51 = vor.u32 %v1724_v43, %v1550_v45  ;;  %v1301_v52 = vor.u32 %v1663_v47, %v1300_v46  ;;  %v1688_v53 = vld [vmem:[%s1907_s11 + $0x124] sm:$0xf]  ;;  %v1406_v54 = vld [vmem:[%s1907_s11 + $0x130] sm:$0xf0] }
  0x54   : > { %968 = vmatpush.bf16.msrb.mxu1 %v1617_v0  ;;  %996 = vmatpush.bf16.msrb.mxu3 %v1493_v5  ;;  %v1720_v55 = vld [vmem:[%s1907_s11 + $0x224] sm:$0xf]  ;;  %v1429_v56 = vor.u32 %v1695_v49, %v1428_v48  ;;  %v1534_v57 = vld [vmem:[%s1907_s11 + $0x230] sm:$0xf0]  ;;  %v1284_v58 = vld [vmem:[%s1907_s11 + $0x28] sm:$0xf]  ;;  %v1409_v62 = vor.u32 %v1688_v53, %v1406_v54 }
  0x55   : > { %982 = vmatpush.bf16.msrb.mxu2 %v1365_v1  ;;  %v1659_v59 = vld [vmem:[%s1907_s11 + $0x34] sm:$0xf0]  ;;  %v1412_v60 = vld [vmem:[%s1907_s11 + $0x128] sm:$0xf]  ;;  %v1684_v0 = vld [vmem:[%s1907_s11 + $0x104] sm:$0xf]  ;;  %v1537_v2 = vor.u32 %v1720_v55, %v1534_v57 }
  0x56   : > { %v1691_v61 = vld [vmem:[%s1907_s11 + $0x134] sm:$0xf0]  ;;  %v1390_v1 = vld [vmem:[%s1907_s11 + $0x110] sm:$0xf0]  ;;  %v1285_v3 = vor.u32 %v1659_v59, %v1284_v58  ;;  %v1716_v4 = vld [vmem:[%s1907_s11 + $0x204] sm:$0xf] }
  0x57   : > { %955 = vmatpush.bf16.msrb.mxu0 %v1473_v13  ;;  %v1518_v5 = vld [vmem:[%s1907_s11 + $0x210] sm:$0xf0]  ;;  %v1268_v6 = vld [vmem:[%s1907_s11 + $0x8] sm:$0xf]  ;;  %v1413_v7 = vor.u32 %v1691_v61, %v1412_v60  ;;  %v1655_v8 = vld [vmem:[%s1907_s11 + $0x14] sm:$0xf0] }
  0x58   : > { %969 = vmatpush.bf16.msrb.mxu1 %v1601_v15  ;;  %997 = vmatpush.bf16.msrb.mxu3 %v1477_v20  ;;  %v1396_v9 = vld [vmem:[%s1907_s11 + $0x108] sm:$0xf]  ;;  %v1687_v11 = vld [vmem:[%s1907_s11 + $0x114] sm:$0xf0]  ;;  %v1681_v15 = vld [vmem:[%s1907_s11 + $0xec] sm:$0xf]  ;;  %v1521_v20 = vor.u32 %v1716_v4, %v1518_v5  ;;  %v1269_v21 = vor.u32 %v1655_v8, %v1268_v6 }
  0x59   : > { %983 = vmatpush.bf16.msrb.mxu2 %v1349_v16  ;;  %v1636_v12 = vld [vmem:[%s1907_s11 + $0x2e8] sm:$0xf]  ;;  %v1747_v13 = vld [vmem:[%s1907_s11 + $0x2f4] sm:$0xf0]  ;;  %v1393_v16 = vor.u32 %v1684_v0, %v1390_v1  ;;  %v1382_v17 = vld [vmem:[%s1907_s11 + $0xf8] sm:$0xf0]  ;;  %v1397_v24 = vor.u32 %v1687_v11, %v1396_v9 }
  0x5a   : > { %v1713_v18 = vld [vmem:[%s1907_s11 + $0x1ec] sm:$0xf]  ;;  %v1510_v19 = vld [vmem:[%s1907_s11 + $0x1f8] sm:$0xf0]  ;;  %v1637_v25 = vor.u32 %v1747_v13, %v1636_v12  ;;  %v1743_v29 = vld [vmem:[%s1907_s11 + $0x2d4] sm:$0xf0] }
  0x5b   : > { %956 = vmatpush.bf16.msrb.mxu0 %v1457_v26  ;;  %v1745_v22 = vld [vmem:[%s1907_s11 + $0x2ec] sm:$0xf]  ;;  %v1638_v23 = vld [vmem:[%s1907_s11 + $0x2f8] sm:$0xf0]  ;;  %v1385_v26 = vor.u32 %v1681_v15, %v1382_v17  ;;  %v1739_v41 = vld [vmem:[%s1907_s11 + $0x2b4] sm:$0xf0] }
  0x5c   : > { %970 = vmatpush.bf16.msrb.mxu1 %v1585_v27  ;;  %998 = vmatpush.bf16.msrb.mxu3 %v1461_v32  ;;  %v1513_v27 = vor.u32 %v1713_v18, %v1510_v19  ;;  %v1677_v30 = vld [vmem:[%s1907_s11 + $0xcc] sm:$0xf]  ;;  %v1641_v31 = vor.u32 %v1745_v22, %v1638_v23  ;;  %v1366_v32 = vld [vmem:[%s1907_s11 + $0xd8] sm:$0xf0]  ;;  %v1735_v53 = vld [vmem:[%s1907_s11 + $0x294] sm:$0xf0] }
  0x5d   : > { %984 = vmatpush.bf16.msrb.mxu2 %v1333_v28  ;;  %v1620_v28 = vld [vmem:[%s1907_s11 + $0x2c8] sm:$0xf]  ;;  %v1709_v33 = vld [vmem:[%s1907_s11 + $0x1cc] sm:$0xf]  ;;  %v1494_v34 = vld [vmem:[%s1907_s11 + $0x1d8] sm:$0xf0] }
  0x5e   : > { %v1741_v35 = vld [vmem:[%s1907_s11 + $0x2cc] sm:$0xf]  ;;  %v1622_v36 = vld [vmem:[%s1907_s11 + $0x2d8] sm:$0xf0]  ;;  %v1621_v37 = vor.u32 %v1743_v29, %v1620_v28  ;;  %v1572_v1 = vld [vmem:[%s1907_s11 + $0x268] sm:$0xf] }
  0x5f   : > { %957 = vmatpush.bf16.msrb.mxu0 %v1441_v38  ;;  %v1369_v38 = vor.u32 %v1677_v30, %v1366_v32  ;;  %v1673_v42 = vld [vmem:[%s1907_s11 + $0xac] sm:$0xf]  ;;  %v1625_v43 = vor.u32 %v1741_v35, %v1622_v36  ;;  %v1478_v46 = vld [vmem:[%s1907_s11 + $0x1b8] sm:$0xf0]  ;;  %v1556_v15 = vld [vmem:[%s1907_s11 + $0x248] sm:$0xf] }
  0x60   : > { %971 = vmatpush.bf16.msrb.mxu1 %v1569_v39  ;;  %999 = vmatpush.bf16.msrb.mxu3 %v1445_v44  ;;  %v1497_v39 = vor.u32 %v1709_v33, %v1494_v34  ;;  %v1350_v44 = vld [vmem:[%s1907_s11 + $0xb8] sm:$0xf0]  ;;  %v1705_v45 = vld [vmem:[%s1907_s11 + $0x1ac] sm:$0xf]  ;;  %v1723_v28 = vld [vmem:[%s1907_s11 + $0x234] sm:$0xf0] }
  0x61   : > { %985 = vmatpush.bf16.msrb.mxu2 %v1317_v40  ;;  %v1604_v40 = vld [vmem:[%s1907_s11 + $0x2a8] sm:$0xf]  ;;  %v1737_v47 = vld [vmem:[%s1907_s11 + $0x2ac] sm:$0xf]  ;;  %v1606_v48 = vld [vmem:[%s1907_s11 + $0x2b8] sm:$0xf0] }
  0x62   : > { %v1605_v49 = vor.u32 %v1739_v41, %v1604_v40  ;;  %v1669_v54 = vld [vmem:[%s1907_s11 + $0x8c] sm:$0xf]  ;;  %v1609_v55 = vor.u32 %v1737_v47, %v1606_v48  ;;  %v1462_v58 = vld [vmem:[%s1907_s11 + $0x198] sm:$0xf0]  ;;  %v1719_v40 = vld [vmem:[%s1907_s11 + $0x214] sm:$0xf0] }
  0x63   : > { %958 = vmatpush.bf16.msrb.mxu0 %v1425_v50  ;;  %v1353_v50 = vor.u32 %v1673_v42, %v1350_v44  ;;  %v1701_v57 = vld [vmem:[%s1907_s11 + $0x18c] sm:$0xf]  ;;  %v1590_v60 = vld [vmem:[%s1907_s11 + $0x298] sm:$0xf0]  ;;  %p1642_p11 = scmp.ne.s32.totalorder %s1821_s17, 5 }
  0x64   : > { %972 = vmatpush.bf16.msrb.mxu1 %v1553_v51  ;;  %1000 = vmatpush.bf16.msrb.mxu3 %v1429_v56  ;;  %v1481_v51 = vor.u32 %v1705_v45, %v1478_v46  ;;  %v1334_v56 = vld [vmem:[%s1907_s11 + $0x98] sm:$0xf0]  ;;  %v1733_v59 = vld [vmem:[%s1907_s11 + $0x28c] sm:$0xf]  ;;  %v1465_v0 = vor.u32 %v1701_v57, %v1462_v58 }
  0x65   : > { %986 = vmatpush.bf16.msrb.mxu2 %v1301_v52  ;;  %v1588_v52 = vld [vmem:[%s1907_s11 + $0x288] sm:$0xf]  ;;  %v1593_v4 = vor.u32 %v1733_v59, %v1590_v60  ;;  %v1318_v5 = vld [vmem:[%s1907_s11 + $0x78] sm:$0xf0]  ;;  %v1697_v6 = vld [vmem:[%s1907_s11 + $0x16c] sm:$0xf] }
  0x66   : > { %v1589_v61 = vor.u32 %v1735_v53, %v1588_v52  ;;  %v1729_v8 = vld [vmem:[%s1907_s11 + $0x26c] sm:$0xf]  ;;  %v1574_v9 = vld [vmem:[%s1907_s11 + $0x278] sm:$0xf0] }
  0x67   : > { %959 = vmatpush.bf16.msrb.mxu0 %v1409_v62  ;;  %v1337_v62 = vor.u32 %v1669_v54, %v1334_v56  ;;  %v1661_v17 = vld [vmem:[%s1907_s11 + $0x4c] sm:$0xf]  ;;  %v1577_v18 = vor.u32 %v1729_v8, %v1574_v9  ;;  %v1302_v19 = vld [vmem:[%s1907_s11 + $0x58] sm:$0xf0] }
  0x68   : > { %973 = vmatpush.bf16.msrb.mxu1 %v1537_v2  ;;  %1001 = vmatpush.bf16.msrb.mxu3 %v1413_v7  ;;  %v1731_v2 = vld [vmem:[%s1907_s11 + $0x274] sm:$0xf0]  ;;  %v1446_v7 = vld [vmem:[%s1907_s11 + $0x178] sm:$0xf0]  ;;  %v1725_v22 = vld [vmem:[%s1907_s11 + $0x24c] sm:$0xf] }
  0x69   : > { %987 = vmatpush.bf16.msrb.mxu2 %v1285_v3  ;;  %v1665_v3 = vld [vmem:[%s1907_s11 + $0x6c] sm:$0xf]  ;;  %v1573_v11 = vor.u32 %v1731_v2, %v1572_v1  ;;  %v1449_v13 = vor.u32 %v1697_v6, %v1446_v7  ;;  %v1558_v23 = vld [vmem:[%s1907_s11 + $0x258] sm:$0xf0] }
  0x6a   : > { %v1321_v12 = vor.u32 %v1665_v3, %v1318_v5  ;;  %v1657_v29 = vld [vmem:[%s1907_s11 + $0x2c] sm:$0xf]  ;;  %v1561_v30 = vor.u32 %v1725_v22, %v1558_v23  ;;  %v1414_v33 = vld [vmem:[%s1907_s11 + $0x138] sm:$0xf0] }
  0x6b   : > { %960 = vmatpush.bf16.msrb.mxu0 %v1393_v16  ;;  %v1727_v16 = vld [vmem:[%s1907_s11 + $0x254] sm:$0xf0]  ;;  %v1689_v32 = vld [vmem:[%s1907_s11 + $0x12c] sm:$0xf]  ;;  %v1542_v35 = vld [vmem:[%s1907_s11 + $0x238] sm:$0xf0] }
  0x6c   : > { %974 = vmatpush.bf16.msrb.mxu1 %v1521_v20  ;;  %1002 = vmatpush.bf16.msrb.mxu3 %v1397_v24  ;;  %v1693_v20 = vld [vmem:[%s1907_s11 + $0x14c] sm:$0xf]  ;;  %v1557_v24 = vor.u32 %v1727_v16, %v1556_v15  ;;  %v1398_v45 = vld [vmem:[%s1907_s11 + $0x118] sm:$0xf0] }
  0x6d   : > { %988 = vmatpush.bf16.msrb.mxu2 %v1269_v21  ;;  %v1430_v21 = vld [vmem:[%s1907_s11 + $0x158] sm:$0xf0]  ;;  %v1721_v34 = vld [vmem:[%s1907_s11 + $0x22c] sm:$0xf] }
  0x6e   : > { %961 = vmatmul.bf16.vlgmr.msrb.gmra.mxu0 %v2007_v10  ;;  %v1653_v41 = vld [vmem:[%s1907_s11 + $0xc] sm:$0xf]  ;;  %v1545_v42 = vor.u32 %v1721_v34, %v1542_v35  ;;  %v1526_v47 = vld [vmem:[%s1907_s11 + $0x218] sm:$0xf0] }
  0x6f   : > { %1009 = vmatpush.bf16.msra.mxu0 %v1637_v25  ;;  %975 = vmatmul.bf16.vlgmr.msrb.gmra.mxu1 %v2012_v14  ;;  %v1305_v25 = vor.u32 %v1661_v17, %v1302_v19  ;;  %v1685_v44 = vld [vmem:[%s1907_s11 + $0x10c] sm:$0xf] }
  0x70   : > { %1023 = vmatpush.bf16.msra.mxu1 %v1385_v26  ;;  %1051 = vmatpush.bf16.msra.mxu3 %v1641_v31  ;;  %v1433_v26 = vor.u32 %v1693_v20, %v1430_v21  ;;  %v1286_v31 = vld [vmem:[%s1907_s11 + $0x38] sm:$0xf0]  ;;  %v1717_v46 = vld [vmem:[%s1907_s11 + $0x20c] sm:$0xf] }
  0x71   : > { %1037 = vmatpush.bf16.msra.mxu2 %v1513_v27  ;;  %1003 = vmatmul.bf16.vlgmr.msrb.gmra.mxu3 %v2007_v10  ;;  %v1540_v27 = vld [vmem:[%s1907_s11 + $0x228] sm:$0xf]  ;;  %v295_v21 = vld [vmem:[#allocation2 + $0x18] sm:$0xff] }
  0x72   : > { %989 = vmatmul.bf16.vlgmr.msrb.gmra.mxu2 %v1997_v63  ;;  %v1541_v36 = vor.u32 %v1723_v28, %v1540_v27 }
  0x73   : > { %1010 = vmatpush.bf16.msra.mxu0 %v1621_v37  ;;  %v1289_v37 = vor.u32 %v1657_v29, %v1286_v31 }
  0x74   : > { %1024 = vmatpush.bf16.msra.mxu1 %v1369_v38  ;;  %1052 = vmatpush.bf16.msra.mxu3 %v1625_v43  ;;  %v1417_v38 = vor.u32 %v1689_v32, %v1414_v33  ;;  %v1270_v43 = vld [vmem:[%s1907_s11 + $0x18] sm:$0xf0]  ;;  %v296_v32 = vld [vmem:[#allocation2 + $0x10] sm:$0xff] }
  0x75   : > { %1038 = vmatpush.bf16.msra.mxu2 %v1497_v39  ;;  %v1524_v39 = vld [vmem:[%s1907_s11 + $0x208] sm:$0xf] }
  0x76   : > { %v1525_v48 = vor.u32 %v1719_v40, %v1524_v39  ;;  %v300_v40 = vld [vmem:[#allocation2 + $0x38] sm:$0xff] }
  0x77   : > { %1011 = vmatpush.bf16.msra.mxu0 %v1605_v49  ;;  %v1273_v49 = vor.u32 %v1653_v41, %v1270_v43 }
  0x78   : > { %1025 = vmatpush.bf16.msra.mxu1 %v1353_v50  ;;  %1053 = vmatpush.bf16.msra.mxu3 %v1609_v55  ;;  %v1401_v50 = vor.u32 %v1685_v44, %v1398_v45  ;;  %v293_v55 = vld [vmem:[#allocation2 + $0x30] sm:$0xff] }
  0x79   : > { %1039 = vmatpush.bf16.msra.mxu2 %v1481_v51  ;;  %v1529_v51 = vor.u32 %v1717_v46, %v1526_v47 }
  0x7b   : > { %1012 = vmatpush.bf16.msra.mxu0 %v1589_v61 }
  0x7c   : > { %1026 = vmatpush.bf16.msra.mxu1 %v1337_v62  ;;  %1054 = vmatpush.bf16.msra.mxu3 %v1593_v4  ;;  %v297_v62 = vld [vmem:[#allocation2 + $0x8] sm:$0xff]  ;;  %v294_v4 = vld [vmem:[#allocation2] sm:$0xff] }
  0x7d   : > { %1040 = vmatpush.bf16.msra.mxu2 %v1465_v0 }
  0x7f   : > { %1013 = vmatpush.bf16.msra.mxu0 %v1573_v11 }
  0x80   : > { %1027 = vmatpush.bf16.msra.mxu1 %v1321_v12  ;;  %1055 = vmatpush.bf16.msra.mxu3 %v1577_v18  ;;  %v298_v12 = vld [vmem:[#allocation2 + $0x20] sm:$0xff] }
  0x81   : > { %1041 = vmatpush.bf16.msra.mxu2 %v1449_v13 }
  0x83   : > { %1014 = vmatpush.bf16.msra.mxu0 %v1557_v24 }
  0x84   : > { %1028 = vmatpush.bf16.msra.mxu1 %v1305_v25  ;;  %1056 = vmatpush.bf16.msra.mxu3 %v1561_v30  ;;  %v299_v30 = vld [vmem:[#allocation2 + $0x28] sm:$0xff] }
  0x85   : > { %1042 = vmatpush.bf16.msra.mxu2 %v1433_v26 }
  0x87   : > { %1015 = vmatpush.bf16.msra.mxu0 %v1541_v36 }
  0x88   : > { %1029 = vmatpush.bf16.msra.mxu1 %v1289_v37  ;;  %1057 = vmatpush.bf16.msra.mxu3 %v1545_v42 }
  0x89   : > { %1043 = vmatpush.bf16.msra.mxu2 %v1417_v38 }
  0x8b   : > { %1016 = vmatpush.bf16.msra.mxu0 %v1525_v48 }
  0x8c   : > { %1030 = vmatpush.bf16.msra.mxu1 %v1273_v49  ;;  %1058 = vmatpush.bf16.msra.mxu3 %v1529_v51 }
  0x8d   : > { %1044 = vmatpush.bf16.msra.mxu2 %v1401_v50 }
  0x8e   : > { %1017 = vmatmul.bf16.vlgmr.msra.gmra.mxu0 %v2012_v14 }
  0x8f   : > { %1031 = vmatmul.bf16.vlgmr.msra.gmra.mxu1 %v1997_v63  ;;  %1059 = vmatmul.bf16.vlgmr.msra.gmra.mxu3 %v2012_v14 }
  0x90   : > { %1045 = vmatmul.bf16.vlgmr.msra.gmra.mxu2 %v2007_v10 }
  0xcb   : > { %v906_v52 = vpop.f32.mrf.mxu0 }
  0xce   : > { %v920_v53 = vpop.f32.mrf.mxu1 }
  0xcf   : > { %v921_v54 = vadd.f32 %v920_v53, %v906_v52 }
  0xd2   : > { %v948_v63 = vpop.f32.mrf.mxu3 }
  0xd3   : > { %v908_v59 = vpop.f32.mrf.mxu0 }
  0xd5   : > { %v934_v56 = vpop.f32.mrf.mxu2 }
  0xd6   : > { %v935_v57 = vadd.f32 %v934_v56, %v921_v54  ;;  %v922_v60 = vpop.f32.mrf.mxu1 }
  0xd7   : > { %v923_v61 = vadd.f32 %v922_v60, %v908_v59 }
  0xd8   : > { %v1065_v58 = vadd.f32 %v935_v57, %v293_v55 }
  0xda   : > { %1073 = vst [vmem:[#allocation2 + $0x30] sm:$0xff] %v1065_v58  ;;  %v950_v7 = vpop.f32.mrf.mxu3 }
  0xdd   : > { %v936_v0 = vpop.f32.mrf.mxu2 }
  0xde   : > { %v937_v1 = vadd.f32 %v936_v0, %v923_v61 }
  0xe0   : > { %v1069_v2 = vadd.f32 %v937_v1, %v297_v62 }
  0xe2   : > { %1077 = vst [vmem:[#allocation2 + $0x8] sm:$0xff] %v1069_v2 }
  0xeb   : > { %v962_v10 = vpop.f32.mrf.mxu0 }
  0xec   : > { %v963_v3 = vadd.f32 %v962_v10, %v948_v63  ;;  %v976_v14 = vpop.f32.mrf.mxu1 }
  0xee   : > { %v977_v5 = vadd.f32 %v976_v14, %v963_v3 }
  0xf0   : > { %v1066_v6 = vadd.f32 %v977_v5, %v294_v4 }
  0xf2   : > { %1074 = vst [vmem:[#allocation2] sm:$0xff] %v1066_v6 }
  0xf3   : > { %v964_v8 = vpop.f32.mrf.mxu0 }
  0xf4   : > { %v965_v9 = vadd.f32 %v964_v8, %v950_v7  ;;  %v978_v11 = vpop.f32.mrf.mxu1  ;;  %v1004_v17 = vpop.f32.mrf.mxu3 }
  0xf5   : > { %v990_v16 = vpop.f32.mrf.mxu2 }
  0xf6   : > { %v979_v13 = vadd.f32 %v978_v11, %v965_v9  ;;  %v1005_v18 = vadd.f32 %v1004_v17, %v990_v16 }
  0xf8   : > { %v1070_v15 = vadd.f32 %v979_v13, %v298_v12 }
  0xfa   : > { %1078 = vst [vmem:[#allocation2 + $0x20] sm:$0xff] %v1070_v15 }
  0xfc   : > { %v1006_v20 = vpop.f32.mrf.mxu3 }
  0xfd   : > { %v992_v19 = vpop.f32.mrf.mxu2 }
  0xfe   : > { %v1007_v26 = vadd.f32 %v1006_v20, %v992_v19 }
 0x10b   : > { %v1018_v22 = vpop.f32.mrf.mxu0 }
 0x10c   : > { %v1019_v23 = vadd.f32 %v1018_v22, %v1005_v18  ;;  %v1032_v25 = vpop.f32.mrf.mxu1 }
 0x10e   : > { %v1067_v24 = vadd.f32 %v1019_v23, %v295_v21 }
 0x110   : > { %1075 = vst [vmem:[#allocation2 + $0x18] sm:$0xff] %v1067_v24 }
 0x112   : > { %v1060_v29 = vpop.f32.mrf.mxu3 }
 0x113   : > { %v1046_v27 = vpop.f32.mrf.mxu2  ;;  %v1020_v31 = vpop.f32.mrf.mxu0 }
 0x114   : > { %v1047_v28 = vadd.f32 %v1046_v27, %v1032_v25  ;;  %v1021_v33 = vadd.f32 %v1020_v31, %v1007_v26  ;;  %v1034_v37 = vpop.f32.mrf.mxu1 }
 0x116   : > { %v1061_v34 = vadd.f32 %v1060_v29, %v1047_v28  ;;  %v1071_v35 = vadd.f32 %v1021_v33, %v299_v30 }
 0x118   : > { %v1068_v36 = vadd.f32 %v1061_v34, %v296_v32  ;;  %1079 = vst [vmem:[#allocation2 + $0x28] sm:$0xff] %v1071_v35 }
 0x11a   : > { %1076 = vst [vmem:[#allocation2 + $0x10] sm:$0xff] %v1068_v36  ;;  %v1062_v41 = vpop.f32.mrf.mxu3 }
 0x11b   : > { %v1048_v38 = vpop.f32.mrf.mxu2 }
 0x11c   : > { %v1049_v39 = vadd.f32 %v1048_v38, %v1034_v37 }
 0x11e   : > { %v1063_v42 = vadd.f32 %v1062_v41, %v1049_v39  ;;  %1084 = sbr.rel (%p1642_p11) target bundleno = 307 (0x133), region = 70 }
 0x120   : > { %v1072_v43 = vadd.f32 %v1063_v42, %v300_v40 }
 0x122   : > { %1080 = vst [vmem:[#allocation2 + $0x38] sm:$0xff] %v1072_v43 }
 0x123   : > { %v1085_v44 = vld [vmem:[#allocation2 + $0x30] sm:$0xff]  ;;  %v1086_v45 = vld [vmem:[#allocation2] sm:$0xff]  ;;  %v1087_v50 = vld [vmem:[#allocation2 + $0x18] sm:$0xff] }
 0x124   : > { %v1093_v46 = vld [vmem:[%s2164_s2] sm:$0xf]  ;;  %v1088_v51 = vld [vmem:[#allocation2 + $0x10] sm:$0xff]  ;;  %v1089_v56 = vld [vmem:[#allocation2 + $0x8] sm:$0xff] }
 0x125   : > { %v1095_v47 = vperm.slane %v1093_v46, 0  ;;  %v1096_v48 = vperm.slane %v1093_v46, 1  ;;  %v1111_v49 = vld [vmem:[%s2165_s3] sm:$0xf]  ;;  %v1097_v54 = vperm.slane %v1093_v46, 2  ;;  %v1098_v55 = vperm.slane %v1093_v46, 3 }
 0x126   : > { %v1113_v52 = vperm.slane %v1111_v49, 0  ;;  %v1114_v53 = vperm.slane %v1111_v49, 1  ;;  %v1090_v57 = vld [vmem:[#allocation2 + $0x20] sm:$0xff]  ;;  %v1115_v60 = vperm.slane %v1111_v49, 2  ;;  %v1116_v61 = vperm.slane %v1111_v49, 3  ;;  %v1091_v62 = vld [vmem:[#allocation2 + $0x28] sm:$0xff] }
 0x127   : > { %v1103_v58 = vmul.f32 %v1095_v47, %v1085_v44  ;;  %v1104_v59 = vmul.f32 %v1096_v48, %v1086_v45  ;;  %v1105_v1 = vmul.f32 %v1097_v54, %v1087_v50  ;;  %v1106_v2 = vmul.f32 %v1098_v55, %v1088_v51 }
 0x128   : > { %v1107_v63 = vmul.f32 %v1095_v47, %v1089_v56  ;;  %v1108_v10 = vmul.f32 %v1096_v48, %v1090_v57  ;;  %v1109_v4 = vmul.f32 %v1097_v54, %v1091_v62 }
 0x129   : > { %v1092_v0 = vld [vmem:[#allocation2 + $0x38] sm:$0xff]  ;;  %v1121_v3 = vadd.f32 %v1113_v52, %v1103_v58  ;;  %v1122_v14 = vadd.f32 %v1114_v53, %v1104_v59  ;;  %v1123_v6 = vadd.f32 %v1115_v60, %v1105_v1  ;;  %v1124_v7 = vadd.f32 %v1116_v61, %v1106_v2 }
 0x12a   : > { %v1110_v5 = vmul.f32 %v1098_v55, %v1092_v0  ;;  %v1125_v8 = vadd.f32 %v1113_v52, %v1107_v63  ;;  %v1126_v9 = vadd.f32 %v1114_v53, %v1108_v10  ;;  %v1127_v13 = vadd.f32 %v1115_v60, %v1109_v4 }
 0x12b   : > { %v1129_v11 = vmax.f32 %v1121_v3, 0.0  ;;  %v1130_v12 = vmax.f32 %v1122_v14, 0.0  ;;  %v1131_v16 = vmax.f32 %v1123_v6, 0.0  ;;  %v1132_v17 = vmax.f32 %v1124_v7, 0.0 }
 0x12c   : > { %v1128_v15 = vadd.f32 %v1116_v61, %v1110_v5  ;;  %v1133_v18 = vmax.f32 %v1125_v8, 0.0  ;;  %v1134_v19 = vmax.f32 %v1126_v9, 0.0  ;;  %v1135_v21 = vmax.f32 %v1127_v13, 0.0 }
 0x12d   : > { %v1137_v20 = vpack.c.bf16 %v1130_v12, %v1129_v11  ;;  %v1138_v23 = vpack.c.bf16 %v1132_v17, %v1131_v16 }
 0x12e   : > { %v1136_v22 = vmax.f32 %v1128_v15, 0.0  ;;  %v1139_v24 = vpack.c.bf16 %v1134_v19, %v1133_v18 }
 0x12f   : > { %1141 = vst [vmem:[%s2166_s4] sm:$0xff] %v1137_v20 }
 0x130   : > { %v1140_v25 = vpack.c.bf16 %v1136_v22, %v1135_v21  ;;  %1142 = vst [vmem:[%s2166_s4 + $0x8] sm:$0xff] %v1138_v23 }
 0x131   : > { %1143 = vst [vmem:[%s2166_s4 + $0x10] sm:$0xff] %v1139_v24 }
 0x132   : > { %1144 = vst [vmem:[%s2166_s4 + $0x18] sm:$0xff] %v1140_v25 }
 0x133 PF: > { %s14_s19 = sadd.s32 1, %s1829_s19   ;;  %s2167_s15 = smov %s1817_s16 }
 0x134   : > { %p11_p12 = scmp.ge.s32.totalorder %s14_s19, 8   ;;  %s2168_s16 = smov %s1892_s23 }
 0x135   : > { %s2169_s17 = smov %s1825_s18  ;;  %s2170_s18 = smov %s2172_s20 }
 0x136   :  { %13 = sbr.rel (!%p11_p12) target bundleno = 3 (0x3), region = 114 }

// kernel: _lambda_.25
= control target key start
LH: loop header
LB: loop body
LE: loop exit
PB: predicated region body
PF: predicated region fallthrough
CT: control target
= control target key end

     0   :  { %s1401_s1 = inlined_call_operand.vmem [shape: bf16[256,512], index: 1, kind: input, shape index: {}]   ;;  %s1402_s0 = inlined_call_operand.vmem [shape: bf16[16,256], index: 0, kind: input, shape index: {}]   ;;  %s1403_s2 = inlined_call_operand.vmem [shape: f32[1,512], index: 2, kind: input, shape index: {}]   ;;  %s1404_s3 = inlined_call_operand.vmem [shape: f32[1,512], index: 3, kind: input, shape index: {}]   ;;  %s1405_s4 = inlined_call_operand.vmem [shape: bf16[16,512], index: 4, kind: output, shape index: {}]  }
   0x1   :  { %v742_v0 = vld [vmem:[%s1401_s1 + $0xe0] sm:$0xf]  ;;  %v916_v1 = vld [vmem:[%s1401_s1 + $0xec] sm:$0xf0]  ;;  %v914_v5 = vld [vmem:[%s1401_s1 + $0xe4] sm:$0xf] }
   0x2   :  { %v870_v2 = vld [vmem:[%s1401_s1 + $0x1e0] sm:$0xf]  ;;  %v743_v3 = vor.u32 %v916_v1, %v742_v0  ;;  %v948_v4 = vld [vmem:[%s1401_s1 + $0x1ec] sm:$0xf0]  ;;  %v744_v6 = vld [vmem:[%s1401_s1 + $0xf0] sm:$0xf0] }
   0x3   :  { %v871_v7 = vor.u32 %v948_v4, %v870_v2  ;;  %v747_v8 = vor.u32 %v914_v5, %v744_v6  ;;  %v946_v9 = vld [vmem:[%s1401_s1 + $0x1e4] sm:$0xf]  ;;  %v872_v10 = vld [vmem:[%s1401_s1 + $0x1f0] sm:$0xf0]  ;;  %v726_v11 = vld [vmem:[%s1401_s1 + $0xc0] sm:$0xf] }
   0x4   :  { %433 = vmatpush.bf16.msra.mxu0 %v743_v3  ;;  %v875_v12 = vor.u32 %v946_v9, %v872_v10  ;;  %v912_v13 = vld [vmem:[%s1401_s1 + $0xcc] sm:$0xf0]  ;;  %v854_v14 = vld [vmem:[%s1401_s1 + $0x1c0] sm:$0xf]  ;;  %v910_v18 = vld [vmem:[%s1401_s1 + $0xc4] sm:$0xf] }
   0x5   :  { %v944_v15 = vld [vmem:[%s1401_s1 + $0x1cc] sm:$0xf0]  ;;  %447 = vmatpush.bf16.msra.mxu1 %v871_v7  ;;  %461 = vmatpush.bf16.msra.mxu2 %v747_v8  ;;  %v727_v16 = vor.u32 %v912_v13, %v726_v11  ;;  %v728_v19 = vld [vmem:[%s1401_s1 + $0xd0] sm:$0xf0]  ;;  %v942_v20 = vld [vmem:[%s1401_s1 + $0x1c4] sm:$0xf] }
   0x6   :  { %v855_v17 = vor.u32 %v944_v15, %v854_v14  ;;  %475 = vmatpush.bf16.msra.mxu3 %v875_v12  ;;  %v731_v21 = vor.u32 %v910_v18, %v728_v19  ;;  %v856_v22 = vld [vmem:[%s1401_s1 + $0x1d0] sm:$0xf0]  ;;  %v710_v23 = vld [vmem:[%s1401_s1 + $0xa0] sm:$0xf]  ;;  %v908_v24 = vld [vmem:[%s1401_s1 + $0xac] sm:$0xf0] }
   0x7   :  { %v859_v25 = vor.u32 %v942_v20, %v856_v22  ;;  %v838_v26 = vld [vmem:[%s1401_s1 + $0x1a0] sm:$0xf]  ;;  %v940_v27 = vld [vmem:[%s1401_s1 + $0x1ac] sm:$0xf0]  ;;  %v906_v28 = vld [vmem:[%s1401_s1 + $0xa4] sm:$0xf]  ;;  %v711_v29 = vor.u32 %v908_v24, %v710_v23 }
   0x8   :  { %434 = vmatpush.bf16.msra.mxu0 %v727_v16  ;;  %v712_v30 = vld [vmem:[%s1401_s1 + $0xb0] sm:$0xf0]  ;;  %v938_v31 = vld [vmem:[%s1401_s1 + $0x1a4] sm:$0xf]  ;;  %v839_v33 = vor.u32 %v940_v27, %v838_v26  ;;  %v694_v35 = vld [vmem:[%s1401_s1 + $0x80] sm:$0xf] }
   0x9   :  { %v840_v32 = vld [vmem:[%s1401_s1 + $0x1b0] sm:$0xf0]  ;;  %448 = vmatpush.bf16.msra.mxu1 %v855_v17  ;;  %462 = vmatpush.bf16.msra.mxu2 %v731_v21  ;;  %v715_v34 = vor.u32 %v906_v28, %v712_v30  ;;  %v904_v36 = vld [vmem:[%s1401_s1 + $0x8c] sm:$0xf0]  ;;  %v822_v37 = vld [vmem:[%s1401_s1 + $0x180] sm:$0xf] }
   0xa   :  { %476 = vmatpush.bf16.msra.mxu3 %v859_v25  ;;  %v843_v38 = vor.u32 %v938_v31, %v840_v32  ;;  %v936_v39 = vld [vmem:[%s1401_s1 + $0x18c] sm:$0xf0]  ;;  %v902_v40 = vld [vmem:[%s1401_s1 + $0x84] sm:$0xf]  ;;  %v696_v41 = vld [vmem:[%s1401_s1 + $0x90] sm:$0xf0]  ;;  %v695_v44 = vor.u32 %v904_v36, %v694_v35 }
   0xb   :  { %v934_v42 = vld [vmem:[%s1401_s1 + $0x184] sm:$0xf]  ;;  %v824_v43 = vld [vmem:[%s1401_s1 + $0x190] sm:$0xf0]  ;;  %v823_v45 = vor.u32 %v936_v39, %v822_v37  ;;  %v699_v46 = vor.u32 %v902_v40, %v696_v41  ;;  %v678_v47 = vld [vmem:[%s1401_s1 + $0x60] sm:$0xf] }
   0xc   :  { %435 = vmatpush.bf16.msra.mxu0 %v711_v29  ;;  %v900_v48 = vld [vmem:[%s1401_s1 + $0x6c] sm:$0xf0]  ;;  %v806_v49 = vld [vmem:[%s1401_s1 + $0x160] sm:$0xf]  ;;  %v827_v50 = vor.u32 %v934_v42, %v824_v43  ;;  %v898_v52 = vld [vmem:[%s1401_s1 + $0x64] sm:$0xf] }
   0xd   :  { %449 = vmatpush.bf16.msra.mxu1 %v839_v33  ;;  %463 = vmatpush.bf16.msra.mxu2 %v715_v34  ;;  %v932_v51 = vld [vmem:[%s1401_s1 + $0x16c] sm:$0xf0]  ;;  %v680_v53 = vld [vmem:[%s1401_s1 + $0x70] sm:$0xf0]  ;;  %v930_v54 = vld [vmem:[%s1401_s1 + $0x164] sm:$0xf]  ;;  %v679_v56 = vor.u32 %v900_v48, %v678_v47 }
   0xe   :  { %477 = vmatpush.bf16.msra.mxu3 %v843_v38  ;;  %v808_v55 = vld [vmem:[%s1401_s1 + $0x170] sm:$0xf0]  ;;  %v807_v57 = vor.u32 %v932_v51, %v806_v49  ;;  %v683_v58 = vor.u32 %v898_v52, %v680_v53  ;;  %v662_v59 = vld [vmem:[%s1401_s1 + $0x40] sm:$0xf]  ;;  %v896_v60 = vld [vmem:[%s1401_s1 + $0x4c] sm:$0xf0] }
   0xf   :  { %v790_v61 = vld [vmem:[%s1401_s1 + $0x140] sm:$0xf]  ;;  %v811_v62 = vor.u32 %v930_v54, %v808_v55  ;;  %v928_v63 = vld [vmem:[%s1401_s1 + $0x14c] sm:$0xf0]  ;;  %v894_v0 = vld [vmem:[%s1401_s1 + $0x44] sm:$0xf]  ;;  %v663_v4 = vor.u32 %v896_v60, %v662_v59 }
  0x10   :  { %436 = vmatpush.bf16.msra.mxu0 %v695_v44  ;;  %v664_v1 = vld [vmem:[%s1401_s1 + $0x50] sm:$0xf0]  ;;  %v926_v2 = vld [vmem:[%s1401_s1 + $0x144] sm:$0xf]  ;;  %v791_v5 = vor.u32 %v928_v63, %v790_v61  ;;  %v646_v7 = vld [vmem:[%s1401_s1 + $0x20] sm:$0xf] }
  0x11   :  { %450 = vmatpush.bf16.msra.mxu1 %v823_v45  ;;  %464 = vmatpush.bf16.msra.mxu2 %v699_v46  ;;  %v792_v3 = vld [vmem:[%s1401_s1 + $0x150] sm:$0xf0]  ;;  %v667_v6 = vor.u32 %v894_v0, %v664_v1  ;;  %v892_v8 = vld [vmem:[%s1401_s1 + $0x2c] sm:$0xf0]  ;;  %v774_v9 = vld [vmem:[%s1401_s1 + $0x120] sm:$0xf] }
  0x12   :  { %478 = vmatpush.bf16.msra.mxu3 %v827_v50  ;;  %v795_v10 = vor.u32 %v926_v2, %v792_v3  ;;  %v924_v11 = vld [vmem:[%s1401_s1 + $0x12c] sm:$0xf0]  ;;  %v890_v12 = vld [vmem:[%s1401_s1 + $0x24] sm:$0xf]  ;;  %v648_v13 = vld [vmem:[%s1401_s1 + $0x30] sm:$0xf0]  ;;  %v647_v16 = vor.u32 %v892_v8, %v646_v7 }
  0x13   :  { %v922_v14 = vld [vmem:[%s1401_s1 + $0x124] sm:$0xf]  ;;  %v776_v15 = vld [vmem:[%s1401_s1 + $0x130] sm:$0xf0]  ;;  %v630_v17 = vld [vmem:[%s1401_s1] sm:$0xf]  ;;  %v775_v20 = vor.u32 %v924_v11, %v774_v9  ;;  %v651_v21 = vor.u32 %v890_v12, %v648_v13 }
  0x14   :  { %437 = vmatpush.bf16.msra.mxu0 %v679_v56  ;;  %v888_v18 = vld [vmem:[%s1401_s1 + $0xc] sm:$0xf0]  ;;  %v758_v19 = vld [vmem:[%s1401_s1 + $0x100] sm:$0xf]  ;;  %v886_v23 = vld [vmem:[%s1401_s1 + $0x4] sm:$0xf]  ;;  %v779_v25 = vor.u32 %v922_v14, %v776_v15 }
  0x15   :  { %451 = vmatpush.bf16.msra.mxu1 %v807_v57  ;;  %465 = vmatpush.bf16.msra.mxu2 %v683_v58  ;;  %v920_v22 = vld [vmem:[%s1401_s1 + $0x10c] sm:$0xf0]  ;;  %v632_v24 = vld [vmem:[%s1401_s1 + $0x10] sm:$0xf0]  ;;  %v918_v26 = vld [vmem:[%s1401_s1 + $0x104] sm:$0xf]  ;;  %v631_v32 = vor.u32 %v888_v18, %v630_v17 }
  0x16   :  { %479 = vmatpush.bf16.msra.mxu3 %v811_v62  ;;  %v760_v27 = vld [vmem:[%s1401_s1 + $0x110] sm:$0xf0]  ;;  %v750_v28 = vld [vmem:[%s1401_s1 + $0xe8] sm:$0xf]  ;;  %v917_v29 = vld [vmem:[%s1401_s1 + $0xf4] sm:$0xf0]  ;;  %v759_v36 = vor.u32 %v920_v22, %v758_v19  ;;  %v635_v37 = vor.u32 %v886_v23, %v632_v24 }
  0x17   :  { %v878_v30 = vld [vmem:[%s1401_s1 + $0x1e8] sm:$0xf]  ;;  %v949_v31 = vld [vmem:[%s1401_s1 + $0x1f4] sm:$0xf0]  ;;  %v915_v33 = vld [vmem:[%s1401_s1 + $0xec] sm:$0xf]  ;;  %v763_v41 = vor.u32 %v918_v26, %v760_v27  ;;  %v751_v42 = vor.u32 %v917_v29, %v750_v28 }
  0x18   :  { %438 = vmatpush.bf16.msra.mxu0 %v663_v4  ;;  %v752_v34 = vld [vmem:[%s1401_s1 + $0xf8] sm:$0xf0]  ;;  %v947_v35 = vld [vmem:[%s1401_s1 + $0x1ec] sm:$0xf]  ;;  %v622_v39 = vld [vmem:[%s1402_s0] sm:$0xf]  ;;  %v879_v45 = vor.u32 %v949_v31, %v878_v30 }
  0x19   :  { %452 = vmatpush.bf16.msra.mxu1 %v791_v5  ;;  %466 = vmatpush.bf16.msra.mxu2 %v667_v6  ;;  %v880_v38 = vld [vmem:[%s1401_s1 + $0x1f8] sm:$0xf0]  ;;  %v885_v40 = vld [vmem:[%s1402_s0 + $0x4] sm:$0xf0]  ;;  %v884_v43 = vld [vmem:[%s1402_s0 + $0x4] sm:$0xf]  ;;  %v755_v46 = vor.u32 %v915_v33, %v752_v34 }
  0x1a   :  { %480 = vmatpush.bf16.msra.mxu3 %v795_v10  ;;  %v624_v44 = vld [vmem:[%s1402_s0 + $0x8] sm:$0xf0]  ;;  %v734_v47 = vld [vmem:[%s1401_s1 + $0xc8] sm:$0xf]  ;;  %v913_v48 = vld [vmem:[%s1401_s1 + $0xd4] sm:$0xf0]  ;;  %v883_v50 = vor.u32 %v947_v35, %v880_v38  ;;  %v1221_v54 = vor.u32 %v885_v40, %v622_v39 }
  0x1b   :  { %v862_v49 = vld [vmem:[%s1401_s1 + $0x1c8] sm:$0xf]  ;;  %v945_v51 = vld [vmem:[%s1401_s1 + $0x1d4] sm:$0xf0]  ;;  %v911_v52 = vld [vmem:[%s1401_s1 + $0xcc] sm:$0xf]  ;;  %v1229_v57 = vor.u32 %v884_v43, %v624_v44  ;;  %v735_v58 = vor.u32 %v913_v48, %v734_v47 }
  0x1c   :  { %439 = vmatpush.bf16.msra.mxu0 %v647_v16  ;;  %v736_v53 = vld [vmem:[%s1401_s1 + $0xd8] sm:$0xf0]  ;;  %v943_v55 = vld [vmem:[%s1401_s1 + $0x1cc] sm:$0xf]  ;;  %v863_v59 = vor.u32 %v945_v51, %v862_v49  ;;  %v718_v61 = vld [vmem:[%s1401_s1 + $0xa8] sm:$0xf] }
  0x1d   :  { %453 = vmatpush.bf16.msra.mxu1 %v775_v20  ;;  %467 = vmatpush.bf16.msra.mxu2 %v651_v21  ;;  %v864_v56 = vld [vmem:[%s1401_s1 + $0x1d8] sm:$0xf0]  ;;  %v739_v60 = vor.u32 %v911_v52, %v736_v53  ;;  %v909_v62 = vld [vmem:[%s1401_s1 + $0xb4] sm:$0xf0]  ;;  %v846_v63 = vld [vmem:[%s1401_s1 + $0x1a8] sm:$0xf] }
  0x1e   :  { %481 = vmatpush.bf16.msra.mxu3 %v779_v25  ;;  %v867_v0 = vor.u32 %v943_v55, %v864_v56  ;;  %v941_v1 = vld [vmem:[%s1401_s1 + $0x1b4] sm:$0xf0]  ;;  %v907_v2 = vld [vmem:[%s1401_s1 + $0xac] sm:$0xf]  ;;  %v720_v3 = vld [vmem:[%s1401_s1 + $0xb8] sm:$0xf0]  ;;  %v719_v6 = vor.u32 %v909_v62, %v718_v61 }
  0x1f   :  { %v939_v4 = vld [vmem:[%s1401_s1 + $0x1ac] sm:$0xf]  ;;  %v848_v5 = vld [vmem:[%s1401_s1 + $0x1b8] sm:$0xf0]  ;;  %v847_v7 = vor.u32 %v941_v1, %v846_v63  ;;  %v723_v8 = vor.u32 %v907_v2, %v720_v3  ;;  %v702_v9 = vld [vmem:[%s1401_s1 + $0x88] sm:$0xf] }
  0x20   :  { %440 = vmatpush.bf16.msra.mxu0 %v631_v32  ;;  %v905_v10 = vld [vmem:[%s1401_s1 + $0x94] sm:$0xf0]  ;;  %v830_v11 = vld [vmem:[%s1401_s1 + $0x188] sm:$0xf]  ;;  %v851_v12 = vor.u32 %v939_v4, %v848_v5  ;;  %v903_v14 = vld [vmem:[%s1401_s1 + $0x8c] sm:$0xf] }
  0x21   :  { %454 = vmatpush.bf16.msra.mxu1 %v759_v36  ;;  %468 = vmatpush.bf16.msra.mxu2 %v635_v37  ;;  %v937_v13 = vld [vmem:[%s1401_s1 + $0x194] sm:$0xf0]  ;;  %v704_v15 = vld [vmem:[%s1401_s1 + $0x98] sm:$0xf0]  ;;  %v935_v16 = vld [vmem:[%s1401_s1 + $0x18c] sm:$0xf]  ;;  %v703_v18 = vor.u32 %v905_v10, %v702_v9 }
  0x22   :  { %482 = vmatpush.bf16.msra.mxu3 %v763_v41  ;;  %v832_v17 = vld [vmem:[%s1401_s1 + $0x198] sm:$0xf0]  ;;  %v831_v19 = vor.u32 %v937_v13, %v830_v11  ;;  %v707_v20 = vor.u32 %v903_v14, %v704_v15  ;;  %v686_v21 = vld [vmem:[%s1401_s1 + $0x68] sm:$0xf]  ;;  %v901_v22 = vld [vmem:[%s1401_s1 + $0x74] sm:$0xf0] }
  0x23   :  { %441 = vmatmul.bf16.vlgmr.msra.gmra.mxu0 %v1221_v54  ;;  %v814_v23 = vld [vmem:[%s1401_s1 + $0x168] sm:$0xf]  ;;  %v835_v24 = vor.u32 %v935_v16, %v832_v17  ;;  %v933_v25 = vld [vmem:[%s1401_s1 + $0x174] sm:$0xf0]  ;;  %v899_v26 = vld [vmem:[%s1401_s1 + $0x6c] sm:$0xf]  ;;  %v687_v30 = vor.u32 %v901_v22, %v686_v21 }
  0x24   :  { %489 = vmatpush.bf16.msrb.mxu0 %v751_v42  ;;  %469 = vmatmul.bf16.vlgmr.msra.gmra.mxu2 %v1221_v54  ;;  %v688_v27 = vld [vmem:[%s1401_s1 + $0x78] sm:$0xf0]  ;;  %v931_v28 = vld [vmem:[%s1401_s1 + $0x16c] sm:$0xf]  ;;  %v815_v31 = vor.u32 %v933_v25, %v814_v23  ;;  %v670_v33 = vld [vmem:[%s1401_s1 + $0x48] sm:$0xf] }
  0x25   :  { %503 = vmatpush.bf16.msrb.mxu1 %v879_v45  ;;  %517 = vmatpush.bf16.msrb.mxu2 %v755_v46  ;;  %v816_v29 = vld [vmem:[%s1401_s1 + $0x178] sm:$0xf0]  ;;  %v691_v32 = vor.u32 %v899_v26, %v688_v27  ;;  %v897_v34 = vld [vmem:[%s1401_s1 + $0x54] sm:$0xf0]  ;;  %v798_v35 = vld [vmem:[%s1401_s1 + $0x148] sm:$0xf] }
  0x26   :  { %531 = vmatpush.bf16.msrb.mxu3 %v883_v50  ;;  %455 = vmatmul.bf16.vlgmr.msra.gmra.mxu1 %v1229_v57  ;;  %v819_v36 = vor.u32 %v931_v28, %v816_v29  ;;  %v929_v37 = vld [vmem:[%s1401_s1 + $0x154] sm:$0xf0]  ;;  %v895_v38 = vld [vmem:[%s1401_s1 + $0x4c] sm:$0xf]  ;;  %v672_v39 = vld [vmem:[%s1401_s1 + $0x58] sm:$0xf0]  ;;  %v671_v42 = vor.u32 %v897_v34, %v670_v33 }
  0x27   :  { %483 = vmatmul.bf16.vlgmr.msra.gmra.mxu3 %v1229_v57  ;;  %v927_v40 = vld [vmem:[%s1401_s1 + $0x14c] sm:$0xf]  ;;  %v800_v41 = vld [vmem:[%s1401_s1 + $0x158] sm:$0xf0]  ;;  %v799_v43 = vor.u32 %v929_v37, %v798_v35  ;;  %v675_v44 = vor.u32 %v895_v38, %v672_v39  ;;  %v654_v45 = vld [vmem:[%s1401_s1 + $0x28] sm:$0xf] }
  0x28   :  { %490 = vmatpush.bf16.msrb.mxu0 %v735_v58  ;;  %v893_v46 = vld [vmem:[%s1401_s1 + $0x34] sm:$0xf0]  ;;  %v782_v47 = vld [vmem:[%s1401_s1 + $0x128] sm:$0xf]  ;;  %v803_v48 = vor.u32 %v927_v40, %v800_v41  ;;  %v891_v50 = vld [vmem:[%s1401_s1 + $0x2c] sm:$0xf] }
  0x29   :  { %504 = vmatpush.bf16.msrb.mxu1 %v863_v59  ;;  %518 = vmatpush.bf16.msrb.mxu2 %v739_v60  ;;  %v925_v49 = vld [vmem:[%s1401_s1 + $0x134] sm:$0xf0]  ;;  %v656_v51 = vld [vmem:[%s1401_s1 + $0x38] sm:$0xf0]  ;;  %v923_v52 = vld [vmem:[%s1401_s1 + $0x12c] sm:$0xf]  ;;  %v655_v55 = vor.u32 %v893_v46, %v654_v45 }
  0x2a   :  { %532 = vmatpush.bf16.msrb.mxu3 %v867_v0  ;;  %v784_v53 = vld [vmem:[%s1401_s1 + $0x138] sm:$0xf0]  ;;  %v783_v56 = vor.u32 %v925_v49, %v782_v47  ;;  %v659_v58 = vor.u32 %v891_v50, %v656_v51  ;;  %v638_v59 = vld [vmem:[%s1401_s1 + $0x8] sm:$0xf]  ;;  %v889_v60 = vld [vmem:[%s1401_s1 + $0x14] sm:$0xf0] }
  0x2b   :  { %v766_v61 = vld [vmem:[%s1401_s1 + $0x108] sm:$0xf]  ;;  %v787_v62 = vor.u32 %v923_v52, %v784_v53  ;;  %v921_v63 = vld [vmem:[%s1401_s1 + $0x114] sm:$0xf0]  ;;  %v887_v0 = vld [vmem:[%s1401_s1 + $0xc] sm:$0xf]  ;;  %v639_v4 = vor.u32 %v889_v60, %v638_v59 }
  0x2c   :  { %491 = vmatpush.bf16.msrb.mxu0 %v719_v6  ;;  %v640_v1 = vld [vmem:[%s1401_s1 + $0x18] sm:$0xf0]  ;;  %v919_v2 = vld [vmem:[%s1401_s1 + $0x10c] sm:$0xf]  ;;  %v767_v5 = vor.u32 %v921_v63, %v766_v61  ;;  %v590_v13 = vld [vmem:[%s1404_s3] sm:$0xf] }
  0x2d   :  { %505 = vmatpush.bf16.msrb.mxu1 %v847_v7  ;;  %519 = vmatpush.bf16.msrb.mxu2 %v723_v8  ;;  %v768_v3 = vld [vmem:[%s1401_s1 + $0x118] sm:$0xf0]  ;;  %v643_v6 = vor.u32 %v887_v0, %v640_v1  ;;  %v572_v8 = vld [vmem:[%s1403_s2] sm:$0xf]  ;;  %v592_v15 = vperm.slane %v590_v13, 0  ;;  %v594_v39 = vperm.slane %v590_v13, 2 }
  0x2e   :  { %533 = vmatpush.bf16.msrb.mxu3 %v851_v12  ;;  %v771_v7 = vor.u32 %v919_v2, %v768_v3  ;;  %v574_v11 = vperm.slane %v572_v8, 0  ;;  %v575_v17 = vperm.slane %v572_v8, 1  ;;  %v576_v37 = vperm.slane %v572_v8, 2 }
  0x2f   :  { %v577_v41 = vperm.slane %v572_v8, 3 }
  0x30   :  { %492 = vmatpush.bf16.msrb.mxu0 %v703_v18 }
  0x31   :  { %506 = vmatpush.bf16.msrb.mxu1 %v831_v19  ;;  %520 = vmatpush.bf16.msrb.mxu2 %v707_v20  ;;  %v593_v19 = vperm.slane %v590_v13, 1 }
  0x32   :  { %534 = vmatpush.bf16.msrb.mxu3 %v835_v24 }
  0x34   :  { %493 = vmatpush.bf16.msrb.mxu0 %v687_v30 }
  0x35   :  { %507 = vmatpush.bf16.msrb.mxu1 %v815_v31  ;;  %521 = vmatpush.bf16.msrb.mxu2 %v691_v32 }
  0x36   :  { %535 = vmatpush.bf16.msrb.mxu3 %v819_v36 }
  0x38   :  { %494 = vmatpush.bf16.msrb.mxu0 %v671_v42 }
  0x39   :  { %508 = vmatpush.bf16.msrb.mxu1 %v799_v43  ;;  %522 = vmatpush.bf16.msrb.mxu2 %v675_v44  ;;  %v595_v44 = vperm.slane %v590_v13, 3 }
  0x3a   :  { %536 = vmatpush.bf16.msrb.mxu3 %v803_v48 }
  0x3c   :  { %495 = vmatpush.bf16.msrb.mxu0 %v655_v55 }
  0x3d   :  { %509 = vmatpush.bf16.msrb.mxu1 %v783_v56  ;;  %523 = vmatpush.bf16.msrb.mxu2 %v659_v58 }
  0x3e   :  { %537 = vmatpush.bf16.msrb.mxu3 %v787_v62 }
  0x40   :  { %496 = vmatpush.bf16.msrb.mxu0 %v639_v4 }
  0x41   :  { %510 = vmatpush.bf16.msrb.mxu1 %v767_v5  ;;  %524 = vmatpush.bf16.msrb.mxu2 %v643_v6 }
  0x42   :  { %538 = vmatpush.bf16.msrb.mxu3 %v771_v7 }
  0x43   :  { %497 = vmatmul.bf16.vlgmr.msrb.gmra.mxu0 %v1221_v54 }
  0x44   :  { %511 = vmatmul.bf16.vlgmr.msrb.gmra.mxu1 %v1229_v57  ;;  %525 = vmatmul.bf16.vlgmr.msrb.gmra.mxu2 %v1221_v54 }
  0x45   :  { %539 = vmatmul.bf16.vlgmr.msrb.gmra.mxu3 %v1229_v57 }
  0xa0   :  { %v442_v9 = vpop.f32.mrf.mxu0 }
  0xa3   :  { %v456_v10 = vpop.f32.mrf.mxu1 }
  0xa4   :  { %v457_v12 = vadd.f32 %v456_v10, %v442_v9 }
  0xa6   :  { %v582_v14 = vmul.f32 %v574_v11, %v457_v12 }
  0xa7   :  { %v470_v16 = vpop.f32.mrf.mxu2 }
  0xa8   :  { %v444_v57 = vpop.f32.mrf.mxu0  ;;  %v600_v20 = vadd.f32 %v592_v15, %v582_v14 }
  0xaa   :  { %v484_v18 = vpop.f32.mrf.mxu3 }
  0xab   :  { %v485_v54 = vadd.f32 %v484_v18, %v470_v16  ;;  %v458_v22 = vpop.f32.mrf.mxu1 }
  0xac   :  { %v459_v23 = vadd.f32 %v458_v22, %v444_v57 }
  0xad   :  { %v583_v21 = vmul.f32 %v575_v17, %v485_v54 }
  0xae   :  { %v586_v26 = vmul.f32 %v574_v11, %v459_v23 }
  0xaf   :  { %v601_v24 = vadd.f32 %v593_v19, %v583_v21  ;;  %v472_v27 = vpop.f32.mrf.mxu2 }
  0xb0   :  { %v604_v30 = vadd.f32 %v592_v15, %v586_v26 }
  0xb1   :  { %v608_v25 = vpack.c.bf16 %v601_v24, %v600_v20 }
  0xb2   :  { %v486_v28 = vpop.f32.mrf.mxu3 }
  0xb3   :  { %612 = vst [vmem:[%s1405_s4] sm:$0xff] %v608_v25  ;;  %v487_v29 = vadd.f32 %v486_v28, %v472_v27 }
  0xb5   :  { %v587_v31 = vmul.f32 %v575_v17, %v487_v29 }
  0xb7   :  { %v605_v32 = vadd.f32 %v593_v19, %v587_v31 }
  0xb9   :  { %v610_v33 = vpack.c.bf16 %v605_v32, %v604_v30 }
  0xbb   :  { %614 = vst [vmem:[%s1405_s4 + $0x10] sm:$0xff] %v610_v33 }
  0xc0   :  { %v498_v34 = vpop.f32.mrf.mxu0 }
  0xc1   :  { %v512_v35 = vpop.f32.mrf.mxu1 }
  0xc2   :  { %v513_v36 = vadd.f32 %v512_v35, %v498_v34 }
  0xc4   :  { %v584_v38 = vmul.f32 %v576_v37, %v513_v36 }
  0xc6   :  { %v602_v47 = vadd.f32 %v594_v39, %v584_v38 }
  0xc7   :  { %v526_v40 = vpop.f32.mrf.mxu2 }
  0xc8   :  { %v540_v42 = vpop.f32.mrf.mxu3  ;;  %v500_v45 = vpop.f32.mrf.mxu0 }
  0xc9   :  { %v541_v43 = vadd.f32 %v540_v42, %v526_v40  ;;  %v514_v46 = vpop.f32.mrf.mxu1 }
  0xca   :  { %v515_v50 = vadd.f32 %v514_v46, %v500_v45 }
  0xcb   :  { %v585_v48 = vmul.f32 %v577_v41, %v541_v43 }
  0xcc   :  { %v588_v55 = vmul.f32 %v576_v37, %v515_v50 }
  0xcd   :  { %v603_v49 = vadd.f32 %v595_v44, %v585_v48 }
  0xce   :  { %v606_v59 = vadd.f32 %v594_v39, %v588_v55 }
  0xcf   :  { %v609_v51 = vpack.c.bf16 %v603_v49, %v602_v47  ;;  %v528_v52 = vpop.f32.mrf.mxu2 }
  0xd0   :  { %v542_v53 = vpop.f32.mrf.mxu3 }
  0xd1   :  { %613 = vst [vmem:[%s1405_s4 + $0x8] sm:$0xff] %v609_v51  ;;  %v543_v56 = vadd.f32 %v542_v53, %v528_v52 }
  0xd3   :  { %v589_v58 = vmul.f32 %v577_v41, %v543_v56 }
  0xd5   :  { %v607_v60 = vadd.f32 %v595_v44, %v589_v58 }
  0xd7   :  { %v611_v61 = vpack.c.bf16 %v607_v60, %v606_v59 }
  0xd9   :  { %615 = vst [vmem:[%s1405_s4 + $0x18] sm:$0xff] %v611_v61 }

// kernel: _lambda_.26
= control target key start
LH: loop header
LB: loop body
LE: loop exit
PB: predicated region body
PF: predicated region fallthrough
CT: control target
= control target key end

     0   :  { %s2351_s18 = smov 0   ;;  %s2353_s19 = smov 0   ;;  %s2740_s0 = inlined_call_operand.vmem [shape: bf16[16,4608], index: 0, kind: input, shape index: {}]   ;;  %s2741_s1 = inlined_call_operand.vmem [shape: bf16[4608,512], index: 1, kind: input, shape index: {}]   ;;  %s2742_s2 = inlined_call_operand.vmem [shape: f32[1,512], index: 2, kind: input, shape index: {}]   ;;  %s2743_s3 = inlined_call_operand.vmem [shape: f32[1,512], index: 3, kind: input, shape index: {}]   ;;  %s2744_s4 = inlined_call_operand.vmem [shape: bf16[16,512], index: 4, kind: input, shape index: {}]   ;;  %s2745_s5 = inlined_call_operand.vmem [shape: bf16[16,512], index: 5, kind: output, shape index: {}]  }
   0x1   :  { %s2355_s20 = smov 0   ;;  %s2357_s21 = smov 0  }
   0x2   :  { %s2359_s22 = smov 0  }
   0x3 LB: > { %s24_s23 = sadd.s32 1, %s2314_s21  ;;  %p43_p1 = scmp.ne.s32.totalorder %s2306_s19, %s2302_s18  ;;  %s2318_s22 = sphi %s2359_s22, %s15_s22   ;;  %s2314_s21 = sphi %s2357_s21, %s2749_s21   ;;  %s2310_s20 = sphi %s2355_s20, %s2748_s20   ;;  %s2306_s19 = sphi %s2353_s19, %s2747_s19   ;;  %s2302_s18 = sphi %s2351_s18, %s2746_s18  }
   0x4   : > { %p25_p0 = scmp.ge.s32.totalorder %s24_s23, 9  ;;  %p44_p2 = scmp.eq.s32.totalorder %s2318_s22, 0 }
   0x5   : > { %s36_s25 = sadd.s32 1, %s2306_s19  ;;  %p1562_p5 = scmp.ge.s32.totalorder %s2318_s22, 9 }
   0x6   : > { %s2751_s23 = smov (%p25_p0, %s24_s23), 0  ;;  %p45_p3 = por %p44_p2, %p43_p1 }
   0x7   : > { %s32_s24 = ssub.s32 %s2314_s21, %s2751_s23  ;;  %205 = sbr.rel (%p1562_p5) target bundleno = 20 (0x14), region = 28 }
   0x8   : > { %p34_p4 = scmp.eq.s32.totalorder %s32_s24, 0 }
   0xa   : > { %s2386_s26 = scalar_select %p34_p4, %s2306_s19, %s36_s25  }
   0xc   : > { %208 = sbr.rel (!%p45_p3) target bundleno = 20 (0x14), region = 32  ;;  %s210_s27 = sand.u32 (%p45_p3), 1, %s2306_s19  }
   0xd   : > { %s2105_s28 = sshll.u32 (%p45_p3), %s2314_s21, 4  ;;  %s1563_s29 = sshll.u32 (%p45_p3), %s210_s27, 5 }
   0xe   : > { %s218_s7 = scalar_lea.vmem (%p45_p3), %s2740_s0, %s2105_s28  ;;  %s212_s8 = scalar_lea.vmem (%p45_p3), [#allocation3], %s1563_s29 }
   0xf   : > { %v231_v0 = vld [vmem:[%s218_s7] sm:$0xff] (%p45_p3)  ;;  %v233_v1 = vld [vmem:[%s218_s7 + $0x8] sm:$0xff] (%p45_p3)  ;;  %v235_v2 = vld [vmem:[%s218_s7 + $0x90] sm:$0xff] (%p45_p3) }
  0x10   : > { %232 = vst [vmem:[%s212_s8] sm:$0xff] (%p45_p3), %v231_v0  ;;  %v237_v3 = vld [vmem:[%s218_s7 + $0x98] sm:$0xff] (%p45_p3) }
  0x11   : > { %234 = vst [vmem:[%s212_s8 + $0x8] sm:$0xff] %v233_v1 }
  0x12   : > { %236 = vst [vmem:[%s212_s8 + $0x10] sm:$0xff] %v235_v2 }
  0x13   : > { %238 = vst [vmem:[%s212_s8 + $0x18] sm:$0xff] %v237_v3 }
  0x14 PF: > { %p1566_p6 = scmp.ge.s32.totalorder %s2318_s22, 1  ;;  %p253_p7 = scmp.lt.s32.totalorder %s2318_s22, 10 }
  0x16   : > { %p254_p8 = pnand %p1566_p6, %p253_p7 }
  0x17   : > { %s260_s9 = sand.u32 (!%p254_p8), 1, %s2302_s18   ;;  %s1568_s10 = sshll.u32 (!%p254_p8), %s2310_s20, 6 }
  0x18   : > { %257 = sbr.rel (%p254_p8) target bundleno = 344 (0x158), region = 59  ;;  %s1567_s11 = sshll.u32 (!%p254_p8), %s260_s9, 5 }
  0x19   : > { %p303_p9 = scmp.lt.s32.totalorder (!%p254_p8), %s1568_s10, 575  ;;  %s2403_s16 = scalar_lea.vmem (!%p254_p8), [#allocation3], %s1567_s11 }
  0x1a   : > { %p1571_p10 = scmp.ne.s32.totalorder (!%p254_p8), %s2310_s20, 0 }
  0x1d   : > { %s2753_s10 = smov (!%p303_p9, %s1568_s10), 575  ;;  %326 = sbr.rel (%p1571_p10) target bundleno = 43 (0x2b), region = 67 }
  0x1e   : > { %s2106_s12 = sshll.u32 %s2753_s10, 4 }
  0x1f   : > { %s2401_s15 = scalar_lea.vmem %s2741_s1, %s2106_s12 }
  0x22   : > { %v2320_v4 = vmov 0.0  }
  0x23   : > { %327 = vst [vmem:[#allocation2 + $0x30] sm:$0xff] %v2320_v4 }
  0x24   : > { %328 = vst [vmem:[#allocation2] sm:$0xff] %v2320_v4 }
  0x25   : > { %329 = vst [vmem:[#allocation2 + $0x18] sm:$0xff] %v2320_v4 }
  0x26   : > { %330 = vst [vmem:[#allocation2 + $0x10] sm:$0xff] %v2320_v4 }
  0x27   : > { %331 = vst [vmem:[#allocation2 + $0x8] sm:$0xff] %v2320_v4 }
  0x28   : > { %332 = vst [vmem:[#allocation2 + $0x20] sm:$0xff] %v2320_v4 }
  0x29   : > { %333 = vst [vmem:[#allocation2 + $0x28] sm:$0xff] %v2320_v4 }
  0x2a   : > { %334 = vst [vmem:[#allocation2 + $0x38] sm:$0xff] %v2320_v4 }
  0x2b PF: > { %v1702_v5 = vld [vmem:[%s2401_s15 + $0xe0] sm:$0xf]  ;;  %v2141_v6 = vld [vmem:[%s2401_s15 + $0xec] sm:$0xf0]  ;;  %p2100_p11 = scmp.ne.s32.totalorder %s2310_s20, 8 }
  0x2c   : > { %v1830_v7 = vld [vmem:[%s2401_s15 + $0x1e0] sm:$0xf]  ;;  %v1703_v8 = vor.u32 %v2141_v6, %v1702_v5  ;;  %v2173_v9 = vld [vmem:[%s2401_s15 + $0x1ec] sm:$0xf0] }
  0x2d   : > { %v1958_v10 = vld [vmem:[%s2401_s15 + $0x2e0] sm:$0xf]  ;;  %v2205_v11 = vld [vmem:[%s2401_s15 + $0x2ec] sm:$0xf0]  ;;  %v1831_v12 = vor.u32 %v2173_v9, %v1830_v7 }
  0x2e   : > { %v1959_v13 = vor.u32 %v2205_v11, %v1958_v10  ;;  %v2086_v14 = vld [vmem:[%s2401_s15 + $0x3e0] sm:$0xf]  ;;  %v2237_v15 = vld [vmem:[%s2401_s15 + $0x3ec] sm:$0xf0]  ;;  %1135 = vmatpush.bf16.msra.mxu0 %v1703_v8 }
  0x2f   : > { %v1686_v16 = vld [vmem:[%s2401_s15 + $0xc0] sm:$0xf]  ;;  %v2087_v17 = vor.u32 %v2237_v15, %v2086_v14  ;;  %v2137_v18 = vld [vmem:[%s2401_s15 + $0xcc] sm:$0xf0]  ;;  %1149 = vmatpush.bf16.msra.mxu1 %v1831_v12 }
  0x30   : > { %v1814_v19 = vld [vmem:[%s2401_s15 + $0x1c0] sm:$0xf]  ;;  %v2169_v20 = vld [vmem:[%s2401_s15 + $0x1cc] sm:$0xf0]  ;;  %1163 = vmatpush.bf16.msra.mxu2 %v1959_v13  ;;  %v1687_v21 = vor.u32 %v2137_v18, %v1686_v16 }
  0x31   : > { %v1815_v22 = vor.u32 %v2169_v20, %v1814_v19  ;;  %v1942_v23 = vld [vmem:[%s2401_s15 + $0x2c0] sm:$0xf]  ;;  %v2201_v24 = vld [vmem:[%s2401_s15 + $0x2cc] sm:$0xf0]  ;;  %1177 = vmatpush.bf16.msra.mxu3 %v2087_v17 }
  0x32   : > { %v2070_v25 = vld [vmem:[%s2401_s15 + $0x3c0] sm:$0xf]  ;;  %v1943_v26 = vor.u32 %v2201_v24, %v1942_v23  ;;  %v2233_v27 = vld [vmem:[%s2401_s15 + $0x3cc] sm:$0xf0]  ;;  %1136 = vmatpush.bf16.msra.mxu0 %v1687_v21 }
  0x33   : > { %v1670_v28 = vld [vmem:[%s2401_s15 + $0xa0] sm:$0xf]  ;;  %v2133_v29 = vld [vmem:[%s2401_s15 + $0xac] sm:$0xf0]  ;;  %v2071_v30 = vor.u32 %v2233_v27, %v2070_v25  ;;  %1150 = vmatpush.bf16.msra.mxu1 %v1815_v22 }
  0x34   : > { %v1798_v31 = vld [vmem:[%s2401_s15 + $0x1a0] sm:$0xf]  ;;  %v2165_v32 = vld [vmem:[%s2401_s15 + $0x1ac] sm:$0xf0]  ;;  %v1671_v34 = vor.u32 %v2133_v29, %v1670_v28  ;;  %1164 = vmatpush.bf16.msra.mxu2 %v1943_v26 }
  0x35   : > { %v1926_v33 = vld [vmem:[%s2401_s15 + $0x2a0] sm:$0xf]  ;;  %v2197_v35 = vld [vmem:[%s2401_s15 + $0x2ac] sm:$0xf0]  ;;  %v1799_v38 = vor.u32 %v2165_v32, %v1798_v31  ;;  %1178 = vmatpush.bf16.msra.mxu3 %v2071_v30 }
  0x36   : > { %v2054_v36 = vld [vmem:[%s2401_s15 + $0x3a0] sm:$0xf]  ;;  %v2229_v37 = vld [vmem:[%s2401_s15 + $0x3ac] sm:$0xf0]  ;;  %v1927_v39 = vor.u32 %v2197_v35, %v1926_v33  ;;  %1137 = vmatpush.bf16.msra.mxu0 %v1671_v34  ;;  %v2139_v33 = vld [vmem:[%s2401_s15 + $0xe4] sm:$0xf] }
  0x37   : > { %v1654_v40 = vld [vmem:[%s2401_s15 + $0x80] sm:$0xf]  ;;  %v2129_v41 = vld [vmem:[%s2401_s15 + $0x8c] sm:$0xf0]  ;;  %v2055_v43 = vor.u32 %v2229_v37, %v2054_v36  ;;  %1151 = vmatpush.bf16.msra.mxu1 %v1799_v38  ;;  %v1704_v34 = vld [vmem:[%s2401_s15 + $0xf0] sm:$0xf0] }
  0x38   : > { %v1782_v42 = vld [vmem:[%s2401_s15 + $0x180] sm:$0xf]  ;;  %v2161_v44 = vld [vmem:[%s2401_s15 + $0x18c] sm:$0xf0]  ;;  %v1655_v49 = vor.u32 %v2129_v41, %v1654_v40  ;;  %1165 = vmatpush.bf16.msra.mxu2 %v1927_v39  ;;  %v2171_v35 = vld [vmem:[%s2401_s15 + $0x1e4] sm:$0xf] }
  0x39   : > { %v1910_v45 = vld [vmem:[%s2401_s15 + $0x280] sm:$0xf]  ;;  %v2193_v46 = vld [vmem:[%s2401_s15 + $0x28c] sm:$0xf0]  ;;  %v1783_v50 = vor.u32 %v2161_v44, %v1782_v42  ;;  %1179 = vmatpush.bf16.msra.mxu3 %v2055_v43  ;;  %v1832_v37 = vld [vmem:[%s2401_s15 + $0x1f0] sm:$0xf0] }
  0x3a   : > { %v2038_v47 = vld [vmem:[%s2401_s15 + $0x380] sm:$0xf]  ;;  %v2225_v48 = vld [vmem:[%s2401_s15 + $0x38c] sm:$0xf0]  ;;  %v1911_v51 = vor.u32 %v2193_v46, %v1910_v45  ;;  %1138 = vmatpush.bf16.msra.mxu0 %v1655_v49  ;;  %v2203_v38 = vld [vmem:[%s2401_s15 + $0x2e4] sm:$0xf]  ;;  %v1707_v45 = vor.u32 %v2139_v33, %v1704_v34  ;;  %v1835_v46 = vor.u32 %v2171_v35, %v1832_v37 }
  0x3b   : > { %v1638_v52 = vld [vmem:[%s2401_s15 + $0x60] sm:$0xf]  ;;  %v2125_v53 = vld [vmem:[%s2401_s15 + $0x6c] sm:$0xf0]  ;;  %v2039_v55 = vor.u32 %v2225_v48, %v2038_v47  ;;  %1152 = vmatpush.bf16.msra.mxu1 %v1783_v50  ;;  %v1960_v39 = vld [vmem:[%s2401_s15 + $0x2f0] sm:$0xf0] }
  0x3c   : > { %v1766_v54 = vld [vmem:[%s2401_s15 + $0x160] sm:$0xf]  ;;  %v2157_v56 = vld [vmem:[%s2401_s15 + $0x16c] sm:$0xf0]  ;;  %v1639_v61 = vor.u32 %v2125_v53, %v1638_v52  ;;  %1166 = vmatpush.bf16.msra.mxu2 %v1911_v51  ;;  %v2235_v42 = vld [vmem:[%s2401_s15 + $0x3e4] sm:$0xf]  ;;  %v1963_v47 = vor.u32 %v2203_v38, %v1960_v39 }
  0x3d   : > { %v1894_v57 = vld [vmem:[%s2401_s15 + $0x260] sm:$0xf]  ;;  %v2189_v58 = vld [vmem:[%s2401_s15 + $0x26c] sm:$0xf0]  ;;  %v1767_v62 = vor.u32 %v2157_v56, %v1766_v54  ;;  %1180 = vmatpush.bf16.msra.mxu3 %v2039_v55  ;;  %v2088_v43 = vld [vmem:[%s2401_s15 + $0x3f0] sm:$0xf0] }
  0x3e   : > { %v2022_v59 = vld [vmem:[%s2401_s15 + $0x360] sm:$0xf]  ;;  %v2221_v60 = vld [vmem:[%s2401_s15 + $0x36c] sm:$0xf0]  ;;  %v1895_v63 = vor.u32 %v2189_v58, %v1894_v57  ;;  %1139 = vmatpush.bf16.msra.mxu0 %v1639_v61  ;;  %v2135_v48 = vld [vmem:[%s2401_s15 + $0xc4] sm:$0xf]  ;;  %v2091_v51 = vor.u32 %v2235_v42, %v2088_v43 }
  0x3f   : > { %v1622_v0 = vld [vmem:[%s2401_s15 + $0x40] sm:$0xf]  ;;  %v2121_v1 = vld [vmem:[%s2401_s15 + $0x4c] sm:$0xf0]  ;;  %v2023_v3 = vor.u32 %v2221_v60, %v2022_v59  ;;  %1153 = vmatpush.bf16.msra.mxu1 %v1767_v62  ;;  %v1688_v49 = vld [vmem:[%s2401_s15 + $0xd0] sm:$0xf0] }
  0x40   : > { %v1750_v2 = vld [vmem:[%s2401_s15 + $0x140] sm:$0xf]  ;;  %v2153_v4 = vld [vmem:[%s2401_s15 + $0x14c] sm:$0xf0]  ;;  %v1623_v9 = vor.u32 %v2121_v1, %v1622_v0  ;;  %1167 = vmatpush.bf16.msra.mxu2 %v1895_v63  ;;  %v2167_v50 = vld [vmem:[%s2401_s15 + $0x1c4] sm:$0xf]  ;;  %v1691_v57 = vor.u32 %v2135_v48, %v1688_v49 }
  0x41   : > { %v1878_v5 = vld [vmem:[%s2401_s15 + $0x240] sm:$0xf]  ;;  %v2185_v6 = vld [vmem:[%s2401_s15 + $0x24c] sm:$0xf0]  ;;  %v1751_v10 = vor.u32 %v2153_v4, %v1750_v2  ;;  %1181 = vmatpush.bf16.msra.mxu3 %v2023_v3  ;;  %v1816_v52 = vld [vmem:[%s2401_s15 + $0x1d0] sm:$0xf0] }
  0x42   : > { %v2006_v7 = vld [vmem:[%s2401_s15 + $0x340] sm:$0xf]  ;;  %v2217_v8 = vld [vmem:[%s2401_s15 + $0x34c] sm:$0xf0]  ;;  %v1879_v11 = vor.u32 %v2185_v6, %v1878_v5  ;;  %1140 = vmatpush.bf16.msra.mxu0 %v1623_v9  ;;  %v2199_v53 = vld [vmem:[%s2401_s15 + $0x2c4] sm:$0xf]  ;;  %v1819_v58 = vor.u32 %v2167_v50, %v1816_v52 }
  0x43   : > { %v1606_v12 = vld [vmem:[%s2401_s15 + $0x20] sm:$0xf]  ;;  %v2117_v13 = vld [vmem:[%s2401_s15 + $0x2c] sm:$0xf0]  ;;  %v2007_v15 = vor.u32 %v2217_v8, %v2006_v7  ;;  %1154 = vmatpush.bf16.msra.mxu1 %v1751_v10  ;;  %v1944_v54 = vld [vmem:[%s2401_s15 + $0x2d0] sm:$0xf0] }
  0x44   : > { %v1734_v14 = vld [vmem:[%s2401_s15 + $0x120] sm:$0xf]  ;;  %v2149_v16 = vld [vmem:[%s2401_s15 + $0x12c] sm:$0xf0]  ;;  %v1607_v21 = vor.u32 %v2117_v13, %v1606_v12  ;;  %1168 = vmatpush.bf16.msra.mxu2 %v1879_v11  ;;  %v2231_v55 = vld [vmem:[%s2401_s15 + $0x3c4] sm:$0xf]  ;;  %v1947_v59 = vor.u32 %v2199_v53, %v1944_v54 }
  0x45   : > { %v1862_v17 = vld [vmem:[%s2401_s15 + $0x220] sm:$0xf]  ;;  %v2181_v18 = vld [vmem:[%s2401_s15 + $0x22c] sm:$0xf0]  ;;  %v1735_v24 = vor.u32 %v2149_v16, %v1734_v14  ;;  %1182 = vmatpush.bf16.msra.mxu3 %v2007_v15  ;;  %v2072_v56 = vld [vmem:[%s2401_s15 + $0x3d0] sm:$0xf0] }
  0x46   : > { %v1990_v19 = vld [vmem:[%s2401_s15 + $0x320] sm:$0xf]  ;;  %v2213_v20 = vld [vmem:[%s2401_s15 + $0x32c] sm:$0xf0]  ;;  %v1863_v25 = vor.u32 %v2181_v18, %v1862_v17  ;;  %1141 = vmatpush.bf16.msra.mxu0 %v1607_v21  ;;  %v2131_v60 = vld [vmem:[%s2401_s15 + $0xa4] sm:$0xf]  ;;  %v2075_v63 = vor.u32 %v2231_v55, %v2072_v56 }
  0x47   : > { %v1590_v22 = vld [vmem:[%s2401_s15] sm:$0xf]  ;;  %v2113_v23 = vld [vmem:[%s2401_s15 + $0xc] sm:$0xf0]  ;;  %v1991_v29 = vor.u32 %v2213_v20, %v1990_v19  ;;  %1155 = vmatpush.bf16.msra.mxu1 %v1735_v24  ;;  %v1672_v61 = vld [vmem:[%s2401_s15 + $0xb0] sm:$0xf0] }
  0x48   : > { %v1718_v26 = vld [vmem:[%s2401_s15 + $0x100] sm:$0xf]  ;;  %v2145_v27 = vld [vmem:[%s2401_s15 + $0x10c] sm:$0xf0]  ;;  %v1591_v36 = vor.u32 %v2113_v23, %v1590_v22  ;;  %1169 = vmatpush.bf16.msra.mxu2 %v1863_v25  ;;  %v2163_v62 = vld [vmem:[%s2401_s15 + $0x1a4] sm:$0xf]  ;;  %v1675_v6 = vor.u32 %v2131_v60, %v1672_v61 }
  0x49   : > { %v1846_v28 = vld [vmem:[%s2401_s15 + $0x200] sm:$0xf]  ;;  %v2177_v30 = vld [vmem:[%s2401_s15 + $0x20c] sm:$0xf0]  ;;  %v1719_v40 = vor.u32 %v2145_v27, %v1718_v26  ;;  %1183 = vmatpush.bf16.msra.mxu3 %v1991_v29  ;;  %v1800_v0 = vld [vmem:[%s2401_s15 + $0x1b0] sm:$0xf0] }
  0x4a   : > { %v1974_v31 = vld [vmem:[%s2401_s15 + $0x300] sm:$0xf]  ;;  %v2209_v32 = vld [vmem:[%s2401_s15 + $0x30c] sm:$0xf0]  ;;  %v1847_v41 = vor.u32 %v2177_v30, %v1846_v28  ;;  %1142 = vmatpush.bf16.msra.mxu0 %v1591_v36  ;;  %v2195_v1 = vld [vmem:[%s2401_s15 + $0x2a4] sm:$0xf]  ;;  %v1803_v10 = vor.u32 %v2163_v62, %v1800_v0 }
  0x4b   : > { %v1975_v44 = vor.u32 %v2209_v32, %v1974_v31  ;;  %1156 = vmatpush.bf16.msra.mxu1 %v1719_v40  ;;  %v1928_v2 = vld [vmem:[%s2401_s15 + $0x2b0] sm:$0xf0]  ;;  %v2227_v3 = vld [vmem:[%s2401_s15 + $0x3a4] sm:$0xf]  ;;  %v1582_v8 = vld [vmem:[%s2403_s16 + $0x8] sm:$0xf] }
  0x4c   : > { %1170 = vmatpush.bf16.msra.mxu2 %v1847_v41  ;;  %v2056_v4 = vld [vmem:[%s2401_s15 + $0x3b0] sm:$0xf0]  ;;  %v2127_v5 = vld [vmem:[%s2401_s15 + $0x84] sm:$0xf]  ;;  %v2110_v9 = vld [vmem:[%s2403_s16 + $0x14] sm:$0xf0]  ;;  %v1931_v11 = vor.u32 %v2195_v1, %v1928_v2 }
  0x4d   : > { %1184 = vmatpush.bf16.msra.mxu3 %v1975_v44  ;;  %v1656_v7 = vld [vmem:[%s2401_s15 + $0x90] sm:$0xf0]  ;;  %v2159_v12 = vld [vmem:[%s2401_s15 + $0x184] sm:$0xf]  ;;  %v2499_v13 = vor.u32 %v2110_v9, %v1582_v8  ;;  %v2108_v14 = vld [vmem:[%s2403_s16 + $0xc] sm:$0xf]  ;;  %v2059_v16 = vor.u32 %v2227_v3, %v2056_v4 }
  0x4e   : > { %1191 = vmatpush.bf16.msrb.mxu0 %v1707_v45  ;;  %v1584_v15 = vld [vmem:[%s2403_s16 + $0x18] sm:$0xf0]  ;;  %v1784_v17 = vld [vmem:[%s2401_s15 + $0x190] sm:$0xf0]  ;;  %v2191_v18 = vld [vmem:[%s2401_s15 + $0x284] sm:$0xf]  ;;  %v1659_v24 = vor.u32 %v2127_v5, %v1656_v7 }
  0x4f   : > { %1205 = vmatpush.bf16.msrb.mxu1 %v1835_v46  ;;  %v1912_v19 = vld [vmem:[%s2401_s15 + $0x290] sm:$0xf0]  ;;  %v2506_v20 = vor.u32 %v2108_v14, %v1584_v15  ;;  %v2223_v21 = vld [vmem:[%s2401_s15 + $0x384] sm:$0xf]  ;;  %1171 = vmatmul.bf16.vlgmr.msra.gmra.mxu2 %v2499_v13  ;;  %v1574_v26 = vld [vmem:[%s2403_s16] sm:$0xf]  ;;  %v1787_v28 = vor.u32 %v2159_v12, %v1784_v17 }
  0x50   : > { %1219 = vmatpush.bf16.msrb.mxu2 %v1963_v47  ;;  %v2040_v22 = vld [vmem:[%s2401_s15 + $0x390] sm:$0xf0]  ;;  %v2123_v23 = vld [vmem:[%s2401_s15 + $0x64] sm:$0xf]  ;;  %v2109_v27 = vld [vmem:[%s2403_s16 + $0xc] sm:$0xf0]  ;;  %v1915_v29 = vor.u32 %v2191_v18, %v1912_v19 }
  0x51   : > { %1233 = vmatpush.bf16.msrb.mxu3 %v2091_v51  ;;  %v1640_v25 = vld [vmem:[%s2401_s15 + $0x70] sm:$0xf0]  ;;  %v2155_v30 = vld [vmem:[%s2401_s15 + $0x164] sm:$0xf]  ;;  %v2517_v31 = vor.u32 %v2109_v27, %v1574_v26  ;;  %v2043_v34 = vor.u32 %v2223_v21, %v2040_v22  ;;  %v1710_v14 = vld [vmem:[%s2401_s15 + $0xe8] sm:$0xf] }
  0x52   : > { %1192 = vmatpush.bf16.msrb.mxu0 %v1691_v57  ;;  %1185 = vmatmul.bf16.vlgmr.msra.gmra.mxu3 %v2506_v20  ;;  %v2107_v32 = vld [vmem:[%s2403_s16 + $0x4] sm:$0xf]  ;;  %v1576_v33 = vld [vmem:[%s2403_s16 + $0x10] sm:$0xf0]  ;;  %v1643_v41 = vor.u32 %v2123_v23, %v1640_v25  ;;  %v2142_v15 = vld [vmem:[%s2401_s15 + $0xf4] sm:$0xf0] }
  0x53   : > { %1206 = vmatpush.bf16.msrb.mxu1 %v1819_v58  ;;  %v1768_v35 = vld [vmem:[%s2401_s15 + $0x170] sm:$0xf0]  ;;  %v2187_v36 = vld [vmem:[%s2401_s15 + $0x264] sm:$0xf]  ;;  %v2524_v38 = vor.u32 %v2107_v32, %v1576_v33  ;;  %1143 = vmatmul.bf16.vlgmr.msra.gmra.mxu0 %v2517_v31  ;;  %v2174_v18 = vld [vmem:[%s2401_s15 + $0x1f4] sm:$0xf0]  ;;  %v1711_v27 = vor.u32 %v2142_v15, %v1710_v14 }
  0x54   : > { %1220 = vmatpush.bf16.msrb.mxu2 %v1947_v59  ;;  %v1896_v37 = vld [vmem:[%s2401_s15 + $0x270] sm:$0xf0]  ;;  %v2219_v39 = vld [vmem:[%s2401_s15 + $0x364] sm:$0xf]  ;;  %v1771_v42 = vor.u32 %v2155_v30, %v1768_v35  ;;  %v1966_v19 = vld [vmem:[%s2401_s15 + $0x2e8] sm:$0xf] }
  0x55   : > { %1234 = vmatpush.bf16.msrb.mxu3 %v2075_v63  ;;  %v2024_v40 = vld [vmem:[%s2401_s15 + $0x370] sm:$0xf0]  ;;  %1157 = vmatmul.bf16.vlgmr.msra.gmra.mxu1 %v2524_v38  ;;  %v1899_v43 = vor.u32 %v2187_v36, %v1896_v37  ;;  %v2119_v44 = vld [vmem:[%s2401_s15 + $0x44] sm:$0xf]  ;;  %v2206_v21 = vld [vmem:[%s2401_s15 + $0x2f4] sm:$0xf0] }
  0x56   : > { %1193 = vmatpush.bf16.msrb.mxu0 %v1675_v6  ;;  %v1624_v45 = vld [vmem:[%s2401_s15 + $0x50] sm:$0xf0]  ;;  %v2151_v46 = vld [vmem:[%s2401_s15 + $0x144] sm:$0xf]  ;;  %v2027_v47 = vor.u32 %v2219_v39, %v2024_v40  ;;  %v2238_v25 = vld [vmem:[%s2401_s15 + $0x3f4] sm:$0xf0] }
  0x57   : > { %1207 = vmatpush.bf16.msrb.mxu1 %v1803_v10  ;;  %v1752_v48 = vld [vmem:[%s2401_s15 + $0x150] sm:$0xf0]  ;;  %v2183_v49 = vld [vmem:[%s2401_s15 + $0x244] sm:$0xf]  ;;  %v1627_v53 = vor.u32 %v2119_v44, %v1624_v45  ;;  %v1694_v30 = vld [vmem:[%s2401_s15 + $0xc8] sm:$0xf] }
  0x58   : > { %1221 = vmatpush.bf16.msrb.mxu2 %v1931_v11  ;;  %v1880_v50 = vld [vmem:[%s2401_s15 + $0x250] sm:$0xf0]  ;;  %v2215_v51 = vld [vmem:[%s2401_s15 + $0x344] sm:$0xf]  ;;  %v1755_v54 = vor.u32 %v2151_v46, %v1752_v48  ;;  %v2138_v32 = vld [vmem:[%s2401_s15 + $0xd4] sm:$0xf0] }
  0x59   : > { %1235 = vmatpush.bf16.msrb.mxu3 %v2059_v16  ;;  %v2008_v52 = vld [vmem:[%s2401_s15 + $0x350] sm:$0xf0]  ;;  %v1883_v55 = vor.u32 %v2183_v49, %v1880_v50  ;;  %v2115_v56 = vld [vmem:[%s2401_s15 + $0x24] sm:$0xf]  ;;  %v1838_v16 = vld [vmem:[%s2401_s15 + $0x1e8] sm:$0xf] }
  0x5a   : > { %1194 = vmatpush.bf16.msrb.mxu0 %v1659_v24  ;;  %v1608_v57 = vld [vmem:[%s2401_s15 + $0x30] sm:$0xf0]  ;;  %v2147_v58 = vld [vmem:[%s2401_s15 + $0x124] sm:$0xf]  ;;  %v2011_v59 = vor.u32 %v2215_v51, %v2008_v52  ;;  %v2094_v24 = vld [vmem:[%s2401_s15 + $0x3e8] sm:$0xf] }
  0x5b   : > { %1208 = vmatpush.bf16.msrb.mxu1 %v1787_v28  ;;  %v1736_v60 = vld [vmem:[%s2401_s15 + $0x130] sm:$0xf0]  ;;  %v2179_v61 = vld [vmem:[%s2401_s15 + $0x224] sm:$0xf]  ;;  %v1611_v1 = vor.u32 %v2115_v56, %v1608_v57  ;;  %v1839_v28 = vor.u32 %v2174_v18, %v1838_v16  ;;  %v1822_v33 = vld [vmem:[%s2401_s15 + $0x1c8] sm:$0xf] }
  0x5c   : > { %1222 = vmatpush.bf16.msrb.mxu2 %v1915_v29  ;;  %v1864_v62 = vld [vmem:[%s2401_s15 + $0x230] sm:$0xf0]  ;;  %v2211_v63 = vld [vmem:[%s2401_s15 + $0x324] sm:$0xf]  ;;  %v1739_v4 = vor.u32 %v2147_v58, %v1736_v60  ;;  %v1967_v29 = vor.u32 %v2206_v21, %v1966_v19  ;;  %v2170_v35 = vld [vmem:[%s2401_s15 + $0x1d4] sm:$0xf0] }
  0x5d   : > { %1236 = vmatpush.bf16.msrb.mxu3 %v2043_v34  ;;  %v1992_v0 = vld [vmem:[%s2401_s15 + $0x330] sm:$0xf0]  ;;  %v2111_v2 = vld [vmem:[%s2401_s15 + $0x4] sm:$0xf]  ;;  %v1867_v5 = vor.u32 %v2179_v61, %v1864_v62  ;;  %v2095_v34 = vor.u32 %v2238_v25, %v2094_v24  ;;  %v1950_v36 = vld [vmem:[%s2401_s15 + $0x2c8] sm:$0xf] }
  0x5e   : > { %1195 = vmatpush.bf16.msrb.mxu0 %v1643_v41  ;;  %v1592_v3 = vld [vmem:[%s2401_s15 + $0x10] sm:$0xf0]  ;;  %v2143_v6 = vld [vmem:[%s2401_s15 + $0x104] sm:$0xf]  ;;  %v1995_v9 = vor.u32 %v2211_v63, %v1992_v0  ;;  %v2202_v37 = vld [vmem:[%s2401_s15 + $0x2d4] sm:$0xf0]  ;;  %v1695_v41 = vor.u32 %v2138_v32, %v1694_v30 }
  0x5f   : > { %1209 = vmatpush.bf16.msrb.mxu1 %v1771_v42  ;;  %v1720_v7 = vld [vmem:[%s2401_s15 + $0x110] sm:$0xf0]  ;;  %v2175_v8 = vld [vmem:[%s2401_s15 + $0x204] sm:$0xf]  ;;  %v1595_v17 = vor.u32 %v2111_v2, %v1592_v3  ;;  %v2078_v39 = vld [vmem:[%s2401_s15 + $0x3c8] sm:$0xf]  ;;  %v1823_v42 = vor.u32 %v2170_v35, %v1822_v33 }
  0x60   : > { %1223 = vmatpush.bf16.msrb.mxu2 %v1899_v43  ;;  %v1848_v10 = vld [vmem:[%s2401_s15 + $0x210] sm:$0xf0]  ;;  %v2207_v11 = vld [vmem:[%s2401_s15 + $0x304] sm:$0xf]  ;;  %v1723_v22 = vor.u32 %v2143_v6, %v1720_v7  ;;  %v2234_v40 = vld [vmem:[%s2401_s15 + $0x3d4] sm:$0xf0]  ;;  %v1951_v43 = vor.u32 %v2202_v37, %v1950_v36 }
  0x61   : > { %1237 = vmatpush.bf16.msrb.mxu3 %v2027_v47  ;;  %v1976_v12 = vld [vmem:[%s2401_s15 + $0x310] sm:$0xf0]  ;;  %v1851_v23 = vor.u32 %v2175_v8, %v1848_v10  ;;  %v1678_v44 = vld [vmem:[%s2401_s15 + $0xa8] sm:$0xf]  ;;  %v2134_v45 = vld [vmem:[%s2401_s15 + $0xb4] sm:$0xf0]  ;;  %v2079_v47 = vor.u32 %v2234_v40, %v2078_v39 }
  0x62   : > { %1196 = vmatpush.bf16.msrb.mxu0 %v1627_v53  ;;  %v1979_v26 = vor.u32 %v2207_v11, %v1976_v12  ;;  %v1806_v46 = vld [vmem:[%s2401_s15 + $0x1a8] sm:$0xf]  ;;  %v2166_v48 = vld [vmem:[%s2401_s15 + $0x1b4] sm:$0xf0]  ;;  %v1679_v53 = vor.u32 %v2134_v45, %v1678_v44 }
  0x63   : > { %1210 = vmatpush.bf16.msrb.mxu1 %v1755_v54  ;;  %v1934_v49 = vld [vmem:[%s2401_s15 + $0x2a8] sm:$0xf]  ;;  %v2198_v50 = vld [vmem:[%s2401_s15 + $0x2b4] sm:$0xf0]  ;;  %v1807_v54 = vor.u32 %v2166_v48, %v1806_v46 }
  0x64   : > { %1224 = vmatpush.bf16.msrb.mxu2 %v1883_v55  ;;  %v2062_v51 = vld [vmem:[%s2401_s15 + $0x3a8] sm:$0xf]  ;;  %v2230_v52 = vld [vmem:[%s2401_s15 + $0x3b4] sm:$0xf0]  ;;  %v1935_v55 = vor.u32 %v2198_v50, %v1934_v49 }
  0x65   : > { %1238 = vmatpush.bf16.msrb.mxu3 %v2011_v59  ;;  %v1662_v56 = vld [vmem:[%s2401_s15 + $0x88] sm:$0xf]  ;;  %v2130_v57 = vld [vmem:[%s2401_s15 + $0x94] sm:$0xf0]  ;;  %v2063_v59 = vor.u32 %v2230_v52, %v2062_v51 }
  0x66   : > { %1197 = vmatpush.bf16.msrb.mxu0 %v1611_v1  ;;  %v1790_v58 = vld [vmem:[%s2401_s15 + $0x188] sm:$0xf]  ;;  %v2162_v60 = vld [vmem:[%s2401_s15 + $0x194] sm:$0xf0]  ;;  %v1663_v1 = vor.u32 %v2130_v57, %v1662_v56  ;;  %v1840_v57 = vld [vmem:[%s2401_s15 + $0x1f8] sm:$0xf0] }
  0x67   : > { %1211 = vmatpush.bf16.msrb.mxu1 %v1739_v4  ;;  %v1918_v61 = vld [vmem:[%s2401_s15 + $0x288] sm:$0xf]  ;;  %v2194_v62 = vld [vmem:[%s2401_s15 + $0x294] sm:$0xf0]  ;;  %v1791_v2 = vor.u32 %v2162_v60, %v1790_v58  ;;  %v2204_v58 = vld [vmem:[%s2401_s15 + $0x2ec] sm:$0xf] }
  0x68   : > { %1225 = vmatpush.bf16.msrb.mxu2 %v1867_v5  ;;  %v2046_v63 = vld [vmem:[%s2401_s15 + $0x388] sm:$0xf]  ;;  %v2226_v0 = vld [vmem:[%s2401_s15 + $0x394] sm:$0xf0]  ;;  %v1919_v3 = vor.u32 %v2194_v62, %v1918_v61  ;;  %v2236_v62 = vld [vmem:[%s2401_s15 + $0x3ec] sm:$0xf] }
  0x69   : > { %1239 = vmatpush.bf16.msrb.mxu3 %v1995_v9  ;;  %v1646_v4 = vld [vmem:[%s2401_s15 + $0x68] sm:$0xf]  ;;  %v2126_v5 = vld [vmem:[%s2401_s15 + $0x74] sm:$0xf0]  ;;  %v2047_v7 = vor.u32 %v2226_v0, %v2046_v63  ;;  %v2096_v63 = vld [vmem:[%s2401_s15 + $0x3f8] sm:$0xf0] }
  0x6a   : > { %1198 = vmatpush.bf16.msrb.mxu0 %v1595_v17  ;;  %v1774_v6 = vld [vmem:[%s2401_s15 + $0x168] sm:$0xf]  ;;  %v2158_v8 = vld [vmem:[%s2401_s15 + $0x174] sm:$0xf0]  ;;  %v1647_v14 = vor.u32 %v2126_v5, %v1646_v4  ;;  %v2136_v4 = vld [vmem:[%s2401_s15 + $0xcc] sm:$0xf] }
  0x6b   : > { %1212 = vmatpush.bf16.msrb.mxu1 %v1723_v22  ;;  %v1902_v9 = vld [vmem:[%s2401_s15 + $0x268] sm:$0xf]  ;;  %v2190_v10 = vld [vmem:[%s2401_s15 + $0x274] sm:$0xf0]  ;;  %v1775_v15 = vor.u32 %v2158_v8, %v1774_v6  ;;  %v1696_v5 = vld [vmem:[%s2401_s15 + $0xd8] sm:$0xf0] }
  0x6c   : > { %1226 = vmatpush.bf16.msrb.mxu2 %v1851_v23  ;;  %v2030_v11 = vld [vmem:[%s2401_s15 + $0x368] sm:$0xf]  ;;  %v2222_v12 = vld [vmem:[%s2401_s15 + $0x374] sm:$0xf0]  ;;  %v1903_v16 = vor.u32 %v2190_v10, %v1902_v9  ;;  %v2168_v6 = vld [vmem:[%s2401_s15 + $0x1cc] sm:$0xf] }
  0x6d   : > { %1240 = vmatpush.bf16.msrb.mxu3 %v1979_v26  ;;  %1199 = vmatmul.bf16.vlgmr.msrb.gmra.mxu0 %v2517_v31  ;;  %v1630_v17 = vld [vmem:[%s2401_s15 + $0x48] sm:$0xf]  ;;  %v2122_v18 = vld [vmem:[%s2401_s15 + $0x54] sm:$0xf0]  ;;  %v2031_v21 = vor.u32 %v2222_v12, %v2030_v11  ;;  %v1824_v8 = vld [vmem:[%s2401_s15 + $0x1d8] sm:$0xf0] }
  0x6e   : > { %1247 = vmatpush.bf16.msra.mxu0 %v1711_v27  ;;  %1213 = vmatmul.bf16.vlgmr.msrb.gmra.mxu1 %v2524_v38  ;;  %v1758_v19 = vld [vmem:[%s2401_s15 + $0x148] sm:$0xf]  ;;  %v2154_v22 = vld [vmem:[%s2401_s15 + $0x154] sm:$0xf0]  ;;  %v1631_v27 = vor.u32 %v2122_v18, %v1630_v17  ;;  %v2200_v9 = vld [vmem:[%s2401_s15 + $0x2cc] sm:$0xf] }
  0x6f   : > { %1261 = vmatpush.bf16.msra.mxu1 %v1839_v28  ;;  %1227 = vmatmul.bf16.vlgmr.msrb.gmra.mxu2 %v2499_v13  ;;  %v1886_v23 = vld [vmem:[%s2401_s15 + $0x248] sm:$0xf]  ;;  %v2186_v24 = vld [vmem:[%s2401_s15 + $0x254] sm:$0xf0]  ;;  %v1759_v28 = vor.u32 %v2154_v22, %v1758_v19  ;;  %v1952_v10 = vld [vmem:[%s2401_s15 + $0x2d8] sm:$0xf0] }
  0x70   : > { %1275 = vmatpush.bf16.msra.mxu2 %v1967_v29  ;;  %1241 = vmatmul.bf16.vlgmr.msrb.gmra.mxu3 %v2506_v20  ;;  %v2014_v25 = vld [vmem:[%s2401_s15 + $0x348] sm:$0xf]  ;;  %v2218_v26 = vld [vmem:[%s2401_s15 + $0x354] sm:$0xf0]  ;;  %v1887_v29 = vor.u32 %v2186_v24, %v1886_v23  ;;  %v2232_v11 = vld [vmem:[%s2401_s15 + $0x3cc] sm:$0xf] }
  0x71   : > { %1289 = vmatpush.bf16.msra.mxu3 %v2095_v34  ;;  %v1614_v30 = vld [vmem:[%s2401_s15 + $0x28] sm:$0xf]  ;;  %v2118_v32 = vld [vmem:[%s2401_s15 + $0x34] sm:$0xf0]  ;;  %v2015_v34 = vor.u32 %v2218_v26, %v2014_v25  ;;  %v2080_v12 = vld [vmem:[%s2401_s15 + $0x3d8] sm:$0xf0] }
  0x72   : > { %1248 = vmatpush.bf16.msra.mxu0 %v1695_v41  ;;  %v1742_v33 = vld [vmem:[%s2401_s15 + $0x128] sm:$0xf]  ;;  %v2150_v35 = vld [vmem:[%s2401_s15 + $0x134] sm:$0xf0]  ;;  %v1615_v41 = vor.u32 %v2118_v32, %v1614_v30  ;;  %v2132_v17 = vld [vmem:[%s2401_s15 + $0xac] sm:$0xf] }
  0x73   : > { %1262 = vmatpush.bf16.msra.mxu1 %v1823_v42  ;;  %v1870_v36 = vld [vmem:[%s2401_s15 + $0x228] sm:$0xf]  ;;  %v2182_v37 = vld [vmem:[%s2401_s15 + $0x234] sm:$0xf0]  ;;  %v1743_v44 = vor.u32 %v2150_v35, %v1742_v33  ;;  %v1680_v18 = vld [vmem:[%s2401_s15 + $0xb8] sm:$0xf0] }
  0x74   : > { %1276 = vmatpush.bf16.msra.mxu2 %v1951_v43  ;;  %v1998_v39 = vld [vmem:[%s2401_s15 + $0x328] sm:$0xf]  ;;  %v2214_v40 = vld [vmem:[%s2401_s15 + $0x334] sm:$0xf0]  ;;  %v1871_v45 = vor.u32 %v2182_v37, %v1870_v36  ;;  %v2164_v19 = vld [vmem:[%s2401_s15 + $0x1ac] sm:$0xf] }
  0x75   : > { %1290 = vmatpush.bf16.msra.mxu3 %v2079_v47  ;;  %v1598_v42 = vld [vmem:[%s2401_s15 + $0x8] sm:$0xf]  ;;  %v2114_v43 = vld [vmem:[%s2401_s15 + $0x14] sm:$0xf0]  ;;  %v1999_v49 = vor.u32 %v2214_v40, %v1998_v39  ;;  %v1808_v22 = vld [vmem:[%s2401_s15 + $0x1b8] sm:$0xf0] }
  0x76   : > { %1249 = vmatpush.bf16.msra.mxu0 %v1679_v53  ;;  %v1726_v46 = vld [vmem:[%s2401_s15 + $0x108] sm:$0xf]  ;;  %v2146_v47 = vld [vmem:[%s2401_s15 + $0x114] sm:$0xf0]  ;;  %v2140_v53 = vld [vmem:[%s2401_s15 + $0xec] sm:$0xf]  ;;  %v1599_v56 = vor.u32 %v2114_v43, %v1598_v42 }
  0x77   : > { %1263 = vmatpush.bf16.msra.mxu1 %v1807_v54  ;;  %v1854_v48 = vld [vmem:[%s2401_s15 + $0x208] sm:$0xf]  ;;  %v2178_v50 = vld [vmem:[%s2401_s15 + $0x214] sm:$0xf0]  ;;  %v1712_v54 = vld [vmem:[%s2401_s15 + $0xf8] sm:$0xf0]  ;;  %v1727_v60 = vor.u32 %v2146_v47, %v1726_v46 }
  0x78   : > { %1277 = vmatpush.bf16.msra.mxu2 %v1935_v55  ;;  %v1982_v51 = vld [vmem:[%s2401_s15 + $0x308] sm:$0xf]  ;;  %v2210_v52 = vld [vmem:[%s2401_s15 + $0x314] sm:$0xf0]  ;;  %v2172_v55 = vld [vmem:[%s2401_s15 + $0x1ec] sm:$0xf]  ;;  %v1855_v61 = vor.u32 %v2178_v50, %v1854_v48 }
  0x79   : > { %1291 = vmatpush.bf16.msra.mxu3 %v2063_v59  ;;  %v1968_v59 = vld [vmem:[%s2401_s15 + $0x2f8] sm:$0xf0]  ;;  %v1983_v0 = vor.u32 %v2210_v52, %v1982_v51  ;;  %v2196_v23 = vld [vmem:[%s2401_s15 + $0x2ac] sm:$0xf] }
  0x7a   : > { %1250 = vmatpush.bf16.msra.mxu0 %v1663_v1  ;;  %v1715_v1 = vor.u32 %v2140_v53, %v1712_v54  ;;  %v1936_v24 = vld [vmem:[%s2401_s15 + $0x2b8] sm:$0xf0]  ;;  %v2228_v25 = vld [vmem:[%s2401_s15 + $0x3ac] sm:$0xf] }
  0x7b   : > { %1264 = vmatpush.bf16.msra.mxu1 %v1791_v2  ;;  %v1843_v2 = vor.u32 %v2172_v55, %v1840_v57  ;;  %v2064_v26 = vld [vmem:[%s2401_s15 + $0x3b8] sm:$0xf0]  ;;  %v2128_v30 = vld [vmem:[%s2401_s15 + $0x8c] sm:$0xf] }
  0x7c   : > { %1278 = vmatpush.bf16.msra.mxu2 %v1919_v3  ;;  %v1971_v3 = vor.u32 %v2204_v58, %v1968_v59  ;;  %v1664_v32 = vld [vmem:[%s2401_s15 + $0x98] sm:$0xf0]  ;;  %v2160_v33 = vld [vmem:[%s2401_s15 + $0x18c] sm:$0xf] }
  0x7d   : > { %1292 = vmatpush.bf16.msra.mxu3 %v2047_v7  ;;  %v2099_v7 = vor.u32 %v2236_v62, %v2096_v63  ;;  %v1792_v35 = vld [vmem:[%s2401_s15 + $0x198] sm:$0xf0]  ;;  %v2192_v36 = vld [vmem:[%s2401_s15 + $0x28c] sm:$0xf] }
  0x7e   : > { %1251 = vmatpush.bf16.msra.mxu0 %v1647_v14  ;;  %v1699_v14 = vor.u32 %v2136_v4, %v1696_v5  ;;  %v1920_v37 = vld [vmem:[%s2401_s15 + $0x298] sm:$0xf0]  ;;  %v2224_v39 = vld [vmem:[%s2401_s15 + $0x38c] sm:$0xf]  ;;  %v1795_v42 = vor.u32 %v2160_v33, %v1792_v35 }
  0x7f   : > { %1265 = vmatpush.bf16.msra.mxu1 %v1775_v15  ;;  %v1827_v15 = vor.u32 %v2168_v6, %v1824_v8  ;;  %v2048_v40 = vld [vmem:[%s2401_s15 + $0x398] sm:$0xf0]  ;;  %v1923_v43 = vor.u32 %v2192_v36, %v1920_v37  ;;  %v2156_v46 = vld [vmem:[%s2401_s15 + $0x16c] sm:$0xf] }
  0x80   : > { %1279 = vmatpush.bf16.msra.mxu2 %v1903_v16  ;;  %v1955_v16 = vor.u32 %v2200_v9, %v1952_v10  ;;  %v2051_v47 = vor.u32 %v2224_v39, %v2048_v40  ;;  %v1776_v48 = vld [vmem:[%s2401_s15 + $0x178] sm:$0xf0]  ;;  %v2220_v51 = vld [vmem:[%s2401_s15 + $0x36c] sm:$0xf]  ;;  %v335_v39 = vld [vmem:[#allocation2 + $0x30] sm:$0xff] }
  0x81   : > { %1293 = vmatpush.bf16.msra.mxu3 %v2031_v21  ;;  %v2083_v21 = vor.u32 %v2232_v11, %v2080_v12  ;;  %v1904_v50 = vld [vmem:[%s2401_s15 + $0x278] sm:$0xf0]  ;;  %v1779_v54 = vor.u32 %v2156_v46, %v1776_v48  ;;  %v2152_v58 = vld [vmem:[%s2401_s15 + $0x14c] sm:$0xf] }
  0x82   : > { %1252 = vmatpush.bf16.msra.mxu0 %v1631_v27  ;;  %v1683_v27 = vor.u32 %v2132_v17, %v1680_v18  ;;  %v2032_v52 = vld [vmem:[%s2401_s15 + $0x378] sm:$0xf0]  ;;  %v2216_v63 = vld [vmem:[%s2401_s15 + $0x34c] sm:$0xf] }
  0x83   : > { %1266 = vmatpush.bf16.msra.mxu1 %v1759_v28  ;;  %v1811_v28 = vor.u32 %v2164_v19, %v1808_v22  ;;  %v1632_v57 = vld [vmem:[%s2401_s15 + $0x58] sm:$0xf0]  ;;  %v2035_v59 = vor.u32 %v2220_v51, %v2032_v52  ;;  %v2116_v4 = vld [vmem:[%s2401_s15 + $0x2c] sm:$0xf] }
  0x84   : > { %1280 = vmatpush.bf16.msra.mxu2 %v1887_v29  ;;  %v1939_v29 = vor.u32 %v2196_v23, %v1936_v24  ;;  %v1888_v62 = vld [vmem:[%s2401_s15 + $0x258] sm:$0xf0]  ;;  %v2148_v6 = vld [vmem:[%s2401_s15 + $0x12c] sm:$0xf] }
  0x85   : > { %1294 = vmatpush.bf16.msra.mxu3 %v2015_v34  ;;  %v2067_v34 = vor.u32 %v2228_v25, %v2064_v26  ;;  %v1616_v5 = vld [vmem:[%s2401_s15 + $0x38] sm:$0xf0]  ;;  %v2180_v9 = vld [vmem:[%s2401_s15 + $0x22c] sm:$0xf] }
  0x86   : > { %1253 = vmatpush.bf16.msra.mxu0 %v1615_v41  ;;  %v1667_v41 = vor.u32 %v2128_v30, %v1664_v32  ;;  %v1744_v8 = vld [vmem:[%s2401_s15 + $0x138] sm:$0xf0]  ;;  %v2212_v11 = vld [vmem:[%s2401_s15 + $0x32c] sm:$0xf] }
  0x87   : > { %1267 = vmatpush.bf16.msra.mxu1 %v1743_v44  ;;  %v2124_v44 = vld [vmem:[%s2401_s15 + $0x6c] sm:$0xf]  ;;  %v1872_v10 = vld [vmem:[%s2401_s15 + $0x238] sm:$0xf0] }
  0x88   : > { %1281 = vmatpush.bf16.msra.mxu2 %v1871_v45  ;;  %v1648_v45 = vld [vmem:[%s2401_s15 + $0x78] sm:$0xf0]  ;;  %v2112_v17 = vld [vmem:[%s2401_s15 + $0xc] sm:$0xf] }
  0x89   : > { %1295 = vmatpush.bf16.msra.mxu3 %v1999_v49  ;;  %v2188_v49 = vld [vmem:[%s2401_s15 + $0x26c] sm:$0xf]  ;;  %v1651_v53 = vor.u32 %v2124_v44, %v1648_v45  ;;  %v2000_v12 = vld [vmem:[%s2401_s15 + $0x338] sm:$0xf0] }
  0x8a   : > { %1254 = vmatpush.bf16.msra.mxu0 %v1599_v56  ;;  %v1907_v55 = vor.u32 %v2188_v49, %v1904_v50  ;;  %v2120_v56 = vld [vmem:[%s2401_s15 + $0x4c] sm:$0xf]  ;;  %v1600_v18 = vld [vmem:[%s2401_s15 + $0x18] sm:$0xf0] }
  0x8b   : > { %1268 = vmatpush.bf16.msra.mxu1 %v1727_v60  ;;  %v1760_v60 = vld [vmem:[%s2401_s15 + $0x158] sm:$0xf0]  ;;  %v2144_v19 = vld [vmem:[%s2401_s15 + $0x10c] sm:$0xf] }
  0x8c   : > { %1282 = vmatpush.bf16.msra.mxu2 %v1855_v61  ;;  %v2184_v61 = vld [vmem:[%s2401_s15 + $0x24c] sm:$0xf]  ;;  %v1728_v22 = vld [vmem:[%s2401_s15 + $0x118] sm:$0xf0] }
  0x8d   : > { %1296 = vmatpush.bf16.msra.mxu3 %v1983_v0  ;;  %1255 = vmatmul.bf16.vlgmr.msra.gmra.mxu0 %v2517_v31  ;;  %v2016_v0 = vld [vmem:[%s2401_s15 + $0x358] sm:$0xf0]  ;;  %v2176_v23 = vld [vmem:[%s2401_s15 + $0x20c] sm:$0xf] }
  0x8e   : > { %1303 = vmatpush.bf16.msrb.mxu0 %v1715_v1  ;;  %1269 = vmatmul.bf16.vlgmr.msra.gmra.mxu1 %v2524_v38  ;;  %v1635_v1 = vor.u32 %v2120_v56, %v1632_v57  ;;  %v1856_v24 = vld [vmem:[%s2401_s15 + $0x218] sm:$0xf0]  ;;  %v2208_v25 = vld [vmem:[%s2401_s15 + $0x30c] sm:$0xf] }
  0x8f   : > { %1317 = vmatpush.bf16.msrb.mxu1 %v1843_v2  ;;  %1283 = vmatmul.bf16.vlgmr.msra.gmra.mxu2 %v2499_v13  ;;  %v1763_v2 = vor.u32 %v2152_v58, %v1760_v60  ;;  %v1984_v26 = vld [vmem:[%s2401_s15 + $0x318] sm:$0xf0]  ;;  %v339_v46 = vld [vmem:[#allocation2 + $0x8] sm:$0xff] }
  0x90   : > { %1331 = vmatpush.bf16.msrb.mxu2 %v1971_v3  ;;  %1297 = vmatmul.bf16.vlgmr.msra.gmra.mxu3 %v2506_v20  ;;  %v1891_v3 = vor.u32 %v2184_v61, %v1888_v62  ;;  %v1987_v30 = vor.u32 %v2208_v25, %v1984_v26  ;;  %v340_v62 = vld [vmem:[#allocation2 + $0x20] sm:$0xff] }
  0x91   : > { %1345 = vmatpush.bf16.msrb.mxu3 %v2099_v7  ;;  %v2019_v7 = vor.u32 %v2216_v63, %v2016_v0 }
  0x92   : > { %1304 = vmatpush.bf16.msrb.mxu0 %v1699_v14  ;;  %v1619_v14 = vor.u32 %v2116_v4, %v1616_v5 }
  0x93   : > { %1318 = vmatpush.bf16.msrb.mxu1 %v1827_v15  ;;  %v1747_v15 = vor.u32 %v2148_v6, %v1744_v8 }
  0x94   : > { %1332 = vmatpush.bf16.msrb.mxu2 %v1955_v16  ;;  %v1875_v16 = vor.u32 %v2180_v9, %v1872_v10 }
  0x95   : > { %1346 = vmatpush.bf16.msrb.mxu3 %v2083_v21  ;;  %v2003_v21 = vor.u32 %v2212_v11, %v2000_v12 }
  0x96   : > { %1305 = vmatpush.bf16.msrb.mxu0 %v1683_v27  ;;  %v1603_v27 = vor.u32 %v2112_v17, %v1600_v18  ;;  %v341_v17 = vld [vmem:[#allocation2 + $0x28] sm:$0xff] }
  0x97   : > { %1319 = vmatpush.bf16.msrb.mxu1 %v1811_v28  ;;  %v1731_v28 = vor.u32 %v2144_v19, %v1728_v22 }
  0x98   : > { %1333 = vmatpush.bf16.msrb.mxu2 %v1939_v29  ;;  %v1859_v29 = vor.u32 %v2176_v23, %v1856_v24 }
  0x99   : > { %1347 = vmatpush.bf16.msrb.mxu3 %v2067_v34 }
  0x9a   : > { %1306 = vmatpush.bf16.msrb.mxu0 %v1667_v41 }
  0x9b   : > { %1320 = vmatpush.bf16.msrb.mxu1 %v1795_v42 }
  0x9c   : > { %1334 = vmatpush.bf16.msrb.mxu2 %v1923_v43 }
  0x9d   : > { %1348 = vmatpush.bf16.msrb.mxu3 %v2051_v47 }
  0x9e   : > { %1307 = vmatpush.bf16.msrb.mxu0 %v1651_v53  ;;  %v336_v53 = vld [vmem:[#allocation2] sm:$0xff] }
  0x9f   : > { %1321 = vmatpush.bf16.msrb.mxu1 %v1779_v54 }
  0xa0   : > { %1335 = vmatpush.bf16.msrb.mxu2 %v1907_v55 }
  0xa1   : > { %1349 = vmatpush.bf16.msrb.mxu3 %v2035_v59 }
  0xa2   : > { %1308 = vmatpush.bf16.msrb.mxu0 %v1635_v1 }
  0xa3   : > { %1322 = vmatpush.bf16.msrb.mxu1 %v1763_v2 }
  0xa4   : > { %1336 = vmatpush.bf16.msrb.mxu2 %v1891_v3 }
  0xa5   : > { %1350 = vmatpush.bf16.msrb.mxu3 %v2019_v7  ;;  %v337_v7 = vld [vmem:[#allocation2 + $0x18] sm:$0xff] }
  0xa6   : > { %1309 = vmatpush.bf16.msrb.mxu0 %v1619_v14 }
  0xa7   : > { %1323 = vmatpush.bf16.msrb.mxu1 %v1747_v15 }
  0xa8   : > { %1337 = vmatpush.bf16.msrb.mxu2 %v1875_v16 }
  0xa9   : > { %1351 = vmatpush.bf16.msrb.mxu3 %v2003_v21 }
  0xaa   : > { %1310 = vmatpush.bf16.msrb.mxu0 %v1603_v27  ;;  %v338_v27 = vld [vmem:[#allocation2 + $0x10] sm:$0xff] }
  0xab   : > { %1324 = vmatpush.bf16.msrb.mxu1 %v1731_v28 }
  0xac   : > { %1338 = vmatpush.bf16.msrb.mxu2 %v1859_v29 }
  0xad   : > { %1352 = vmatpush.bf16.msrb.mxu3 %v1987_v30  ;;  %1311 = vmatmul.bf16.vlgmr.msrb.gmra.mxu0 %v2517_v31 }
  0xae   : > { %1325 = vmatmul.bf16.vlgmr.msrb.gmra.mxu1 %v2524_v38 }
  0xaf   : > { %1339 = vmatmul.bf16.vlgmr.msrb.gmra.mxu2 %v2499_v13 }
  0xb0   : > { %1353 = vmatmul.bf16.vlgmr.msrb.gmra.mxu3 %v2506_v20 }
  0xd0   : > { %v1144_v32 = vpop.f32.mrf.mxu0 }
  0xd2   : > { %v1158_v33 = vpop.f32.mrf.mxu1  ;;  %v1172_v35 = vpop.f32.mrf.mxu2 }
  0xd3   : > { %v1159_v34 = vadd.f32 %v1158_v33, %v1144_v32 }
  0xd5   : > { %v1186_v36 = vpop.f32.mrf.mxu3  ;;  %v1173_v37 = vadd.f32 %v1172_v35, %v1159_v34 }
  0xd7   : > { %v1187_v40 = vadd.f32 %v1186_v36, %v1173_v37  ;;  %v342_v36 = vld [vmem:[#allocation2 + $0x38] sm:$0xff] }
  0xd8   : > { %v1146_v42 = vpop.f32.mrf.mxu0 }
  0xd9   : > { %v1359_v41 = vadd.f32 %v1187_v40, %v335_v39 }
  0xda   : > { %v1160_v43 = vpop.f32.mrf.mxu1  ;;  %v1174_v31 = vpop.f32.mrf.mxu2 }
  0xdb   : > { %1367 = vst [vmem:[#allocation2 + $0x30] sm:$0xff] %v1359_v41  ;;  %v1161_v44 = vadd.f32 %v1160_v43, %v1146_v42 }
  0xdd   : > { %v1188_v45 = vpop.f32.mrf.mxu3  ;;  %v1175_v38 = vadd.f32 %v1174_v31, %v1161_v44 }
  0xdf   : > { %v1189_v13 = vadd.f32 %v1188_v45, %v1175_v38 }
  0xe1   : > { %v1363_v47 = vadd.f32 %v1189_v13, %v339_v46 }
  0xe3   : > { %1371 = vst [vmem:[#allocation2 + $0x8] sm:$0xff] %v1363_v47 }
  0xea   : > { %v1200_v20 = vpop.f32.mrf.mxu0 }
  0xeb   : > { %v1214_v48 = vpop.f32.mrf.mxu1 }
  0xec   : > { %v1215_v49 = vadd.f32 %v1214_v48, %v1200_v20 }
  0xf2   : > { %v1228_v50 = vpop.f32.mrf.mxu2  ;;  %v1202_v55 = vpop.f32.mrf.mxu0 }
  0xf3   : > { %v1229_v51 = vadd.f32 %v1228_v50, %v1215_v49  ;;  %v1242_v52 = vpop.f32.mrf.mxu3  ;;  %v1216_v56 = vpop.f32.mrf.mxu1 }
  0xf4   : > { %v1217_v58 = vadd.f32 %v1216_v56, %v1202_v55 }
  0xf5   : > { %v1243_v54 = vadd.f32 %v1242_v52, %v1229_v51 }
  0xf7   : > { %v1360_v57 = vadd.f32 %v1243_v54, %v336_v53 }
  0xf9   : > { %1368 = vst [vmem:[#allocation2] sm:$0xff] %v1360_v57 }
  0xfa   : > { %v1230_v59 = vpop.f32.mrf.mxu2 }
  0xfb   : > { %v1231_v60 = vadd.f32 %v1230_v59, %v1217_v58  ;;  %v1244_v61 = vpop.f32.mrf.mxu3 }
  0xfd   : > { %v1245_v63 = vadd.f32 %v1244_v61, %v1231_v60 }
  0xff   : > { %v1364_v0 = vadd.f32 %v1245_v63, %v340_v62 }
 0x101   : > { %1372 = vst [vmem:[#allocation2 + $0x20] sm:$0xff] %v1364_v0 }
 0x10a   : > { %v1256_v1 = vpop.f32.mrf.mxu0 }
 0x10b   : > { %v1270_v2 = vpop.f32.mrf.mxu1 }
 0x10c   : > { %v1271_v3 = vadd.f32 %v1270_v2, %v1256_v1 }
 0x112   : > { %v1284_v4 = vpop.f32.mrf.mxu2  ;;  %v1258_v9 = vpop.f32.mrf.mxu0 }
 0x113   : > { %v1285_v5 = vadd.f32 %v1284_v4, %v1271_v3  ;;  %v1298_v6 = vpop.f32.mrf.mxu3  ;;  %v1272_v10 = vpop.f32.mrf.mxu1 }
 0x114   : > { %v1273_v12 = vadd.f32 %v1272_v10, %v1258_v9 }
 0x115   : > { %v1299_v8 = vadd.f32 %v1298_v6, %v1285_v5 }
 0x117   : > { %v1361_v11 = vadd.f32 %v1299_v8, %v337_v7 }
 0x119   : > { %1369 = vst [vmem:[#allocation2 + $0x18] sm:$0xff] %v1361_v11 }
 0x11a   : > { %v1286_v14 = vpop.f32.mrf.mxu2 }
 0x11b   : > { %v1287_v15 = vadd.f32 %v1286_v14, %v1273_v12  ;;  %v1300_v16 = vpop.f32.mrf.mxu3 }
 0x11d   : > { %v1301_v18 = vadd.f32 %v1300_v16, %v1287_v15 }
 0x11f   : > { %v1365_v19 = vadd.f32 %v1301_v18, %v341_v17 }
 0x121   : > { %1373 = vst [vmem:[#allocation2 + $0x28] sm:$0xff] %v1365_v19 }
 0x12a   : > { %v1312_v21 = vpop.f32.mrf.mxu0 }
 0x12b   : > { %v1326_v22 = vpop.f32.mrf.mxu1 }
 0x12c   : > { %v1327_v23 = vadd.f32 %v1326_v22, %v1312_v21 }
 0x132   : > { %v1340_v24 = vpop.f32.mrf.mxu2  ;;  %v1314_v29 = vpop.f32.mrf.mxu0 }
 0x133   : > { %v1341_v25 = vadd.f32 %v1340_v24, %v1327_v23  ;;  %v1354_v26 = vpop.f32.mrf.mxu3  ;;  %v1328_v30 = vpop.f32.mrf.mxu1 }
 0x134   : > { %v1329_v33 = vadd.f32 %v1328_v30, %v1314_v29 }
 0x135   : > { %v1355_v28 = vadd.f32 %v1354_v26, %v1341_v25 }
 0x137   : > { %v1362_v32 = vadd.f32 %v1355_v28, %v338_v27 }
 0x139   : > { %1370 = vst [vmem:[#allocation2 + $0x10] sm:$0xff] %v1362_v32 }
 0x13a   : > { %v1342_v34 = vpop.f32.mrf.mxu2 }
 0x13b   : > { %v1343_v35 = vadd.f32 %v1342_v34, %v1329_v33  ;;  %v1356_v37 = vpop.f32.mrf.mxu3 }
 0x13d   : > { %v1357_v39 = vadd.f32 %v1356_v37, %v1343_v35  ;;  %1378 = sbr.rel (%p2100_p11) target bundleno = 344 (0x158), region = 71 }
 0x13f   : > { %v1366_v40 = vadd.f32 %v1357_v39, %v342_v36 }
 0x141   : > { %1374 = vst [vmem:[#allocation2 + $0x38] sm:$0xff] %v1366_v40 }
 0x142   : > { %v1379_v41 = vld [vmem:[#allocation2 + $0x30] sm:$0xff]  ;;  %v1380_v42 = vld [vmem:[#allocation2] sm:$0xff]  ;;  %v1381_v48 = vld [vmem:[#allocation2 + $0x18] sm:$0xff] }
 0x143   : > { %v1387_v43 = vld [vmem:[%s2742_s2] sm:$0xf]  ;;  %v1382_v49 = vld [vmem:[#allocation2 + $0x10] sm:$0xff]  ;;  %v1424_v50 = vld [vmem:[%s2744_s4 + $0x8] sm:$0xff] }
 0x144   : > { %v1389_v44 = vperm.slane %v1387_v43, 0  ;;  %v1390_v31 = vperm.slane %v1387_v43, 1  ;;  %v1405_v45 = vld [vmem:[%s2743_s3] sm:$0xf]  ;;  %v1391_v53 = vperm.slane %v1387_v43, 2  ;;  %v1392_v54 = vperm.slane %v1387_v43, 3 }
 0x145   : > { %v1423_v38 = vld [vmem:[%s2744_s4] sm:$0xff]  ;;  %v1407_v46 = vperm.slane %v1405_v45, 0  ;;  %v1408_v13 = vperm.slane %v1405_v45, 1  ;;  %v1383_v55 = vld [vmem:[#allocation2 + $0x8] sm:$0xff]  ;;  %v1425_v57 = vld [vmem:[%s2744_s4 + $0x10] sm:$0xff]  ;;  %v1409_v58 = vperm.slane %v1405_v45, 2  ;;  %v1429_v60 = vunpack.c.l.bf16 %v1424_v50 }
 0x146   : > { %v1427_v47 = vunpack.c.l.bf16 %v1423_v38  ;;  %v1428_v20 = vunpack.c.h.bf16 %v1423_v38  ;;  %v1397_v51 = vmul.f32 %v1389_v44, %v1379_v41  ;;  %v1398_v52 = vmul.f32 %v1390_v31, %v1380_v42  ;;  %v1384_v56 = vld [vmem:[#allocation2 + $0x20] sm:$0xff]  ;;  %v1385_v2 = vld [vmem:[#allocation2 + $0x28] sm:$0xff]  ;;  %v1426_v17 = vld [vmem:[%s2744_s4 + $0x18] sm:$0xff] }
 0x147   : > { %v1410_v59 = vperm.slane %v1405_v45, 3  ;;  %v1430_v61 = vunpack.c.h.bf16 %v1424_v50  ;;  %v1399_v0 = vmul.f32 %v1391_v53, %v1381_v48  ;;  %v1400_v1 = vmul.f32 %v1392_v54, %v1382_v49 }
 0x148   : > { %v1415_v62 = vadd.f32 %v1407_v46, %v1397_v51  ;;  %v1416_v63 = vadd.f32 %v1408_v13, %v1398_v52  ;;  %v1386_v3 = vld [vmem:[#allocation2 + $0x38] sm:$0xff]  ;;  %v1401_v4 = vmul.f32 %v1389_v44, %v1383_v55  ;;  %v1402_v5 = vmul.f32 %v1390_v31, %v1384_v56 }
 0x149   : > { %v1431_v6 = vunpack.c.l.bf16 %v1425_v57  ;;  %v1432_v7 = vunpack.c.h.bf16 %v1425_v57  ;;  %v1417_v10 = vadd.f32 %v1409_v58, %v1399_v0  ;;  %v1418_v11 = vadd.f32 %v1410_v59, %v1400_v1 }
 0x14a   : > { %v1435_v8 = vadd.f32 %v1427_v47, %v1415_v62  ;;  %v1436_v9 = vadd.f32 %v1428_v20, %v1416_v63  ;;  %v1419_v12 = vadd.f32 %v1407_v46, %v1401_v4  ;;  %v1420_v14 = vadd.f32 %v1408_v13, %v1402_v5 }
 0x14b   : > { %v1403_v15 = vmul.f32 %v1391_v53, %v1385_v2  ;;  %v1404_v16 = vmul.f32 %v1392_v54, %v1386_v3  ;;  %v1437_v21 = vadd.f32 %v1429_v60, %v1417_v10  ;;  %v1438_v22 = vadd.f32 %v1430_v61, %v1418_v11 }
 0x14c   : > { %v1443_v18 = vmax.f32 %v1435_v8, 0.0  ;;  %v1444_v19 = vmax.f32 %v1436_v9, 0.0  ;;  %v1439_v23 = vadd.f32 %v1431_v6, %v1419_v12  ;;  %v1440_v24 = vadd.f32 %v1432_v7, %v1420_v14 }
 0x14d   : > { %v1421_v25 = vadd.f32 %v1409_v58, %v1403_v15  ;;  %v1422_v26 = vadd.f32 %v1410_v59, %v1404_v16  ;;  %v1445_v28 = vmax.f32 %v1437_v21, 0.0  ;;  %v1446_v29 = vmax.f32 %v1438_v22, 0.0 }
 0x14e   : > { %v1451_v27 = vpack.c.bf16 %v1444_v19, %v1443_v18  ;;  %v1433_v30 = vunpack.c.l.bf16 %v1426_v17  ;;  %v1447_v32 = vmax.f32 %v1439_v23, 0.0  ;;  %v1448_v33 = vmax.f32 %v1440_v24, 0.0 }
 0x14f   : > { %v1434_v34 = vunpack.c.h.bf16 %v1426_v17  ;;  %v1452_v35 = vpack.c.bf16 %v1446_v29, %v1445_v28 }
 0x150   : > { %1455 = vst [vmem:[%s2745_s5] sm:$0xff] %v1451_v27  ;;  %v1441_v36 = vadd.f32 %v1433_v30, %v1421_v25  ;;  %v1453_v37 = vpack.c.bf16 %v1448_v33, %v1447_v32 }
 0x151   : > { %v1442_v39 = vadd.f32 %v1434_v34, %v1422_v26  ;;  %1456 = vst [vmem:[%s2745_s5 + $0x8] sm:$0xff] %v1452_v35 }
 0x152   : > { %v1449_v40 = vmax.f32 %v1441_v36, 0.0  ;;  %1457 = vst [vmem:[%s2745_s5 + $0x10] sm:$0xff] %v1453_v37 }
 0x153   : > { %v1450_v41 = vmax.f32 %v1442_v39, 0.0 }
 0x155   : > { %v1454_v42 = vpack.c.bf16 %v1450_v41, %v1449_v40 }
 0x157   : > { %1458 = vst [vmem:[%s2745_s5 + $0x18] sm:$0xff] %v1454_v42 }
 0x158 PF: > { %s15_s22 = sadd.s32 1, %s2318_s22   ;;  %s2746_s18 = smov %s2306_s19 }
 0x159   : > { %p12_p12 = scmp.ge.s32.totalorder %s15_s22, 11   ;;  %s2747_s19 = smov %s2386_s26 }
 0x15a   : > { %s2748_s20 = smov %s2314_s21  ;;  %s2749_s21 = smov %s2751_s23 }
 0x15b   :  { %14 = sbr.rel (!%p12_p12) target bundleno = 3 (0x3), region = 112 }

// kernel: _lambda_.27
= control target key start
LH: loop header
LB: loop body
LE: loop exit
PB: predicated region body
PF: predicated region fallthrough
CT: control target
= control target key end

     0   :  { %s731_s0 = inlined_call_operand.vmem [shape: bf16[2,1,512], index: 0, kind: input, shape index: {}]   ;;  %s732_s1 = inlined_call_operand.vmem [shape: bf16[512,128], index: 1, kind: input, shape index: {}]   ;;  %s733_s2 = inlined_call_operand.vmem [shape: f32[1,128], index: 2, kind: input, shape index: {}]   ;;  %s734_s3 = inlined_call_operand.hbm [shape: f32[2,128], index: 3, kind: output, shape index: {}]  }
   0x1   :  { %v544_v0 = vld [vmem:[%s732_s1 + $0x38] sm:$0xff]  ;;  %v543_v4 = vld [vmem:[%s732_s1 + $0x30] sm:$0xff]  ;;  %v542_v8 = vld [vmem:[%s732_s1 + $0x28] sm:$0xff] }
   0x2   :  { %v552_v1 = vld [vmem:[%s732_s1 + $0x78] sm:$0xff]  ;;  %340 = vmatpush.bf16.msra.mxu0 %v544_v0  ;;  %v551_v5 = vld [vmem:[%s732_s1 + $0x70] sm:$0xff]  ;;  %v550_v9 = vld [vmem:[%s732_s1 + $0x68] sm:$0xff] }
   0x3   :  { %v560_v2 = vld [vmem:[%s732_s1 + $0xb8] sm:$0xff]  ;;  %353 = vmatpush.bf16.msra.mxu1 %v552_v1  ;;  %v559_v6 = vld [vmem:[%s732_s1 + $0xb0] sm:$0xff]  ;;  %v558_v10 = vld [vmem:[%s732_s1 + $0xa8] sm:$0xff] }
   0x4   :  { %v568_v3 = vld [vmem:[%s732_s1 + $0xf8] sm:$0xff]  ;;  %366 = vmatpush.bf16.msra.mxu2 %v560_v2  ;;  %v567_v7 = vld [vmem:[%s732_s1 + $0xf0] sm:$0xff]  ;;  %v566_v11 = vld [vmem:[%s732_s1 + $0xe8] sm:$0xff] }
   0x5   :  { %379 = vmatpush.bf16.msra.mxu3 %v568_v3  ;;  %v541_v12 = vld [vmem:[%s732_s1 + $0x20] sm:$0xff] }
   0x6   :  { %341 = vmatpush.bf16.msra.mxu0 %v543_v4  ;;  %v549_v13 = vld [vmem:[%s732_s1 + $0x60] sm:$0xff] }
   0x7   :  { %354 = vmatpush.bf16.msra.mxu1 %v551_v5  ;;  %v557_v14 = vld [vmem:[%s732_s1 + $0xa0] sm:$0xff] }
   0x8   :  { %367 = vmatpush.bf16.msra.mxu2 %v559_v6  ;;  %v570_v15 = vld [vmem:[%s731_s0] sm:$0xff]  }
   0x9   :  { %380 = vmatpush.bf16.msra.mxu3 %v567_v7  ;;  %v565_v16 = vld [vmem:[%s732_s1 + $0xe0] sm:$0xff]  ;;  %v571_v17 = vunpack.c.l.bf16 %v570_v15  ;;  %v572_v18 = vunpack.c.h.bf16 %v570_v15 }
   0xa   :  { %342 = vmatpush.bf16.msra.mxu0 %v542_v8 }
   0xb   :  { %355 = vmatpush.bf16.msra.mxu1 %v550_v9 }
   0xc   :  { %368 = vmatpush.bf16.msra.mxu2 %v558_v10 }
   0xd   :  { %381 = vmatpush.bf16.msra.mxu3 %v566_v11 }
   0xe   :  { %8 = vsyncpa [#allocation3], 0  ;;  %v27_v19 = vperm.slane %v572_v18, 0  ;;  %v28_v20 = vperm.slane %v572_v18, 2  ;;  %343 = vmatpush.bf16.msra.mxu0 %v541_v12  ;;  %v540_v21 = vld [vmem:[%s732_s1 + $0x18] sm:$0xff]  ;;  %v23_v23 = vperm.slane %v571_v17, 0 }
   0xf   :  { %356 = vmatpush.bf16.msra.mxu1 %v549_v13  ;;  %v548_v22 = vld [vmem:[%s732_s1 + $0x58] sm:$0xff]  ;;  %v24_v24 = vperm.slane %v571_v17, 2  ;;  %v29_v25 = vperm.slane %v572_v18, 4  ;;  %v30_v26 = vperm.slane %v572_v18, 6  ;;  %v25_v30 = vperm.slane %v571_v17, 4  ;;  %v539_v35 = vld [vmem:[%s732_s1 + $0x10] sm:$0xff] }
  0x10   :  { %369 = vmatpush.bf16.msra.mxu2 %v557_v14  ;;  %v556_v27 = vld [vmem:[%s732_s1 + $0x98] sm:$0xff]  ;;  %v43_v29 = vpack.c.bf16 %v27_v19, %v27_v19  ;;  %v26_v31 = vperm.slane %v571_v17, 6  ;;  %v44_v32 = vpack.c.bf16 %v28_v20, %v28_v20  ;;  %v547_v36 = vld [vmem:[%s732_s1 + $0x50] sm:$0xff]  ;;  %v39_v37 = vpack.c.bf16 %v23_v23, %v23_v23  ;;  %v538_v47 = vld [vmem:[%s732_s1 + $0x8] sm:$0xff]  ;;  %s400_s27 = sshll.u32 %s734_s3, 4  ;;  %s401_s27 = int_to_ptr.hbm [resolvable:$true] %s400_s27 }
  0x11   :  { %382 = vmatpush.bf16.msra.mxu3 %v565_v16  ;;  %v564_v28 = vld [vmem:[%s732_s1 + $0xd8] sm:$0xff]  ;;  %v45_v33 = vpack.c.bf16 %v29_v25, %v29_v25  ;;  %v46_v34 = vpack.c.bf16 %v30_v26, %v30_v26  ;;  %v40_v39 = vpack.c.bf16 %v24_v24, %v24_v24  ;;  %v555_v41 = vld [vmem:[%s732_s1 + $0x90] sm:$0xff]  ;;  %v41_v43 = vpack.c.bf16 %v25_v30, %v25_v30  ;;  %v546_v48 = vld [vmem:[%s732_s1 + $0x48] sm:$0xff] }
  0x12   :  { %344 = vmatpush.bf16.msra.mxu0 %v540_v21  ;;  %v127_v38 = vunpack.c.l.b16 %v43_v29  ;;  %v128_v40 = vunpack.c.l.b16 %v44_v32  ;;  %v563_v42 = vld [vmem:[%s732_s1 + $0xd0] sm:$0xff]  ;;  %v42_v45 = vpack.c.bf16 %v26_v31, %v26_v31  ;;  %vm132_vm0 = vcmask 1041409   ;;  %v554_v53 = vld [vmem:[%s732_s1 + $0x88] sm:$0xff]  ;;  %v537_v59 = vld [vmem:[%s732_s1] sm:$0xff] }
  0x13   :  { %357 = vmatpush.bf16.msra.mxu1 %v548_v22  ;;  %v129_v44 = vunpack.c.l.b16 %v45_v33  ;;  %v130_v46 = vunpack.c.l.b16 %v46_v34  ;;  %v123_v49 = vunpack.c.l.b16 %v39_v37  ;;  %v124_v51 = vunpack.c.l.b16 %v40_v39  ;;  %v562_v54 = vld [vmem:[%s732_s1 + $0xc8] sm:$0xff]  ;;  %v545_v60 = vld [vmem:[%s732_s1 + $0x40] sm:$0xff] }
  0x14   :  { %370 = vmatpush.bf16.msra.mxu2 %v556_v27  ;;  %v131_v50 = vrot.slane %v127_v38, 7  ;;  %v134_v52 = vrot.slane %v128_v40, 7  ;;  %v125_v55 = vunpack.c.l.b16 %v41_v43  ;;  %v126_v57 = vunpack.c.l.b16 %v42_v45  ;;  %v553_v63 = vld [vmem:[%s732_s1 + $0x80] sm:$0xff] }
  0x15   :  { %383 = vmatpush.bf16.msra.mxu3 %v564_v28  ;;  %v136_v56 = vrot.slane %v129_v44, 7  ;;  %v138_v58 = vrot.slane %v130_v46, 7  ;;  %v561_v0 = vld [vmem:[%s732_s1 + $0xc0] sm:$0xff]  ;;  %s601_s1 = smov [#allocation2]  }
  0x16   :  { %345 = vmatpush.bf16.msra.mxu0 %v539_v35  ;;  %v133_v61 = vsel %vm132_vm0, %v131_v50, %v123_v49  ;;  %v135_v62 = vsel %vm132_vm0, %v134_v52, %v124_v51  ;;  %v574_v7 = vld [vmem:[%s733_s2] ss:$0 sm:$0xff]  ;;  %s398_s24 = sshll.u32 %s601_s1, 4  ;;  %s399_s24 = int_to_ptr.vmem [resolvable:$true] %s398_s24 }
  0x17   :  { %358 = vmatpush.bf16.msra.mxu1 %v547_v36  ;;  %v137_v1 = vsel %vm132_vm0, %v136_v56, %v125_v55  ;;  %v139_v2 = vsel %vm132_vm0, %v138_v58, %v126_v57  ;;  %v140_v3 = vpack.c.b16 %v133_v61, %v133_v61  ;;  %v141_v4 = vpack.c.b16 %v135_v62, %v135_v62 }
  0x18   :  { %371 = vmatpush.bf16.msra.mxu2 %v555_v41  ;;  %v142_v5 = vpack.c.b16 %v137_v1, %v137_v1  ;;  %v143_v6 = vpack.c.b16 %v139_v2, %v139_v2 }
  0x19   :  { %384 = vmatpush.bf16.msra.mxu3 %v563_v42 }
  0x1a   :  { %346 = vmatpush.bf16.msra.mxu0 %v538_v47 }
  0x1b   :  { %359 = vmatpush.bf16.msra.mxu1 %v546_v48 }
  0x1c   :  { %372 = vmatpush.bf16.msra.mxu2 %v554_v53 }
  0x1d   :  { %385 = vmatpush.bf16.msra.mxu3 %v562_v54 }
  0x1e   :  { %347 = vmatpush.bf16.msra.mxu0 %v537_v59 }
  0x1f   :  { %360 = vmatpush.bf16.msra.mxu1 %v545_v60 }
  0x20   :  { %373 = vmatpush.bf16.msra.mxu2 %v553_v63 }
  0x21   :  { %386 = vmatpush.bf16.msra.mxu3 %v561_v0  ;;  %348 = vmatmul.bf16.vlgmr.msra.gmra.mxu0 %v140_v3 }
  0x22   :  { %361 = vmatmul.bf16.vlgmr.msra.gmra.mxu1 %v141_v4 }
  0x23   :  { %374 = vmatmul.bf16.vlgmr.msra.gmra.mxu2 %v142_v5 }
  0x24   :  { %387 = vmatmul.bf16.vlgmr.msra.gmra.mxu3 %v143_v6 }
  0x9e   :  { %v349_v8 = vpop.f32.mrf.mxu0 }
  0x9f   :  { %v362_v9 = vpop.f32.mrf.mxu1  ;;  %v350_v10 = vadd.f32 %v574_v7, %v349_v8 }
  0xa1   :  { %v363_v11 = vadd.f32 %v362_v9, %v350_v10 }
  0xa6   :  { %v375_v12 = vpop.f32.mrf.mxu2  ;;  %v351_v15 = vpop.f32.mrf.mxu0 }
  0xa7   :  { %v388_v13 = vpop.f32.mrf.mxu3  ;;  %v376_v14 = vadd.f32 %v375_v12, %v363_v11  ;;  %v364_v16 = vpop.f32.mrf.mxu1 }
  0xa9   :  { %v389_v17 = vadd.f32 %v388_v13, %v376_v14 }
  0xab   :  { %392 = vst [vmem:[#allocation2] sm:$0x3] %v389_v17 }
  0xac   :  { %403 = dma.vmem_to_hbm [thread:$0]  %s399_s24, 32, %s401_s27, [#allocation3]  }
  0xae   :  { %v377_v18 = vpop.f32.mrf.mxu2 }
  0xaf   :  { %v390_v19 = vpop.f32.mrf.mxu3 }
  0xb0   :  { %599 = dma.done.wait [#allocation3], 32  }
  0xb1   :  { %600 = vsyncadd [#allocation3], 4294967264 }
  0xb2   :  { %408 = vsyncpa [#allocation3], 1 }

</bundles_post_ra>
